<compile_context>
chip_gen: v6e
topology: v6e:2x2x1
jax: 0.10.0
libtpu: 0.0.40
codegen_flags: <defaults>
</compile_context>

<pallas_src>
import functools
from collections import namedtuple

import numpy as np
import jax
import jax.numpy as jnp
from jax.experimental import pallas as pl
from jax.experimental.pallas import tpu as pltpu


_VMEM = pl.BlockSpec(memory_space=pltpu.MemorySpace.VMEM)


def _pad_to(n, m):
    return -(-n // m) * m


# ----------------------------------------------------------------------------
# Pallas kernels
# ----------------------------------------------------------------------------
def _mm_bias_act_kernel(x_ref, w_ref, b_ref, o_ref, *, act):
    """bf16 (im2col-)matmul on the MXU (f32 acc) + f32 bias + optional SiLU."""
    acc = jnp.dot(x_ref[...], w_ref[...], preferred_element_type=jnp.float32)
    acc = acc + b_ref[...]                       # bias broadcast over rows, f32
    if act:
        acc = acc * jax.nn.sigmoid(acc)          # SiLU in f32 (v5e has no bf16 VPU/EUP)
    o_ref[...] = acc.astype(o_ref.dtype)         # bf16 activation out


def _decode_score_kernel(pred_ref, const_ref, out_ref, *, num_classes, inv_img):
    """YOLO decode + sigmoid(obj)*softmax(cls); single lane-dense [N,128] output.

    pred_ref : [Np, 5+C]  bf16   cols = (tx ty tw th | obj | cls...)
    const_ref: [Np, 8]    f32    cols = (grid_x grid_y anchor_w anchor_h stride 0 0 0)
    out_ref  : [Np, 128]  f32    cols 0:4 = clipped x1y1x2y2, 4:4+C = scores
    """
    p = pred_ref[...].astype(jnp.float32)
    c = const_ref[...]
    txy = p[:, 0:2]
    twh = p[:, 2:4]
    obj = p[:, 4:5]
    cls = p[:, 5:5 + num_classes]
    grid = c[:, 0:2]
    anwh = c[:, 2:4]
    strd = c[:, 4:5]

    xy = (jax.nn.sigmoid(txy) + grid) * strd
    wh = jnp.exp(twh) * anwh
    x1y1 = jnp.clip((xy - 0.5 * wh) * inv_img, 0.0, 1.0)
    x2y2 = jnp.clip((xy + 0.5 * wh) * inv_img, 0.0, 1.0)

    obj_s = jax.nn.sigmoid(obj)
    cmax = jnp.max(cls, axis=-1, keepdims=True)
    e = jnp.exp(cls - cmax)
    scores = obj_s * (e / jnp.sum(e, axis=-1, keepdims=True))

    payload = jnp.concatenate([x1y1, x2y2, scores], axis=-1)       # [Np, 4+C]
    zpad = jnp.zeros((payload.shape[0], out_ref.shape[1] - payload.shape[1]),
                     jnp.float32)
    out_ref[...] = jnp.concatenate([payload, zpad], axis=-1)       # full-lane store


# ----------------------------------------------------------------------------
# Pallas wrappers
# ----------------------------------------------------------------------------
def pallas_matmul_bias_act(x, wp, bp, act, n_out):
    """x:[M,Kp] bf16 @ wp:[Kp,Np] bf16 + bp:[1,Np] f32 -> [M, n_out] bf16.

    Gridded over M ('parallel') so larger layers pipeline / split across TCs.
    Per-block VMEM stays tiny (<1 MiB) -> safe on v5e/v6e/v7x scoped limits.
    """
    M, Kp = x.shape
    Np = wp.shape[1]
    tm = 256 if M > 256 else _pad_to(M, 8)
    Mp = _pad_to(M, tm)
    if Mp != M:
        x = jnp.pad(x, ((0, Mp - M), (0, 0)))
    out = pl.pallas_call(
        functools.partial(_mm_bias_act_kernel, act=act),
        grid=(Mp // tm,),
        in_specs=[pl.BlockSpec((tm, Kp), lambda i: (i, 0)),
                  pl.BlockSpec((Kp, Np), lambda i: (0, 0)),
                  pl.BlockSpec((1, Np), lambda i: (0, 0))],
        out_specs=pl.BlockSpec((tm, Np), lambda i: (i, 0)),
        out_shape=jax.ShapeDtypeStruct((Mp, Np), jnp.bfloat16),
        compiler_params=pltpu.CompilerParams(
            dimension_semantics=("parallel",)),
    )(x, wp, bp)
    return out[:M, :n_out]


def pallas_decode_scores(pred_slab, const_slab, num_classes, img_size):
    Np = pred_slab.shape[0]
    return pl.pallas_call(
        functools.partial(_decode_score_kernel, num_classes=num_classes,
                          inv_img=1.0 / float(img_size)),
        out_shape=jax.ShapeDtypeStruct((Np, 128), jnp.float32),
        in_specs=[_VMEM, _VMEM],
        out_specs=_VMEM,
    )(pred_slab, const_slab)


# ----------------------------------------------------------------------------
# Conv / upsample glue (im2col + fused Pallas matmul)
# ----------------------------------------------------------------------------
ConvParam = namedtuple("ConvParam", ["wp", "bp", "kh", "kw", "cout"])


def _prep_matmul_weights(wm, b, kh, kw):
    """Pre-pad [K,cout] weights to bf16 [Kp,Np] and bias to f32 [1,Np] (once)."""
    K, cout = wm.shape
    Kp, Np = _pad_to(K, 128), _pad_to(cout, 128)
    wp = jnp.zeros((Kp, Np), jnp.bfloat16).at[:K, :cout].set(
        wm.astype(jnp.bfloat16))
    bp = jnp.zeros((1, Np), jnp.float32).at[0, :cout].set(b)
    return ConvParam(wp, bp, kh, kw, cout)


def conv2d(x, cp, stride, act):
    """x: [1,H,W,Cin] NHWC bf16; 'same' padding, given stride."""
    kh, kw = cp.kh, cp.kw
    H, W, cin = x.shape[1], x.shape[2], x.shape[3]
    Ho, Wo = H // stride, W // stride
    Kp = cp.wp.shape[0]
    if kh == 1 and kw == 1 and stride == 1:
        col = x.reshape(H * W, cin)
        if cin < Kp:
            col = jnp.pad(col, ((0, 0), (0, Kp - cin)))
    else:
        pad = kh // 2
        xp = jnp.pad(x, ((0, 0), (pad, pad), (pad, pad), (0, 0))) if pad else x
        patches = [xp[:, dy:dy + Ho * stride:stride,
                      dx:dx + Wo * stride:stride, :]
                   for dy in range(kh) for dx in range(kw)]
        K = kh * kw * cin
        if K < Kp:  # fold K-padding into the im2col concat (no extra HBM pass)
            patches.append(jnp.zeros((1, Ho, Wo, Kp - K), x.dtype))
        col = jnp.concatenate(patches, axis=-1).reshape(Ho * Wo, Kp)
    out = pallas_matmul_bias_act(col.astype(jnp.bfloat16), cp.wp, cp.bp,
                                 act, cp.cout)
    return out.reshape(1, Ho, Wo, cp.cout)


def upsample2(x):
    return jnp.repeat(jnp.repeat(x, 2, axis=1), 2, axis=2)


# ----------------------------------------------------------------------------
# YOLOv5 model (synthetic deterministic weights)
# ----------------------------------------------------------------------------
class YOLOv5Pallas:
    def __init__(self, img_size=64, num_classes=20,
                 conf_thresh=0.001, nms_thresh=0.6):
        self.img_size = img_size
        self.num_classes = num_classes
        self.conf_thresh = conf_thresh
        self.nms_thresh = nms_thresh
        self.strides = (8, 16, 32)
        self.num_anchors = 3

        # COCO anchors scaled from 640 -> img_size, reshaped (3 levels, 3, 2)
        anchor_size = [[10, 13], [16, 30], [33, 23],
                       [30, 61], [62, 45], [59, 119],
                       [116, 90], [156, 198], [373, 326]]
        self.anchor_size = (np.asarray(anchor_size, np.float32)
                            * (img_size / 640.0)).reshape(3, 3, 2)

        c3, c4, c5 = 32, 64, 128
        self.feat_dims = (c3, c4, c5)
        head_dim = 32
        self.head_dim = head_dim
        A, C = self.num_anchors, self.num_classes

        key = jax.random.PRNGKey(1)
        raw = {}

        def add(name, kh, kw, cin, cout):
            nonlocal key
            key, k = jax.random.split(key)
            raw[name] = (jax.random.normal(k, (kh, kw, cin, cout),
                                           jnp.float32) * 0.05,
                         jnp.zeros((cout,), jnp.float32))

        # backbone (stride-2 conv stack; outputs at strides 8/16/32)
        add('b0', 3, 3, 3, 8)
        add('b1', 3, 3, 8, 16)
        add('b2', 3, 3, 16, c3)
        add('b3', 3, 3, c3, c4)
        add('b4', 3, 3, c4, c5)
        # neck (top-down FPN)
        add('lat5', 1, 1, c5, c5)
        add('red5', 1, 1, c5, c4)
        add('lat4', 1, 1, c4, c4)
        add('smooth4', 3, 3, c4, c4)
        add('red4', 1, 1, c4, c3)
        add('lat3', 1, 1, c3, c3)
        add('smooth3', 3, 3, c3, c3)
        # decoupled head per level
        for i, di in enumerate((c3, c4, c5)):
            add(f'proj{i}', 1, 1, di, head_dim)
            add(f'clsconv{i}', 3, 3, head_dim, head_dim)
            add(f'regconv{i}', 3, 3, head_dim, head_dim)
            add(f'clspred{i}', 1, 1, head_dim, A * C)
            add(f'regpred{i}', 1, 1, head_dim, A * 4)
            add(f'objpred{i}', 1, 1, head_dim, A * 1)

        # ---- prepare fused / pre-padded bf16 weights (done once) -----------
        def prep(name):
            w, b = raw[name]
            kh, kw, cin, cout = w.shape
            return _prep_matmul_weights(w.reshape(kh * kw * cin, cout),
                                        b, kh, kw)

        self.params = {n: prep(n) for n in
                       ('b0', 'b1', 'b2', 'b3', 'b4',
                        'lat5', 'red5', 'lat4', 'smooth4', 'red4',
                        'lat3', 'smooth3')}
        for i in range(3):
            self.params[f'proj{i}'] = prep(f'proj{i}')
            # fuse cls/reg 3x3 branch convs (same input h) into one matmul
            wc, bc = raw[f'clsconv{i}']
            wr, br = raw[f'regconv{i}']
            wd = jnp.concatenate([wc, wr], axis=-1)        # [3,3,32,64]
            bd = jnp.concatenate([bc, br])
            self.params[f'dual{i}'] = _prep_matmul_weights(
                wd.reshape(9 * head_dim, 2 * head_dim), bd, 3, 3)
            # fuse cls/reg/obj 1x1 predictors into one block-diagonal matmul
            wcp, bcp = raw[f'clspred{i}']
            wrp, brp = raw[f'regpred{i}']
            wop, bop = raw[f'objpred{i}']
            Nf = A * C + A * 4 + A
            wm = jnp.zeros((2 * head_dim, Nf), jnp.float32)
            wm = wm.at[:head_dim, :A * C].set(wcp.reshape(head_dim, A * C))
            wm = wm.at[head_dim:, A * C:A * C + A * 4].set(
                wrp.reshape(head_dim, A * 4))
            wm = wm.at[head_dim:, A * C + A * 4:].set(wop.reshape(head_dim, A))
            bm = jnp.concatenate([bcp, brp, bop])
            self.params[f'pred{i}'] = _prep_matmul_weights(wm, bm, 1, 1)

        self._create_grid()
        self._fwd = jax.jit(self._forward)

    def _create_grid(self):
        rows = []
        for ind, s in enumerate(self.strides):
            fh = fw = self.img_size // s
            gy, gx = jnp.meshgrid(jnp.arange(fh), jnp.arange(fw), indexing='ij')
            gxy = jnp.stack([gx, gy], -1).reshape(-1, 2).astype(jnp.float32)
            gxy = jnp.repeat(gxy, self.num_anchors, axis=0)           # [HW*A,2]
            an = jnp.tile(jnp.asarray(self.anchor_size[ind], jnp.float32),
                          (fh * fw, 1))                               # [HW*A,2]
            st = jnp.full((fh * fw * self.num_anchors, 1), float(s),
                          jnp.float32)
            rows.append(jnp.concatenate([gxy, an, st], axis=-1))      # [HW*A,5]
        const = jnp.concatenate(rows, 0)
        self.num_preds = int(const.shape[0])
        self.num_preds_pad = _pad_to(self.num_preds, 8)
        self.const_slab = jnp.zeros((self.num_preds_pad, 8), jnp.float32
                                    ).at[:self.num_preds, :5].set(const)

    # inference_single_image (trainable=False path), device-side math only;
    # NMS/postprocess stays host-side (see below).
    def _forward(self, x_nchw):
        p = self.params
        A, C = self.num_anchors, self.num_classes
        x = jnp.transpose(x_nchw, (0, 2, 3, 1)).astype(jnp.bfloat16)  # NCHW->NHWC

        # backbone
        t = conv2d(x, p['b0'], 2, True)
        t = conv2d(t, p['b1'], 2, True)
        c3 = conv2d(t, p['b2'], 2, True)
        c4 = conv2d(c3, p['b3'], 2, True)
        c5 = conv2d(c4, p['b4'], 2, True)

        # neck (FPN)
        p5 = conv2d(c5, p['lat5'], 1, True)
        up5 = upsample2(conv2d(p5, p['red5'], 1, True))
        p4 = conv2d(conv2d(c4, p['lat4'], 1, True) + up5, p['smooth4'], 1, True)
        up4 = upsample2(conv2d(p4, p['red4'], 1, True))
        p3 = conv2d(conv2d(c3, p['lat3'], 1, True) + up4, p['smooth3'], 1, True)

        # decoupled head: proj -> fused(cls||reg) 3x3 -> fused(cls|reg|obj) 1x1
        reg_l, obj_l, cls_l = [], [], []
        for i, f in enumerate((p3, p4, p5)):
            h = conv2d(f, p[f'proj{i}'], 1, True)
            hd = conv2d(h, p[f'dual{i}'], 1, True)         # [..,2*head_dim]
            pr = conv2d(hd, p[f'pred{i}'], 1, False)       # [.., A*C+4A+A]
            hw = pr.shape[1] * pr.shape[2]
            pr = pr.reshape(hw, A * C + 4 * A + A)
            cls_l.append(pr[:, :A * C].reshape(hw * A, C))
            reg_l.append(pr[:, A * C:A * C + 4 * A].reshape(hw * A, 4))
            obj_l.append(pr[:, A * C + 4 * A:].reshape(hw * A, 1))

        # pack (reg | obj | cls) into one slab, decode+score in one kernel
        pred_all = jnp.concatenate(
            [jnp.concatenate(reg_l, 0), jnp.concatenate(obj_l, 0),
             jnp.concatenate(cls_l, 0)], axis=-1)           # [N, 5+C] bf16
        pred_slab = jnp.pad(
            pred_all, ((0, self.num_preds_pad - self.num_preds), (0, 0)))

        out = pallas_decode_scores(pred_slab, self.const_slab, C, self.img_size)
        bboxes = out[:self.num_preds, 0:4]
        scores = out[:self.num_preds, 4:4 + C]
        return bboxes, scores

    def __call__(self, x_nchw):
        return self._fwd(x_nchw)

    # ---------------- host-side postprocess (mirrors the PyTorch module) ----
    def nms(self, dets, scores):
        x1, y1, x2, y2 = dets[:, 0], dets[:, 1], dets[:, 2], dets[:, 3]
        areas = (x2 - x1) * (y2 - y1)
        order = scores.argsort()[::-1]
        keep = []
        while order.size > 0:
            i = order[0]
            keep.append(i)
            xx1 = np.maximum(x1[i], x1[order[1:]])
            yy1 = np.maximum(y1[i], y1[order[1:]])
            xx2 = np.minimum(x2[i], x2[order[1:]])
            yy2 = np.minimum(y2[i], y2[order[1:]])
            w = np.maximum(1e-28, xx2 - xx1)
            h = np.maximum(1e-28, yy2 - yy1)
            inter = w * h
            ovr = inter / (areas[i] + areas[order[1:]] - inter + 1e-14)
            inds = np.where(ovr <= self.nms_thresh)[0]
            order = order[inds + 1]
        return keep

    def postprocess(self, bboxes, scores):
        cls_inds = np.argmax(scores, axis=1)
        scores = scores[np.arange(scores.shape[0]), cls_inds]
        keep = np.where(scores >= self.conf_thresh)
        bboxes, scores, cls_inds = bboxes[keep], scores[keep], cls_inds[keep]
        keep = np.zeros(len(bboxes), dtype=np.int32)
        for i in range(self.num_classes):
            inds = np.where(cls_inds == i)[0]
            if len(inds) == 0:
                continue
            c_keep = self.nms(bboxes[inds], scores[inds])
            keep[inds[c_keep]] = 1
        keep = np.where(keep > 0)
        return bboxes[keep], scores[keep], cls_inds[keep]


# ----------------------------------------------------------------------------
if __name__ == "__main__":
    key = jax.random.PRNGKey(0)
    # small, forward-consistent shapes: batch=1 (inference path), RGB, 64x64
    x = jax.random.normal(key, (1, 3, 64, 64), jnp.float32)     # NCHW like torch

    model = YOLOv5Pallas(img_size=64, num_classes=20)
    bboxes, scores = model(x)
    jax.block_until_ready((bboxes, scores))

    # host-side postprocess / NMS (identical structure to the PyTorch module)
    b, s, c = model.postprocess(np.asarray(bboxes), np.asarray(scores))
    assert bboxes.shape == (252, 4) and scores.shape == (252, 20)
    print("KERNEL_OK")
</pallas_src>

<mosaic_0001>
module attributes {stable_mosaic.version = 11 : i64} {
  func.func @_mm_bias_act_kernel(%arg0: i32, %arg1: memref<256x128xbf16, #tpu.memory_space<vmem>>, %arg2: memref<128x128xbf16, #tpu.memory_space<vmem>>, %arg3: memref<1x128xf32, #tpu.memory_space<vmem>>, %arg4: memref<256x128xbf16, #tpu.memory_space<vmem>>) attributes {dimension_semantics = [#tpu.dimension_semantics<parallel>], iteration_bounds = array<i64: 4>, scalar_prefetch = 0 : i64, scratch_operands = 0 : i64, tpu.core_type = #tpu.core_type<tc>, window_params = [{transform_indices = @transform_0, window_bounds = array<i64: 256, 128>}, {pipeline_mode = #tpu.pipeline_mode<synchronous>, transform_indices = @transform_1, window_bounds = array<i64: 128, 128>}, {pipeline_mode = #tpu.pipeline_mode<synchronous>, transform_indices = @transform_2, window_bounds = array<i64: 1, 128>}, {transform_indices = @transform_3, window_bounds = array<i64: 256, 128>}]} {
    %c0 = arith.constant 0 : index
    %c0_0 = arith.constant 0 : index
    %0 = vector.load %arg1[%c0, %c0_0] : memref<256x128xbf16, #tpu.memory_space<vmem>>, vector<256x128xbf16>
    %c0_1 = arith.constant 0 : index
    %c0_2 = arith.constant 0 : index
    %1 = vector.load %arg2[%c0_1, %c0_2] : memref<128x128xbf16, #tpu.memory_space<vmem>>, vector<128x128xbf16>
    %cst = arith.constant dense<0.000000e+00> : vector<256x128xf32>
    %2 = tpu.matmul %0, %1, %cst {dimension_numbers = #tpu.dot_dimension_numbers<[1], [0], [0], [1], [0, 0, 1, 1], [], []>} : vector<256x128xbf16>, vector<128x128xbf16>, vector<256x128xf32> -> vector<256x128xf32>
    %c0_3 = arith.constant 0 : index
    %c0_4 = arith.constant 0 : index
    %3 = vector.load %arg3[%c0_3, %c0_4] : memref<1x128xf32, #tpu.memory_space<vmem>>, vector<1x128xf32>
    %4 = vector.broadcast %3 : vector<1x128xf32> to vector<256x128xf32>
    %5 = arith.addf %2, %4 : vector<256x128xf32>
    %6 = arith.negf %5 : vector<256x128xf32>
    %7 = math.exp %6 : vector<256x128xf32>
    %cst_5 = arith.constant 1.000000e+00 : f32
    %8 = vector.broadcast %cst_5 : f32 to vector<256x128xf32>
    %9 = arith.addf %8, %7 : vector<256x128xf32>
    %10 = arith.divf %8, %9 : vector<256x128xf32>
    %11 = arith.mulf %5, %10 : vector<256x128xf32>
    %12 = arith.truncf %11 : vector<256x128xf32> to vector<256x128xbf16>
    %c0_6 = arith.constant 0 : index
    %c0_7 = arith.constant 0 : index
    %13 = vector.load %arg4[%c0_6, %c0_7] : memref<256x128xbf16, #tpu.memory_space<vmem>>, vector<256x128xbf16>
    tpu.vector_store %arg4[%c0_6, %c0_7], %12 {strides = array<i32>} : memref<256x128xbf16, #tpu.memory_space<vmem>>, vector<256x128xbf16>,
    return
  }
  func.func @transform_0(%arg0: i32) -> (i32, i32) {
    %c0_i32 = arith.constant 0 : i32
    %c0_i32_0 = arith.constant 0 : i32
    return %arg0, %c0_i32 : i32, i32
  }
  func.func @transform_1(%arg0: i32) -> (i32, i32) {
    %c0_i32 = arith.constant 0 : i32
    %c0_i32_0 = arith.constant 0 : i32
    %c0_i32_1 = arith.constant 0 : i32
    return %c0_i32, %c0_i32_0 : i32, i32
  }
  func.func @transform_2(%arg0: i32) -> (i32, i32) {
    %c0_i32 = arith.constant 0 : i32
    %c0_i32_0 = arith.constant 0 : i32
    %c0_i32_1 = arith.constant 0 : i32
    return %c0_i32, %c0_i32_0 : i32, i32
  }
  func.func @transform_3(%arg0: i32) -> (i32, i32) {
    %c0_i32 = arith.constant 0 : i32
    %c0_i32_0 = arith.constant 0 : i32
    return %arg0, %c0_i32 : i32, i32
  }
}

module attributes {stable_mosaic.version = 11 : i64} {
  func.func @_mm_bias_act_kernel(%arg0: i32, %arg1: memref<256x128xbf16, #tpu.memory_space<vmem>>, %arg2: memref<128x128xbf16, #tpu.memory_space<vmem>>, %arg3: memref<1x128xf32, #tpu.memory_space<vmem>>, %arg4: memref<256x128xbf16, #tpu.memory_space<vmem>>) attributes {dimension_semantics = [#tpu.dimension_semantics<parallel>], iteration_bounds = array<i64: 1>, scalar_prefetch = 0 : i64, scratch_operands = 0 : i64, tpu.core_type = #tpu.core_type<tc>, window_params = [{transform_indices = @transform_0, window_bounds = array<i64: 256, 128>}, {pipeline_mode = #tpu.pipeline_mode<synchronous>, transform_indices = @transform_1, window_bounds = array<i64: 128, 128>}, {pipeline_mode = #tpu.pipeline_mode<synchronous>, transform_indices = @transform_2, window_bounds = array<i64: 1, 128>}, {transform_indices = @transform_3, window_bounds = array<i64: 256, 128>}]} {
    %c0 = arith.constant 0 : index
    %c0_0 = arith.constant 0 : index
    %0 = vector.load %arg1[%c0, %c0_0] : memref<256x128xbf16, #tpu.memory_space<vmem>>, vector<256x128xbf16>
    %c0_1 = arith.constant 0 : index
    %c0_2 = arith.constant 0 : index
    %1 = vector.load %arg2[%c0_1, %c0_2] : memref<128x128xbf16, #tpu.memory_space<vmem>>, vector<128x128xbf16>
    %cst = arith.constant dense<0.000000e+00> : vector<256x128xf32>
    %2 = tpu.matmul %0, %1, %cst {dimension_numbers = #tpu.dot_dimension_numbers<[1], [0], [0], [1], [0, 0, 1, 1], [], []>} : vector<256x128xbf16>, vector<128x128xbf16>, vector<256x128xf32> -> vector<256x128xf32>
    %c0_3 = arith.constant 0 : index
    %c0_4 = arith.constant 0 : index
    %3 = vector.load %arg3[%c0_3, %c0_4] : memref<1x128xf32, #tpu.memory_space<vmem>>, vector<1x128xf32>
    %4 = vector.broadcast %3 : vector<1x128xf32> to vector<256x128xf32>
    %5 = arith.addf %2, %4 : vector<256x128xf32>
    %6 = arith.negf %5 : vector<256x128xf32>
    %7 = math.exp %6 : vector<256x128xf32>
    %cst_5 = arith.constant 1.000000e+00 : f32
    %8 = vector.broadcast %cst_5 : f32 to vector<256x128xf32>
    %9 = arith.addf %8, %7 : vector<256x128xf32>
    %10 = arith.divf %8, %9 : vector<256x128xf32>
    %11 = arith.mulf %5, %10 : vector<256x128xf32>
    %12 = arith.truncf %11 : vector<256x128xf32> to vector<256x128xbf16>
    %c0_6 = arith.constant 0 : index
    %c0_7 = arith.constant 0 : index
    %13 = vector.load %arg4[%c0_6, %c0_7] : memref<256x128xbf16, #tpu.memory_space<vmem>>, vector<256x128xbf16>
    tpu.vector_store %arg4[%c0_6, %c0_7], %12 {strides = array<i32>} : memref<256x128xbf16, #tpu.memory_space<vmem>>, vector<256x128xbf16>,
    return
  }
  func.func @transform_0(%arg0: i32) -> (i32, i32) {
    %c0_i32 = arith.constant 0 : i32
    %c0_i32_0 = arith.constant 0 : i32
    return %arg0, %c0_i32 : i32, i32
  }
  func.func @transform_1(%arg0: i32) -> (i32, i32) {
    %c0_i32 = arith.constant 0 : i32
    %c0_i32_0 = arith.constant 0 : i32
    %c0_i32_1 = arith.constant 0 : i32
    return %c0_i32, %c0_i32_0 : i32, i32
  }
  func.func @transform_2(%arg0: i32) -> (i32, i32) {
    %c0_i32 = arith.constant 0 : i32
    %c0_i32_0 = arith.constant 0 : i32
    %c0_i32_1 = arith.constant 0 : i32
    return %c0_i32, %c0_i32_0 : i32, i32
  }
  func.func @transform_3(%arg0: i32) -> (i32, i32) {
    %c0_i32 = arith.constant 0 : i32
    %c0_i32_0 = arith.constant 0 : i32
    return %arg0, %c0_i32 : i32, i32
  }
}

module attributes {stable_mosaic.version = 11 : i64} {
  func.func @_mm_bias_act_kernel(%arg0: i32, %arg1: memref<64x256xbf16, #tpu.memory_space<vmem>>, %arg2: memref<256x128xbf16, #tpu.memory_space<vmem>>, %arg3: memref<1x128xf32, #tpu.memory_space<vmem>>, %arg4: memref<64x128xbf16, #tpu.memory_space<vmem>>) attributes {dimension_semantics = [#tpu.dimension_semantics<parallel>], iteration_bounds = array<i64: 1>, scalar_prefetch = 0 : i64, scratch_operands = 0 : i64, tpu.core_type = #tpu.core_type<tc>, window_params = [{transform_indices = @transform_0, window_bounds = array<i64: 64, 256>}, {pipeline_mode = #tpu.pipeline_mode<synchronous>, transform_indices = @transform_1, window_bounds = array<i64: 256, 128>}, {pipeline_mode = #tpu.pipeline_mode<synchronous>, transform_indices = @transform_2, window_bounds = array<i64: 1, 128>}, {transform_indices = @transform_3, window_bounds = array<i64: 64, 128>}]} {
    %c0 = arith.constant 0 : index
    %c0_0 = arith.constant 0 : index
    %0 = vector.load %arg1[%c0, %c0_0] : memref<64x256xbf16, #tpu.memory_space<vmem>>, vector<64x256xbf16>
    %c0_1 = arith.constant 0 : index
    %c0_2 = arith.constant 0 : index
    %1 = vector.load %arg2[%c0_1, %c0_2] : memref<256x128xbf16, #tpu.memory_space<vmem>>, vector<256x128xbf16>
    %cst = arith.constant dense<0.000000e+00> : vector<64x128xf32>
    %2 = tpu.matmul %0, %1, %cst {dimension_numbers = #tpu.dot_dimension_numbers<[1], [0], [0], [1], [0, 0, 1, 1], [], []>} : vector<64x256xbf16>, vector<256x128xbf16>, vector<64x128xf32> -> vector<64x128xf32>
    %c0_3 = arith.constant 0 : index
    %c0_4 = arith.constant 0 : index
    %3 = vector.load %arg3[%c0_3, %c0_4] : memref<1x128xf32, #tpu.memory_space<vmem>>, vector<1x128xf32>
    %4 = vector.broadcast %3 : vector<1x128xf32> to vector<64x128xf32>
    %5 = arith.addf %2, %4 : vector<64x128xf32>
    %6 = arith.negf %5 : vector<64x128xf32>
    %7 = math.exp %6 : vector<64x128xf32>
    %cst_5 = arith.constant 1.000000e+00 : f32
    %8 = vector.broadcast %cst_5 : f32 to vector<64x128xf32>
    %9 = arith.addf %8, %7 : vector<64x128xf32>
    %10 = arith.divf %8, %9 : vector<64x128xf32>
    %11 = arith.mulf %5, %10 : vector<64x128xf32>
    %12 = arith.truncf %11 : vector<64x128xf32> to vector<64x128xbf16>
    %c0_6 = arith.constant 0 : index
    %c0_7 = arith.constant 0 : index
    %13 = vector.load %arg4[%c0_6, %c0_7] : memref<64x128xbf16, #tpu.memory_space<vmem>>, vector<64x128xbf16>
    tpu.vector_store %arg4[%c0_6, %c0_7], %12 {strides = array<i32>} : memref<64x128xbf16, #tpu.memory_space<vmem>>, vector<64x128xbf16>,
    return
  }
  func.func @transform_0(%arg0: i32) -> (i32, i32) {
    %c0_i32 = arith.constant 0 : i32
    %c0_i32_0 = arith.constant 0 : i32
    return %arg0, %c0_i32 : i32, i32
  }
  func.func @transform_1(%arg0: i32) -> (i32, i32) {
    %c0_i32 = arith.constant 0 : i32
    %c0_i32_0 = arith.constant 0 : i32
    %c0_i32_1 = arith.constant 0 : i32
    return %c0_i32, %c0_i32_0 : i32, i32
  }
  func.func @transform_2(%arg0: i32) -> (i32, i32) {
    %c0_i32 = arith.constant 0 : i32
    %c0_i32_0 = arith.constant 0 : i32
    %c0_i32_1 = arith.constant 0 : i32
    return %c0_i32, %c0_i32_0 : i32, i32
  }
  func.func @transform_3(%arg0: i32) -> (i32, i32) {
    %c0_i32 = arith.constant 0 : i32
    %c0_i32_0 = arith.constant 0 : i32
    return %arg0, %c0_i32 : i32, i32
  }
}

module attributes {stable_mosaic.version = 11 : i64} {
  func.func @_mm_bias_act_kernel(%arg0: i32, %arg1: memref<16x384xbf16, #tpu.memory_space<vmem>>, %arg2: memref<384x128xbf16, #tpu.memory_space<vmem>>, %arg3: memref<1x128xf32, #tpu.memory_space<vmem>>, %arg4: memref<16x128xbf16, #tpu.memory_space<vmem>>) attributes {dimension_semantics = [#tpu.dimension_semantics<parallel>], iteration_bounds = array<i64: 1>, scalar_prefetch = 0 : i64, scratch_operands = 0 : i64, tpu.core_type = #tpu.core_type<tc>, window_params = [{transform_indices = @transform_0, window_bounds = array<i64: 16, 384>}, {pipeline_mode = #tpu.pipeline_mode<synchronous>, transform_indices = @transform_1, window_bounds = array<i64: 384, 128>}, {pipeline_mode = #tpu.pipeline_mode<synchronous>, transform_indices = @transform_2, window_bounds = array<i64: 1, 128>}, {transform_indices = @transform_3, window_bounds = array<i64: 16, 128>}]} {
    %c0 = arith.constant 0 : index
    %c0_0 = arith.constant 0 : index
    %0 = vector.load %arg1[%c0, %c0_0] : memref<16x384xbf16, #tpu.memory_space<vmem>>, vector<16x384xbf16>
    %c0_1 = arith.constant 0 : index
    %c0_2 = arith.constant 0 : index
    %1 = vector.load %arg2[%c0_1, %c0_2] : memref<384x128xbf16, #tpu.memory_space<vmem>>, vector<384x128xbf16>
    %cst = arith.constant dense<0.000000e+00> : vector<16x128xf32>
    %2 = tpu.matmul %0, %1, %cst {dimension_numbers = #tpu.dot_dimension_numbers<[1], [0], [0], [1], [0, 0, 1, 1], [], []>} : vector<16x384xbf16>, vector<384x128xbf16>, vector<16x128xf32> -> vector<16x128xf32>
    %c0_3 = arith.constant 0 : index
    %c0_4 = arith.constant 0 : index
    %3 = vector.load %arg3[%c0_3, %c0_4] : memref<1x128xf32, #tpu.memory_space<vmem>>, vector<1x128xf32>
    %4 = vector.broadcast %3 : vector<1x128xf32> to vector<16x128xf32>
    %5 = arith.addf %2, %4 : vector<16x128xf32>
    %6 = arith.negf %5 : vector<16x128xf32>
    %7 = math.exp %6 : vector<16x128xf32>
    %cst_5 = arith.constant 1.000000e+00 : f32
    %8 = vector.broadcast %cst_5 : f32 to vector<16x128xf32>
    %9 = arith.addf %8, %7 : vector<16x128xf32>
    %10 = arith.divf %8, %9 : vector<16x128xf32>
    %11 = arith.mulf %5, %10 : vector<16x128xf32>
    %12 = arith.truncf %11 : vector<16x128xf32> to vector<16x128xbf16>
    %c0_6 = arith.constant 0 : index
    %c0_7 = arith.constant 0 : index
    %13 = vector.load %arg4[%c0_6, %c0_7] : memref<16x128xbf16, #tpu.memory_space<vmem>>, vector<16x128xbf16>
    tpu.vector_store %arg4[%c0_6, %c0_7], %12 {strides = array<i32>} : memref<16x128xbf16, #tpu.memory_space<vmem>>, vector<16x128xbf16>,
    return
  }
  func.func @transform_0(%arg0: i32) -> (i32, i32) {
    %c0_i32 = arith.constant 0 : i32
    %c0_i32_0 = arith.constant 0 : i32
    return %arg0, %c0_i32 : i32, i32
  }
  func.func @transform_1(%arg0: i32) -> (i32, i32) {
    %c0_i32 = arith.constant 0 : i32
    %c0_i32_0 = arith.constant 0 : i32
    %c0_i32_1 = arith.constant 0 : i32
    return %c0_i32, %c0_i32_0 : i32, i32
  }
  func.func @transform_2(%arg0: i32) -> (i32, i32) {
    %c0_i32 = arith.constant 0 : i32
    %c0_i32_0 = arith.constant 0 : i32
    %c0_i32_1 = arith.constant 0 : i32
    return %c0_i32, %c0_i32_0 : i32, i32
  }
  func.func @transform_3(%arg0: i32) -> (i32, i32) {
    %c0_i32 = arith.constant 0 : i32
    %c0_i32_0 = arith.constant 0 : i32
    return %arg0, %c0_i32 : i32, i32
  }
}

module attributes {stable_mosaic.version = 11 : i64} {
  func.func @_mm_bias_act_kernel(%arg0: i32, %arg1: memref<8x640xbf16, #tpu.memory_space<vmem>>, %arg2: memref<640x128xbf16, #tpu.memory_space<vmem>>, %arg3: memref<1x128xf32, #tpu.memory_space<vmem>>, %arg4: memref<8x128xbf16, #tpu.memory_space<vmem>>) attributes {dimension_semantics = [#tpu.dimension_semantics<parallel>], iteration_bounds = array<i64: 1>, scalar_prefetch = 0 : i64, scratch_operands = 0 : i64, tpu.core_type = #tpu.core_type<tc>, window_params = [{transform_indices = @transform_0, window_bounds = array<i64: 8, 640>}, {pipeline_mode = #tpu.pipeline_mode<synchronous>, transform_indices = @transform_1, window_bounds = array<i64: 640, 128>}, {pipeline_mode = #tpu.pipeline_mode<synchronous>, transform_indices = @transform_2, window_bounds = array<i64: 1, 128>}, {transform_indices = @transform_3, window_bounds = array<i64: 8, 128>}]} {
    %c0 = arith.constant 0 : index
    %c0_0 = arith.constant 0 : index
    %0 = vector.load %arg1[%c0, %c0_0] : memref<8x640xbf16, #tpu.memory_space<vmem>>, vector<8x640xbf16>
    %c0_1 = arith.constant 0 : index
    %c0_2 = arith.constant 0 : index
    %1 = vector.load %arg2[%c0_1, %c0_2] : memref<640x128xbf16, #tpu.memory_space<vmem>>, vector<640x128xbf16>
    %cst = arith.constant dense<0.000000e+00> : vector<8x128xf32>
    %2 = tpu.matmul %0, %1, %cst {dimension_numbers = #tpu.dot_dimension_numbers<[1], [0], [0], [1], [0, 0, 1, 1], [], []>} : vector<8x640xbf16>, vector<640x128xbf16>, vector<8x128xf32> -> vector<8x128xf32>
    %c0_3 = arith.constant 0 : index
    %c0_4 = arith.constant 0 : index
    %3 = vector.load %arg3[%c0_3, %c0_4] : memref<1x128xf32, #tpu.memory_space<vmem>>, vector<1x128xf32>
    %4 = vector.broadcast %3 : vector<1x128xf32> to vector<8x128xf32>
    %5 = arith.addf %2, %4 : vector<8x128xf32>
    %6 = arith.negf %5 : vector<8x128xf32>
    %7 = math.exp %6 : vector<8x128xf32>
    %cst_5 = arith.constant 1.000000e+00 : f32
    %8 = vector.broadcast %cst_5 : f32 to vector<8x128xf32>
    %9 = arith.addf %8, %7 : vector<8x128xf32>
    %10 = arith.divf %8, %9 : vector<8x128xf32>
    %11 = arith.mulf %5, %10 : vector<8x128xf32>
    %12 = arith.truncf %11 : vector<8x128xf32> to vector<8x128xbf16>
    %c0_6 = arith.constant 0 : index
    %c0_7 = arith.constant 0 : index
    %13 = vector.load %arg4[%c0_6, %c0_7] : memref<8x128xbf16, #tpu.memory_space<vmem>>, vector<8x128xbf16>
    tpu.vector_store %arg4[%c0_6, %c0_7], %12 {strides = array<i32>} : memref<8x128xbf16, #tpu.memory_space<vmem>>, vector<8x128xbf16>,
    return
  }
  func.func @transform_0(%arg0: i32) -> (i32, i32) {
    %c0_i32 = arith.constant 0 : i32
    %c0_i32_0 = arith.constant 0 : i32
    return %arg0, %c0_i32 : i32, i32
  }
  func.func @transform_1(%arg0: i32) -> (i32, i32) {
    %c0_i32 = arith.constant 0 : i32
    %c0_i32_0 = arith.constant 0 : i32
    %c0_i32_1 = arith.constant 0 : i32
    return %c0_i32, %c0_i32_0 : i32, i32
  }
  func.func @transform_2(%arg0: i32) -> (i32, i32) {
    %c0_i32 = arith.constant 0 : i32
    %c0_i32_0 = arith.constant 0 : i32
    %c0_i32_1 = arith.constant 0 : i32
    return %c0_i32, %c0_i32_0 : i32, i32
  }
  func.func @transform_3(%arg0: i32) -> (i32, i32) {
    %c0_i32 = arith.constant 0 : i32
    %c0_i32_0 = arith.constant 0 : i32
    return %arg0, %c0_i32 : i32, i32
  }
}

module attributes {stable_mosaic.version = 11 : i64} {
  func.func @_mm_bias_act_kernel(%arg0: i32, %arg1: memref<8x128xbf16, #tpu.memory_space<vmem>>, %arg2: memref<128x128xbf16, #tpu.memory_space<vmem>>, %arg3: memref<1x128xf32, #tpu.memory_space<vmem>>, %arg4: memref<8x128xbf16, #tpu.memory_space<vmem>>) attributes {dimension_semantics = [#tpu.dimension_semantics<parallel>], iteration_bounds = array<i64: 1>, scalar_prefetch = 0 : i64, scratch_operands = 0 : i64, tpu.core_type = #tpu.core_type<tc>, window_params = [{transform_indices = @transform_0, window_bounds = array<i64: 8, 128>}, {pipeline_mode = #tpu.pipeline_mode<synchronous>, transform_indices = @transform_1, window_bounds = array<i64: 128, 128>}, {pipeline_mode = #tpu.pipeline_mode<synchronous>, transform_indices = @transform_2, window_bounds = array<i64: 1, 128>}, {transform_indices = @transform_3, window_bounds = array<i64: 8, 128>}]} {
    %c0 = arith.constant 0 : index
    %c0_0 = arith.constant 0 : index
    %0 = vector.load %arg1[%c0, %c0_0] : memref<8x128xbf16, #tpu.memory_space<vmem>>, vector<8x128xbf16>
    %c0_1 = arith.constant 0 : index
    %c0_2 = arith.constant 0 : index
    %1 = vector.load %arg2[%c0_1, %c0_2] : memref<128x128xbf16, #tpu.memory_space<vmem>>, vector<128x128xbf16>
    %cst = arith.constant dense<0.000000e+00> : vector<8x128xf32>
    %2 = tpu.matmul %0, %1, %cst {dimension_numbers = #tpu.dot_dimension_numbers<[1], [0], [0], [1], [0, 0, 1, 1], [], []>} : vector<8x128xbf16>, vector<128x128xbf16>, vector<8x128xf32> -> vector<8x128xf32>
    %c0_3 = arith.constant 0 : index
    %c0_4 = arith.constant 0 : index
    %3 = vector.load %arg3[%c0_3, %c0_4] : memref<1x128xf32, #tpu.memory_space<vmem>>, vector<1x128xf32>
    %4 = vector.broadcast %3 : vector<1x128xf32> to vector<8x128xf32>
    %5 = arith.addf %2, %4 : vector<8x128xf32>
    %6 = arith.negf %5 : vector<8x128xf32>
    %7 = math.exp %6 : vector<8x128xf32>
    %cst_5 = arith.constant 1.000000e+00 : f32
    %8 = vector.broadcast %cst_5 : f32 to vector<8x128xf32>
    %9 = arith.addf %8, %7 : vector<8x128xf32>
    %10 = arith.divf %8, %9 : vector<8x128xf32>
    %11 = arith.mulf %5, %10 : vector<8x128xf32>
    %12 = arith.truncf %11 : vector<8x128xf32> to vector<8x128xbf16>
    %c0_6 = arith.constant 0 : index
    %c0_7 = arith.constant 0 : index
    %13 = vector.load %arg4[%c0_6, %c0_7] : memref<8x128xbf16, #tpu.memory_space<vmem>>, vector<8x128xbf16>
    tpu.vector_store %arg4[%c0_6, %c0_7], %12 {strides = array<i32>} : memref<8x128xbf16, #tpu.memory_space<vmem>>, vector<8x128xbf16>,
    return
  }
  func.func @transform_0(%arg0: i32) -> (i32, i32) {
    %c0_i32 = arith.constant 0 : i32
    %c0_i32_0 = arith.constant 0 : i32
    return %arg0, %c0_i32 : i32, i32
  }
  func.func @transform_1(%arg0: i32) -> (i32, i32) {
    %c0_i32 = arith.constant 0 : i32
    %c0_i32_0 = arith.constant 0 : i32
    %c0_i32_1 = arith.constant 0 : i32
    return %c0_i32, %c0_i32_0 : i32, i32
  }
  func.func @transform_2(%arg0: i32) -> (i32, i32) {
    %c0_i32 = arith.constant 0 : i32
    %c0_i32_0 = arith.constant 0 : i32
    %c0_i32_1 = arith.constant 0 : i32
    return %c0_i32, %c0_i32_0 : i32, i32
  }
  func.func @transform_3(%arg0: i32) -> (i32, i32) {
    %c0_i32 = arith.constant 0 : i32
    %c0_i32_0 = arith.constant 0 : i32
    return %arg0, %c0_i32 : i32, i32
  }
}

module attributes {stable_mosaic.version = 11 : i64} {
  func.func @_mm_bias_act_kernel(%arg0: i32, %arg1: memref<16x128xbf16, #tpu.memory_space<vmem>>, %arg2: memref<128x128xbf16, #tpu.memory_space<vmem>>, %arg3: memref<1x128xf32, #tpu.memory_space<vmem>>, %arg4: memref<16x128xbf16, #tpu.memory_space<vmem>>) attributes {dimension_semantics = [#tpu.dimension_semantics<parallel>], iteration_bounds = array<i64: 1>, scalar_prefetch = 0 : i64, scratch_operands = 0 : i64, tpu.core_type = #tpu.core_type<tc>, window_params = [{transform_indices = @transform_0, window_bounds = array<i64: 16, 128>}, {pipeline_mode = #tpu.pipeline_mode<synchronous>, transform_indices = @transform_1, window_bounds = array<i64: 128, 128>}, {pipeline_mode = #tpu.pipeline_mode<synchronous>, transform_indices = @transform_2, window_bounds = array<i64: 1, 128>}, {transform_indices = @transform_3, window_bounds = array<i64: 16, 128>}]} {
    %c0 = arith.constant 0 : index
    %c0_0 = arith.constant 0 : index
    %0 = vector.load %arg1[%c0, %c0_0] : memref<16x128xbf16, #tpu.memory_space<vmem>>, vector<16x128xbf16>
    %c0_1 = arith.constant 0 : index
    %c0_2 = arith.constant 0 : index
    %1 = vector.load %arg2[%c0_1, %c0_2] : memref<128x128xbf16, #tpu.memory_space<vmem>>, vector<128x128xbf16>
    %cst = arith.constant dense<0.000000e+00> : vector<16x128xf32>
    %2 = tpu.matmul %0, %1, %cst {dimension_numbers = #tpu.dot_dimension_numbers<[1], [0], [0], [1], [0, 0, 1, 1], [], []>} : vector<16x128xbf16>, vector<128x128xbf16>, vector<16x128xf32> -> vector<16x128xf32>
    %c0_3 = arith.constant 0 : index
    %c0_4 = arith.constant 0 : index
    %3 = vector.load %arg3[%c0_3, %c0_4] : memref<1x128xf32, #tpu.memory_space<vmem>>, vector<1x128xf32>
    %4 = vector.broadcast %3 : vector<1x128xf32> to vector<16x128xf32>
    %5 = arith.addf %2, %4 : vector<16x128xf32>
    %6 = arith.negf %5 : vector<16x128xf32>
    %7 = math.exp %6 : vector<16x128xf32>
    %cst_5 = arith.constant 1.000000e+00 : f32
    %8 = vector.broadcast %cst_5 : f32 to vector<16x128xf32>
    %9 = arith.addf %8, %7 : vector<16x128xf32>
    %10 = arith.divf %8, %9 : vector<16x128xf32>
    %11 = arith.mulf %5, %10 : vector<16x128xf32>
    %12 = arith.truncf %11 : vector<16x128xf32> to vector<16x128xbf16>
    %c0_6 = arith.constant 0 : index
    %c0_7 = arith.constant 0 : index
    %13 = vector.load %arg4[%c0_6, %c0_7] : memref<16x128xbf16, #tpu.memory_space<vmem>>, vector<16x128xbf16>
    tpu.vector_store %arg4[%c0_6, %c0_7], %12 {strides = array<i32>} : memref<16x128xbf16, #tpu.memory_space<vmem>>, vector<16x128xbf16>,
    return
  }
  func.func @transform_0(%arg0: i32) -> (i32, i32) {
    %c0_i32 = arith.constant 0 : i32
    %c0_i32_0 = arith.constant 0 : i32
    return %arg0, %c0_i32 : i32, i32
  }
  func.func @transform_1(%arg0: i32) -> (i32, i32) {
    %c0_i32 = arith.constant 0 : i32
    %c0_i32_0 = arith.constant 0 : i32
    %c0_i32_1 = arith.constant 0 : i32
    return %c0_i32, %c0_i32_0 : i32, i32
  }
  func.func @transform_2(%arg0: i32) -> (i32, i32) {
    %c0_i32 = arith.constant 0 : i32
    %c0_i32_0 = arith.constant 0 : i32
    %c0_i32_1 = arith.constant 0 : i32
    return %c0_i32, %c0_i32_0 : i32, i32
  }
  func.func @transform_3(%arg0: i32) -> (i32, i32) {
    %c0_i32 = arith.constant 0 : i32
    %c0_i32_0 = arith.constant 0 : i32
    return %arg0, %c0_i32 : i32, i32
  }
}

module attributes {stable_mosaic.version = 11 : i64} {
  func.func @_mm_bias_act_kernel(%arg0: i32, %arg1: memref<16x640xbf16, #tpu.memory_space<vmem>>, %arg2: memref<640x128xbf16, #tpu.memory_space<vmem>>, %arg3: memref<1x128xf32, #tpu.memory_space<vmem>>, %arg4: memref<16x128xbf16, #tpu.memory_space<vmem>>) attributes {dimension_semantics = [#tpu.dimension_semantics<parallel>], iteration_bounds = array<i64: 1>, scalar_prefetch = 0 : i64, scratch_operands = 0 : i64, tpu.core_type = #tpu.core_type<tc>, window_params = [{transform_indices = @transform_0, window_bounds = array<i64: 16, 640>}, {pipeline_mode = #tpu.pipeline_mode<synchronous>, transform_indices = @transform_1, window_bounds = array<i64: 640, 128>}, {pipeline_mode = #tpu.pipeline_mode<synchronous>, transform_indices = @transform_2, window_bounds = array<i64: 1, 128>}, {transform_indices = @transform_3, window_bounds = array<i64: 16, 128>}]} {
    %c0 = arith.constant 0 : index
    %c0_0 = arith.constant 0 : index
    %0 = vector.load %arg1[%c0, %c0_0] : memref<16x640xbf16, #tpu.memory_space<vmem>>, vector<16x640xbf16>
    %c0_1 = arith.constant 0 : index
    %c0_2 = arith.constant 0 : index
    %1 = vector.load %arg2[%c0_1, %c0_2] : memref<640x128xbf16, #tpu.memory_space<vmem>>, vector<640x128xbf16>
    %cst = arith.constant dense<0.000000e+00> : vector<16x128xf32>
    %2 = tpu.matmul %0, %1, %cst {dimension_numbers = #tpu.dot_dimension_numbers<[1], [0], [0], [1], [0, 0, 1, 1], [], []>} : vector<16x640xbf16>, vector<640x128xbf16>, vector<16x128xf32> -> vector<16x128xf32>
    %c0_3 = arith.constant 0 : index
    %c0_4 = arith.constant 0 : index
    %3 = vector.load %arg3[%c0_3, %c0_4] : memref<1x128xf32, #tpu.memory_space<vmem>>, vector<1x128xf32>
    %4 = vector.broadcast %3 : vector<1x128xf32> to vector<16x128xf32>
    %5 = arith.addf %2, %4 : vector<16x128xf32>
    %6 = arith.negf %5 : vector<16x128xf32>
    %7 = math.exp %6 : vector<16x128xf32>
    %cst_5 = arith.constant 1.000000e+00 : f32
    %8 = vector.broadcast %cst_5 : f32 to vector<16x128xf32>
    %9 = arith.addf %8, %7 : vector<16x128xf32>
    %10 = arith.divf %8, %9 : vector<16x128xf32>
    %11 = arith.mulf %5, %10 : vector<16x128xf32>
    %12 = arith.truncf %11 : vector<16x128xf32> to vector<16x128xbf16>
    %c0_6 = arith.constant 0 : index
    %c0_7 = arith.constant 0 : index
    %13 = vector.load %arg4[%c0_6, %c0_7] : memref<16x128xbf16, #tpu.memory_space<vmem>>, vector<16x128xbf16>
    tpu.vector_store %arg4[%c0_6, %c0_7], %12 {strides = array<i32>} : memref<16x128xbf16, #tpu.memory_space<vmem>>, vector<16x128xbf16>,
    return
  }
  func.func @transform_0(%arg0: i32) -> (i32, i32) {
    %c0_i32 = arith.constant 0 : i32
    %c0_i32_0 = arith.constant 0 : i32
    return %arg0, %c0_i32 : i32, i32
  }
  func.func @transform_1(%arg0: i32) -> (i32, i32) {
    %c0_i32 = arith.constant 0 : i32
    %c0_i32_0 = arith.constant 0 : i32
    %c0_i32_1 = arith.constant 0 : i32
    return %c0_i32, %c0_i32_0 : i32, i32
  }
  func.func @transform_2(%arg0: i32) -> (i32, i32) {
    %c0_i32 = arith.constant 0 : i32
    %c0_i32_0 = arith.constant 0 : i32
    %c0_i32_1 = arith.constant 0 : i32
    return %c0_i32, %c0_i32_0 : i32, i32
  }
  func.func @transform_3(%arg0: i32) -> (i32, i32) {
    %c0_i32 = arith.constant 0 : i32
    %c0_i32_0 = arith.constant 0 : i32
    return %arg0, %c0_i32 : i32, i32
  }
}

module attributes {stable_mosaic.version = 11 : i64} {
  func.func @_mm_bias_act_kernel(%arg0: i32, %arg1: memref<64x128xbf16, #tpu.memory_space<vmem>>, %arg2: memref<128x128xbf16, #tpu.memory_space<vmem>>, %arg3: memref<1x128xf32, #tpu.memory_space<vmem>>, %arg4: memref<64x128xbf16, #tpu.memory_space<vmem>>) attributes {dimension_semantics = [#tpu.dimension_semantics<parallel>], iteration_bounds = array<i64: 1>, scalar_prefetch = 0 : i64, scratch_operands = 0 : i64, tpu.core_type = #tpu.core_type<tc>, window_params = [{transform_indices = @transform_0, window_bounds = array<i64: 64, 128>}, {pipeline_mode = #tpu.pipeline_mode<synchronous>, transform_indices = @transform_1, window_bounds = array<i64: 128, 128>}, {pipeline_mode = #tpu.pipeline_mode<synchronous>, transform_indices = @transform_2, window_bounds = array<i64: 1, 128>}, {transform_indices = @transform_3, window_bounds = array<i64: 64, 128>}]} {
    %c0 = arith.constant 0 : index
    %c0_0 = arith.constant 0 : index
    %0 = vector.load %arg1[%c0, %c0_0] : memref<64x128xbf16, #tpu.memory_space<vmem>>, vector<64x128xbf16>
    %c0_1 = arith.constant 0 : index
    %c0_2 = arith.constant 0 : index
    %1 = vector.load %arg2[%c0_1, %c0_2] : memref<128x128xbf16, #tpu.memory_space<vmem>>, vector<128x128xbf16>
    %cst = arith.constant dense<0.000000e+00> : vector<64x128xf32>
    %2 = tpu.matmul %0, %1, %cst {dimension_numbers = #tpu.dot_dimension_numbers<[1], [0], [0], [1], [0, 0, 1, 1], [], []>} : vector<64x128xbf16>, vector<128x128xbf16>, vector<64x128xf32> -> vector<64x128xf32>
    %c0_3 = arith.constant 0 : index
    %c0_4 = arith.constant 0 : index
    %3 = vector.load %arg3[%c0_3, %c0_4] : memref<1x128xf32, #tpu.memory_space<vmem>>, vector<1x128xf32>
    %4 = vector.broadcast %3 : vector<1x128xf32> to vector<64x128xf32>
    %5 = arith.addf %2, %4 : vector<64x128xf32>
    %6 = arith.negf %5 : vector<64x128xf32>
    %7 = math.exp %6 : vector<64x128xf32>
    %cst_5 = arith.constant 1.000000e+00 : f32
    %8 = vector.broadcast %cst_5 : f32 to vector<64x128xf32>
    %9 = arith.addf %8, %7 : vector<64x128xf32>
    %10 = arith.divf %8, %9 : vector<64x128xf32>
    %11 = arith.mulf %5, %10 : vector<64x128xf32>
    %12 = arith.truncf %11 : vector<64x128xf32> to vector<64x128xbf16>
    %c0_6 = arith.constant 0 : index
    %c0_7 = arith.constant 0 : index
    %13 = vector.load %arg4[%c0_6, %c0_7] : memref<64x128xbf16, #tpu.memory_space<vmem>>, vector<64x128xbf16>
    tpu.vector_store %arg4[%c0_6, %c0_7], %12 {strides = array<i32>} : memref<64x128xbf16, #tpu.memory_space<vmem>>, vector<64x128xbf16>,
    return
  }
  func.func @transform_0(%arg0: i32) -> (i32, i32) {
    %c0_i32 = arith.constant 0 : i32
    %c0_i32_0 = arith.constant 0 : i32
    return %arg0, %c0_i32 : i32, i32
  }
  func.func @transform_1(%arg0: i32) -> (i32, i32) {
    %c0_i32 = arith.constant 0 : i32
    %c0_i32_0 = arith.constant 0 : i32
    %c0_i32_1 = arith.constant 0 : i32
    return %c0_i32, %c0_i32_0 : i32, i32
  }
  func.func @transform_2(%arg0: i32) -> (i32, i32) {
    %c0_i32 = arith.constant 0 : i32
    %c0_i32_0 = arith.constant 0 : i32
    %c0_i32_1 = arith.constant 0 : i32
    return %c0_i32, %c0_i32_0 : i32, i32
  }
  func.func @transform_3(%arg0: i32) -> (i32, i32) {
    %c0_i32 = arith.constant 0 : i32
    %c0_i32_0 = arith.constant 0 : i32
    return %arg0, %c0_i32 : i32, i32
  }
}

module attributes {stable_mosaic.version = 11 : i64} {
  func.func @_mm_bias_act_kernel(%arg0: i32, %arg1: memref<64x384xbf16, #tpu.memory_space<vmem>>, %arg2: memref<384x128xbf16, #tpu.memory_space<vmem>>, %arg3: memref<1x128xf32, #tpu.memory_space<vmem>>, %arg4: memref<64x128xbf16, #tpu.memory_space<vmem>>) attributes {dimension_semantics = [#tpu.dimension_semantics<parallel>], iteration_bounds = array<i64: 1>, scalar_prefetch = 0 : i64, scratch_operands = 0 : i64, tpu.core_type = #tpu.core_type<tc>, window_params = [{transform_indices = @transform_0, window_bounds = array<i64: 64, 384>}, {pipeline_mode = #tpu.pipeline_mode<synchronous>, transform_indices = @transform_1, window_bounds = array<i64: 384, 128>}, {pipeline_mode = #tpu.pipeline_mode<synchronous>, transform_indices = @transform_2, window_bounds = array<i64: 1, 128>}, {transform_indices = @transform_3, window_bounds = array<i64: 64, 128>}]} {
    %c0 = arith.constant 0 : index
    %c0_0 = arith.constant 0 : index
    %0 = vector.load %arg1[%c0, %c0_0] : memref<64x384xbf16, #tpu.memory_space<vmem>>, vector<64x384xbf16>
    %c0_1 = arith.constant 0 : index
    %c0_2 = arith.constant 0 : index
    %1 = vector.load %arg2[%c0_1, %c0_2] : memref<384x128xbf16, #tpu.memory_space<vmem>>, vector<384x128xbf16>
    %cst = arith.constant dense<0.000000e+00> : vector<64x128xf32>
    %2 = tpu.matmul %0, %1, %cst {dimension_numbers = #tpu.dot_dimension_numbers<[1], [0], [0], [1], [0, 0, 1, 1], [], []>} : vector<64x384xbf16>, vector<384x128xbf16>, vector<64x128xf32> -> vector<64x128xf32>
    %c0_3 = arith.constant 0 : index
    %c0_4 = arith.constant 0 : index
    %3 = vector.load %arg3[%c0_3, %c0_4] : memref<1x128xf32, #tpu.memory_space<vmem>>, vector<1x128xf32>
    %4 = vector.broadcast %3 : vector<1x128xf32> to vector<64x128xf32>
    %5 = arith.addf %2, %4 : vector<64x128xf32>
    %6 = arith.negf %5 : vector<64x128xf32>
    %7 = math.exp %6 : vector<64x128xf32>
    %cst_5 = arith.constant 1.000000e+00 : f32
    %8 = vector.broadcast %cst_5 : f32 to vector<64x128xf32>
    %9 = arith.addf %8, %7 : vector<64x128xf32>
    %10 = arith.divf %8, %9 : vector<64x128xf32>
    %11 = arith.mulf %5, %10 : vector<64x128xf32>
    %12 = arith.truncf %11 : vector<64x128xf32> to vector<64x128xbf16>
    %c0_6 = arith.constant 0 : index
    %c0_7 = arith.constant 0 : index
    %13 = vector.load %arg4[%c0_6, %c0_7] : memref<64x128xbf16, #tpu.memory_space<vmem>>, vector<64x128xbf16>
    tpu.vector_store %arg4[%c0_6, %c0_7], %12 {strides = array<i32>} : memref<64x128xbf16, #tpu.memory_space<vmem>>, vector<64x128xbf16>,
    return
  }
  func.func @transform_0(%arg0: i32) -> (i32, i32) {
    %c0_i32 = arith.constant 0 : i32
    %c0_i32_0 = arith.constant 0 : i32
    return %arg0, %c0_i32 : i32, i32
  }
  func.func @transform_1(%arg0: i32) -> (i32, i32) {
    %c0_i32 = arith.constant 0 : i32
    %c0_i32_0 = arith.constant 0 : i32
    %c0_i32_1 = arith.constant 0 : i32
    return %c0_i32, %c0_i32_0 : i32, i32
  }
  func.func @transform_2(%arg0: i32) -> (i32, i32) {
    %c0_i32 = arith.constant 0 : i32
    %c0_i32_0 = arith.constant 0 : i32
    %c0_i32_1 = arith.constant 0 : i32
    return %c0_i32, %c0_i32_0 : i32, i32
  }
  func.func @transform_3(%arg0: i32) -> (i32, i32) {
    %c0_i32 = arith.constant 0 : i32
    %c0_i32_0 = arith.constant 0 : i32
    return %arg0, %c0_i32 : i32, i32
  }
}

module attributes {stable_mosaic.version = 11 : i64} {
  func.func @_mm_bias_act_kernel(%arg0: i32, %arg1: memref<64x128xbf16, #tpu.memory_space<vmem>>, %arg2: memref<128x128xbf16, #tpu.memory_space<vmem>>, %arg3: memref<1x128xf32, #tpu.memory_space<vmem>>, %arg4: memref<64x128xbf16, #tpu.memory_space<vmem>>) attributes {dimension_semantics = [#tpu.dimension_semantics<parallel>], iteration_bounds = array<i64: 1>, scalar_prefetch = 0 : i64, scratch_operands = 0 : i64, tpu.core_type = #tpu.core_type<tc>, window_params = [{transform_indices = @transform_0, window_bounds = array<i64: 64, 128>}, {pipeline_mode = #tpu.pipeline_mode<synchronous>, transform_indices = @transform_1, window_bounds = array<i64: 128, 128>}, {pipeline_mode = #tpu.pipeline_mode<synchronous>, transform_indices = @transform_2, window_bounds = array<i64: 1, 128>}, {transform_indices = @transform_3, window_bounds = array<i64: 64, 128>}]} {
    %c0 = arith.constant 0 : index
    %c0_0 = arith.constant 0 : index
    %0 = vector.load %arg1[%c0, %c0_0] : memref<64x128xbf16, #tpu.memory_space<vmem>>, vector<64x128xbf16>
    %c0_1 = arith.constant 0 : index
    %c0_2 = arith.constant 0 : index
    %1 = vector.load %arg2[%c0_1, %c0_2] : memref<128x128xbf16, #tpu.memory_space<vmem>>, vector<128x128xbf16>
    %cst = arith.constant dense<0.000000e+00> : vector<64x128xf32>
    %2 = tpu.matmul %0, %1, %cst {dimension_numbers = #tpu.dot_dimension_numbers<[1], [0], [0], [1], [0, 0, 1, 1], [], []>} : vector<64x128xbf16>, vector<128x128xbf16>, vector<64x128xf32> -> vector<64x128xf32>
    %c0_3 = arith.constant 0 : index
    %c0_4 = arith.constant 0 : index
    %3 = vector.load %arg3[%c0_3, %c0_4] : memref<1x128xf32, #tpu.memory_space<vmem>>, vector<1x128xf32>
    %4 = vector.broadcast %3 : vector<1x128xf32> to vector<64x128xf32>
    %5 = arith.addf %2, %4 : vector<64x128xf32>
    %6 = arith.truncf %5 : vector<64x128xf32> to vector<64x128xbf16>
    %c0_5 = arith.constant 0 : index
    %c0_6 = arith.constant 0 : index
    %7 = vector.load %arg4[%c0_5, %c0_6] : memref<64x128xbf16, #tpu.memory_space<vmem>>, vector<64x128xbf16>
    tpu.vector_store %arg4[%c0_5, %c0_6], %6 {strides = array<i32>} : memref<64x128xbf16, #tpu.memory_space<vmem>>, vector<64x128xbf16>,
    return
  }
  func.func @transform_0(%arg0: i32) -> (i32, i32) {
    %c0_i32 = arith.constant 0 : i32
    %c0_i32_0 = arith.constant 0 : i32
    return %arg0, %c0_i32 : i32, i32
  }
  func.func @transform_1(%arg0: i32) -> (i32, i32) {
    %c0_i32 = arith.constant 0 : i32
    %c0_i32_0 = arith.constant 0 : i32
    %c0_i32_1 = arith.constant 0 : i32
    return %c0_i32, %c0_i32_0 : i32, i32
  }
  func.func @transform_2(%arg0: i32) -> (i32, i32) {
    %c0_i32 = arith.constant 0 : i32
    %c0_i32_0 = arith.constant 0 : i32
    %c0_i32_1 = arith.constant 0 : i32
    return %c0_i32, %c0_i32_0 : i32, i32
  }
  func.func @transform_3(%arg0: i32) -> (i32, i32) {
    %c0_i32 = arith.constant 0 : i32
    %c0_i32_0 = arith.constant 0 : i32
    return %arg0, %c0_i32 : i32, i32
  }
}

module attributes {stable_mosaic.version = 11 : i64} {
  func.func @_mm_bias_act_kernel(%arg0: i32, %arg1: memref<16x128xbf16, #tpu.memory_space<vmem>>, %arg2: memref<128x128xbf16, #tpu.memory_space<vmem>>, %arg3: memref<1x128xf32, #tpu.memory_space<vmem>>, %arg4: memref<16x128xbf16, #tpu.memory_space<vmem>>) attributes {dimension_semantics = [#tpu.dimension_semantics<parallel>], iteration_bounds = array<i64: 1>, scalar_prefetch = 0 : i64, scratch_operands = 0 : i64, tpu.core_type = #tpu.core_type<tc>, window_params = [{transform_indices = @transform_0, window_bounds = array<i64: 16, 128>}, {pipeline_mode = #tpu.pipeline_mode<synchronous>, transform_indices = @transform_1, window_bounds = array<i64: 128, 128>}, {pipeline_mode = #tpu.pipeline_mode<synchronous>, transform_indices = @transform_2, window_bounds = array<i64: 1, 128>}, {transform_indices = @transform_3, window_bounds = array<i64: 16, 128>}]} {
    %c0 = arith.constant 0 : index
    %c0_0 = arith.constant 0 : index
    %0 = vector.load %arg1[%c0, %c0_0] : memref<16x128xbf16, #tpu.memory_space<vmem>>, vector<16x128xbf16>
    %c0_1 = arith.constant 0 : index
    %c0_2 = arith.constant 0 : index
    %1 = vector.load %arg2[%c0_1, %c0_2] : memref<128x128xbf16, #tpu.memory_space<vmem>>, vector<128x128xbf16>
    %cst = arith.constant dense<0.000000e+00> : vector<16x128xf32>
    %2 = tpu.matmul %0, %1, %cst {dimension_numbers = #tpu.dot_dimension_numbers<[1], [0], [0], [1], [0, 0, 1, 1], [], []>} : vector<16x128xbf16>, vector<128x128xbf16>, vector<16x128xf32> -> vector<16x128xf32>
    %c0_3 = arith.constant 0 : index
    %c0_4 = arith.constant 0 : index
    %3 = vector.load %arg3[%c0_3, %c0_4] : memref<1x128xf32, #tpu.memory_space<vmem>>, vector<1x128xf32>
    %4 = vector.broadcast %3 : vector<1x128xf32> to vector<16x128xf32>
    %5 = arith.addf %2, %4 : vector<16x128xf32>
    %6 = arith.truncf %5 : vector<16x128xf32> to vector<16x128xbf16>
    %c0_5 = arith.constant 0 : index
    %c0_6 = arith.constant 0 : index
    %7 = vector.load %arg4[%c0_5, %c0_6] : memref<16x128xbf16, #tpu.memory_space<vmem>>, vector<16x128xbf16>
    tpu.vector_store %arg4[%c0_5, %c0_6], %6 {strides = array<i32>} : memref<16x128xbf16, #tpu.memory_space<vmem>>, vector<16x128xbf16>,
    return
  }
  func.func @transform_0(%arg0: i32) -> (i32, i32) {
    %c0_i32 = arith.constant 0 : i32
    %c0_i32_0 = arith.constant 0 : i32
    return %arg0, %c0_i32 : i32, i32
  }
  func.func @transform_1(%arg0: i32) -> (i32, i32) {
    %c0_i32 = arith.constant 0 : i32
    %c0_i32_0 = arith.constant 0 : i32
    %c0_i32_1 = arith.constant 0 : i32
    return %c0_i32, %c0_i32_0 : i32, i32
  }
  func.func @transform_2(%arg0: i32) -> (i32, i32) {
    %c0_i32 = arith.constant 0 : i32
    %c0_i32_0 = arith.constant 0 : i32
    %c0_i32_1 = arith.constant 0 : i32
    return %c0_i32, %c0_i32_0 : i32, i32
  }
  func.func @transform_3(%arg0: i32) -> (i32, i32) {
    %c0_i32 = arith.constant 0 : i32
    %c0_i32_0 = arith.constant 0 : i32
    return %arg0, %c0_i32 : i32, i32
  }
}

module attributes {stable_mosaic.version = 11 : i64} {
  func.func @_mm_bias_act_kernel(%arg0: i32, %arg1: memref<8x128xbf16, #tpu.memory_space<vmem>>, %arg2: memref<128x128xbf16, #tpu.memory_space<vmem>>, %arg3: memref<1x128xf32, #tpu.memory_space<vmem>>, %arg4: memref<8x128xbf16, #tpu.memory_space<vmem>>) attributes {dimension_semantics = [#tpu.dimension_semantics<parallel>], iteration_bounds = array<i64: 1>, scalar_prefetch = 0 : i64, scratch_operands = 0 : i64, tpu.core_type = #tpu.core_type<tc>, window_params = [{transform_indices = @transform_0, window_bounds = array<i64: 8, 128>}, {pipeline_mode = #tpu.pipeline_mode<synchronous>, transform_indices = @transform_1, window_bounds = array<i64: 128, 128>}, {pipeline_mode = #tpu.pipeline_mode<synchronous>, transform_indices = @transform_2, window_bounds = array<i64: 1, 128>}, {transform_indices = @transform_3, window_bounds = array<i64: 8, 128>}]} {
    %c0 = arith.constant 0 : index
    %c0_0 = arith.constant 0 : index
    %0 = vector.load %arg1[%c0, %c0_0] : memref<8x128xbf16, #tpu.memory_space<vmem>>, vector<8x128xbf16>
    %c0_1 = arith.constant 0 : index
    %c0_2 = arith.constant 0 : index
    %1 = vector.load %arg2[%c0_1, %c0_2] : memref<128x128xbf16, #tpu.memory_space<vmem>>, vector<128x128xbf16>
    %cst = arith.constant dense<0.000000e+00> : vector<8x128xf32>
    %2 = tpu.matmul %0, %1, %cst {dimension_numbers = #tpu.dot_dimension_numbers<[1], [0], [0], [1], [0, 0, 1, 1], [], []>} : vector<8x128xbf16>, vector<128x128xbf16>, vector<8x128xf32> -> vector<8x128xf32>
    %c0_3 = arith.constant 0 : index
    %c0_4 = arith.constant 0 : index
    %3 = vector.load %arg3[%c0_3, %c0_4] : memref<1x128xf32, #tpu.memory_space<vmem>>, vector<1x128xf32>
    %4 = vector.broadcast %3 : vector<1x128xf32> to vector<8x128xf32>
    %5 = arith.addf %2, %4 : vector<8x128xf32>
    %6 = arith.truncf %5 : vector<8x128xf32> to vector<8x128xbf16>
    %c0_5 = arith.constant 0 : index
    %c0_6 = arith.constant 0 : index
    %7 = vector.load %arg4[%c0_5, %c0_6] : memref<8x128xbf16, #tpu.memory_space<vmem>>, vector<8x128xbf16>
    tpu.vector_store %arg4[%c0_5, %c0_6], %6 {strides = array<i32>} : memref<8x128xbf16, #tpu.memory_space<vmem>>, vector<8x128xbf16>,
    return
  }
  func.func @transform_0(%arg0: i32) -> (i32, i32) {
    %c0_i32 = arith.constant 0 : i32
    %c0_i32_0 = arith.constant 0 : i32
    return %arg0, %c0_i32 : i32, i32
  }
  func.func @transform_1(%arg0: i32) -> (i32, i32) {
    %c0_i32 = arith.constant 0 : i32
    %c0_i32_0 = arith.constant 0 : i32
    %c0_i32_1 = arith.constant 0 : i32
    return %c0_i32, %c0_i32_0 : i32, i32
  }
  func.func @transform_2(%arg0: i32) -> (i32, i32) {
    %c0_i32 = arith.constant 0 : i32
    %c0_i32_0 = arith.constant 0 : i32
    %c0_i32_1 = arith.constant 0 : i32
    return %c0_i32, %c0_i32_0 : i32, i32
  }
  func.func @transform_3(%arg0: i32) -> (i32, i32) {
    %c0_i32 = arith.constant 0 : i32
    %c0_i32_0 = arith.constant 0 : i32
    return %arg0, %c0_i32 : i32, i32
  }
}

module attributes {stable_mosaic.version = 11 : i64} {
  func.func @_mm_bias_act_kernel(%arg0: i32, %arg1: memref<8x384xbf16, #tpu.memory_space<vmem>>, %arg2: memref<384x128xbf16, #tpu.memory_space<vmem>>, %arg3: memref<1x128xf32, #tpu.memory_space<vmem>>, %arg4: memref<8x128xbf16, #tpu.memory_space<vmem>>) attributes {dimension_semantics = [#tpu.dimension_semantics<parallel>], iteration_bounds = array<i64: 1>, scalar_prefetch = 0 : i64, scratch_operands = 0 : i64, tpu.core_type = #tpu.core_type<tc>, window_params = [{transform_indices = @transform_0, window_bounds = array<i64: 8, 384>}, {pipeline_mode = #tpu.pipeline_mode<synchronous>, transform_indices = @transform_1, window_bounds = array<i64: 384, 128>}, {pipeline_mode = #tpu.pipeline_mode<synchronous>, transform_indices = @transform_2, window_bounds = array<i64: 1, 128>}, {transform_indices = @transform_3, window_bounds = array<i64: 8, 128>}]} {
    %c0 = arith.constant 0 : index
    %c0_0 = arith.constant 0 : index
    %0 = vector.load %arg1[%c0, %c0_0] : memref<8x384xbf16, #tpu.memory_space<vmem>>, vector<8x384xbf16>
    %c0_1 = arith.constant 0 : index
    %c0_2 = arith.constant 0 : index
    %1 = vector.load %arg2[%c0_1, %c0_2] : memref<384x128xbf16, #tpu.memory_space<vmem>>, vector<384x128xbf16>
    %cst = arith.constant dense<0.000000e+00> : vector<8x128xf32>
    %2 = tpu.matmul %0, %1, %cst {dimension_numbers = #tpu.dot_dimension_numbers<[1], [0], [0], [1], [0, 0, 1, 1], [], []>} : vector<8x384xbf16>, vector<384x128xbf16>, vector<8x128xf32> -> vector<8x128xf32>
    %c0_3 = arith.constant 0 : index
    %c0_4 = arith.constant 0 : index
    %3 = vector.load %arg3[%c0_3, %c0_4] : memref<1x128xf32, #tpu.memory_space<vmem>>, vector<1x128xf32>
    %4 = vector.broadcast %3 : vector<1x128xf32> to vector<8x128xf32>
    %5 = arith.addf %2, %4 : vector<8x128xf32>
    %6 = arith.negf %5 : vector<8x128xf32>
    %7 = math.exp %6 : vector<8x128xf32>
    %cst_5 = arith.constant 1.000000e+00 : f32
    %8 = vector.broadcast %cst_5 : f32 to vector<8x128xf32>
    %9 = arith.addf %8, %7 : vector<8x128xf32>
    %10 = arith.divf %8, %9 : vector<8x128xf32>
    %11 = arith.mulf %5, %10 : vector<8x128xf32>
    %12 = arith.truncf %11 : vector<8x128xf32> to vector<8x128xbf16>
    %c0_6 = arith.constant 0 : index
    %c0_7 = arith.constant 0 : index
    %13 = vector.load %arg4[%c0_6, %c0_7] : memref<8x128xbf16, #tpu.memory_space<vmem>>, vector<8x128xbf16>
    tpu.vector_store %arg4[%c0_6, %c0_7], %12 {strides = array<i32>} : memref<8x128xbf16, #tpu.memory_space<vmem>>, vector<8x128xbf16>,
    return
  }
  func.func @transform_0(%arg0: i32) -> (i32, i32) {
    %c0_i32 = arith.constant 0 : i32
    %c0_i32_0 = arith.constant 0 : i32
    return %arg0, %c0_i32 : i32, i32
  }
  func.func @transform_1(%arg0: i32) -> (i32, i32) {
    %c0_i32 = arith.constant 0 : i32
    %c0_i32_0 = arith.constant 0 : i32
    %c0_i32_1 = arith.constant 0 : i32
    return %c0_i32, %c0_i32_0 : i32, i32
  }
  func.func @transform_2(%arg0: i32) -> (i32, i32) {
    %c0_i32 = arith.constant 0 : i32
    %c0_i32_0 = arith.constant 0 : i32
    %c0_i32_1 = arith.constant 0 : i32
    return %c0_i32, %c0_i32_0 : i32, i32
  }
  func.func @transform_3(%arg0: i32) -> (i32, i32) {
    %c0_i32 = arith.constant 0 : i32
    %c0_i32_0 = arith.constant 0 : i32
    return %arg0, %c0_i32 : i32, i32
  }
}

module attributes {stable_mosaic.version = 11 : i64} {
  func.func @_decode_score_kernel(%arg0: memref<256x25xbf16, #tpu.memory_space<vmem>>, %arg1: memref<256x8xf32, #tpu.memory_space<vmem>>, %arg2: memref<256x128xf32, #tpu.memory_space<vmem>>) attributes {dimension_semantics = [], scalar_prefetch = 0 : i64, scratch_operands = 0 : i64, tpu.core_type = #tpu.core_type<tc>} {
    %c0 = arith.constant 0 : index
    %c0_0 = arith.constant 0 : index
    %0 = vector.load %arg0[%c0, %c0_0] : memref<256x25xbf16, #tpu.memory_space<vmem>>, vector<256x25xbf16>
    %1 = arith.extf %0 : vector<256x25xbf16> to vector<256x25xf32>
    %c0_1 = arith.constant 0 : index
    %c0_2 = arith.constant 0 : index
    %2 = vector.load %arg1[%c0_1, %c0_2] : memref<256x8xf32, #tpu.memory_space<vmem>>, vector<256x8xf32>
    %3 = vector.extract_strided_slice %1 {offsets = [0, 0], sizes = [256, 2], strides = [1, 1]} : vector<256x25xf32> to vector<256x2xf32>
    %4 = vector.extract_strided_slice %1 {offsets = [0, 2], sizes = [256, 2], strides = [1, 1]} : vector<256x25xf32> to vector<256x2xf32>
    %5 = vector.extract_strided_slice %1 {offsets = [0, 4], sizes = [256, 1], strides = [1, 1]} : vector<256x25xf32> to vector<256x1xf32>
    %6 = vector.extract_strided_slice %1 {offsets = [0, 5], sizes = [256, 20], strides = [1, 1]} : vector<256x25xf32> to vector<256x20xf32>
    %7 = vector.extract_strided_slice %2 {offsets = [0, 0], sizes = [256, 2], strides = [1, 1]} : vector<256x8xf32> to vector<256x2xf32>
    %8 = vector.extract_strided_slice %2 {offsets = [0, 2], sizes = [256, 2], strides = [1, 1]} : vector<256x8xf32> to vector<256x2xf32>
    %9 = vector.extract_strided_slice %2 {offsets = [0, 4], sizes = [256, 1], strides = [1, 1]} : vector<256x8xf32> to vector<256x1xf32>
    %10 = arith.negf %3 : vector<256x2xf32>
    %11 = math.exp %10 : vector<256x2xf32>
    %cst = arith.constant 1.000000e+00 : f32
    %12 = vector.broadcast %cst : f32 to vector<256x2xf32>
    %13 = arith.addf %12, %11 : vector<256x2xf32>
    %14 = arith.divf %12, %13 : vector<256x2xf32>
    %15 = arith.addf %14, %7 : vector<256x2xf32>
    %16 = vector.broadcast %9 : vector<256x1xf32> to vector<256x2xf32>
    %17 = arith.mulf %15, %16 : vector<256x2xf32>
    %18 = math.exp %4 : vector<256x2xf32>
    %19 = arith.mulf %18, %8 : vector<256x2xf32>
    %cst_3 = arith.constant 5.000000e-01 : f32
    %20 = vector.broadcast %cst_3 : f32 to vector<256x2xf32>
    %21 = arith.mulf %20, %19 : vector<256x2xf32>
    %22 = arith.subf %17, %21 : vector<256x2xf32>
    %cst_4 = arith.constant 1.562500e-02 : f32
    %23 = vector.broadcast %cst_4 : f32 to vector<256x2xf32>
    %24 = arith.mulf %22, %23 : vector<256x2xf32>
    %cst_5 = arith.constant 0.000000e+00 : f32
    %cst_6 = arith.constant 1.000000e+00 : f32
    %25 = vector.broadcast %cst_5 : f32 to vector<256x2xf32>
    %26 = arith.maximumf %25, %24 : vector<256x2xf32>
    %27 = vector.broadcast %cst_6 : f32 to vector<256x2xf32>
    %28 = arith.minimumf %27, %26 : vector<256x2xf32>
    %cst_7 = arith.constant 5.000000e-01 : f32
    %29 = vector.broadcast %cst_7 : f32 to vector<256x2xf32>
    %30 = arith.mulf %29, %19 : vector<256x2xf32>
    %31 = arith.addf %17, %30 : vector<256x2xf32>
    %cst_8 = arith.constant 1.562500e-02 : f32
    %32 = vector.broadcast %cst_8 : f32 to vector<256x2xf32>
    %33 = arith.mulf %31, %32 : vector<256x2xf32>
    %cst_9 = arith.constant 0.000000e+00 : f32
    %cst_10 = arith.constant 1.000000e+00 : f32
    %34 = vector.broadcast %cst_9 : f32 to vector<256x2xf32>
    %35 = arith.maximumf %34, %33 : vector<256x2xf32>
    %36 = vector.broadcast %cst_10 : f32 to vector<256x2xf32>
    %37 = arith.minimumf %36, %35 : vector<256x2xf32>
    %38 = arith.negf %5 : vector<256x1xf32>
    %39 = math.exp %38 : vector<256x1xf32>
    %cst_11 = arith.constant 1.000000e+00 : f32
    %40 = vector.broadcast %cst_11 : f32 to vector<256x1xf32>
    %41 = arith.addf %40, %39 : vector<256x1xf32>
    %42 = arith.divf %40, %41 : vector<256x1xf32>
    %cst_12 = arith.constant dense<0xFF800000> : vector<256xf32>
    %43 = vector.multi_reduction <maximumf>, %6, %cst_12 [1] : vector<256x20xf32> to vector<256xf32>
    %44 = vector.shape_cast %43 : vector<256xf32> to vector<256x1xf32>
    %45 = vector.broadcast %44 : vector<256x1xf32> to vector<256x20xf32>
    %46 = arith.subf %6, %45 : vector<256x20xf32>
    %47 = math.exp %46 : vector<256x20xf32>
    %cst_13 = arith.constant dense<0.000000e+00> : vector<256xf32>
    %48 = vector.multi_reduction <add>, %47, %cst_13 [1] : vector<256x20xf32> to vector<256xf32>
    %49 = vector.shape_cast %48 : vector<256xf32> to vector<256x1xf32>
    %50 = vector.broadcast %49 : vector<256x1xf32> to vector<256x20xf32>
    %51 = arith.divf %47, %50 : vector<256x20xf32>
    %52 = vector.broadcast %42 : vector<256x1xf32> to vector<256x20xf32>
    %53 = arith.mulf %52, %51 : vector<256x20xf32>
    %54 = tpu.concatenate %28, %37, %53 in 1 : vector<256x2xf32>, vector<256x2xf32>, vector<256x20xf32> -> vector<256x24xf32>
    %cst_14 = arith.constant 0.000000e+00 : f32
    %55 = vector.broadcast %cst_14 : f32 to vector<256x104xf32>
    %56 = tpu.concatenate %54, %55 in 1 : vector<256x24xf32>, vector<256x104xf32> -> vector<256x128xf32>
    %c0_15 = arith.constant 0 : index
    %c0_16 = arith.constant 0 : index
    %57 = vector.load %arg2[%c0_15, %c0_16] : memref<256x128xf32, #tpu.memory_space<vmem>>, vector<256x128xf32>
    tpu.vector_store %arg2[%c0_15, %c0_16], %56 {strides = array<i32>} : memref<256x128xf32, #tpu.memory_space<vmem>>, vector<256x128xf32>,
    return
  }
}

</mosaic_0001>

<bundles_post_ra>
// kernel: _forward.22
= control target key start
LH: loop header
LB: loop body
LE: loop exit
PB: predicated region body
PF: predicated region fallthrough
CT: control target
= control target key end

     0   :  { %s1478_s12 = smov 0   ;;  %s1727_s0 = inlined_call_operand.vmem [shape: bf16[1024,128], index: 0, kind: input, shape index: {}]   ;;  %s1728_s1 = inlined_call_operand.vmem [shape: bf16[128,128], index: 1, kind: input, shape index: {}]   ;;  %s1729_s2 = inlined_call_operand.vmem [shape: f32[1,128], index: 2, kind: input, shape index: {}]   ;;  %s1730_s3 = inlined_call_operand.vmem [shape: bf16[1024,128], index: 3, kind: output, shape index: {}]  }
   0x1 LB: > { %s975_s13 = sadd.s32 4294967295, %s1456_s12   ;;  %p979_p0 = scmp.ge.s32.totalorder %s1456_s12, 1  ;;  %s1456_s12 = sphi %s1478_s12, %s13_s12  }
   0x2   : > { %p138_p1 = scmp.lt.s32.totalorder %s1456_s12, 5 }
   0x4   : > { %p139_p2 = pnand %p979_p0, %p138_p1 }
   0x5   : > { %s980_s16 = sshll.u32 (!%p139_p2), %s975_s13, 5 }
   0x6   : > { %142 = sbr.rel (%p139_p2) target bundleno = 323 (0x143), region = 32  ;;  %p163_p3 = scmp.lt.s32.totalorder (!%p139_p2), %s980_s16, 127 }
   0xb   : > { %v1298_v0 = vld [vmem:[%s1728_s1 + $0x38] sm:$0xff]   ;;  %v1299_v1 = vld [vmem:[%s1728_s1 + $0x30] sm:$0xff]   ;;  %s1732_s16 = smov (!%p163_p3, %s980_s16), 127  ;;  %v1300_v2 = vld [vmem:[%s1728_s1 + $0x28] sm:$0xff]  }
   0xc   : > { %1226 = vmatprep.subr.bf16.mxu0 %v1298_v0  ;;  %1274 = vmatprep.subr.bf16.mxu1 %v1298_v0  ;;  %s981_s21 = sshll.u32 %s1732_s16, 2  ;;  %v1301_v3 = vld [vmem:[%s1728_s1 + $0x20] sm:$0xff]   ;;  %v1302_v6 = vld [vmem:[%s1728_s1 + $0x18] sm:$0xff]   ;;  %v1303_v7 = vld [vmem:[%s1728_s1 + $0x10] sm:$0xff]  }
   0xd   : > { %1227 = vmatpush3.bf16.msra.mxu0 %v1298_v0  ;;  %1282 = vmatpush3.bf16.msra.mxu1 %v1298_v0  ;;  %s1503_s24 = scalar_lea.vmem %s1727_s0, %s981_s21  ;;  %v1304_v8 = vld [vmem:[%s1728_s1 + $0x8] sm:$0xff]   ;;  %v1305_v9 = vld [vmem:[%s1728_s1] sm:$0xff]   ;;  %s1662_s13 = scalar_lea.vmem %s1730_s3, %s981_s21 }
   0xe   : > { %1228 = vmatprep.subr.bf16.mxu0 %v1299_v1  ;;  %1275 = vmatprep.subr.bf16.mxu1 %v1299_v1  ;;  %v1306_v4 = vld [vmem:[%s1503_s24] sm:$0xff]   ;;  %v1308_v10 = vld [vmem:[%s1503_s24 + $0x8] sm:$0xff]   ;;  %v1310_v12 = vld [vmem:[%s1503_s24 + $0x10] sm:$0xff]  }
   0xf   : > { %v1307_v5 = vld [vmem:[%s1503_s24 + $0x40] sm:$0xff]   ;;  %1242 = vmatprep.mubr.bf16.mxu0 %v1306_v4  ;;  %v1309_v11 = vld [vmem:[%s1503_s24 + $0x48] sm:$0xff]   ;;  %v1311_v13 = vld [vmem:[%s1503_s24 + $0x50] sm:$0xff]  }
  0x10   : > { %1258 = vmatprep.mubr.bf16.mxu1 %v1307_v5  ;;  %v1312_v14 = vld [vmem:[%s1503_s24 + $0x18] sm:$0xff]   ;;  %v1314_v16 = vld [vmem:[%s1503_s24 + $0x20] sm:$0xff]   ;;  %v1316_v18 = vld [vmem:[%s1503_s24 + $0x28] sm:$0xff]  }
  0x11   : > { %1229 = vmatpush3.bf16.msra.mxu0 %v1299_v1  ;;  %1283 = vmatpush3.bf16.msra.mxu1 %v1299_v1  ;;  %v1313_v15 = vld [vmem:[%s1503_s24 + $0x58] sm:$0xff]   ;;  %v1315_v17 = vld [vmem:[%s1503_s24 + $0x60] sm:$0xff]   ;;  %v1317_v19 = vld [vmem:[%s1503_s24 + $0x68] sm:$0xff]  }
  0x12   : > { %1230 = vmatprep.subr.bf16.mxu0 %v1300_v2  ;;  %1276 = vmatprep.subr.bf16.mxu1 %v1300_v2  ;;  %v1318_v20 = vld [vmem:[%s1503_s24 + $0x30] sm:$0xff]   ;;  %v1320_v22 = vld [vmem:[%s1503_s24 + $0x38] sm:$0xff]   ;;  %v1539_v24 = vld [vmem:[%s1729_s2] ss:$0 sm:$0xff] }
  0x13   : > { %v1319_v21 = vld [vmem:[%s1503_s24 + $0x70] sm:$0xff]   ;;  %v1321_v23 = vld [vmem:[%s1503_s24 + $0x78] sm:$0xff]  }
  0x15   : > { %1231 = vmatpush3.bf16.msra.mxu0 %v1300_v2  ;;  %1284 = vmatpush3.bf16.msra.mxu1 %v1300_v2 }
  0x16   : > { %1232 = vmatprep.subr.bf16.mxu0 %v1301_v3  ;;  %1277 = vmatprep.subr.bf16.mxu1 %v1301_v3 }
  0x19   : > { %1233 = vmatpush3.bf16.msra.mxu0 %v1301_v3  ;;  %1285 = vmatpush3.bf16.msra.mxu1 %v1301_v3 }
  0x1a   : > { %1234 = vmatprep.subr.bf16.mxu0 %v1302_v6  ;;  %1278 = vmatprep.subr.bf16.mxu1 %v1302_v6 }
  0x1d   : > { %1235 = vmatpush3.bf16.msra.mxu0 %v1302_v6  ;;  %1286 = vmatpush3.bf16.msra.mxu1 %v1302_v6 }
  0x1e   : > { %1236 = vmatprep.subr.bf16.mxu0 %v1303_v7  ;;  %1279 = vmatprep.subr.bf16.mxu1 %v1303_v7 }
  0x21   : > { %1237 = vmatpush3.bf16.msra.mxu0 %v1303_v7  ;;  %1287 = vmatpush3.bf16.msra.mxu1 %v1303_v7 }
  0x22   : > { %1238 = vmatprep.subr.bf16.mxu0 %v1304_v8  ;;  %1280 = vmatprep.subr.bf16.mxu1 %v1304_v8 }
  0x25   : > { %1239 = vmatpush3.bf16.msra.mxu0 %v1304_v8  ;;  %1288 = vmatpush3.bf16.msra.mxu1 %v1304_v8 }
  0x26   : > { %1240 = vmatprep.subr.bf16.mxu0 %v1305_v9  ;;  %1281 = vmatprep.subr.bf16.mxu1 %v1305_v9 }
  0x29   : > { %1241 = vmatpush3.bf16.msra.mxu0 %v1305_v9  ;;  %1289 = vmatpush3.bf16.msra.mxu1 %v1305_v9 }
  0x2c   : > { %1243 = vmatmul.mubr.bf16.vlgmr.msra.gmra.mxu0 %v1308_v10  ;;  %1259 = vmatmul.mubr.bf16.vlgmr.msra.gmra.mxu1 %v1309_v11 }
  0x2d   : > { %1246 = vmatprep.mubr.bf16.mxu0 %v1310_v12  ;;  %1262 = vmatprep.mubr.bf16.mxu1 %v1311_v13 }
  0x34   : > { %1247 = vmatmul.mubr.bf16.gmra.mxu0 %v1312_v14  ;;  %1263 = vmatmul.mubr.bf16.gmra.mxu1 %v1313_v15 }
  0x35   : > { %1250 = vmatprep.mubr.bf16.mxu0 %v1314_v16  ;;  %1266 = vmatprep.mubr.bf16.mxu1 %v1315_v17 }
  0x3c   : > { %1251 = vmatmul.mubr.bf16.gmra.mxu0 %v1316_v18  ;;  %1267 = vmatmul.mubr.bf16.gmra.mxu1 %v1317_v19 }
  0x3d   : > { %1254 = vmatprep.mubr.bf16.mxu0 %v1318_v20  ;;  %1270 = vmatprep.mubr.bf16.mxu1 %v1319_v21 }
  0x44   : > { %1255 = vmatmul.mubr.bf16.gmra.mxu0 %v1320_v22  ;;  %1271 = vmatmul.mubr.bf16.gmra.mxu1 %v1321_v23 }
  0xec   : > { %v1244_v25 = vpop.f32.mrf.mxu0  ;;  %v1260_v26 = vpop.f32.mrf.mxu1 }
  0xed   : > { %v1542_v27 = vadd.f32 %v1244_v25, %v1539_v24  ;;  %v1545_v28 = vadd.f32 %v1260_v26, %v1539_v24 }
  0xee   : > { %v408_v29 = vpop.f32.mrf.mxu0  ;;  %v472_v30 = vpop.f32.mrf.mxu1 }
  0xef   : > { %v1011_v31 = vmul.f32 -1.442695, %v1542_v27  ;;  %v1027_v32 = vmul.f32 -1.442695, %v1545_v28  ;;  %v1550_v33 = vadd.f32 %v1539_v24, %v408_v29  ;;  %v1553_v34 = vadd.f32 %v1539_v24, %v472_v30 }
  0xf0   : > { %v1245_v35 = vpop.f32.mrf.mxu0  ;;  %v1261_v36 = vpop.f32.mrf.mxu1 }
  0xf1   : > { %1322 = vpow2.f32 %v1011_v31  ;;  %v1009_v37 = vmul.f32 -1.442695, %v1550_v33  ;;  %v1025_v38 = vmul.f32 -1.442695, %v1553_v34  ;;  %v1558_v39 = vadd.f32 %v1245_v35, %v1539_v24 }
  0xf2   : > { %1324 = vpow2.f32 %v1027_v32  ;;  %v1561_v40 = vadd.f32 %v1261_v36, %v1539_v24  ;;  %v411_v41 = vpop.f32.mrf.mxu0  ;;  %v475_v42 = vpop.f32.mrf.mxu1 }
  0xf3   : > { %1326 = vpow2.f32 %v1009_v37  ;;  %v1012_v43 = vmul.f32 -1.442695, %v1558_v39  ;;  %v1565_v44 = vadd.f32 %v1539_v24, %v411_v41  ;;  %v1568_v45 = vadd.f32 %v1539_v24, %v475_v42 }
  0xf4   : > { %1328 = vpow2.f32 %v1025_v38  ;;  %v1028_v46 = vmul.f32 -1.442695, %v1561_v40  ;;  %v1248_v47 = vpop.f32.mrf.mxu0  ;;  %v1264_v48 = vpop.f32.mrf.mxu1 }
  0xf5   : > { %1330 = vpow2.f32 %v1012_v43  ;;  %v1010_v49 = vmul.f32 -1.442695, %v1565_v44  ;;  %v1026_v50 = vmul.f32 -1.442695, %v1568_v45  ;;  %v1574_v51 = vadd.f32 %v1248_v47, %v1539_v24 }
  0xf6   : > { %1332 = vpow2.f32 %v1028_v46  ;;  %v1577_v52 = vadd.f32 %v1264_v48, %v1539_v24  ;;  %v424_v53 = vpop.f32.mrf.mxu0  ;;  %v488_v54 = vpop.f32.mrf.mxu1 }
  0xf7   : > { %1334 = vpow2.f32 %v1010_v49  ;;  %v1015_v55 = vmul.f32 -1.442695, %v1574_v51  ;;  %v1581_v56 = vadd.f32 %v1539_v24, %v424_v53  ;;  %v1584_v57 = vadd.f32 %v1539_v24, %v488_v54 }
  0xf8   : > { %1336 = vpow2.f32 %v1026_v50  ;;  %v1031_v58 = vmul.f32 -1.442695, %v1577_v52  ;;  %v1249_v59 = vpop.f32.mrf.mxu0  ;;  %v1265_v60 = vpop.f32.mrf.mxu1 }
  0xf9   : > { %1338 = vpow2.f32 %v1015_v55  ;;  %v1013_v61 = vmul.f32 -1.442695, %v1581_v56  ;;  %v1029_v62 = vmul.f32 -1.442695, %v1584_v57  ;;  %v1590_v63 = vadd.f32 %v1249_v59, %v1539_v24 }
  0xfa   : > { %1340 = vpow2.f32 %v1031_v58  ;;  %v1593_v0 = vadd.f32 %v1265_v60, %v1539_v24  ;;  %v427_v1 = vpop.f32.mrf.mxu0  ;;  %v491_v2 = vpop.f32.mrf.mxu1 }
  0xfb   : > { %1342 = vpow2.f32 %v1013_v61  ;;  %v1016_v3 = vmul.f32 -1.442695, %v1590_v63  ;;  %v1597_v4 = vadd.f32 %v1539_v24, %v427_v1  ;;  %v1600_v5 = vadd.f32 %v1539_v24, %v491_v2 }
  0xfc   : > { %1344 = vpow2.f32 %v1029_v62  ;;  %v1032_v6 = vmul.f32 -1.442695, %v1593_v0  ;;  %v1252_v7 = vpop.f32.mrf.mxu0  ;;  %v1268_v8 = vpop.f32.mrf.mxu1 }
  0xfd   : > { %1346 = vpow2.f32 %v1016_v3  ;;  %v1014_v9 = vmul.f32 -1.442695, %v1597_v4  ;;  %v1030_v10 = vmul.f32 -1.442695, %v1600_v5  ;;  %v1606_v41 = vadd.f32 %v1252_v7, %v1539_v24 }
  0xfe   : > { %v1323_v11 = vpop.eup %1322  ;;  %1348 = vpow2.f32 %v1032_v6  ;;  %v440_v12 = vpop.f32.mrf.mxu0  ;;  %v1609_v53 = vadd.f32 %v1268_v8, %v1539_v24 }
  0xff   : > { %v504_v13 = vpop.f32.mrf.mxu1  ;;  %v1325_v14 = vpop.eup %1324  ;;  %v633_v15 = vadd.f32 1.0, %v1323_v11  ;;  %1350 = vpow2.f32 %v1014_v9  ;;  %v1019_v59 = vmul.f32 -1.442695, %v1606_v41  ;;  %v1613_v60 = vadd.f32 %v1539_v24, %v440_v12 }
 0x100   : > { %v1327_v16 = vpop.eup %1326  ;;  %v649_v17 = vadd.f32 1.0, %v1325_v14  ;;  %1352 = vpow2.f32 %v1030_v10  ;;  %v1253_v18 = vpop.f32.mrf.mxu0  ;;  %v1616_v1 = vadd.f32 %v1539_v24, %v504_v13 }
 0x101   : > { %v1329_v19 = vpop.eup %1328  ;;  %1354 = vrcp.f32 %v633_v15  ;;  %v631_v20 = vadd.f32 1.0, %v1327_v16  ;;  %v1269_v21 = vpop.f32.mrf.mxu1  ;;  %v1619_v2 = vadd.f32 %v1253_v18, %v1539_v24 }
 0x102   : > { %v1331_v22 = vpop.eup %1330  ;;  %1356 = vrcp.f32 %v649_v17  ;;  %v647_v23 = vadd.f32 1.0, %v1329_v19  ;;  %v443_v31 = vpop.f32.mrf.mxu0  ;;  %v1622_v7 = vadd.f32 %v1269_v21, %v1539_v24  ;;  %v1035_v17 = vmul.f32 -1.442695, %v1609_v53 }
 0x103   : > { %v1333_v25 = vpop.eup %1332  ;;  %1358 = vrcp.f32 %v631_v20  ;;  %v634_v26 = vadd.f32 1.0, %v1331_v22  ;;  %v507_v36 = vpop.f32.mrf.mxu1  ;;  %v1625_v8 = vadd.f32 %v1539_v24, %v443_v31  ;;  %v1017_v20 = vmul.f32 -1.442695, %v1613_v60 }
 0x104   : > { %v1335_v29 = vpop.eup %1334  ;;  %1360 = vrcp.f32 %v647_v23  ;;  %v650_v30 = vadd.f32 1.0, %v1333_v25  ;;  %v1256_v48 = vpop.f32.mrf.mxu0  ;;  %v1628_v12 = vadd.f32 %v1539_v24, %v507_v36  ;;  %v1033_v22 = vmul.f32 -1.442695, %v1616_v1 }
 0x105   : > { %v1337_v32 = vpop.eup %1336  ;;  %1362 = vrcp.f32 %v634_v26  ;;  %v632_v35 = vadd.f32 1.0, %v1335_v29  ;;  %v1272_v54 = vpop.f32.mrf.mxu1  ;;  %v1631_v13 = vadd.f32 %v1256_v48, %v1539_v24  ;;  %v1020_v23 = vmul.f32 -1.442695, %v1619_v2 }
 0x106   : > { %v1339_v37 = vpop.eup %1338  ;;  %1364 = vrcp.f32 %v650_v30  ;;  %v648_v38 = vadd.f32 1.0, %v1337_v32  ;;  %v456_v9 = vpop.f32.mrf.mxu0  ;;  %v1635_v18 = vadd.f32 %v1272_v54, %v1539_v24  ;;  %v1036_v25 = vmul.f32 -1.442695, %v1622_v7 }
 0x107   : > { %v1341_v42 = vpop.eup %1340  ;;  %1366 = vrcp.f32 %v632_v35  ;;  %v637_v43 = vadd.f32 1.0, %v1339_v37  ;;  %v520_v14 = vpop.f32.mrf.mxu1  ;;  %v1018_v30 = vmul.f32 -1.442695, %v1625_v8  ;;  %v1034_v31 = vmul.f32 -1.442695, %v1628_v12 }
 0x108   : > { %v1343_v46 = vpop.eup %1342  ;;  %1368 = vrcp.f32 %v648_v38  ;;  %v653_v47 = vadd.f32 1.0, %v1341_v42  ;;  %v1257_v26 = vpop.f32.mrf.mxu0  ;;  %v1023_v32 = vmul.f32 -1.442695, %v1631_v13  ;;  %v1039_v37 = vmul.f32 -1.442695, %v1635_v18 }
 0x109   : > { %v1345_v49 = vpop.eup %1344  ;;  %1370 = vrcp.f32 %v637_v43  ;;  %v635_v50 = vadd.f32 1.0, %v1343_v46  ;;  %v1273_v35 = vpop.f32.mrf.mxu1  ;;  %v1646_v38 = vadd.f32 %v1539_v24, %v456_v9  ;;  %v1649_v42 = vadd.f32 %v1539_v24, %v520_v14 }
 0x10a   : > { %v1347_v55 = vpop.eup %1346  ;;  %1372 = vrcp.f32 %v653_v47  ;;  %v651_v58 = vadd.f32 1.0, %v1345_v49  ;;  %v1654_v48 = vadd.f32 %v1257_v26, %v1539_v24 }
 0x10b   : > { %v1349_v61 = vpop.eup %1348  ;;  %1374 = vrcp.f32 %v635_v50  ;;  %v638_v62 = vadd.f32 1.0, %v1347_v55 }
 0x10c   : > { %v1351_v3 = vpop.eup %1350  ;;  %1376 = vrcp.f32 %v651_v58  ;;  %v654_v6 = vadd.f32 1.0, %v1349_v61  ;;  %v523_v61 = vpop.f32.mrf.mxu1 }
 0x10d   : > { %v1353_v10 = vpop.eup %1352  ;;  %1378 = vrcp.f32 %v638_v62  ;;  %v636_v11 = vadd.f32 1.0, %v1351_v3 }
 0x10e   : > { %v1355_v15 = vpop.eup %1354  ;;  %1380 = vrcp.f32 %v654_v6  ;;  %v652_v16 = vadd.f32 1.0, %v1353_v10 }
 0x10f   : > { %v1357_v19 = vpop.eup %1356  ;;  %1382 = vrcp.f32 %v636_v11  ;;  %v729_v46 = vmul.f32 %v1355_v15, %v1542_v27  ;;  %v1666_v27 = vadd.f32 %v1273_v35, %v1539_v24  ;;  %v1680_v15 = vadd.f32 %v1539_v24, %v523_v61 }
 0x110   : > { %v1359_v21 = vpop.eup %1358  ;;  %1384 = vrcp.f32 %v652_v16  ;;  %v745_v50 = vmul.f32 %v1357_v19, %v1545_v28  ;;  %v1024_v16 = vmul.f32 -1.442695, %v1654_v48 }
 0x111   : > { %v1361_v29 = vpop.eup %1360  ;;  %1386 = vpow2.f32 %v1019_v59  ;;  %v727_v58 = vmul.f32 %v1359_v21, %v1550_v33  ;;  %v1021_v33 = vmul.f32 -1.442695, %v1646_v38  ;;  %v1040_v19 = vmul.f32 -1.442695, %v1666_v27 }
 0x112   : > { %v1363_v36 = vpop.eup %1362  ;;  %1388 = vpow2.f32 %v1035_v17  ;;  %v743_v3 = vmul.f32 %v1361_v29, %v1553_v34  ;;  %v1037_v34 = vmul.f32 -1.442695, %v1649_v42  ;;  %v1038_v29 = vmul.f32 -1.442695, %v1680_v15 }
 0x113   : > { %v1365_v43 = vpop.eup %1364  ;;  %v730_v47 = vmul.f32 %v1363_v36, %v1558_v39  ;;  %1390 = vpow2.f32 %v1017_v20  ;;  %v459_v39 = vpop.f32.mrf.mxu0 }
 0x114   : > { %v1367_v49 = vpop.eup %1366  ;;  %v746_v54 = vmul.f32 %v1365_v43, %v1561_v40  ;;  %1392 = vpow2.f32 %v1033_v22  ;;  %v1675_v11 = vadd.f32 %v1539_v24, %v459_v39 }
 0x115   : > { %v1369_v55 = vpop.eup %1368  ;;  %v1115_v59 = vpack.c.bf16 %v730_v47, %v729_v46  ;;  %v728_v28 = vmul.f32 %v1367_v49, %v1565_v44  ;;  %1394 = vpow2.f32 %v1020_v23 }
 0x116   : > { %v1371_v62 = vpop.eup %1370  ;;  %v1155_v6 = vpack.c.bf16 %v746_v54, %v745_v50  ;;  %v744_v40 = vmul.f32 %v1369_v55, %v1568_v45  ;;  %1396 = vpow2.f32 %v1036_v25  ;;  %v1022_v23 = vmul.f32 -1.442695, %v1675_v11 }
 0x117   : > { %v1373_v9 = vpop.eup %1372  ;;  %1187 = vst [vmem:[%s1662_s13 + $0x8] sm:$0xff] %v1115_v59   ;;  %v1110_v10 = vpack.c.bf16 %v728_v28, %v727_v58  ;;  %1398 = vpow2.f32 %v1018_v30  ;;  %v733_v21 = vmul.f32 %v1371_v62, %v1574_v51 }
 0x118   : > { %v1375_v44 = vpop.eup %1374  ;;  %1195 = vst [vmem:[%s1662_s13 + $0x48] sm:$0xff] %v1155_v6   ;;  %v1150_v14 = vpack.c.bf16 %v744_v40, %v743_v3  ;;  %1400 = vpow2.f32 %v1034_v31  ;;  %v749_v25 = vmul.f32 %v1373_v9, %v1577_v52 }
 0x119   : > { %v1377_v45 = vpop.eup %1376  ;;  %1111 = vst [vmem:[%s1662_s13] sm:$0xff] %v1110_v10   ;;  %1402 = vpow2.f32 %v1023_v32  ;;  %v731_v31 = vmul.f32 %v1375_v44, %v1581_v56 }
 0x11a   : > { %v1379_v17 = vpop.eup %1378  ;;  %1194 = vst [vmem:[%s1662_s13 + $0x40] sm:$0xff] %v1150_v14   ;;  %1404 = vpow2.f32 %v1039_v37  ;;  %v747_v35 = vmul.f32 %v1377_v45, %v1584_v57 }
 0x11b   : > { %v1381_v20 = vpop.eup %1380  ;;  %v734_v22 = vmul.f32 %v1379_v17, %v1590_v63  ;;  %1406 = vpow2.f32 %v1021_v33 }
 0x11c   : > { %v1383_v24 = vpop.eup %1382  ;;  %v750_v26 = vmul.f32 %v1381_v20, %v1593_v0  ;;  %1408 = vpow2.f32 %v1037_v34 }
 0x11d   : > { %v1385_v30 = vpop.eup %1384  ;;  %v1125_v32 = vpack.c.bf16 %v734_v22, %v733_v21  ;;  %v732_v51 = vmul.f32 %v1383_v24, %v1597_v4  ;;  %1410 = vpow2.f32 %v1024_v16 }
 0x11e   : > { %v1387_v63 = vpop.eup %1386  ;;  %v1165_v36 = vpack.c.bf16 %v750_v26, %v749_v25  ;;  %v748_v52 = vmul.f32 %v1385_v30, %v1600_v5  ;;  %1412 = vpow2.f32 %v1040_v19 }
 0x11f   : > { %v1389_v0 = vpop.eup %1388  ;;  %1189 = vst [vmem:[%s1662_s13 + $0x18] sm:$0xff] %v1125_v32   ;;  %v1120_v37 = vpack.c.bf16 %v732_v51, %v731_v31  ;;  %v641_v43 = vadd.f32 1.0, %v1387_v63  ;;  %1414 = vpow2.f32 %v1022_v23 }
 0x120   : > { %v1391_v46 = vpop.eup %1390  ;;  %1197 = vst [vmem:[%s1662_s13 + $0x58] sm:$0xff] %v1165_v36   ;;  %v1160_v56 = vpack.c.bf16 %v748_v52, %v747_v35  ;;  %v657_v47 = vadd.f32 1.0, %v1389_v0  ;;  %1416 = vpow2.f32 %v1038_v29 }
 0x121   : > { %v1393_v4 = vpop.eup %1392  ;;  %1188 = vst [vmem:[%s1662_s13 + $0x10] sm:$0xff] %v1120_v37   ;;  %1418 = vrcp.f32 %v641_v43  ;;  %v639_v49 = vadd.f32 1.0, %v1391_v46 }
 0x122   : > { %v1395_v57 = vpop.eup %1394  ;;  %1196 = vst [vmem:[%s1662_s13 + $0x50] sm:$0xff] %v1160_v56   ;;  %1420 = vrcp.f32 %v657_v47  ;;  %v655_v5 = vadd.f32 1.0, %v1393_v4 }
 0x123   : > { %v1397_v50 = vpop.eup %1396  ;;  %1422 = vrcp.f32 %v639_v49  ;;  %v642_v54 = vadd.f32 1.0, %v1395_v57 }
 0x124   : > { %v1399_v39 = vpop.eup %1398  ;;  %1424 = vrcp.f32 %v655_v5  ;;  %v658_v55 = vadd.f32 1.0, %v1397_v50 }
 0x125   : > { %v1401_v58 = vpop.eup %1400  ;;  %1426 = vrcp.f32 %v642_v54  ;;  %v640_v59 = vadd.f32 1.0, %v1399_v39 }
 0x126   : > { %v1403_v28 = vpop.eup %1402  ;;  %1428 = vrcp.f32 %v658_v55  ;;  %v656_v61 = vadd.f32 1.0, %v1401_v58 }
 0x127   : > { %v1405_v62 = vpop.eup %1404  ;;  %1430 = vrcp.f32 %v640_v59  ;;  %v645_v3 = vadd.f32 1.0, %v1403_v28 }
 0x128   : > { %v1407_v6 = vpop.eup %1406  ;;  %1432 = vrcp.f32 %v656_v61  ;;  %v661_v40 = vadd.f32 1.0, %v1405_v62 }
 0x129   : > { %v1409_v9 = vpop.eup %1408  ;;  %1434 = vrcp.f32 %v645_v3  ;;  %v643_v10 = vadd.f32 1.0, %v1407_v6 }
 0x12a   : > { %v1411_v33 = vpop.eup %1410  ;;  %1436 = vrcp.f32 %v661_v40  ;;  %v659_v44 = vadd.f32 1.0, %v1409_v9 }
 0x12b   : > { %v1413_v14 = vpop.eup %1412  ;;  %1438 = vrcp.f32 %v643_v10  ;;  %v646_v34 = vadd.f32 1.0, %v1411_v33 }
 0x12c   : > { %v1415_v45 = vpop.eup %1414  ;;  %1440 = vrcp.f32 %v659_v44  ;;  %v662_v16 = vadd.f32 1.0, %v1413_v14 }
 0x12d   : > { %v1417_v17 = vpop.eup %1416  ;;  %1442 = vrcp.f32 %v646_v34  ;;  %v644_v19 = vadd.f32 1.0, %v1415_v45 }
 0x12e   : > { %v1419_v20 = vpop.eup %1418  ;;  %1444 = vrcp.f32 %v662_v16  ;;  %v660_v21 = vadd.f32 1.0, %v1417_v17 }
 0x12f   : > { %v1421_v22 = vpop.eup %1420  ;;  %1446 = vrcp.f32 %v644_v19  ;;  %v737_v29 = vmul.f32 %v1419_v20, %v1606_v41 }
 0x130   : > { %v1423_v23 = vpop.eup %1422  ;;  %1448 = vrcp.f32 %v660_v21  ;;  %v753_v32 = vmul.f32 %v1421_v22, %v1609_v53 }
 0x131   : > { %v1425_v24 = vpop.eup %1424  ;;  %v735_v35 = vmul.f32 %v1423_v23, %v1613_v60 }
 0x132   : > { %v1427_v25 = vpop.eup %1426  ;;  %v751_v37 = vmul.f32 %v1425_v24, %v1616_v1 }
 0x133   : > { %v1429_v26 = vpop.eup %1428  ;;  %v738_v30 = vmul.f32 %v1427_v25, %v1619_v2 }
 0x134   : > { %v1431_v31 = vpop.eup %1430  ;;  %v754_v51 = vmul.f32 %v1429_v26, %v1622_v7 }
 0x135   : > { %v1433_v63 = vpop.eup %1432  ;;  %v1135_v36 = vpack.c.bf16 %v738_v30, %v737_v29  ;;  %v736_v52 = vmul.f32 %v1431_v31, %v1625_v8 }
 0x136   : > { %v1435_v0 = vpop.eup %1434  ;;  %v1175_v41 = vpack.c.bf16 %v754_v51, %v753_v32  ;;  %v752_v2 = vmul.f32 %v1433_v63, %v1628_v12 }
 0x137   : > { %v1437_v43 = vpop.eup %1436  ;;  %1191 = vst [vmem:[%s1662_s13 + $0x28] sm:$0xff] %v1135_v36   ;;  %v1130_v46 = vpack.c.bf16 %v736_v52, %v735_v35  ;;  %v741_v8 = vmul.f32 %v1435_v0, %v1631_v13 }
 0x138   : > { %v1439_v53 = vpop.eup %1438  ;;  %1199 = vst [vmem:[%s1662_s13 + $0x68] sm:$0xff] %v1175_v41   ;;  %v1170_v7 = vpack.c.bf16 %v752_v2, %v751_v37  ;;  %v757_v4 = vmul.f32 %v1437_v43, %v1635_v18 }
 0x139   : > { %v1441_v56 = vpop.eup %1440  ;;  %1190 = vst [vmem:[%s1662_s13 + $0x20] sm:$0xff] %v1130_v46   ;;  %v739_v5 = vmul.f32 %v1439_v53, %v1646_v38 }
 0x13a   : > { %v1443_v60 = vpop.eup %1442  ;;  %1198 = vst [vmem:[%s1662_s13 + $0x60] sm:$0xff] %v1170_v7   ;;  %v755_v39 = vmul.f32 %v1441_v56, %v1649_v42 }
 0x13b   : > { %v1445_v47 = vpop.eup %1444  ;;  %v742_v1 = vmul.f32 %v1443_v60, %v1654_v48 }
 0x13c   : > { %v1447_v12 = vpop.eup %1446  ;;  %v758_v49 = vmul.f32 %v1445_v47, %v1666_v27 }
 0x13d   : > { %v1449_v57 = vpop.eup %1448  ;;  %v1145_v50 = vpack.c.bf16 %v742_v1, %v741_v8  ;;  %v740_v54 = vmul.f32 %v1447_v12, %v1675_v11 }
 0x13e   : > { %v1185_v55 = vpack.c.bf16 %v758_v49, %v757_v4  ;;  %v756_v13 = vmul.f32 %v1449_v57, %v1680_v15 }
 0x13f   : > { %1193 = vst [vmem:[%s1662_s13 + $0x38] sm:$0xff] %v1145_v50   ;;  %v1140_v58 = vpack.c.bf16 %v740_v54, %v739_v5 }
 0x140   : > { %1201 = vst [vmem:[%s1662_s13 + $0x78] sm:$0xff] %v1185_v55   ;;  %v1180_v48 = vpack.c.bf16 %v756_v13, %v755_v39 }
 0x141   : > { %1192 = vst [vmem:[%s1662_s13 + $0x30] sm:$0xff] %v1140_v58  }
 0x142   : > { %1200 = vst [vmem:[%s1662_s13 + $0x70] sm:$0xff] %v1180_v48  }
 0x143 PF: > { %s13_s12 = sadd.s32 1, %s1456_s12  }
 0x144   : > { %p10_p4 = scmp.ge.s32.totalorder %s13_s12, 6  }
 0x146   :  { %12 = sbr.rel (!%p10_p4) target bundleno = 1 (0x1), region = 62 }

// kernel: _forward.23
= control target key start
LH: loop header
LB: loop body
LE: loop exit
PB: predicated region body
PF: predicated region fallthrough
CT: control target
= control target key end

     0   :  { %s1524_s1 = inlined_call_operand.vmem [shape: bf16[128,128], index: 1, kind: input, shape index: {}]   ;;  %s1525_s0 = inlined_call_operand.vmem [shape: bf16[256,128], index: 0, kind: input, shape index: {}]   ;;  %s1526_s2 = inlined_call_operand.vmem [shape: f32[1,128], index: 2, kind: input, shape index: {}]   ;;  %s1527_s3 = inlined_call_operand.vmem [shape: bf16[256,128], index: 3, kind: output, shape index: {}]  }
   0x1   :  { %v1067_v0 = vld [vmem:[%s1524_s1 + $0x38] sm:$0xff]   ;;  %v1068_v1 = vld [vmem:[%s1524_s1 + $0x30] sm:$0xff]   ;;  %v1069_v2 = vld [vmem:[%s1524_s1 + $0x28] sm:$0xff]  }
   0x2   :  { %1003 = vmatprep.subr.bf16.mxu0 %v1067_v0  ;;  %1051 = vmatprep.subr.bf16.mxu1 %v1067_v0  ;;  %v1070_v3 = vld [vmem:[%s1524_s1 + $0x20] sm:$0xff]   ;;  %v1071_v6 = vld [vmem:[%s1524_s1 + $0x18] sm:$0xff]   ;;  %v1072_v7 = vld [vmem:[%s1524_s1 + $0x10] sm:$0xff]  }
   0x3   :  { %1004 = vmatpush3.bf16.msra.mxu0 %v1067_v0  ;;  %1059 = vmatpush3.bf16.msra.mxu1 %v1067_v0  ;;  %v1075_v4 = vld [vmem:[%s1525_s0] sm:$0xff]   ;;  %v1073_v8 = vld [vmem:[%s1524_s1 + $0x8] sm:$0xff]   ;;  %v1079_v12 = vld [vmem:[%s1525_s0 + $0x10] sm:$0xff]  }
   0x4   :  { %1005 = vmatprep.subr.bf16.mxu0 %v1068_v1  ;;  %1052 = vmatprep.subr.bf16.mxu1 %v1068_v1  ;;  %v1076_v5 = vld [vmem:[%s1525_s0 + $0x40] sm:$0xff]   ;;  %v1077_v10 = vld [vmem:[%s1525_s0 + $0x8] sm:$0xff]   ;;  %v1080_v13 = vld [vmem:[%s1525_s0 + $0x50] sm:$0xff]  }
   0x5   :  { %1019 = vmatprep.mubr.bf16.mxu0 %v1075_v4  ;;  %1035 = vmatprep.mubr.bf16.mxu1 %v1076_v5  ;;  %v1074_v9 = vld [vmem:[%s1524_s1] sm:$0xff]   ;;  %v1078_v11 = vld [vmem:[%s1525_s0 + $0x48] sm:$0xff]   ;;  %v1081_v14 = vld [vmem:[%s1525_s0 + $0x18] sm:$0xff]  }
   0x6   :  { %v1082_v15 = vld [vmem:[%s1525_s0 + $0x58] sm:$0xff]   ;;  %v1083_v16 = vld [vmem:[%s1525_s0 + $0x20] sm:$0xff]   ;;  %v1085_v18 = vld [vmem:[%s1525_s0 + $0x28] sm:$0xff]  }
   0x7   :  { %1006 = vmatpush3.bf16.msra.mxu0 %v1068_v1  ;;  %1060 = vmatpush3.bf16.msra.mxu1 %v1068_v1  ;;  %v1084_v17 = vld [vmem:[%s1525_s0 + $0x60] sm:$0xff]   ;;  %v1086_v19 = vld [vmem:[%s1525_s0 + $0x68] sm:$0xff]   ;;  %v1087_v20 = vld [vmem:[%s1525_s0 + $0x30] sm:$0xff]  }
   0x8   :  { %1007 = vmatprep.subr.bf16.mxu0 %v1069_v2  ;;  %1053 = vmatprep.subr.bf16.mxu1 %v1069_v2  ;;  %v1088_v21 = vld [vmem:[%s1525_s0 + $0x70] sm:$0xff]   ;;  %v1089_v22 = vld [vmem:[%s1525_s0 + $0x38] sm:$0xff]   ;;  %v1314_v24 = vld [vmem:[%s1526_s2] ss:$0 sm:$0xff] }
   0x9   :  { %v1090_v23 = vld [vmem:[%s1525_s0 + $0x78] sm:$0xff]  }
   0xb   :  { %1008 = vmatpush3.bf16.msra.mxu0 %v1069_v2  ;;  %1061 = vmatpush3.bf16.msra.mxu1 %v1069_v2 }
   0xc   :  { %1009 = vmatprep.subr.bf16.mxu0 %v1070_v3  ;;  %1054 = vmatprep.subr.bf16.mxu1 %v1070_v3 }
   0xf   :  { %1010 = vmatpush3.bf16.msra.mxu0 %v1070_v3  ;;  %1062 = vmatpush3.bf16.msra.mxu1 %v1070_v3 }
  0x10   :  { %1011 = vmatprep.subr.bf16.mxu0 %v1071_v6  ;;  %1055 = vmatprep.subr.bf16.mxu1 %v1071_v6 }
  0x13   :  { %1012 = vmatpush3.bf16.msra.mxu0 %v1071_v6  ;;  %1063 = vmatpush3.bf16.msra.mxu1 %v1071_v6 }
  0x14   :  { %1013 = vmatprep.subr.bf16.mxu0 %v1072_v7  ;;  %1056 = vmatprep.subr.bf16.mxu1 %v1072_v7 }
  0x17   :  { %1014 = vmatpush3.bf16.msra.mxu0 %v1072_v7  ;;  %1064 = vmatpush3.bf16.msra.mxu1 %v1072_v7 }
  0x18   :  { %1015 = vmatprep.subr.bf16.mxu0 %v1073_v8  ;;  %1057 = vmatprep.subr.bf16.mxu1 %v1073_v8 }
  0x1b   :  { %1016 = vmatpush3.bf16.msra.mxu0 %v1073_v8  ;;  %1065 = vmatpush3.bf16.msra.mxu1 %v1073_v8 }
  0x1c   :  { %1017 = vmatprep.subr.bf16.mxu0 %v1074_v9  ;;  %1058 = vmatprep.subr.bf16.mxu1 %v1074_v9 }
  0x1f   :  { %1018 = vmatpush3.bf16.msra.mxu0 %v1074_v9  ;;  %1066 = vmatpush3.bf16.msra.mxu1 %v1074_v9 }
  0x22   :  { %1020 = vmatmul.mubr.bf16.vlgmr.msra.gmra.mxu0 %v1077_v10  ;;  %1036 = vmatmul.mubr.bf16.vlgmr.msra.gmra.mxu1 %v1078_v11 }
  0x23   :  { %1023 = vmatprep.mubr.bf16.mxu0 %v1079_v12  ;;  %1039 = vmatprep.mubr.bf16.mxu1 %v1080_v13 }
  0x2a   :  { %1024 = vmatmul.mubr.bf16.gmra.mxu0 %v1081_v14  ;;  %1040 = vmatmul.mubr.bf16.gmra.mxu1 %v1082_v15 }
  0x2b   :  { %1027 = vmatprep.mubr.bf16.mxu0 %v1083_v16  ;;  %1043 = vmatprep.mubr.bf16.mxu1 %v1084_v17 }
  0x32   :  { %1028 = vmatmul.mubr.bf16.gmra.mxu0 %v1085_v18  ;;  %1044 = vmatmul.mubr.bf16.gmra.mxu1 %v1086_v19 }
  0x33   :  { %1031 = vmatprep.mubr.bf16.mxu0 %v1087_v20  ;;  %1047 = vmatprep.mubr.bf16.mxu1 %v1088_v21 }
  0x3a   :  { %1032 = vmatmul.mubr.bf16.gmra.mxu0 %v1089_v22  ;;  %1048 = vmatmul.mubr.bf16.gmra.mxu1 %v1090_v23 }
  0xe2   :  { %v1021_v25 = vpop.f32.mrf.mxu0  ;;  %v1037_v26 = vpop.f32.mrf.mxu1 }
  0xe3   :  { %v1317_v27 = vadd.f32 %v1021_v25, %v1314_v24  ;;  %v1320_v28 = vadd.f32 %v1037_v26, %v1314_v24 }
  0xe4   :  { %v248_v29 = vpop.f32.mrf.mxu0  ;;  %v312_v30 = vpop.f32.mrf.mxu1 }
  0xe5   :  { %v790_v31 = vmul.f32 -1.442695, %v1317_v27  ;;  %v806_v32 = vmul.f32 -1.442695, %v1320_v28  ;;  %v1325_v33 = vadd.f32 %v1314_v24, %v248_v29  ;;  %v1328_v34 = vadd.f32 %v1314_v24, %v312_v30 }
  0xe6   :  { %v1022_v35 = vpop.f32.mrf.mxu0  ;;  %v1038_v36 = vpop.f32.mrf.mxu1 }
  0xe7   :  { %1091 = vpow2.f32 %v790_v31  ;;  %v788_v37 = vmul.f32 -1.442695, %v1325_v33  ;;  %v804_v38 = vmul.f32 -1.442695, %v1328_v34  ;;  %v1333_v39 = vadd.f32 %v1022_v35, %v1314_v24 }
  0xe8   :  { %1093 = vpow2.f32 %v806_v32  ;;  %v1336_v40 = vadd.f32 %v1038_v36, %v1314_v24  ;;  %v251_v41 = vpop.f32.mrf.mxu0  ;;  %v315_v42 = vpop.f32.mrf.mxu1 }
  0xe9   :  { %1095 = vpow2.f32 %v788_v37  ;;  %v791_v43 = vmul.f32 -1.442695, %v1333_v39  ;;  %v1340_v44 = vadd.f32 %v1314_v24, %v251_v41  ;;  %v1343_v45 = vadd.f32 %v1314_v24, %v315_v42 }
  0xea   :  { %1097 = vpow2.f32 %v804_v38  ;;  %v807_v46 = vmul.f32 -1.442695, %v1336_v40  ;;  %v1025_v47 = vpop.f32.mrf.mxu0  ;;  %v1041_v48 = vpop.f32.mrf.mxu1 }
  0xeb   :  { %1099 = vpow2.f32 %v791_v43  ;;  %v789_v49 = vmul.f32 -1.442695, %v1340_v44  ;;  %v805_v50 = vmul.f32 -1.442695, %v1343_v45  ;;  %v1349_v51 = vadd.f32 %v1025_v47, %v1314_v24 }
  0xec   :  { %1101 = vpow2.f32 %v807_v46  ;;  %v1352_v52 = vadd.f32 %v1041_v48, %v1314_v24  ;;  %v264_v53 = vpop.f32.mrf.mxu0  ;;  %v328_v54 = vpop.f32.mrf.mxu1 }
  0xed   :  { %1103 = vpow2.f32 %v789_v49  ;;  %v794_v55 = vmul.f32 -1.442695, %v1349_v51  ;;  %v1356_v56 = vadd.f32 %v1314_v24, %v264_v53  ;;  %v1359_v57 = vadd.f32 %v1314_v24, %v328_v54 }
  0xee   :  { %1105 = vpow2.f32 %v805_v50  ;;  %v810_v58 = vmul.f32 -1.442695, %v1352_v52  ;;  %v1026_v59 = vpop.f32.mrf.mxu0  ;;  %v1042_v60 = vpop.f32.mrf.mxu1 }
  0xef   :  { %1107 = vpow2.f32 %v794_v55  ;;  %v792_v61 = vmul.f32 -1.442695, %v1356_v56  ;;  %v808_v62 = vmul.f32 -1.442695, %v1359_v57  ;;  %v1365_v63 = vadd.f32 %v1026_v59, %v1314_v24 }
  0xf0   :  { %1109 = vpow2.f32 %v810_v58  ;;  %v1368_v0 = vadd.f32 %v1042_v60, %v1314_v24  ;;  %v267_v1 = vpop.f32.mrf.mxu0  ;;  %v331_v2 = vpop.f32.mrf.mxu1 }
  0xf1   :  { %1111 = vpow2.f32 %v792_v61  ;;  %v795_v3 = vmul.f32 -1.442695, %v1365_v63  ;;  %v1372_v4 = vadd.f32 %v1314_v24, %v267_v1  ;;  %v1375_v5 = vadd.f32 %v1314_v24, %v331_v2 }
  0xf2   :  { %1113 = vpow2.f32 %v808_v62  ;;  %v811_v6 = vmul.f32 -1.442695, %v1368_v0  ;;  %v1029_v7 = vpop.f32.mrf.mxu0  ;;  %v1045_v8 = vpop.f32.mrf.mxu1 }
  0xf3   :  { %1115 = vpow2.f32 %v795_v3  ;;  %v793_v9 = vmul.f32 -1.442695, %v1372_v4  ;;  %v809_v10 = vmul.f32 -1.442695, %v1375_v5  ;;  %v1381_v41 = vadd.f32 %v1029_v7, %v1314_v24 }
  0xf4   :  { %v1092_v11 = vpop.eup %1091  ;;  %1117 = vpow2.f32 %v811_v6  ;;  %v280_v12 = vpop.f32.mrf.mxu0  ;;  %v1384_v53 = vadd.f32 %v1045_v8, %v1314_v24 }
  0xf5   :  { %v344_v13 = vpop.f32.mrf.mxu1  ;;  %v1094_v14 = vpop.eup %1093  ;;  %v473_v15 = vadd.f32 1.0, %v1092_v11  ;;  %1119 = vpow2.f32 %v793_v9  ;;  %v798_v59 = vmul.f32 -1.442695, %v1381_v41  ;;  %v1388_v60 = vadd.f32 %v1314_v24, %v280_v12 }
  0xf6   :  { %v1096_v16 = vpop.eup %1095  ;;  %v489_v17 = vadd.f32 1.0, %v1094_v14  ;;  %1121 = vpow2.f32 %v809_v10  ;;  %v1030_v18 = vpop.f32.mrf.mxu0  ;;  %v1391_v1 = vadd.f32 %v1314_v24, %v344_v13 }
  0xf7   :  { %v1098_v19 = vpop.eup %1097  ;;  %1123 = vrcp.f32 %v473_v15  ;;  %v471_v20 = vadd.f32 1.0, %v1096_v16  ;;  %v1046_v21 = vpop.f32.mrf.mxu1  ;;  %v1394_v2 = vadd.f32 %v1030_v18, %v1314_v24 }
  0xf8   :  { %v1100_v22 = vpop.eup %1099  ;;  %1125 = vrcp.f32 %v489_v17  ;;  %v487_v23 = vadd.f32 1.0, %v1098_v19  ;;  %v283_v31 = vpop.f32.mrf.mxu0  ;;  %v1397_v7 = vadd.f32 %v1046_v21, %v1314_v24  ;;  %v814_v17 = vmul.f32 -1.442695, %v1384_v53 }
  0xf9   :  { %v1102_v25 = vpop.eup %1101  ;;  %1127 = vrcp.f32 %v471_v20  ;;  %v474_v26 = vadd.f32 1.0, %v1100_v22  ;;  %v347_v36 = vpop.f32.mrf.mxu1  ;;  %v1400_v8 = vadd.f32 %v1314_v24, %v283_v31  ;;  %v796_v20 = vmul.f32 -1.442695, %v1388_v60 }
  0xfa   :  { %v1104_v29 = vpop.eup %1103  ;;  %1129 = vrcp.f32 %v487_v23  ;;  %v490_v30 = vadd.f32 1.0, %v1102_v25  ;;  %v1033_v48 = vpop.f32.mrf.mxu0  ;;  %v1403_v12 = vadd.f32 %v1314_v24, %v347_v36  ;;  %v812_v22 = vmul.f32 -1.442695, %v1391_v1 }
  0xfb   :  { %v1106_v32 = vpop.eup %1105  ;;  %1131 = vrcp.f32 %v474_v26  ;;  %v472_v35 = vadd.f32 1.0, %v1104_v29  ;;  %v1049_v54 = vpop.f32.mrf.mxu1  ;;  %v1406_v13 = vadd.f32 %v1033_v48, %v1314_v24  ;;  %v799_v23 = vmul.f32 -1.442695, %v1394_v2 }
  0xfc   :  { %v1108_v37 = vpop.eup %1107  ;;  %1133 = vrcp.f32 %v490_v30  ;;  %v488_v38 = vadd.f32 1.0, %v1106_v32  ;;  %v296_v9 = vpop.f32.mrf.mxu0  ;;  %v1410_v18 = vadd.f32 %v1049_v54, %v1314_v24  ;;  %v815_v25 = vmul.f32 -1.442695, %v1397_v7 }
  0xfd   :  { %v1110_v42 = vpop.eup %1109  ;;  %1135 = vrcp.f32 %v472_v35  ;;  %v477_v43 = vadd.f32 1.0, %v1108_v37  ;;  %v360_v14 = vpop.f32.mrf.mxu1  ;;  %v797_v30 = vmul.f32 -1.442695, %v1400_v8  ;;  %v813_v31 = vmul.f32 -1.442695, %v1403_v12 }
  0xfe   :  { %v1112_v46 = vpop.eup %1111  ;;  %1137 = vrcp.f32 %v488_v38  ;;  %v493_v47 = vadd.f32 1.0, %v1110_v42  ;;  %v1034_v26 = vpop.f32.mrf.mxu0  ;;  %v802_v32 = vmul.f32 -1.442695, %v1406_v13  ;;  %v818_v37 = vmul.f32 -1.442695, %v1410_v18 }
  0xff   :  { %v1114_v49 = vpop.eup %1113  ;;  %1139 = vrcp.f32 %v477_v43  ;;  %v475_v50 = vadd.f32 1.0, %v1112_v46  ;;  %v1050_v35 = vpop.f32.mrf.mxu1  ;;  %v1421_v38 = vadd.f32 %v1314_v24, %v296_v9  ;;  %v1424_v42 = vadd.f32 %v1314_v24, %v360_v14 }
 0x100   :  { %v1116_v55 = vpop.eup %1115  ;;  %1141 = vrcp.f32 %v493_v47  ;;  %v491_v58 = vadd.f32 1.0, %v1114_v49  ;;  %v1429_v48 = vadd.f32 %v1034_v26, %v1314_v24 }
 0x101   :  { %v1118_v61 = vpop.eup %1117  ;;  %1143 = vrcp.f32 %v475_v50  ;;  %v478_v62 = vadd.f32 1.0, %v1116_v55  ;;  %v1434_v55 = vadd.f32 %v1050_v35, %v1314_v24 }
 0x102   :  { %v1120_v3 = vpop.eup %1119  ;;  %1145 = vrcp.f32 %v491_v58  ;;  %v494_v6 = vadd.f32 1.0, %v1118_v61  ;;  %v299_v58 = vpop.f32.mrf.mxu0 }
 0x103   :  { %v1122_v10 = vpop.eup %1121  ;;  %1147 = vrcp.f32 %v478_v62  ;;  %v476_v11 = vadd.f32 1.0, %v1120_v3  ;;  %v363_v62 = vpop.f32.mrf.mxu1 }
 0x104   :  { %v1124_v15 = vpop.eup %1123  ;;  %1149 = vrcp.f32 %v494_v6  ;;  %v492_v16 = vadd.f32 1.0, %v1122_v10  ;;  %v1452_v14 = vadd.f32 %v1314_v24, %v363_v62 }
 0x105   :  { %v1126_v19 = vpop.eup %1125  ;;  %1151 = vrcp.f32 %v476_v11  ;;  %v569_v46 = vmul.f32 %v1124_v15, %v1317_v27 }
 0x106   :  { %v1128_v21 = vpop.eup %1127  ;;  %1153 = vrcp.f32 %v492_v16  ;;  %v585_v50 = vmul.f32 %v1126_v19, %v1320_v28  ;;  %v803_v16 = vmul.f32 -1.442695, %v1429_v48  ;;  %v819_v19 = vmul.f32 -1.442695, %v1434_v55 }
 0x107   :  { %v1130_v29 = vpop.eup %1129  ;;  %1155 = vpow2.f32 %v798_v59  ;;  %v567_v61 = vmul.f32 %v1128_v21, %v1325_v33  ;;  %v800_v33 = vmul.f32 -1.442695, %v1421_v38 }
 0x108   :  { %v1132_v36 = vpop.eup %1131  ;;  %1157 = vpow2.f32 %v814_v17  ;;  %v583_v6 = vmul.f32 %v1130_v29, %v1328_v34  ;;  %v817_v29 = vmul.f32 -1.442695, %v1452_v14 }
 0x109   :  { %v1134_v43 = vpop.eup %1133  ;;  %v570_v47 = vmul.f32 %v1132_v36, %v1333_v39  ;;  %1159 = vpow2.f32 %v796_v20 }
 0x10a   :  { %v1136_v49 = vpop.eup %1135  ;;  %v586_v54 = vmul.f32 %v1134_v43, %v1336_v40  ;;  %1161 = vpow2.f32 %v812_v22 }
 0x10b   :  { %v1138_v59 = vpop.eup %1137  ;;  %v892_v27 = vpack.c.bf16 %v570_v47, %v569_v46  ;;  %v568_v39 = vmul.f32 %v1136_v49, %v1340_v44  ;;  %1163 = vpow2.f32 %v799_v23  ;;  %v1445_v44 = vadd.f32 %v1314_v24, %v299_v58 }
 0x10c   :  { %v1140_v3 = vpop.eup %1139  ;;  %v932_v9 = vpack.c.bf16 %v586_v54, %v585_v50  ;;  %v584_v28 = vmul.f32 %v1138_v59, %v1343_v45  ;;  %1165 = vpow2.f32 %v815_v25  ;;  %v816_v45 = vmul.f32 -1.442695, %v1424_v42 }
 0x10d   :  { %v1142_v40 = vpop.eup %1141  ;;  %964 = vst [vmem:[%s1527_s3 + $0x8] sm:$0xff] %v892_v27   ;;  %v887_v10 = vpack.c.bf16 %v568_v39, %v567_v61  ;;  %1167 = vpow2.f32 %v797_v30  ;;  %v573_v24 = vmul.f32 %v1140_v3, %v1349_v51  ;;  %v801_v22 = vmul.f32 -1.442695, %v1445_v44 }
 0x10e   :  { %v1144_v11 = vpop.eup %1143  ;;  %972 = vst [vmem:[%s1527_s3 + $0x48] sm:$0xff] %v932_v9   ;;  %v927_v34 = vpack.c.bf16 %v584_v28, %v583_v6  ;;  %1169 = vpow2.f32 %v813_v31  ;;  %v589_v25 = vmul.f32 %v1142_v40, %v1352_v52 }
 0x10f   :  { %v1146_v15 = vpop.eup %1145  ;;  %888 = vst [vmem:[%s1527_s3] sm:$0xff] %v887_v10   ;;  %1171 = vpow2.f32 %v802_v32  ;;  %v571_v31 = vmul.f32 %v1144_v11, %v1356_v56 }
 0x110   :  { %v1148_v17 = vpop.eup %1147  ;;  %971 = vst [vmem:[%s1527_s3 + $0x40] sm:$0xff] %v927_v34   ;;  %1173 = vpow2.f32 %v818_v37 }
 0x111   :  { %v1150_v20 = vpop.eup %1149  ;;  %v574_v21 = vmul.f32 %v1148_v17, %v1365_v63  ;;  %1175 = vpow2.f32 %v800_v33  ;;  %v587_v63 = vmul.f32 %v1146_v15, %v1359_v57 }
 0x112   :  { %v1152_v23 = vpop.eup %1151  ;;  %v590_v26 = vmul.f32 %v1150_v20, %v1368_v0  ;;  %1177 = vpow2.f32 %v816_v45 }
 0x113   :  { %v1154_v30 = vpop.eup %1153  ;;  %v902_v32 = vpack.c.bf16 %v574_v21, %v573_v24  ;;  %v572_v35 = vmul.f32 %v1152_v23, %v1372_v4  ;;  %1179 = vpow2.f32 %v803_v16 }
 0x114   :  { %v1156_v51 = vpop.eup %1155  ;;  %v942_v36 = vpack.c.bf16 %v590_v26, %v589_v25  ;;  %v588_v37 = vmul.f32 %v1154_v30, %v1375_v5  ;;  %1181 = vpow2.f32 %v819_v19 }
 0x115   :  { %v1158_v52 = vpop.eup %1157  ;;  %966 = vst [vmem:[%s1527_s3 + $0x18] sm:$0xff] %v902_v32   ;;  %v897_v0 = vpack.c.bf16 %v572_v35, %v571_v31  ;;  %v481_v43 = vadd.f32 1.0, %v1156_v51  ;;  %1183 = vpow2.f32 %v801_v22 }
 0x116   :  { %v1160_v56 = vpop.eup %1159  ;;  %974 = vst [vmem:[%s1527_s3 + $0x58] sm:$0xff] %v942_v36   ;;  %v937_v4 = vpack.c.bf16 %v588_v37, %v587_v63  ;;  %v497_v46 = vadd.f32 1.0, %v1158_v52  ;;  %1185 = vpow2.f32 %v817_v29 }
 0x117   :  { %v1162_v57 = vpop.eup %1161  ;;  %965 = vst [vmem:[%s1527_s3 + $0x10] sm:$0xff] %v897_v0   ;;  %1187 = vrcp.f32 %v481_v43  ;;  %v479_v5 = vadd.f32 1.0, %v1160_v56 }
 0x118   :  { %v1164_v47 = vpop.eup %1163  ;;  %973 = vst [vmem:[%s1527_s3 + $0x50] sm:$0xff] %v937_v4   ;;  %1189 = vrcp.f32 %v497_v46  ;;  %v495_v49 = vadd.f32 1.0, %v1162_v57 }
 0x119   :  { %v1166_v50 = vpop.eup %1165  ;;  %1191 = vrcp.f32 %v479_v5  ;;  %v482_v54 = vadd.f32 1.0, %v1164_v47 }
 0x11a   :  { %v1168_v58 = vpop.eup %1167  ;;  %1193 = vrcp.f32 %v495_v49  ;;  %v498_v59 = vadd.f32 1.0, %v1166_v50 }
 0x11b   :  { %v1170_v61 = vpop.eup %1169  ;;  %1195 = vrcp.f32 %v482_v54  ;;  %v480_v27 = vadd.f32 1.0, %v1168_v58 }
 0x11c   :  { %v1172_v39 = vpop.eup %1171  ;;  %1197 = vrcp.f32 %v498_v59  ;;  %v496_v62 = vadd.f32 1.0, %v1170_v61 }
 0x11d   :  { %v1174_v3 = vpop.eup %1173  ;;  %1199 = vrcp.f32 %v480_v27  ;;  %v485_v6 = vadd.f32 1.0, %v1172_v39 }
 0x11e   :  { %v1176_v9 = vpop.eup %1175  ;;  %1201 = vrcp.f32 %v496_v62  ;;  %v501_v28 = vadd.f32 1.0, %v1174_v3 }
 0x11f   :  { %v1178_v40 = vpop.eup %1177  ;;  %1203 = vrcp.f32 %v485_v6  ;;  %v483_v10 = vadd.f32 1.0, %v1176_v9 }
 0x120   :  { %v1180_v33 = vpop.eup %1179  ;;  %1205 = vrcp.f32 %v501_v28  ;;  %v499_v11 = vadd.f32 1.0, %v1178_v40 }
 0x121   :  { %v1182_v34 = vpop.eup %1181  ;;  %1207 = vrcp.f32 %v483_v10  ;;  %v486_v45 = vadd.f32 1.0, %v1180_v33 }
 0x122   :  { %v1184_v15 = vpop.eup %1183  ;;  %1209 = vrcp.f32 %v499_v11  ;;  %v502_v16 = vadd.f32 1.0, %v1182_v34 }
 0x123   :  { %v1186_v17 = vpop.eup %1185  ;;  %1211 = vrcp.f32 %v486_v45  ;;  %v484_v19 = vadd.f32 1.0, %v1184_v15 }
 0x124   :  { %v1188_v20 = vpop.eup %1187  ;;  %1213 = vrcp.f32 %v502_v16  ;;  %v500_v24 = vadd.f32 1.0, %v1186_v17 }
 0x125   :  { %v1190_v21 = vpop.eup %1189  ;;  %1215 = vrcp.f32 %v484_v19  ;;  %v577_v29 = vmul.f32 %v1188_v20, %v1381_v41 }
 0x126   :  { %v1192_v22 = vpop.eup %1191  ;;  %1217 = vrcp.f32 %v500_v24  ;;  %v593_v32 = vmul.f32 %v1190_v21, %v1384_v53 }
 0x127   :  { %v1194_v23 = vpop.eup %1193  ;;  %v575_v63 = vmul.f32 %v1192_v22, %v1388_v60 }
 0x128   :  { %v1196_v25 = vpop.eup %1195  ;;  %v591_v0 = vmul.f32 %v1194_v23, %v1391_v1 }
 0x129   :  { %v1198_v26 = vpop.eup %1197  ;;  %v578_v30 = vmul.f32 %v1196_v25, %v1394_v2 }
 0x12a   :  { %v1200_v31 = vpop.eup %1199  ;;  %v594_v35 = vmul.f32 %v1198_v26, %v1397_v7 }
 0x12b   :  { %v1202_v51 = vpop.eup %1201  ;;  %v912_v36 = vpack.c.bf16 %v578_v30, %v577_v29  ;;  %v576_v37 = vmul.f32 %v1200_v31, %v1400_v8 }
 0x12c   :  { %v1204_v52 = vpop.eup %1203  ;;  %v952_v43 = vpack.c.bf16 %v594_v35, %v593_v32  ;;  %v592_v56 = vmul.f32 %v1202_v51, %v1403_v12 }
 0x12d   :  { %v1206_v41 = vpop.eup %1205  ;;  %968 = vst [vmem:[%s1527_s3 + $0x28] sm:$0xff] %v912_v36   ;;  %v907_v53 = vpack.c.bf16 %v576_v37, %v575_v63  ;;  %v581_v12 = vmul.f32 %v1204_v52, %v1406_v13 }
 0x12e   :  { %v1208_v2 = vpop.eup %1207  ;;  %976 = vst [vmem:[%s1527_s3 + $0x68] sm:$0xff] %v952_v43   ;;  %v947_v60 = vpack.c.bf16 %v592_v56, %v591_v0  ;;  %v597_v57 = vmul.f32 %v1206_v41, %v1410_v18 }
 0x12f   :  { %v1210_v7 = vpop.eup %1209  ;;  %967 = vst [vmem:[%s1527_s3 + $0x20] sm:$0xff] %v907_v53   ;;  %v579_v49 = vmul.f32 %v1208_v2, %v1421_v38 }
 0x130   :  { %v1212_v1 = vpop.eup %1211  ;;  %975 = vst [vmem:[%s1527_s3 + $0x60] sm:$0xff] %v947_v60   ;;  %v595_v58 = vmul.f32 %v1210_v7, %v1424_v42 }
 0x131   :  { %v1214_v8 = vpop.eup %1213  ;;  %v582_v4 = vmul.f32 %v1212_v1, %v1429_v48 }
 0x132   :  { %v1216_v46 = vpop.eup %1215  ;;  %v598_v5 = vmul.f32 %v1214_v8, %v1434_v55 }
 0x133   :  { %v1218_v47 = vpop.eup %1217  ;;  %v922_v50 = vpack.c.bf16 %v582_v4, %v581_v12  ;;  %v580_v54 = vmul.f32 %v1216_v46, %v1445_v44 }
 0x134   :  { %v962_v59 = vpack.c.bf16 %v598_v5, %v597_v57  ;;  %v596_v61 = vmul.f32 %v1218_v47, %v1452_v14 }
 0x135   :  { %970 = vst [vmem:[%s1527_s3 + $0x38] sm:$0xff] %v922_v50   ;;  %v917_v13 = vpack.c.bf16 %v580_v54, %v579_v49 }
 0x136   :  { %978 = vst [vmem:[%s1527_s3 + $0x78] sm:$0xff] %v962_v59   ;;  %v957_v18 = vpack.c.bf16 %v596_v61, %v595_v58 }
 0x137   :  { %969 = vst [vmem:[%s1527_s3 + $0x30] sm:$0xff] %v917_v13  }
 0x138   :  { %977 = vst [vmem:[%s1527_s3 + $0x70] sm:$0xff] %v957_v18  }

// kernel: _forward.24
= control target key start
LH: loop header
LB: loop body
LE: loop exit
PB: predicated region body
PF: predicated region fallthrough
CT: control target
= control target key end

     0   :  { %s666_s1 = inlined_call_operand.vmem [shape: bf16[256,128], index: 1, kind: input, shape index: {}]   ;;  %s667_s0 = inlined_call_operand.vmem [shape: bf16[64,256], index: 0, kind: input, shape index: {}]   ;;  %s668_s2 = inlined_call_operand.vmem [shape: f32[1,128], index: 2, kind: input, shape index: {}]   ;;  %s669_s3 = inlined_call_operand.vmem [shape: bf16[64,128], index: 3, kind: output, shape index: {}]  }
   0x1   :  { %v491_v0 = vld [vmem:[%s666_s1 + $0x78] sm:$0xff]   ;;  %v493_v2 = vld [vmem:[%s666_s1 + $0x70] sm:$0xff]   ;;  %v495_v4 = vld [vmem:[%s666_s1 + $0x68] sm:$0xff]  }
   0x2   :  { %v492_v1 = vld [vmem:[%s666_s1 + $0x38] sm:$0xff]   ;;  %435 = vmatprep.subr.bf16.mxu0 %v491_v0  ;;  %475 = vmatprep.subr.bf16.mxu1 %v491_v0  ;;  %v494_v3 = vld [vmem:[%s666_s1 + $0x30] sm:$0xff]   ;;  %v496_v5 = vld [vmem:[%s666_s1 + $0x28] sm:$0xff]  }
   0x3   :  { %436 = vmatpush3.bf16.msra.mxu0 %v492_v1  ;;  %483 = vmatpush3.bf16.msra.mxu1 %v492_v1  ;;  %v497_v6 = vld [vmem:[%s666_s1 + $0x60] sm:$0xff]   ;;  %v499_v8 = vld [vmem:[%s666_s1 + $0x58] sm:$0xff]   ;;  %v501_v10 = vld [vmem:[%s666_s1 + $0x50] sm:$0xff]  }
   0x4   :  { %437 = vmatprep.subr.bf16.mxu0 %v493_v2  ;;  %476 = vmatprep.subr.bf16.mxu1 %v493_v2  ;;  %v498_v7 = vld [vmem:[%s666_s1 + $0x20] sm:$0xff]   ;;  %v500_v9 = vld [vmem:[%s666_s1 + $0x18] sm:$0xff]   ;;  %v502_v13 = vld [vmem:[%s666_s1 + $0x10] sm:$0xff]  }
   0x5   :  { %v509_v11 = vld [vmem:[%s667_s0 + $0x4] ss:$8 sps:$4 sm:$0xff]   ;;  %v507_v18 = vld [vmem:[%s667_s0] ss:$8 sps:$4 sm:$0xff]   ;;  %v513_v20 = vld [vmem:[%s667_s0 + $0x14] ss:$8 sps:$4 sm:$0xff]  }
   0x6   :  { %v512_v12 = vld [vmem:[%s667_s0 + $0x24] ss:$8 sps:$4 sm:$0xff]   ;;  %230 = vmatprep.mubr.bf16.mxu0 %v509_v11  ;;  %v510_v19 = vld [vmem:[%s667_s0 + $0x20] ss:$8 sps:$4 sm:$0xff]   ;;  %v515_v21 = vld [vmem:[%s667_s0 + $0x34] ss:$8 sps:$4 sm:$0xff]  }
   0x7   :  { %438 = vmatpush3.bf16.msra.mxu0 %v494_v3  ;;  %484 = vmatpush3.bf16.msra.mxu1 %v494_v3  ;;  %v503_v14 = vld [vmem:[%s666_s1 + $0x48] sm:$0xff]   ;;  %v505_v16 = vld [vmem:[%s666_s1 + $0x40] sm:$0xff]   ;;  %v517_v22 = vld [vmem:[%s667_s0 + $0x10] ss:$8 sps:$4 sm:$0xff]  }
   0x8   :  { %439 = vmatprep.subr.bf16.mxu0 %v495_v4  ;;  %477 = vmatprep.subr.bf16.mxu1 %v495_v4  ;;  %v504_v15 = vld [vmem:[%s666_s1 + $0x8] sm:$0xff]   ;;  %v506_v17 = vld [vmem:[%s666_s1] sm:$0xff]   ;;  %v518_v23 = vld [vmem:[%s667_s0 + $0x30] ss:$8 sps:$4 sm:$0xff]  }
   0x9   :  { %246 = vmatprep.mubr.bf16.mxu1 %v512_v12  ;;  %v363_v26 = vld [vmem:[%s668_s2] ss:$0 sm:$0xff] }
   0xb   :  { %440 = vmatpush3.bf16.msra.mxu0 %v496_v5  ;;  %485 = vmatpush3.bf16.msra.mxu1 %v496_v5 }
   0xc   :  { %441 = vmatprep.subr.bf16.mxu0 %v497_v6  ;;  %478 = vmatprep.subr.bf16.mxu1 %v497_v6 }
   0xf   :  { %442 = vmatpush3.bf16.msra.mxu0 %v498_v7  ;;  %486 = vmatpush3.bf16.msra.mxu1 %v498_v7 }
  0x10   :  { %443 = vmatprep.subr.bf16.mxu0 %v499_v8  ;;  %479 = vmatprep.subr.bf16.mxu1 %v499_v8 }
  0x13   :  { %444 = vmatpush3.bf16.msra.mxu0 %v500_v9  ;;  %487 = vmatpush3.bf16.msra.mxu1 %v500_v9 }
  0x14   :  { %445 = vmatprep.subr.bf16.mxu0 %v501_v10  ;;  %480 = vmatprep.subr.bf16.mxu1 %v501_v10 }
  0x17   :  { %446 = vmatpush3.bf16.msra.mxu0 %v502_v13  ;;  %488 = vmatpush3.bf16.msra.mxu1 %v502_v13 }
  0x18   :  { %447 = vmatprep.subr.bf16.mxu0 %v503_v14  ;;  %481 = vmatprep.subr.bf16.mxu1 %v503_v14 }
  0x1b   :  { %448 = vmatpush3.bf16.msra.mxu0 %v504_v15  ;;  %489 = vmatpush3.bf16.msra.mxu1 %v504_v15 }
  0x1c   :  { %449 = vmatprep.subr.bf16.mxu0 %v505_v16  ;;  %482 = vmatprep.subr.bf16.mxu1 %v505_v16 }
  0x1f   :  { %450 = vmatpush3.bf16.msra.mxu0 %v506_v17  ;;  %490 = vmatpush3.bf16.msra.mxu1 %v506_v17 }
  0x22   :  { %231 = vmatmul.mubr.bf16.vlgmr.msra.gmra.mxu0 %v507_v18  ;;  %247 = vmatmul.mubr.bf16.vlgmr.msra.gmra.mxu1 %v510_v19 }
  0x23   :  { %238 = vmatprep.mubr.bf16.mxu0 %v513_v20  ;;  %254 = vmatprep.mubr.bf16.mxu1 %v515_v21 }
  0x2a   :  { %239 = vmatmul.mubr.bf16.gmra.mxu0 %v517_v22  ;;  %255 = vmatmul.mubr.bf16.gmra.mxu1 %v518_v23 }
  0xe2   :  { %v451_v24 = vpop.f32.mrf.mxu0  ;;  %v463_v25 = vpop.f32.mrf.mxu1 }
  0xe4   :  { %v452_v27 = vpop.f32.mrf.mxu0  ;;  %v464_v28 = vpop.f32.mrf.mxu1 }
  0xe5   :  { %v453_v29 = vadd.f32 %v452_v27, %v451_v24  ;;  %v465_v30 = vadd.f32 %v464_v28, %v463_v25 }
  0xe6   :  { %v454_v31 = vpop.f32.mrf.mxu0  ;;  %v466_v32 = vpop.f32.mrf.mxu1 }
  0xe7   :  { %v646_v33 = vadd.f32 %v453_v29, %v363_v26  ;;  %v648_v34 = vadd.f32 %v465_v30, %v363_v26 }
  0xe8   :  { %v455_v35 = vpop.f32.mrf.mxu0  ;;  %v467_v36 = vpop.f32.mrf.mxu1 }
  0xe9   :  { %v388_v37 = vmul.f32 -1.442695, %v646_v33  ;;  %v392_v38 = vmul.f32 -1.442695, %v648_v34  ;;  %v456_v39 = vadd.f32 %v455_v35, %v454_v31  ;;  %v468_v40 = vadd.f32 %v467_v36, %v466_v32 }
  0xea   :  { %v457_v41 = vpop.f32.mrf.mxu0  ;;  %v469_v42 = vpop.f32.mrf.mxu1 }
  0xeb   :  { %519 = vpow2.f32 %v388_v37  ;;  %v236_v43 = vadd.f32 %v456_v39, %v363_v26  ;;  %v252_v44 = vadd.f32 %v468_v40, %v363_v26 }
  0xec   :  { %521 = vpow2.f32 %v392_v38  ;;  %v458_v45 = vpop.f32.mrf.mxu0  ;;  %v470_v46 = vpop.f32.mrf.mxu1 }
  0xed   :  { %v389_v47 = vmul.f32 -1.442695, %v236_v43  ;;  %v393_v48 = vmul.f32 -1.442695, %v252_v44  ;;  %v459_v49 = vadd.f32 %v458_v45, %v457_v41  ;;  %v471_v50 = vadd.f32 %v470_v46, %v469_v42 }
  0xee   :  { %v460_v51 = vpop.f32.mrf.mxu0  ;;  %v472_v52 = vpop.f32.mrf.mxu1 }
  0xef   :  { %523 = vpow2.f32 %v389_v47  ;;  %v241_v53 = vadd.f32 %v459_v49, %v363_v26  ;;  %v257_v54 = vadd.f32 %v471_v50, %v363_v26 }
  0xf0   :  { %525 = vpow2.f32 %v393_v48  ;;  %v461_v55 = vpop.f32.mrf.mxu0  ;;  %v473_v56 = vpop.f32.mrf.mxu1 }
  0xf1   :  { %v390_v57 = vmul.f32 -1.442695, %v241_v53  ;;  %v394_v58 = vmul.f32 -1.442695, %v257_v54  ;;  %v462_v59 = vadd.f32 %v461_v55, %v460_v51  ;;  %v474_v60 = vadd.f32 %v473_v56, %v472_v52 }
  0xf3   :  { %527 = vpow2.f32 %v390_v57  ;;  %v244_v61 = vadd.f32 %v462_v59, %v363_v26  ;;  %v260_v62 = vadd.f32 %v474_v60, %v363_v26 }
  0xf4   :  { %529 = vpow2.f32 %v394_v58 }
  0xf5   :  { %v391_v63 = vmul.f32 -1.442695, %v244_v61  ;;  %v395_v0 = vmul.f32 -1.442695, %v260_v62 }
  0xf7   :  { %531 = vpow2.f32 %v391_v63 }
  0xf8   :  { %v520_v1 = vpop.eup %519  ;;  %533 = vpow2.f32 %v395_v0 }
  0xf9   :  { %v522_v2 = vpop.eup %521  ;;  %v287_v3 = vadd.f32 1.0, %v520_v1 }
  0xfa   :  { %v291_v4 = vadd.f32 1.0, %v522_v2 }
  0xfb   :  { %535 = vrcp.f32 %v287_v3 }
  0xfc   :  { %v524_v5 = vpop.eup %523  ;;  %537 = vrcp.f32 %v291_v4 }
  0xfd   :  { %v526_v6 = vpop.eup %525  ;;  %v288_v7 = vadd.f32 1.0, %v524_v5 }
  0xfe   :  { %v292_v8 = vadd.f32 1.0, %v526_v6 }
  0xff   :  { %539 = vrcp.f32 %v288_v7 }
 0x100   :  { %v528_v9 = vpop.eup %527  ;;  %541 = vrcp.f32 %v292_v8 }
 0x101   :  { %v530_v10 = vpop.eup %529  ;;  %v289_v11 = vadd.f32 1.0, %v528_v9 }
 0x102   :  { %v293_v12 = vadd.f32 1.0, %v530_v10 }
 0x103   :  { %543 = vrcp.f32 %v289_v11 }
 0x104   :  { %v532_v13 = vpop.eup %531  ;;  %545 = vrcp.f32 %v293_v12 }
 0x105   :  { %v534_v14 = vpop.eup %533  ;;  %v290_v15 = vadd.f32 1.0, %v532_v13 }
 0x106   :  { %v294_v16 = vadd.f32 1.0, %v534_v14 }
 0x107   :  { %547 = vrcp.f32 %v290_v15 }
 0x108   :  { %549 = vrcp.f32 %v294_v16  ;;  %v536_v17 = vpop.eup %535 }
 0x109   :  { %v538_v18 = vpop.eup %537  ;;  %v311_v21 = vmul.f32 %v536_v17, %v646_v33 }
 0x10a   :  { %v315_v23 = vmul.f32 %v538_v18, %v648_v34 }
 0x10c   :  { %v540_v19 = vpop.eup %539 }
 0x10d   :  { %v542_v20 = vpop.eup %541  ;;  %v312_v22 = vmul.f32 %v540_v19, %v236_v43 }
 0x10e   :  { %v316_v24 = vmul.f32 %v542_v20, %v252_v44 }
 0x10f   :  { %v415_v25 = vpack.c.bf16 %v312_v22, %v311_v21 }
 0x110   :  { %v425_v26 = vpack.c.bf16 %v316_v24, %v315_v23  ;;  %v544_v27 = vpop.eup %543 }
 0x111   :  { %416 = vst [vmem:[%s669_s3] sm:$0xff] %v415_v25   ;;  %v546_v28 = vpop.eup %545  ;;  %v313_v31 = vmul.f32 %v544_v27, %v241_v53 }
 0x112   :  { %433 = vst [vmem:[%s669_s3 + $0x10] sm:$0xff] %v425_v26   ;;  %v317_v33 = vmul.f32 %v546_v28, %v257_v54 }
 0x114   :  { %v548_v29 = vpop.eup %547 }
 0x115   :  { %v550_v30 = vpop.eup %549  ;;  %v314_v32 = vmul.f32 %v548_v29, %v244_v61 }
 0x116   :  { %v318_v35 = vmul.f32 %v550_v30, %v260_v62 }
 0x117   :  { %v420_v34 = vpack.c.bf16 %v314_v32, %v313_v31 }
 0x118   :  { %v430_v36 = vpack.c.bf16 %v318_v35, %v317_v33 }
 0x119   :  { %432 = vst [vmem:[%s669_s3 + $0x8] sm:$0xff] %v420_v34  }
 0x11a   :  { %434 = vst [vmem:[%s669_s3 + $0x18] sm:$0xff] %v430_v36  }

// kernel: _forward.25
= control target key start
LH: loop header
LB: loop body
LE: loop exit
PB: predicated region body
PF: predicated region fallthrough
CT: control target
= control target key end

     0   :  { %v472_v1 = vmov 0.0   ;;  %vm473_vm0 = vmmov 0   ;;  %s581_s1 = inlined_call_operand.vmem [shape: bf16[384,128], index: 1, kind: input, shape index: {}]   ;;  %s582_s0 = inlined_call_operand.vmem [shape: bf16[16,384], index: 0, kind: input, shape index: {}]   ;;  %s583_s2 = inlined_call_operand.vmem [shape: f32[1,128], index: 2, kind: input, shape index: {}]   ;;  %s584_s3 = inlined_call_operand.vmem [shape: bf16[16,128], index: 3, kind: output, shape index: {}]  }
   0x1   :  { %v436_v0 = vld [vmem:[%s581_s1 + $0x78] sm:$0xff]   ;;  %414 = vmatprep.subr.bf16.mxu1 %v472_v1  ;;  %430 = vmatprep.mubr.msk.bf16.mxu1 %vm473_vm0, %v472_v1  ;;  %v439_v4 = vld [vmem:[%s581_s1 + $0x70] sm:$0xff]   ;;  %v442_v7 = vld [vmem:[%s581_s1 + $0x68] sm:$0xff]  }
   0x2   :  { %v437_v2 = vld [vmem:[%s581_s1 + $0x38] sm:$0xff]   ;;  %383 = vmatprep.subr.bf16.mxu0 %v436_v0  ;;  %v440_v5 = vld [vmem:[%s581_s1 + $0x30] sm:$0xff]   ;;  %v443_v8 = vld [vmem:[%s581_s1 + $0x28] sm:$0xff]  }
   0x3   :  { %v438_v3 = vld [vmem:[%s581_s1 + $0xb8] sm:$0xff]   ;;  %384 = vmatpush3.bf16.msra.mxu0 %v437_v2  ;;  %v441_v6 = vld [vmem:[%s581_s1 + $0xb0] sm:$0xff]   ;;  %v444_v9 = vld [vmem:[%s581_s1 + $0xa8] sm:$0xff]  }
   0x4   :  { %415 = vmatpush3.bf16.msra.mxu1 %v438_v3  ;;  %385 = vmatprep.subr.bf16.mxu0 %v439_v4  ;;  %v445_v10 = vld [vmem:[%s581_s1 + $0x60] sm:$0xff]   ;;  %v448_v13 = vld [vmem:[%s581_s1 + $0x58] sm:$0xff]   ;;  %v451_v16 = vld [vmem:[%s581_s1 + $0x50] sm:$0xff]  }
   0x5   :  { %416 = vmatprep.subr.bf16.mxu1 %v472_v1  ;;  %v446_v11 = vld [vmem:[%s581_s1 + $0x20] sm:$0xff]   ;;  %v449_v14 = vld [vmem:[%s581_s1 + $0x18] sm:$0xff]   ;;  %v452_v17 = vld [vmem:[%s581_s1 + $0x10] sm:$0xff]  }
   0x6   :  { %v447_v12 = vld [vmem:[%s581_s1 + $0xa0] sm:$0xff]   ;;  %v450_v15 = vld [vmem:[%s581_s1 + $0x98] sm:$0xff]   ;;  %v453_v18 = vld [vmem:[%s581_s1 + $0x90] sm:$0xff]  }
   0x7   :  { %386 = vmatpush3.bf16.msra.mxu0 %v440_v5  ;;  %v454_v19 = vld [vmem:[%s581_s1 + $0x48] sm:$0xff]   ;;  %v457_v22 = vld [vmem:[%s581_s1 + $0x40] sm:$0xff]  }
   0x8   :  { %417 = vmatpush3.bf16.msra.mxu1 %v441_v6  ;;  %387 = vmatprep.subr.bf16.mxu0 %v442_v7  ;;  %v455_v20 = vld [vmem:[%s581_s1 + $0x8] sm:$0xff]   ;;  %v462_v23 = vld [vmem:[%s582_s0 + $0x4] ss:$12 sps:$4 sm:$0xff]   ;;  %v344_v30 = vld [vmem:[%s583_s2] ss:$0 sm:$0xff] }
   0x9   :  { %418 = vmatprep.subr.bf16.mxu1 %v472_v1  ;;  %v456_v21 = vld [vmem:[%s581_s1 + $0x88] sm:$0xff]   ;;  %v458_v24 = vld [vmem:[%s581_s1] sm:$0xff]   ;;  %266 = vmatprep.mubr.bf16.mxu0 %v462_v23 }
   0xa   :  { %v459_v25 = vld [vmem:[%s581_s1 + $0x80] sm:$0xff]   ;;  %v463_v27 = vld [vmem:[%s582_s0 + $0x8] ss:$12 sps:$4 sm:$0xff]  }
   0xb   :  { %388 = vmatpush3.bf16.msra.mxu0 %v443_v8  ;;  %v460_v26 = vld [vmem:[%s582_s0] ss:$12 sps:$4 sm:$0xff]  }
   0xc   :  { %419 = vmatpush3.bf16.msra.mxu1 %v444_v9  ;;  %389 = vmatprep.subr.bf16.mxu0 %v445_v10 }
   0xd   :  { %420 = vmatprep.subr.bf16.mxu1 %v472_v1 }
   0xf   :  { %390 = vmatpush3.bf16.msra.mxu0 %v446_v11 }
  0x10   :  { %421 = vmatpush3.bf16.msra.mxu1 %v447_v12  ;;  %391 = vmatprep.subr.bf16.mxu0 %v448_v13 }
  0x11   :  { %422 = vmatprep.subr.bf16.mxu1 %v472_v1 }
  0x13   :  { %392 = vmatpush3.bf16.msra.mxu0 %v449_v14 }
  0x14   :  { %423 = vmatpush3.bf16.msra.mxu1 %v450_v15  ;;  %393 = vmatprep.subr.bf16.mxu0 %v451_v16 }
  0x15   :  { %424 = vmatprep.subr.bf16.mxu1 %v472_v1 }
  0x17   :  { %394 = vmatpush3.bf16.msra.mxu0 %v452_v17 }
  0x18   :  { %425 = vmatpush3.bf16.msra.mxu1 %v453_v18  ;;  %395 = vmatprep.subr.bf16.mxu0 %v454_v19 }
  0x19   :  { %426 = vmatprep.subr.bf16.mxu1 %v472_v1 }
  0x1b   :  { %396 = vmatpush3.bf16.msra.mxu0 %v455_v20 }
  0x1c   :  { %427 = vmatpush3.bf16.msra.mxu1 %v456_v21  ;;  %397 = vmatprep.subr.bf16.mxu0 %v457_v22 }
  0x1d   :  { %428 = vmatprep.subr.bf16.mxu1 %v472_v1 }
  0x1f   :  { %398 = vmatpush3.bf16.msra.mxu0 %v458_v24 }
  0x20   :  { %429 = vmatpush3.bf16.msra.mxu1 %v459_v25 }
  0x22   :  { %267 = vmatmul.mubr.bf16.vlgmr.msra.gmra.mxu0 %v460_v26 }
  0x23   :  { %431 = vmatmul.mubr.bf16.vlgmr.msra.gmra.mxu1 %v463_v27 }
  0xe2   :  { %v399_v28 = vpop.f32.mrf.mxu0 }
  0xe3   :  { %v309_v29 = vpop.f32.mrf.mxu1 }
  0xe4   :  { %v400_v31 = vpop.f32.mrf.mxu0 }
  0xe5   :  { %v401_v32 = vadd.f32 %v400_v31, %v399_v28  ;;  %v432_v33 = vpop.f32.mrf.mxu1 }
  0xe6   :  { %v402_v34 = vpop.f32.mrf.mxu0 }
  0xe7   :  { %v269_v35 = vadd.f32 %v401_v32, %v344_v30  ;;  %v312_v36 = vpop.f32.mrf.mxu1 }
  0xe8   :  { %v403_v37 = vpop.f32.mrf.mxu0 }
  0xe9   :  { %v310_v38 = vadd.f32 %v309_v29, %v269_v35  ;;  %v404_v39 = vadd.f32 %v403_v37, %v402_v34  ;;  %v433_v40 = vpop.f32.mrf.mxu1 }
  0xeb   :  { %v372_v41 = vmul.f32 -1.442695, %v310_v38  ;;  %v272_v42 = vadd.f32 %v404_v39, %v344_v30 }
  0xed   :  { %464 = vpow2.f32 %v372_v41  ;;  %v313_v43 = vadd.f32 %v312_v36, %v272_v42 }
  0xef   :  { %v373_v44 = vmul.f32 -1.442695, %v313_v43 }
  0xf1   :  { %466 = vpow2.f32 %v373_v44 }
  0xfa   :  { %v465_v45 = vpop.eup %464 }
  0xfb   :  { %v322_v46 = vadd.f32 1.0, %v465_v45 }
  0xfd   :  { %468 = vrcp.f32 %v322_v46 }
  0xfe   :  { %v467_v47 = vpop.eup %466 }
  0xff   :  { %v323_v48 = vadd.f32 1.0, %v467_v47 }
 0x101   :  { %470 = vrcp.f32 %v323_v48 }
 0x10a   :  { %v469_v49 = vpop.eup %468 }
 0x10b   :  { %v328_v51 = vmul.f32 %v469_v49, %v310_v38 }
 0x10e   :  { %v471_v50 = vpop.eup %470 }
 0x10f   :  { %v329_v52 = vmul.f32 %v471_v50, %v313_v43 }
 0x111   :  { %v381_v53 = vpack.c.bf16 %v329_v52, %v328_v51 }
 0x113   :  { %382 = vst [vmem:[%s584_s3] sm:$0xff] %v381_v53  }

// kernel: _forward.27
= control target key start
LH: loop header
LB: loop body
LE: loop exit
PB: predicated region body
PF: predicated region fallthrough
CT: control target
= control target key end

     0   :  { %v193_v0 = vmov 0.0   ;;  %vm194_vm0 = vmmov 0   ;;  %s248_s1 = inlined_call_operand.vmem [shape: bf16[128,128], index: 1, kind: input, shape index: {}]   ;;  %s249_s0 = inlined_call_operand.vmem [shape: bf16[8,128], index: 0, kind: input, shape index: {}]   ;;  %s250_s2 = inlined_call_operand.vmem [shape: f32[1,128], index: 2, kind: input, shape index: {}]   ;;  %s251_s3 = inlined_call_operand.vmem [shape: bf16[8,128], index: 3, kind: output, shape index: {}]  }
   0x1   :  { %159 = vmatprep.subr.bf16.mxu0 %v193_v0  ;;  %v181_v1 = vld [vmem:[%s248_s1 + $0x38] sm:$0xff]   ;;  %175 = vmatprep.mubr.msk.bf16.mxu0 %vm194_vm0, %v193_v0  ;;  %v182_v2 = vld [vmem:[%s248_s1 + $0x30] sm:$0xff]   ;;  %v183_v3 = vld [vmem:[%s248_s1 + $0x28] sm:$0xff]  }
   0x2   :  { %160 = vmatpush3.bf16.msra.mxu0 %v181_v1  ;;  %v184_v4 = vld [vmem:[%s248_s1 + $0x20] sm:$0xff]   ;;  %v185_v5 = vld [vmem:[%s248_s1 + $0x18] sm:$0xff]   ;;  %v186_v6 = vld [vmem:[%s248_s1 + $0x10] sm:$0xff]  }
   0x3   :  { %161 = vmatprep.subr.bf16.mxu0 %v193_v0  ;;  %v187_v7 = vld [vmem:[%s248_s1 + $0x8] sm:$0xff]   ;;  %v188_v8 = vld [vmem:[%s248_s1] sm:$0xff]  }
   0x4   :  { %v15_v9 = vld [vmem:[%s249_s0] sm:$0xf] }
   0x5   :  { %v140_v10 = vld [vmem:[%s250_s2] ss:$0 sm:$0xff] }
   0x6   :  { %162 = vmatpush3.bf16.msra.mxu0 %v182_v2 }
   0x7   :  { %163 = vmatprep.subr.bf16.mxu0 %v193_v0 }
   0xa   :  { %164 = vmatpush3.bf16.msra.mxu0 %v183_v3 }
   0xb   :  { %165 = vmatprep.subr.bf16.mxu0 %v193_v0 }
   0xe   :  { %166 = vmatpush3.bf16.msra.mxu0 %v184_v4 }
   0xf   :  { %167 = vmatprep.subr.bf16.mxu0 %v193_v0 }
  0x12   :  { %168 = vmatpush3.bf16.msra.mxu0 %v185_v5 }
  0x13   :  { %169 = vmatprep.subr.bf16.mxu0 %v193_v0 }
  0x16   :  { %170 = vmatpush3.bf16.msra.mxu0 %v186_v6 }
  0x17   :  { %171 = vmatprep.subr.bf16.mxu0 %v193_v0 }
  0x1a   :  { %172 = vmatpush3.bf16.msra.mxu0 %v187_v7 }
  0x1b   :  { %173 = vmatprep.subr.bf16.mxu0 %v193_v0 }
  0x1e   :  { %174 = vmatpush3.bf16.msra.mxu0 %v188_v8 }
  0x21   :  { %176 = vmatmul.mubr.bf16.vlgmr.msra.gmra.mxu0 %v15_v9 }
  0xe1   :  { %v121_v11 = vpop.f32.mrf.mxu0 }
  0xe2   :  { %v122_v12 = vadd.f32 %v140_v10, %v121_v11 }
  0xe3   :  { %v177_v13 = vpop.f32.mrf.mxu0 }
  0xe4   :  { %v149_v14 = vmul.f32 -1.442695, %v122_v12 }
  0xe5   :  { %v124_v15 = vpop.f32.mrf.mxu0 }
  0xe6   :  { %189 = vpow2.f32 %v149_v14 }
  0xe7   :  { %v178_v16 = vpop.f32.mrf.mxu0 }
  0xf3   :  { %v190_v17 = vpop.eup %189 }
  0xf4   :  { %v130_v18 = vadd.f32 1.0, %v190_v17 }
  0xf6   :  { %191 = vrcp.f32 %v130_v18 }
 0x103   :  { %v192_v19 = vpop.eup %191 }
 0x104   :  { %v133_v20 = vmul.f32 %v192_v19, %v122_v12 }
 0x106   :  { %v134_v21 = vpack.c.bf16 %v133_v20, %v133_v20 }
 0x108   :  { %135 = vst [vmem:[%s251_s3] sm:$0xf] %v134_v21 }

// kernel: _forward.26
= control target key start
LH: loop header
LB: loop body
LE: loop exit
PB: predicated region body
PF: predicated region fallthrough
CT: control target
= control target key end

     0   :  { %v667_v35 = vmov 0.0   ;;  %vm668_vm0 = vmmov 0   ;;  %s824_s1 = inlined_call_operand.vmem [shape: bf16[640,128], index: 1, kind: input, shape index: {}]   ;;  %s825_s0 = inlined_call_operand.vmem [shape: bf16[8,640], index: 0, kind: input, shape index: {}]   ;;  %s826_s2 = inlined_call_operand.vmem [shape: f32[1,128], index: 2, kind: input, shape index: {}]   ;;  %s827_s3 = inlined_call_operand.vmem [shape: bf16[8,128], index: 3, kind: output, shape index: {}]  }
   0x1   :  { %v618_v0 = vld [vmem:[%s824_s1 + $0x78] sm:$0xff]   ;;  %v622_v4 = vld [vmem:[%s824_s1 + $0x70] sm:$0xff]   ;;  %v626_v8 = vld [vmem:[%s824_s1 + $0x68] sm:$0xff]  }
   0x2   :  { %v619_v1 = vld [vmem:[%s824_s1 + $0x38] sm:$0xff]   ;;  %543 = vmatprep.subr.bf16.mxu0 %v618_v0  ;;  %v623_v5 = vld [vmem:[%s824_s1 + $0x30] sm:$0xff]   ;;  %v627_v9 = vld [vmem:[%s824_s1 + $0x28] sm:$0xff]  }
   0x3   :  { %v620_v2 = vld [vmem:[%s824_s1 + $0xf8] sm:$0xff]   ;;  %544 = vmatpush3.bf16.msra.mxu0 %v619_v1  ;;  %v624_v6 = vld [vmem:[%s824_s1 + $0xf0] sm:$0xff]   ;;  %v628_v10 = vld [vmem:[%s824_s1 + $0xe8] sm:$0xff]  }
   0x4   :  { %v621_v3 = vld [vmem:[%s824_s1 + $0xb8] sm:$0xff]   ;;  %565 = vmatprep.subr.bf16.mxu1 %v620_v2  ;;  %545 = vmatprep.subr.bf16.mxu0 %v622_v4  ;;  %v625_v7 = vld [vmem:[%s824_s1 + $0xb0] sm:$0xff]   ;;  %v629_v11 = vld [vmem:[%s824_s1 + $0xa8] sm:$0xff]  }
   0x5   :  { %566 = vmatpush3.bf16.msra.mxu1 %v621_v3  ;;  %v630_v12 = vld [vmem:[%s824_s1 + $0x60] sm:$0xff]   ;;  %v634_v16 = vld [vmem:[%s824_s1 + $0x58] sm:$0xff]   ;;  %v638_v20 = vld [vmem:[%s824_s1 + $0x50] sm:$0xff]  }
   0x6   :  { %567 = vmatprep.subr.bf16.mxu1 %v624_v6  ;;  %v631_v13 = vld [vmem:[%s824_s1 + $0x20] sm:$0xff]   ;;  %v635_v17 = vld [vmem:[%s824_s1 + $0x18] sm:$0xff]   ;;  %v639_v21 = vld [vmem:[%s824_s1 + $0x10] sm:$0xff]  }
   0x7   :  { %546 = vmatpush3.bf16.msra.mxu0 %v623_v5  ;;  %v632_v14 = vld [vmem:[%s824_s1 + $0xe0] sm:$0xff]   ;;  %v636_v18 = vld [vmem:[%s824_s1 + $0xd8] sm:$0xff]   ;;  %v640_v22 = vld [vmem:[%s824_s1 + $0xd0] sm:$0xff]  }
   0x8   :  { %547 = vmatprep.subr.bf16.mxu0 %v626_v8  ;;  %v633_v15 = vld [vmem:[%s824_s1 + $0xa0] sm:$0xff]   ;;  %v637_v19 = vld [vmem:[%s824_s1 + $0x98] sm:$0xff]   ;;  %v641_v23 = vld [vmem:[%s824_s1 + $0x90] sm:$0xff]  }
   0x9   :  { %568 = vmatpush3.bf16.msra.mxu1 %v625_v7  ;;  %v642_v24 = vld [vmem:[%s824_s1 + $0x48] sm:$0xff]   ;;  %v646_v28 = vld [vmem:[%s824_s1 + $0x40] sm:$0xff]   ;;  %v655_v39 = vld [vmem:[%s824_s1 + $0x138] sm:$0xff]  }
   0xa   :  { %569 = vmatprep.subr.bf16.mxu1 %v628_v10  ;;  %v643_v25 = vld [vmem:[%s824_s1 + $0x8] sm:$0xff]   ;;  %v647_v29 = vld [vmem:[%s824_s1] sm:$0xff]   ;;  %v656_v40 = vld [vmem:[%s824_s1 + $0x130] sm:$0xff]  }
   0xb   :  { %548 = vmatpush3.bf16.msra.mxu0 %v627_v9  ;;  %v644_v26 = vld [vmem:[%s824_s1 + $0xc8] sm:$0xff]   ;;  %v648_v30 = vld [vmem:[%s824_s1 + $0xc0] sm:$0xff]   ;;  %v659_v43 = vld [vmem:[%s824_s1 + $0x118] sm:$0xff]  }
   0xc   :  { %549 = vmatprep.subr.bf16.mxu0 %v630_v12  ;;  %v645_v27 = vld [vmem:[%s824_s1 + $0x88] sm:$0xff]   ;;  %v15_v31 = vld [vmem:[%s825_s0] sm:$0xff]  ;;  %v660_v44 = vld [vmem:[%s824_s1 + $0x110] sm:$0xff]  }
   0xd   :  { %570 = vmatpush3.bf16.msra.mxu1 %v629_v11  ;;  %v497_v32 = vcombine.low %v15_v31, %v15_v31  ;;  %v498_v33 = vcombine.high %v15_v31, %v15_v31  ;;  %v652_v34 = vld [vmem:[%s824_s1 + $0x80] sm:$0xff]   ;;  %v16_v36 = vld [vmem:[%s825_s0 + $0x8] sm:$0xff]  ;;  %v651_v47 = vld [vmem:[%s825_s0 + $0x10] ss:$0 sps:$4 sm:$0xff]  }
   0xe   :  { %571 = vmatprep.subr.bf16.mxu1 %v632_v14  ;;  %v499_v37 = vcombine.low %v16_v36, %v16_v36  ;;  %v500_v38 = vcombine.high %v16_v36, %v16_v36  ;;  %v657_v41 = vld [vmem:[%s824_s1 + $0x128] sm:$0xff]   ;;  %v658_v42 = vld [vmem:[%s824_s1 + $0x120] sm:$0xff]  }
   0xf   :  { %550 = vmatpush3.bf16.msra.mxu0 %v631_v13  ;;  %395 = vmatprep.mubr.bf16.mxu0 %v498_v33  ;;  %v661_v45 = vld [vmem:[%s824_s1 + $0x108] sm:$0xff]   ;;  %v662_v46 = vld [vmem:[%s824_s1 + $0x100] sm:$0xff]  }
  0x10   :  { %551 = vmatprep.subr.bf16.mxu0 %v634_v16  ;;  %435 = vmatprep.mubr.bf16.mxu1 %v500_v38  ;;  %v496_v57 = vld [vmem:[%s826_s2] ss:$0 sm:$0xff] }
  0x11   :  { %572 = vmatpush3.bf16.msra.mxu1 %v633_v15 }
  0x12   :  { %573 = vmatprep.subr.bf16.mxu1 %v636_v18 }
  0x13   :  { %552 = vmatpush3.bf16.msra.mxu0 %v635_v17 }
  0x14   :  { %553 = vmatprep.subr.bf16.mxu0 %v638_v20 }
  0x15   :  { %574 = vmatpush3.bf16.msra.mxu1 %v637_v19 }
  0x16   :  { %575 = vmatprep.subr.bf16.mxu1 %v640_v22 }
  0x17   :  { %554 = vmatpush3.bf16.msra.mxu0 %v639_v21 }
  0x18   :  { %555 = vmatprep.subr.bf16.mxu0 %v642_v24 }
  0x19   :  { %576 = vmatpush3.bf16.msra.mxu1 %v641_v23 }
  0x1a   :  { %577 = vmatprep.subr.bf16.mxu1 %v644_v26 }
  0x1b   :  { %556 = vmatpush3.bf16.msra.mxu0 %v643_v25 }
  0x1c   :  { %557 = vmatprep.subr.bf16.mxu0 %v646_v28 }
  0x1d   :  { %578 = vmatpush3.bf16.msra.mxu1 %v645_v27 }
  0x1e   :  { %579 = vmatprep.subr.bf16.mxu1 %v648_v30 }
  0x1f   :  { %558 = vmatpush3.bf16.msra.mxu0 %v647_v29 }
  0x20   :  { %596 = vmatprep.subr.bf16.mxu0 %v667_v35 }
  0x21   :  { %580 = vmatpush3.bf16.msra.mxu1 %v652_v34 }
  0x22   :  { %396 = vmatmul.mubr.bf16.vlgmr.msra.gmra.mxu0 %v497_v32 }
  0x23   :  { %597 = vmatpush3.bf16.msra.mxu0 %v655_v39  ;;  %612 = vmatprep.mubr.msk.bf16.mxu0 %vm668_vm0, %v667_v35 }
  0x24   :  { %436 = vmatmul.mubr.bf16.vlgmr.msra.gmra.mxu1 %v499_v37  ;;  %598 = vmatprep.subr.bf16.mxu0 %v667_v35 }
  0x27   :  { %599 = vmatpush3.bf16.msra.mxu0 %v656_v40 }
  0x28   :  { %600 = vmatprep.subr.bf16.mxu0 %v667_v35 }
  0x2b   :  { %601 = vmatpush3.bf16.msra.mxu0 %v657_v41 }
  0x2c   :  { %602 = vmatprep.subr.bf16.mxu0 %v667_v35 }
  0x2f   :  { %603 = vmatpush3.bf16.msra.mxu0 %v658_v42 }
  0x30   :  { %604 = vmatprep.subr.bf16.mxu0 %v667_v35 }
  0x33   :  { %605 = vmatpush3.bf16.msra.mxu0 %v659_v43 }
  0x34   :  { %606 = vmatprep.subr.bf16.mxu0 %v667_v35 }
  0x37   :  { %607 = vmatpush3.bf16.msra.mxu0 %v660_v44 }
  0x38   :  { %608 = vmatprep.subr.bf16.mxu0 %v667_v35 }
  0x3b   :  { %609 = vmatpush3.bf16.msra.mxu0 %v661_v45 }
  0x3c   :  { %610 = vmatprep.subr.bf16.mxu0 %v667_v35 }
  0x3f   :  { %611 = vmatpush3.bf16.msra.mxu0 %v662_v46 }
  0x42   :  { %613 = vmatmul.mubr.bf16.vlgmr.msra.gmra.mxu0 %v651_v47 }
  0xe2   :  { %v559_v48 = vpop.f32.mrf.mxu0 }
  0xe4   :  { %v560_v49 = vpop.f32.mrf.mxu0  ;;  %v581_v50 = vpop.f32.mrf.mxu1 }
  0xe5   :  { %v561_v56 = vadd.f32 %v560_v49, %v559_v48 }
  0xe6   :  { %v562_v51 = vpop.f32.mrf.mxu0  ;;  %v582_v52 = vpop.f32.mrf.mxu1 }
  0xe7   :  { %v398_v58 = vadd.f32 %v561_v56, %v496_v57  ;;  %v583_v59 = vadd.f32 %v582_v52, %v581_v50 }
  0xe8   :  { %v563_v53 = vpop.f32.mrf.mxu0  ;;  %v584_v54 = vpop.f32.mrf.mxu1 }
  0xe9   :  { %v438_v60 = vadd.f32 %v583_v59, %v398_v58 }
  0xea   :  { %v585_v55 = vpop.f32.mrf.mxu1 }
 0x102   :  { %v477_v61 = vpop.f32.mrf.mxu0 }
 0x103   :  { %v478_v62 = vadd.f32 %v477_v61, %v438_v60 }
 0x104   :  { %v614_v63 = vpop.f32.mrf.mxu0 }
 0x105   :  { %v542_v0 = vmul.f32 -1.442695, %v478_v62 }
 0x106   :  { %v480_v1 = vpop.f32.mrf.mxu0 }
 0x107   :  { %663 = vpow2.f32 %v542_v0 }
 0x108   :  { %v615_v2 = vpop.f32.mrf.mxu0 }
 0x114   :  { %v664_v3 = vpop.eup %663 }
 0x115   :  { %v486_v4 = vadd.f32 1.0, %v664_v3 }
 0x117   :  { %665 = vrcp.f32 %v486_v4 }
 0x124   :  { %v666_v5 = vpop.eup %665 }
 0x125   :  { %v489_v6 = vmul.f32 %v666_v5, %v478_v62 }
 0x127   :  { %v490_v7 = vpack.c.bf16 %v489_v6, %v489_v6 }
 0x129   :  { %491 = vst [vmem:[%s827_s3] sm:$0xf] %v490_v7 }

// kernel: _forward.29
= control target key start
LH: loop header
LB: loop body
LE: loop exit
PB: predicated region body
PF: predicated region fallthrough
CT: control target
= control target key end

     0   :  { %v232_v0 = vmov 0.0   ;;  %vm233_vm0 = vmmov 0   ;;  %s287_s1 = inlined_call_operand.vmem [shape: bf16[128,128], index: 1, kind: input, shape index: {}]   ;;  %s288_s0 = inlined_call_operand.vmem [shape: bf16[16,128], index: 0, kind: input, shape index: {}]   ;;  %s289_s2 = inlined_call_operand.vmem [shape: f32[1,128], index: 2, kind: input, shape index: {}]   ;;  %s290_s3 = inlined_call_operand.vmem [shape: bf16[16,128], index: 3, kind: output, shape index: {}]  }
   0x1   :  { %193 = vmatprep.subr.bf16.mxu0 %v232_v0  ;;  %v215_v1 = vld [vmem:[%s287_s1 + $0x38] sm:$0xff]   ;;  %209 = vmatprep.mubr.msk.bf16.mxu0 %vm233_vm0, %v232_v0  ;;  %v216_v2 = vld [vmem:[%s287_s1 + $0x30] sm:$0xff]   ;;  %v217_v3 = vld [vmem:[%s287_s1 + $0x28] sm:$0xff]  }
   0x2   :  { %194 = vmatpush3.bf16.msra.mxu0 %v215_v1  ;;  %v218_v4 = vld [vmem:[%s287_s1 + $0x20] sm:$0xff]   ;;  %v219_v5 = vld [vmem:[%s287_s1 + $0x18] sm:$0xff]   ;;  %v220_v6 = vld [vmem:[%s287_s1 + $0x10] sm:$0xff]  }
   0x3   :  { %195 = vmatprep.subr.bf16.mxu0 %v232_v0  ;;  %v221_v7 = vld [vmem:[%s287_s1 + $0x8] sm:$0xff]   ;;  %v222_v8 = vld [vmem:[%s287_s1] sm:$0xff]  }
   0x4   :  { %v223_v9 = vld [vmem:[%s288_s0] sm:$0xff]  }
   0x5   :  { %v163_v10 = vld [vmem:[%s289_s2] ss:$0 sm:$0xff] }
   0x6   :  { %196 = vmatpush3.bf16.msra.mxu0 %v216_v2 }
   0x7   :  { %197 = vmatprep.subr.bf16.mxu0 %v232_v0 }
   0xa   :  { %198 = vmatpush3.bf16.msra.mxu0 %v217_v3 }
   0xb   :  { %199 = vmatprep.subr.bf16.mxu0 %v232_v0 }
   0xe   :  { %200 = vmatpush3.bf16.msra.mxu0 %v218_v4 }
   0xf   :  { %201 = vmatprep.subr.bf16.mxu0 %v232_v0 }
  0x12   :  { %202 = vmatpush3.bf16.msra.mxu0 %v219_v5 }
  0x13   :  { %203 = vmatprep.subr.bf16.mxu0 %v232_v0 }
  0x16   :  { %204 = vmatpush3.bf16.msra.mxu0 %v220_v6 }
  0x17   :  { %205 = vmatprep.subr.bf16.mxu0 %v232_v0 }
  0x1a   :  { %206 = vmatpush3.bf16.msra.mxu0 %v221_v7 }
  0x1b   :  { %207 = vmatprep.subr.bf16.mxu0 %v232_v0 }
  0x1e   :  { %208 = vmatpush3.bf16.msra.mxu0 %v222_v8 }
  0x21   :  { %210 = vmatmul.mubr.bf16.vlgmr.msra.gmra.mxu0 %v223_v9 }
  0xe1   :  { %v128_v11 = vpop.f32.mrf.mxu0 }
  0xe2   :  { %v129_v12 = vadd.f32 %v163_v10, %v128_v11 }
  0xe3   :  { %v211_v13 = vpop.f32.mrf.mxu0 }
  0xe4   :  { %v173_v14 = vmul.f32 -1.442695, %v129_v12 }
  0xe5   :  { %v131_v15 = vpop.f32.mrf.mxu0 }
  0xe6   :  { %224 = vpow2.f32 %v173_v14  ;;  %v132_v16 = vadd.f32 %v163_v10, %v131_v15 }
  0xe7   :  { %v212_v17 = vpop.f32.mrf.mxu0 }
  0xe8   :  { %v174_v18 = vmul.f32 -1.442695, %v132_v16 }
  0xea   :  { %226 = vpow2.f32 %v174_v18 }
  0xf3   :  { %v225_v19 = vpop.eup %224 }
  0xf4   :  { %v141_v20 = vadd.f32 1.0, %v225_v19 }
  0xf6   :  { %228 = vrcp.f32 %v141_v20 }
  0xf7   :  { %v227_v21 = vpop.eup %226 }
  0xf8   :  { %v142_v22 = vadd.f32 1.0, %v227_v21 }
  0xfa   :  { %230 = vrcp.f32 %v142_v22 }
 0x103   :  { %v229_v23 = vpop.eup %228 }
 0x104   :  { %v147_v25 = vmul.f32 %v229_v23, %v129_v12 }
 0x107   :  { %v231_v24 = vpop.eup %230 }
 0x108   :  { %v148_v26 = vmul.f32 %v231_v24, %v132_v16 }
 0x10a   :  { %v182_v27 = vpack.c.bf16 %v148_v26, %v147_v25 }
 0x10c   :  { %183 = vst [vmem:[%s290_s3] sm:$0xff] %v182_v27  }

// kernel: _forward.32
= control target key start
LH: loop header
LB: loop body
LE: loop exit
PB: predicated region body
PF: predicated region fallthrough
CT: control target
= control target key end

     0   :  { %s514_s1 = inlined_call_operand.vmem [shape: bf16[128,128], index: 1, kind: input, shape index: {}]   ;;  %s515_s0 = inlined_call_operand.vmem [shape: bf16[64,128], index: 0, kind: input, shape index: {}]   ;;  %s516_s2 = inlined_call_operand.vmem [shape: f32[1,128], index: 2, kind: input, shape index: {}]   ;;  %s517_s3 = inlined_call_operand.vmem [shape: bf16[64,128], index: 3, kind: output, shape index: {}]  }
   0x1   :  { %v395_v0 = vld [vmem:[%s514_s1 + $0x38] sm:$0xff]   ;;  %v396_v1 = vld [vmem:[%s514_s1 + $0x30] sm:$0xff]   ;;  %v397_v2 = vld [vmem:[%s514_s1 + $0x28] sm:$0xff]  }
   0x2   :  { %355 = vmatprep.subr.bf16.mxu0 %v395_v0  ;;  %379 = vmatprep.subr.bf16.mxu1 %v395_v0  ;;  %v398_v3 = vld [vmem:[%s514_s1 + $0x20] sm:$0xff]   ;;  %v404_v5 = vld [vmem:[%s515_s0 + $0x10] sm:$0xff]   ;;  %v399_v6 = vld [vmem:[%s514_s1 + $0x18] sm:$0xff]  }
   0x3   :  { %356 = vmatpush3.bf16.msra.mxu0 %v395_v0  ;;  %387 = vmatpush3.bf16.msra.mxu1 %v395_v0  ;;  %v403_v4 = vld [vmem:[%s515_s0] sm:$0xff]   ;;  %v400_v7 = vld [vmem:[%s514_s1 + $0x10] sm:$0xff]   ;;  %v401_v8 = vld [vmem:[%s514_s1 + $0x8] sm:$0xff]  }
   0x4   :  { %357 = vmatprep.subr.bf16.mxu0 %v396_v1  ;;  %380 = vmatprep.subr.bf16.mxu1 %v396_v1  ;;  %v402_v9 = vld [vmem:[%s514_s1] sm:$0xff]   ;;  %v405_v10 = vld [vmem:[%s515_s0 + $0x8] sm:$0xff]   ;;  %v406_v11 = vld [vmem:[%s515_s0 + $0x18] sm:$0xff]  }
   0x5   :  { %371 = vmatprep.mubr.bf16.mxu0 %v403_v4  ;;  %375 = vmatprep.mubr.bf16.mxu1 %v404_v5  ;;  %v283_v12 = vld [vmem:[%s516_s2] ss:$0 sm:$0xff] }
   0x7   :  { %358 = vmatpush3.bf16.msra.mxu0 %v396_v1  ;;  %388 = vmatpush3.bf16.msra.mxu1 %v396_v1 }
   0x8   :  { %359 = vmatprep.subr.bf16.mxu0 %v397_v2  ;;  %381 = vmatprep.subr.bf16.mxu1 %v397_v2 }
   0xb   :  { %360 = vmatpush3.bf16.msra.mxu0 %v397_v2  ;;  %389 = vmatpush3.bf16.msra.mxu1 %v397_v2 }
   0xc   :  { %361 = vmatprep.subr.bf16.mxu0 %v398_v3  ;;  %382 = vmatprep.subr.bf16.mxu1 %v398_v3 }
   0xf   :  { %362 = vmatpush3.bf16.msra.mxu0 %v398_v3  ;;  %390 = vmatpush3.bf16.msra.mxu1 %v398_v3 }
  0x10   :  { %363 = vmatprep.subr.bf16.mxu0 %v399_v6  ;;  %383 = vmatprep.subr.bf16.mxu1 %v399_v6 }
  0x13   :  { %364 = vmatpush3.bf16.msra.mxu0 %v399_v6  ;;  %391 = vmatpush3.bf16.msra.mxu1 %v399_v6 }
  0x14   :  { %365 = vmatprep.subr.bf16.mxu0 %v400_v7  ;;  %384 = vmatprep.subr.bf16.mxu1 %v400_v7 }
  0x17   :  { %366 = vmatpush3.bf16.msra.mxu0 %v400_v7  ;;  %392 = vmatpush3.bf16.msra.mxu1 %v400_v7 }
  0x18   :  { %367 = vmatprep.subr.bf16.mxu0 %v401_v8  ;;  %385 = vmatprep.subr.bf16.mxu1 %v401_v8 }
  0x1b   :  { %368 = vmatpush3.bf16.msra.mxu0 %v401_v8  ;;  %393 = vmatpush3.bf16.msra.mxu1 %v401_v8 }
  0x1c   :  { %369 = vmatprep.subr.bf16.mxu0 %v402_v9  ;;  %386 = vmatprep.subr.bf16.mxu1 %v402_v9 }
  0x1f   :  { %370 = vmatpush3.bf16.msra.mxu0 %v402_v9  ;;  %394 = vmatpush3.bf16.msra.mxu1 %v402_v9 }
  0x22   :  { %372 = vmatmul.mubr.bf16.vlgmr.msra.gmra.mxu0 %v405_v10  ;;  %376 = vmatmul.mubr.bf16.vlgmr.msra.gmra.mxu1 %v406_v11 }
  0xe2   :  { %v373_v13 = vpop.f32.mrf.mxu0  ;;  %v377_v14 = vpop.f32.mrf.mxu1 }
  0xe3   :  { %v161_v15 = vadd.f32 %v373_v13, %v283_v12  ;;  %v177_v16 = vadd.f32 %v377_v14, %v283_v12 }
  0xe4   :  { %v152_v17 = vpop.f32.mrf.mxu0  ;;  %v168_v18 = vpop.f32.mrf.mxu1 }
  0xe5   :  { %v298_v19 = vmul.f32 -1.442695, %v161_v15  ;;  %v302_v20 = vmul.f32 -1.442695, %v177_v16  ;;  %v153_v21 = vadd.f32 %v283_v12, %v152_v17  ;;  %v498_v22 = vadd.f32 %v283_v12, %v168_v18 }
  0xe6   :  { %v374_v23 = vpop.f32.mrf.mxu0  ;;  %v378_v24 = vpop.f32.mrf.mxu1 }
  0xe7   :  { %407 = vpow2.f32 %v298_v19  ;;  %v296_v25 = vmul.f32 -1.442695, %v153_v21  ;;  %v300_v26 = vmul.f32 -1.442695, %v498_v22  ;;  %v164_v27 = vadd.f32 %v374_v23, %v283_v12 }
  0xe8   :  { %409 = vpow2.f32 %v302_v20  ;;  %v180_v28 = vadd.f32 %v378_v24, %v283_v12  ;;  %v155_v29 = vpop.f32.mrf.mxu0  ;;  %v171_v30 = vpop.f32.mrf.mxu1 }
  0xe9   :  { %411 = vpow2.f32 %v296_v25  ;;  %v299_v31 = vmul.f32 -1.442695, %v164_v27  ;;  %v156_v32 = vadd.f32 %v283_v12, %v155_v29  ;;  %v172_v33 = vadd.f32 %v283_v12, %v171_v30 }
  0xea   :  { %413 = vpow2.f32 %v300_v26  ;;  %v303_v34 = vmul.f32 -1.442695, %v180_v28 }
  0xeb   :  { %415 = vpow2.f32 %v299_v31  ;;  %v297_v35 = vmul.f32 -1.442695, %v156_v32  ;;  %v301_v36 = vmul.f32 -1.442695, %v172_v33 }
  0xec   :  { %417 = vpow2.f32 %v303_v34 }
  0xed   :  { %419 = vpow2.f32 %v297_v35 }
  0xee   :  { %421 = vpow2.f32 %v301_v36 }
  0xf4   :  { %v408_v37 = vpop.eup %407 }
  0xf5   :  { %v410_v38 = vpop.eup %409  ;;  %v209_v39 = vadd.f32 1.0, %v408_v37 }
  0xf6   :  { %v412_v40 = vpop.eup %411  ;;  %v213_v41 = vadd.f32 1.0, %v410_v38 }
  0xf7   :  { %v414_v42 = vpop.eup %413  ;;  %423 = vrcp.f32 %v209_v39  ;;  %v207_v43 = vadd.f32 1.0, %v412_v40 }
  0xf8   :  { %v416_v44 = vpop.eup %415  ;;  %425 = vrcp.f32 %v213_v41  ;;  %v211_v45 = vadd.f32 1.0, %v414_v42 }
  0xf9   :  { %v418_v46 = vpop.eup %417  ;;  %427 = vrcp.f32 %v207_v43  ;;  %v210_v47 = vadd.f32 1.0, %v416_v44 }
  0xfa   :  { %v420_v48 = vpop.eup %419  ;;  %429 = vrcp.f32 %v211_v45  ;;  %v214_v49 = vadd.f32 1.0, %v418_v46 }
  0xfb   :  { %v422_v50 = vpop.eup %421  ;;  %431 = vrcp.f32 %v210_v47  ;;  %v208_v51 = vadd.f32 1.0, %v420_v48 }
  0xfc   :  { %433 = vrcp.f32 %v214_v49  ;;  %v212_v52 = vadd.f32 1.0, %v422_v50 }
  0xfd   :  { %435 = vrcp.f32 %v208_v51 }
  0xfe   :  { %437 = vrcp.f32 %v212_v52 }
 0x104   :  { %v424_v53 = vpop.eup %423 }
 0x105   :  { %v426_v54 = vpop.eup %425  ;;  %v233_v59 = vmul.f32 %v424_v53, %v161_v15 }
 0x106   :  { %v428_v55 = vpop.eup %427  ;;  %v237_v62 = vmul.f32 %v426_v54, %v177_v16 }
 0x107   :  { %v430_v56 = vpop.eup %429  ;;  %v231_v1 = vmul.f32 %v428_v55, %v153_v21 }
 0x108   :  { %v432_v57 = vpop.eup %431  ;;  %v235_v4 = vmul.f32 %v430_v56, %v498_v22 }
 0x109   :  { %v434_v58 = vpop.eup %433  ;;  %v234_v60 = vmul.f32 %v432_v57, %v164_v27 }
 0x10a   :  { %v436_v61 = vpop.eup %435  ;;  %v238_v63 = vmul.f32 %v434_v58, %v180_v28 }
 0x10b   :  { %v438_v0 = vpop.eup %437  ;;  %v328_v2 = vpack.c.bf16 %v234_v60, %v233_v59  ;;  %v232_v3 = vmul.f32 %v436_v61, %v156_v32 }
 0x10c   :  { %v338_v5 = vpack.c.bf16 %v238_v63, %v237_v62  ;;  %v236_v6 = vmul.f32 %v438_v0, %v172_v33 }
 0x10d   :  { %340 = vst [vmem:[%s517_s3 + $0x8] sm:$0xff] %v328_v2   ;;  %v323_v7 = vpack.c.bf16 %v232_v3, %v231_v1 }
 0x10e   :  { %342 = vst [vmem:[%s517_s3 + $0x18] sm:$0xff] %v338_v5   ;;  %v333_v8 = vpack.c.bf16 %v236_v6, %v235_v4 }
 0x10f   :  { %324 = vst [vmem:[%s517_s3] sm:$0xff] %v323_v7  }
 0x110   :  { %341 = vst [vmem:[%s517_s3 + $0x10] sm:$0xff] %v333_v8  }

// kernel: _forward.30
= control target key start
LH: loop header
LB: loop body
LE: loop exit
PB: predicated region body
PF: predicated region fallthrough
CT: control target
= control target key end

     0   :  { %v712_v33 = vmov 0.0   ;;  %vm713_vm0 = vmmov 0   ;;  %s875_s1 = inlined_call_operand.vmem [shape: bf16[640,128], index: 1, kind: input, shape index: {}]   ;;  %s876_s0 = inlined_call_operand.vmem [shape: bf16[16,640], index: 0, kind: input, shape index: {}]   ;;  %s877_s2 = inlined_call_operand.vmem [shape: f32[1,128], index: 2, kind: input, shape index: {}]   ;;  %s878_s3 = inlined_call_operand.vmem [shape: bf16[16,128], index: 3, kind: output, shape index: {}]  }
   0x1   :  { %v657_v0 = vld [vmem:[%s875_s1 + $0x78] sm:$0xff]   ;;  %v661_v4 = vld [vmem:[%s875_s1 + $0x70] sm:$0xff]   ;;  %v665_v8 = vld [vmem:[%s875_s1 + $0x68] sm:$0xff]  }
   0x2   :  { %v658_v1 = vld [vmem:[%s875_s1 + $0x38] sm:$0xff]   ;;  %582 = vmatprep.subr.bf16.mxu0 %v657_v0  ;;  %v662_v5 = vld [vmem:[%s875_s1 + $0x30] sm:$0xff]   ;;  %v666_v9 = vld [vmem:[%s875_s1 + $0x28] sm:$0xff]  }
   0x3   :  { %v659_v2 = vld [vmem:[%s875_s1 + $0xf8] sm:$0xff]   ;;  %583 = vmatpush3.bf16.msra.mxu0 %v658_v1  ;;  %v663_v6 = vld [vmem:[%s875_s1 + $0xf0] sm:$0xff]   ;;  %v667_v10 = vld [vmem:[%s875_s1 + $0xe8] sm:$0xff]  }
   0x4   :  { %v660_v3 = vld [vmem:[%s875_s1 + $0xb8] sm:$0xff]   ;;  %604 = vmatprep.subr.bf16.mxu1 %v659_v2  ;;  %584 = vmatprep.subr.bf16.mxu0 %v661_v4  ;;  %v664_v7 = vld [vmem:[%s875_s1 + $0xb0] sm:$0xff]   ;;  %v668_v11 = vld [vmem:[%s875_s1 + $0xa8] sm:$0xff]  }
   0x5   :  { %605 = vmatpush3.bf16.msra.mxu1 %v660_v3  ;;  %v669_v12 = vld [vmem:[%s875_s1 + $0x60] sm:$0xff]   ;;  %v673_v16 = vld [vmem:[%s875_s1 + $0x58] sm:$0xff]   ;;  %v677_v20 = vld [vmem:[%s875_s1 + $0x50] sm:$0xff]  }
   0x6   :  { %606 = vmatprep.subr.bf16.mxu1 %v663_v6  ;;  %v670_v13 = vld [vmem:[%s875_s1 + $0x20] sm:$0xff]   ;;  %v674_v17 = vld [vmem:[%s875_s1 + $0x18] sm:$0xff]   ;;  %v678_v21 = vld [vmem:[%s875_s1 + $0x10] sm:$0xff]  }
   0x7   :  { %585 = vmatpush3.bf16.msra.mxu0 %v662_v5  ;;  %v671_v14 = vld [vmem:[%s875_s1 + $0xe0] sm:$0xff]   ;;  %v675_v18 = vld [vmem:[%s875_s1 + $0xd8] sm:$0xff]   ;;  %v679_v22 = vld [vmem:[%s875_s1 + $0xd0] sm:$0xff]  }
   0x8   :  { %586 = vmatprep.subr.bf16.mxu0 %v665_v8  ;;  %v672_v15 = vld [vmem:[%s875_s1 + $0xa0] sm:$0xff]   ;;  %v676_v19 = vld [vmem:[%s875_s1 + $0x98] sm:$0xff]   ;;  %v680_v23 = vld [vmem:[%s875_s1 + $0x90] sm:$0xff]  }
   0x9   :  { %607 = vmatpush3.bf16.msra.mxu1 %v664_v7  ;;  %v681_v24 = vld [vmem:[%s875_s1 + $0x48] sm:$0xff]   ;;  %v685_v28 = vld [vmem:[%s875_s1 + $0x40] sm:$0xff]   ;;  %v695_v37 = vld [vmem:[%s875_s1 + $0x138] sm:$0xff]  }
   0xa   :  { %608 = vmatprep.subr.bf16.mxu1 %v667_v10  ;;  %v682_v25 = vld [vmem:[%s875_s1 + $0x8] sm:$0xff]   ;;  %v686_v29 = vld [vmem:[%s875_s1] sm:$0xff]   ;;  %v696_v38 = vld [vmem:[%s875_s1 + $0x130] sm:$0xff]  }
   0xb   :  { %587 = vmatpush3.bf16.msra.mxu0 %v666_v9  ;;  %v683_v26 = vld [vmem:[%s875_s1 + $0xc8] sm:$0xff]   ;;  %v687_v30 = vld [vmem:[%s875_s1 + $0xc0] sm:$0xff]   ;;  %v699_v41 = vld [vmem:[%s875_s1 + $0x118] sm:$0xff]  }
   0xc   :  { %588 = vmatprep.subr.bf16.mxu0 %v669_v12  ;;  %v684_v27 = vld [vmem:[%s875_s1 + $0x88] sm:$0xff]   ;;  %v688_v31 = vld [vmem:[%s876_s0] ss:$20 sps:$4 sm:$0xff]   ;;  %v690_v32 = vld [vmem:[%s876_s0 + $0x4] ss:$20 sps:$4 sm:$0xff]  }
   0xd   :  { %609 = vmatpush3.bf16.msra.mxu1 %v668_v11  ;;  %v691_v34 = vld [vmem:[%s875_s1 + $0x80] sm:$0xff]   ;;  %406 = vmatprep.mubr.bf16.mxu0 %v690_v32  ;;  %v692_v35 = vld [vmem:[%s876_s0 + $0x8] ss:$20 sps:$4 sm:$0xff]   ;;  %v700_v42 = vld [vmem:[%s875_s1 + $0x110] sm:$0xff]  }
   0xe   :  { %610 = vmatprep.subr.bf16.mxu1 %v671_v14  ;;  %v694_v36 = vld [vmem:[%s876_s0 + $0xc] ss:$20 sps:$4 sm:$0xff]   ;;  %v703_v45 = vld [vmem:[%s876_s0 + $0x10] ss:$20 sps:$4 sm:$0xff]  }
   0xf   :  { %589 = vmatpush3.bf16.msra.mxu0 %v670_v13  ;;  %447 = vmatprep.mubr.bf16.mxu1 %v694_v36  ;;  %v697_v39 = vld [vmem:[%s875_s1 + $0x128] sm:$0xff]   ;;  %v698_v40 = vld [vmem:[%s875_s1 + $0x120] sm:$0xff]  }
  0x10   :  { %590 = vmatprep.subr.bf16.mxu0 %v673_v16  ;;  %v701_v43 = vld [vmem:[%s875_s1 + $0x108] sm:$0xff]   ;;  %v702_v44 = vld [vmem:[%s875_s1 + $0x100] sm:$0xff]  }
  0x11   :  { %611 = vmatpush3.bf16.msra.mxu1 %v672_v15  ;;  %v525_v52 = vld [vmem:[%s877_s2] ss:$0 sm:$0xff] }
  0x12   :  { %612 = vmatprep.subr.bf16.mxu1 %v675_v18 }
  0x13   :  { %591 = vmatpush3.bf16.msra.mxu0 %v674_v17 }
  0x14   :  { %592 = vmatprep.subr.bf16.mxu0 %v677_v20 }
  0x15   :  { %613 = vmatpush3.bf16.msra.mxu1 %v676_v19 }
  0x16   :  { %614 = vmatprep.subr.bf16.mxu1 %v679_v22 }
  0x17   :  { %593 = vmatpush3.bf16.msra.mxu0 %v678_v21 }
  0x18   :  { %594 = vmatprep.subr.bf16.mxu0 %v681_v24 }
  0x19   :  { %615 = vmatpush3.bf16.msra.mxu1 %v680_v23 }
  0x1a   :  { %616 = vmatprep.subr.bf16.mxu1 %v683_v26 }
  0x1b   :  { %595 = vmatpush3.bf16.msra.mxu0 %v682_v25 }
  0x1c   :  { %596 = vmatprep.subr.bf16.mxu0 %v685_v28 }
  0x1d   :  { %617 = vmatpush3.bf16.msra.mxu1 %v684_v27 }
  0x1e   :  { %618 = vmatprep.subr.bf16.mxu1 %v687_v30 }
  0x1f   :  { %597 = vmatpush3.bf16.msra.mxu0 %v686_v29 }
  0x20   :  { %635 = vmatprep.subr.bf16.mxu0 %v712_v33 }
  0x21   :  { %619 = vmatpush3.bf16.msra.mxu1 %v691_v34 }
  0x22   :  { %407 = vmatmul.mubr.bf16.vlgmr.msra.gmra.mxu0 %v688_v31 }
  0x23   :  { %651 = vmatprep.mubr.msk.bf16.mxu0 %vm713_vm0, %v712_v33  ;;  %636 = vmatpush3.bf16.msra.mxu0 %v695_v37 }
  0x24   :  { %448 = vmatmul.mubr.bf16.vlgmr.msra.gmra.mxu1 %v692_v35  ;;  %637 = vmatprep.subr.bf16.mxu0 %v712_v33 }
  0x27   :  { %638 = vmatpush3.bf16.msra.mxu0 %v696_v38 }
  0x28   :  { %639 = vmatprep.subr.bf16.mxu0 %v712_v33 }
  0x2b   :  { %640 = vmatpush3.bf16.msra.mxu0 %v697_v39 }
  0x2c   :  { %641 = vmatprep.subr.bf16.mxu0 %v712_v33 }
  0x2f   :  { %642 = vmatpush3.bf16.msra.mxu0 %v698_v40 }
  0x30   :  { %643 = vmatprep.subr.bf16.mxu0 %v712_v33 }
  0x33   :  { %644 = vmatpush3.bf16.msra.mxu0 %v699_v41 }
  0x34   :  { %645 = vmatprep.subr.bf16.mxu0 %v712_v33 }
  0x37   :  { %646 = vmatpush3.bf16.msra.mxu0 %v700_v42 }
  0x38   :  { %647 = vmatprep.subr.bf16.mxu0 %v712_v33 }
  0x3b   :  { %648 = vmatpush3.bf16.msra.mxu0 %v701_v43 }
  0x3c   :  { %649 = vmatprep.subr.bf16.mxu0 %v712_v33 }
  0x3f   :  { %650 = vmatpush3.bf16.msra.mxu0 %v702_v44 }
  0x42   :  { %652 = vmatmul.mubr.bf16.vlgmr.msra.gmra.mxu0 %v703_v45 }
  0xe2   :  { %v598_v46 = vpop.f32.mrf.mxu0 }
  0xe4   :  { %v599_v47 = vpop.f32.mrf.mxu0  ;;  %v620_v48 = vpop.f32.mrf.mxu1 }
  0xe5   :  { %v600_v51 = vadd.f32 %v599_v47, %v598_v46 }
  0xe6   :  { %v601_v49 = vpop.f32.mrf.mxu0  ;;  %v621_v50 = vpop.f32.mrf.mxu1 }
  0xe7   :  { %v409_v55 = vadd.f32 %v600_v51, %v525_v52  ;;  %v622_v56 = vadd.f32 %v621_v50, %v620_v48 }
  0xe8   :  { %v602_v53 = vpop.f32.mrf.mxu0  ;;  %v623_v54 = vpop.f32.mrf.mxu1 }
  0xe9   :  { %v603_v57 = vadd.f32 %v602_v53, %v601_v49  ;;  %v450_v61 = vadd.f32 %v622_v56, %v409_v55 }
  0xea   :  { %v624_v58 = vpop.f32.mrf.mxu1 }
  0xeb   :  { %v412_v59 = vadd.f32 %v603_v57, %v525_v52  ;;  %v625_v60 = vadd.f32 %v624_v58, %v623_v54 }
  0xed   :  { %v453_v2 = vadd.f32 %v625_v60, %v412_v59 }
 0x102   :  { %v490_v62 = vpop.f32.mrf.mxu0 }
 0x103   :  { %v491_v63 = vadd.f32 %v490_v62, %v450_v61 }
 0x104   :  { %v653_v0 = vpop.f32.mrf.mxu0 }
 0x105   :  { %v571_v1 = vmul.f32 -1.442695, %v491_v63 }
 0x106   :  { %v493_v3 = vpop.f32.mrf.mxu0 }
 0x107   :  { %704 = vpow2.f32 %v571_v1  ;;  %v494_v4 = vadd.f32 %v493_v3, %v453_v2 }
 0x108   :  { %v654_v5 = vpop.f32.mrf.mxu0 }
 0x109   :  { %v572_v6 = vmul.f32 -1.442695, %v494_v4 }
 0x10b   :  { %706 = vpow2.f32 %v572_v6 }
 0x114   :  { %v705_v7 = vpop.eup %704 }
 0x115   :  { %v503_v8 = vadd.f32 1.0, %v705_v7 }
 0x117   :  { %708 = vrcp.f32 %v503_v8 }
 0x118   :  { %v707_v9 = vpop.eup %706 }
 0x119   :  { %v504_v10 = vadd.f32 1.0, %v707_v9 }
 0x11b   :  { %710 = vrcp.f32 %v504_v10 }
 0x124   :  { %v709_v11 = vpop.eup %708 }
 0x125   :  { %v509_v13 = vmul.f32 %v709_v11, %v491_v63 }
 0x128   :  { %v711_v12 = vpop.eup %710 }
 0x129   :  { %v510_v14 = vmul.f32 %v711_v12, %v494_v4 }
 0x12b   :  { %v580_v15 = vpack.c.bf16 %v510_v14, %v509_v13 }
 0x12d   :  { %581 = vst [vmem:[%s878_s3] sm:$0xff] %v580_v15  }

// kernel: _forward.36
= control target key start
LH: loop header
LB: loop body
LE: loop exit
PB: predicated region body
PF: predicated region fallthrough
CT: control target
= control target key end

     0   :  { %s414_s1 = inlined_call_operand.vmem [shape: bf16[128,128], index: 1, kind: input, shape index: {}]   ;;  %s415_s0 = inlined_call_operand.vmem [shape: bf16[64,128], index: 0, kind: input, shape index: {}]   ;;  %s416_s2 = inlined_call_operand.vmem [shape: f32[1,128], index: 2, kind: input, shape index: {}]   ;;  %s417_s3 = inlined_call_operand.vmem [shape: bf16[64,128], index: 3, kind: output, shape index: {}]  }
   0x1   :  { %v331_v0 = vld [vmem:[%s414_s1 + $0x38] sm:$0xff]   ;;  %v332_v1 = vld [vmem:[%s414_s1 + $0x30] sm:$0xff]   ;;  %v333_v2 = vld [vmem:[%s414_s1 + $0x28] sm:$0xff]  }
   0x2   :  { %291 = vmatprep.subr.bf16.mxu0 %v331_v0  ;;  %315 = vmatprep.subr.bf16.mxu1 %v331_v0  ;;  %v334_v3 = vld [vmem:[%s414_s1 + $0x20] sm:$0xff]   ;;  %v340_v5 = vld [vmem:[%s415_s0 + $0x10] sm:$0xff]   ;;  %v335_v6 = vld [vmem:[%s414_s1 + $0x18] sm:$0xff]  }
   0x3   :  { %292 = vmatpush3.bf16.msra.mxu0 %v331_v0  ;;  %323 = vmatpush3.bf16.msra.mxu1 %v331_v0  ;;  %v339_v4 = vld [vmem:[%s415_s0] sm:$0xff]   ;;  %v336_v7 = vld [vmem:[%s414_s1 + $0x10] sm:$0xff]   ;;  %v337_v8 = vld [vmem:[%s414_s1 + $0x8] sm:$0xff]  }
   0x4   :  { %293 = vmatprep.subr.bf16.mxu0 %v332_v1  ;;  %316 = vmatprep.subr.bf16.mxu1 %v332_v1  ;;  %v338_v9 = vld [vmem:[%s414_s1] sm:$0xff]   ;;  %v341_v10 = vld [vmem:[%s415_s0 + $0x8] sm:$0xff]   ;;  %v342_v11 = vld [vmem:[%s415_s0 + $0x18] sm:$0xff]  }
   0x5   :  { %307 = vmatprep.mubr.bf16.mxu0 %v339_v4  ;;  %311 = vmatprep.mubr.bf16.mxu1 %v340_v5  ;;  %v227_v14 = vld [vmem:[%s416_s2] ss:$0 sm:$0xff] }
   0x7   :  { %294 = vmatpush3.bf16.msra.mxu0 %v332_v1  ;;  %324 = vmatpush3.bf16.msra.mxu1 %v332_v1 }
   0x8   :  { %295 = vmatprep.subr.bf16.mxu0 %v333_v2  ;;  %317 = vmatprep.subr.bf16.mxu1 %v333_v2 }
   0xb   :  { %296 = vmatpush3.bf16.msra.mxu0 %v333_v2  ;;  %325 = vmatpush3.bf16.msra.mxu1 %v333_v2 }
   0xc   :  { %297 = vmatprep.subr.bf16.mxu0 %v334_v3  ;;  %318 = vmatprep.subr.bf16.mxu1 %v334_v3 }
   0xf   :  { %298 = vmatpush3.bf16.msra.mxu0 %v334_v3  ;;  %326 = vmatpush3.bf16.msra.mxu1 %v334_v3 }
  0x10   :  { %299 = vmatprep.subr.bf16.mxu0 %v335_v6  ;;  %319 = vmatprep.subr.bf16.mxu1 %v335_v6 }
  0x13   :  { %300 = vmatpush3.bf16.msra.mxu0 %v335_v6  ;;  %327 = vmatpush3.bf16.msra.mxu1 %v335_v6 }
  0x14   :  { %301 = vmatprep.subr.bf16.mxu0 %v336_v7  ;;  %320 = vmatprep.subr.bf16.mxu1 %v336_v7 }
  0x17   :  { %302 = vmatpush3.bf16.msra.mxu0 %v336_v7  ;;  %328 = vmatpush3.bf16.msra.mxu1 %v336_v7 }
  0x18   :  { %303 = vmatprep.subr.bf16.mxu0 %v337_v8  ;;  %321 = vmatprep.subr.bf16.mxu1 %v337_v8 }
  0x1b   :  { %304 = vmatpush3.bf16.msra.mxu0 %v337_v8  ;;  %329 = vmatpush3.bf16.msra.mxu1 %v337_v8 }
  0x1c   :  { %305 = vmatprep.subr.bf16.mxu0 %v338_v9  ;;  %322 = vmatprep.subr.bf16.mxu1 %v338_v9 }
  0x1f   :  { %306 = vmatpush3.bf16.msra.mxu0 %v338_v9  ;;  %330 = vmatpush3.bf16.msra.mxu1 %v338_v9 }
  0x22   :  { %308 = vmatmul.mubr.bf16.vlgmr.msra.gmra.mxu0 %v341_v10  ;;  %312 = vmatmul.mubr.bf16.vlgmr.msra.gmra.mxu1 %v342_v11 }
  0xe2   :  { %v309_v12 = vpop.f32.mrf.mxu0  ;;  %v313_v13 = vpop.f32.mrf.mxu1 }
  0xe3   :  { %v161_v19 = vadd.f32 %v309_v12, %v227_v14  ;;  %v177_v20 = vadd.f32 %v313_v13, %v227_v14 }
  0xe4   :  { %v152_v15 = vpop.f32.mrf.mxu0  ;;  %v168_v16 = vpop.f32.mrf.mxu1 }
  0xe5   :  { %v153_v23 = vadd.f32 %v227_v14, %v152_v15  ;;  %v169_v24 = vadd.f32 %v227_v14, %v168_v16 }
  0xe6   :  { %v310_v17 = vpop.f32.mrf.mxu0  ;;  %v314_v18 = vpop.f32.mrf.mxu1 }
  0xe7   :  { %v164_v21 = vadd.f32 %v310_v17, %v227_v14  ;;  %v180_v22 = vadd.f32 %v314_v18, %v227_v14 }
  0xe8   :  { %v155_v25 = vpop.f32.mrf.mxu0  ;;  %v171_v26 = vpop.f32.mrf.mxu1 }
  0xe9   :  { %v264_v27 = vpack.c.bf16 %v164_v21, %v161_v19  ;;  %v274_v28 = vpack.c.bf16 %v180_v22, %v177_v20  ;;  %v156_v29 = vadd.f32 %v227_v14, %v155_v25  ;;  %v172_v30 = vadd.f32 %v227_v14, %v171_v26 }
  0xeb   :  { %276 = vst [vmem:[%s417_s3 + $0x8] sm:$0xff] %v264_v27   ;;  %278 = vst [vmem:[%s417_s3 + $0x18] sm:$0xff] %v274_v28   ;;  %v259_v31 = vpack.c.bf16 %v156_v29, %v153_v23  ;;  %v269_v32 = vpack.c.bf16 %v172_v30, %v169_v24 }
  0xed   :  { %260 = vst [vmem:[%s417_s3] sm:$0xff] %v259_v31   ;;  %277 = vst [vmem:[%s417_s3 + $0x10] sm:$0xff] %v269_v32  }

// kernel: _forward.33
= control target key start
LH: loop header
LB: loop body
LE: loop exit
PB: predicated region body
PF: predicated region fallthrough
CT: control target
= control target key end

     0   :  { %s921_s1 = inlined_call_operand.vmem [shape: bf16[384,128], index: 1, kind: input, shape index: {}]   ;;  %s922_s0 = inlined_call_operand.vmem [shape: bf16[64,384], index: 0, kind: input, shape index: {}]   ;;  %s923_s2 = inlined_call_operand.vmem [shape: f32[1,128], index: 2, kind: input, shape index: {}]   ;;  %s924_s3 = inlined_call_operand.vmem [shape: bf16[64,128], index: 3, kind: output, shape index: {}]  }
   0x1   :  { %v684_v0 = vld [vmem:[%s921_s1 + $0x78] sm:$0xff]   ;;  %v686_v2 = vld [vmem:[%s921_s1 + $0x70] sm:$0xff]   ;;  %v689_v5 = vld [vmem:[%s921_s1 + $0x68] sm:$0xff]  }
   0x2   :  { %v685_v1 = vld [vmem:[%s921_s1 + $0x38] sm:$0xff]   ;;  %608 = vmatprep.subr.bf16.mxu0 %v684_v0  ;;  %v688_v4 = vld [vmem:[%s921_s1 + $0x30] sm:$0xff]   ;;  %v691_v7 = vld [vmem:[%s921_s1 + $0x28] sm:$0xff]  }
   0x3   :  { %609 = vmatpush3.bf16.msra.mxu0 %v685_v1  ;;  %v687_v3 = vld [vmem:[%s921_s1 + $0xb8] sm:$0xff]   ;;  %v690_v6 = vld [vmem:[%s921_s1 + $0xb0] sm:$0xff]   ;;  %v692_v8 = vld [vmem:[%s921_s1 + $0x60] sm:$0xff]  }
   0x4   :  { %610 = vmatprep.subr.bf16.mxu0 %v686_v2  ;;  %660 = vmatprep.subr.bf16.mxu1 %v687_v3  ;;  %v693_v9 = vld [vmem:[%s921_s1 + $0xa8] sm:$0xff]   ;;  %v694_v10 = vld [vmem:[%s921_s1 + $0x20] sm:$0xff]   ;;  %v695_v11 = vld [vmem:[%s921_s1 + $0x58] sm:$0xff]  }
   0x5   :  { %661 = vmatpush3.bf16.msra.mxu1 %v687_v3  ;;  %v696_v12 = vld [vmem:[%s921_s1 + $0xa0] sm:$0xff]   ;;  %v697_v13 = vld [vmem:[%s921_s1 + $0x18] sm:$0xff]   ;;  %v698_v15 = vld [vmem:[%s921_s1 + $0x50] sm:$0xff]  }
   0x6   :  { %662 = vmatprep.subr.bf16.mxu1 %v690_v6  ;;  %v699_v14 = vld [vmem:[%s921_s1 + $0x98] sm:$0xff]   ;;  %v700_v16 = vld [vmem:[%s921_s1 + $0x10] sm:$0xff]   ;;  %v701_v18 = vld [vmem:[%s921_s1 + $0x48] sm:$0xff]  }
   0x7   :  { %611 = vmatpush3.bf16.msra.mxu0 %v688_v4  ;;  %v702_v17 = vld [vmem:[%s921_s1 + $0x90] sm:$0xff]   ;;  %v703_v19 = vld [vmem:[%s921_s1 + $0x8] sm:$0xff]   ;;  %v704_v20 = vld [vmem:[%s921_s1 + $0x40] sm:$0xff]  }
   0x8   :  { %612 = vmatprep.subr.bf16.mxu0 %v689_v5  ;;  %v705_v21 = vld [vmem:[%s921_s1 + $0x88] sm:$0xff]   ;;  %v709_v22 = vld [vmem:[%s922_s0 + $0x4] ss:$12 sps:$4 sm:$0xff]   ;;  %v716_v31 = vld [vmem:[%s922_s0 + $0x34] ss:$12 sps:$4 sm:$0xff]  }
   0x9   :  { %663 = vmatpush3.bf16.msra.mxu1 %v690_v6  ;;  %v706_v23 = vld [vmem:[%s921_s1] sm:$0xff]   ;;  %326 = vmatprep.mubr.bf16.mxu0 %v709_v22  ;;  %v711_v24 = vld [vmem:[%s922_s0 + $0x8] ss:$12 sps:$4 sm:$0xff]   ;;  %v720_v32 = vld [vmem:[%s922_s0 + $0x50] ss:$12 sps:$4 sm:$0xff]  }
   0xa   :  { %664 = vmatprep.subr.bf16.mxu1 %v693_v9  ;;  %v710_v25 = vld [vmem:[%s921_s1 + $0x80] sm:$0xff]   ;;  %676 = vmatprep.mubr.bf16.mxu1 %v711_v24  ;;  %v713_v27 = vld [vmem:[%s922_s0 + $0x1c] ss:$12 sps:$4 sm:$0xff]   ;;  %v721_v34 = vld [vmem:[%s922_s0 + $0x4c] ss:$12 sps:$4 sm:$0xff]  }
   0xb   :  { %613 = vmatpush3.bf16.msra.mxu0 %v691_v7  ;;  %v707_v26 = vld [vmem:[%s922_s0] ss:$12 sps:$4 sm:$0xff]   ;;  %v719_v29 = vld [vmem:[%s922_s0 + $0x38] ss:$12 sps:$4 sm:$0xff]   ;;  %v718_v33 = vld [vmem:[%s922_s0 + $0x30] ss:$12 sps:$4 sm:$0xff]  }
   0xc   :  { %614 = vmatprep.subr.bf16.mxu0 %v692_v8  ;;  %v712_v28 = vld [vmem:[%s922_s0 + $0x20] ss:$12 sps:$4 sm:$0xff]   ;;  %v715_v30 = vld [vmem:[%s922_s0 + $0x18] ss:$12 sps:$4 sm:$0xff]   ;;  %v723_v35 = vld [vmem:[%s922_s0 + $0x48] ss:$12 sps:$4 sm:$0xff]  }
   0xd   :  { %665 = vmatpush3.bf16.msra.mxu1 %v693_v9  ;;  %v887_v38 = vld [vmem:[%s923_s2] ss:$0 sm:$0xff] }
   0xe   :  { %666 = vmatprep.subr.bf16.mxu1 %v696_v12 }
   0xf   :  { %615 = vmatpush3.bf16.msra.mxu0 %v694_v10 }
  0x10   :  { %616 = vmatprep.subr.bf16.mxu0 %v695_v11 }
  0x11   :  { %667 = vmatpush3.bf16.msra.mxu1 %v696_v12 }
  0x12   :  { %668 = vmatprep.subr.bf16.mxu1 %v699_v14 }
  0x13   :  { %617 = vmatpush3.bf16.msra.mxu0 %v697_v13 }
  0x14   :  { %618 = vmatprep.subr.bf16.mxu0 %v698_v15 }
  0x15   :  { %669 = vmatpush3.bf16.msra.mxu1 %v699_v14 }
  0x16   :  { %670 = vmatprep.subr.bf16.mxu1 %v702_v17 }
  0x17   :  { %619 = vmatpush3.bf16.msra.mxu0 %v700_v16 }
  0x18   :  { %620 = vmatprep.subr.bf16.mxu0 %v701_v18 }
  0x19   :  { %671 = vmatpush3.bf16.msra.mxu1 %v702_v17 }
  0x1a   :  { %672 = vmatprep.subr.bf16.mxu1 %v705_v21 }
  0x1b   :  { %621 = vmatpush3.bf16.msra.mxu0 %v703_v19 }
  0x1c   :  { %622 = vmatprep.subr.bf16.mxu0 %v704_v20 }
  0x1d   :  { %673 = vmatpush3.bf16.msra.mxu1 %v705_v21 }
  0x1e   :  { %674 = vmatprep.subr.bf16.mxu1 %v710_v25 }
  0x1f   :  { %623 = vmatpush3.bf16.msra.mxu0 %v706_v23 }
  0x21   :  { %675 = vmatpush3.bf16.msra.mxu1 %v710_v25 }
  0x22   :  { %327 = vmatmul.mubr.bf16.vlgmr.msra.gmra.mxu0 %v707_v26 }
  0x23   :  { %334 = vmatprep.mubr.bf16.mxu0 %v713_v27 }
  0x24   :  { %677 = vmatmul.mubr.bf16.vlgmr.msra.gmra.mxu1 %v712_v28 }
  0x25   :  { %680 = vmatprep.mubr.bf16.mxu1 %v719_v29 }
  0x2a   :  { %335 = vmatmul.mubr.bf16.gmra.mxu0 %v715_v30 }
  0x2b   :  { %342 = vmatprep.mubr.bf16.mxu0 %v716_v31 }
  0x2c   :  { %681 = vmatmul.mubr.bf16.gmra.mxu1 %v720_v32 }
  0x32   :  { %343 = vmatmul.mubr.bf16.gmra.mxu0 %v718_v33 }
  0x33   :  { %350 = vmatprep.mubr.bf16.mxu0 %v721_v34 }
  0x3a   :  { %351 = vmatmul.mubr.bf16.gmra.mxu0 %v723_v35 }
  0xe2   :  { %v624_v36 = vpop.f32.mrf.mxu0 }
  0xe4   :  { %v625_v37 = vpop.f32.mrf.mxu0  ;;  %v678_v40 = vpop.f32.mrf.mxu1 }
  0xe5   :  { %v626_v39 = vadd.f32 %v625_v37, %v624_v36 }
  0xe6   :  { %v627_v41 = vpop.f32.mrf.mxu0  ;;  %v393_v43 = vpop.f32.mrf.mxu1 }
  0xe7   :  { %v329_v42 = vadd.f32 %v626_v39, %v887_v38 }
  0xe8   :  { %v628_v44 = vpop.f32.mrf.mxu0  ;;  %v679_v47 = vpop.f32.mrf.mxu1 }
  0xe9   :  { %v629_v45 = vadd.f32 %v628_v44, %v627_v41  ;;  %v890_v46 = vadd.f32 %v393_v43, %v329_v42 }
  0xea   :  { %v630_v48 = vpop.f32.mrf.mxu0  ;;  %v396_v51 = vpop.f32.mrf.mxu1 }
  0xeb   :  { %v561_v49 = vmul.f32 -1.442695, %v890_v46  ;;  %v332_v50 = vadd.f32 %v629_v45, %v887_v38 }
  0xec   :  { %v631_v52 = vpop.f32.mrf.mxu0  ;;  %v682_v56 = vpop.f32.mrf.mxu1 }
  0xed   :  { %724 = vpow2.f32 %v561_v49  ;;  %v632_v53 = vadd.f32 %v631_v52, %v630_v48  ;;  %v894_v54 = vadd.f32 %v396_v51, %v332_v50 }
  0xee   :  { %v633_v55 = vpop.f32.mrf.mxu0  ;;  %v409_v63 = vpop.f32.mrf.mxu1 }
  0xef   :  { %v337_v57 = vadd.f32 %v632_v53, %v887_v38  ;;  %v562_v58 = vmul.f32 -1.442695, %v894_v54 }
  0xf0   :  { %v634_v59 = vpop.f32.mrf.mxu0  ;;  %v683_v6 = vpop.f32.mrf.mxu1 }
  0xf1   :  { %v898_v60 = vadd.f32 %v678_v40, %v337_v57  ;;  %726 = vpow2.f32 %v562_v58  ;;  %v635_v61 = vadd.f32 %v634_v59, %v633_v55 }
  0xf2   :  { %v636_v62 = vpop.f32.mrf.mxu0  ;;  %v412_v14 = vpop.f32.mrf.mxu1 }
  0xf3   :  { %v563_v0 = vmul.f32 -1.442695, %v898_v60  ;;  %v340_v1 = vadd.f32 %v635_v61, %v887_v38 }
  0xf4   :  { %v637_v2 = vpop.f32.mrf.mxu0 }
  0xf5   :  { %728 = vpow2.f32 %v563_v0  ;;  %v405_v3 = vadd.f32 %v679_v47, %v340_v1  ;;  %v638_v4 = vadd.f32 %v637_v2, %v636_v62 }
  0xf6   :  { %v639_v5 = vpop.f32.mrf.mxu0 }
  0xf7   :  { %v564_v7 = vmul.f32 -1.442695, %v405_v3  ;;  %v345_v8 = vadd.f32 %v638_v4, %v887_v38 }
  0xf8   :  { %v640_v9 = vpop.f32.mrf.mxu0 }
  0xf9   :  { %730 = vpow2.f32 %v564_v7  ;;  %v641_v10 = vadd.f32 %v640_v9, %v639_v5  ;;  %v410_v11 = vadd.f32 %v409_v63, %v345_v8 }
  0xfa   :  { %v725_v12 = vpop.eup %724  ;;  %v642_v13 = vpop.f32.mrf.mxu0 }
  0xfb   :  { %v448_v15 = vadd.f32 1.0, %v725_v12  ;;  %v565_v16 = vmul.f32 -1.442695, %v410_v11  ;;  %v348_v17 = vadd.f32 %v641_v10, %v887_v38 }
  0xfc   :  { %v643_v18 = vpop.f32.mrf.mxu0 }
  0xfd   :  { %v644_v19 = vadd.f32 %v643_v18, %v642_v13  ;;  %v413_v20 = vadd.f32 %v412_v14, %v348_v17  ;;  %732 = vpow2.f32 %v565_v16 }
  0xfe   :  { %v727_v21 = vpop.eup %726  ;;  %v645_v22 = vpop.f32.mrf.mxu0  ;;  %734 = vrcp.f32 %v448_v15 }
  0xff   :  { %v449_v23 = vadd.f32 1.0, %v727_v21  ;;  %v353_v24 = vadd.f32 %v644_v19, %v887_v38  ;;  %v566_v25 = vmul.f32 -1.442695, %v413_v20 }
 0x100   :  { %v646_v26 = vpop.f32.mrf.mxu0 }
 0x101   :  { %736 = vrcp.f32 %v449_v23  ;;  %v418_v27 = vadd.f32 %v682_v56, %v353_v24  ;;  %v647_v28 = vadd.f32 %v646_v26, %v645_v22 }
 0x102   :  { %v729_v29 = vpop.eup %728  ;;  %738 = vpow2.f32 %v566_v25 }
 0x103   :  { %v450_v30 = vadd.f32 1.0, %v729_v29  ;;  %v567_v31 = vmul.f32 -1.442695, %v418_v27  ;;  %v356_v32 = vadd.f32 %v647_v28, %v887_v38 }
 0x105   :  { %v421_v33 = vadd.f32 %v683_v6, %v356_v32  ;;  %740 = vpow2.f32 %v567_v31 }
 0x106   :  { %v731_v34 = vpop.eup %730  ;;  %742 = vrcp.f32 %v450_v30 }
 0x107   :  { %v451_v35 = vadd.f32 1.0, %v731_v34  ;;  %v568_v36 = vmul.f32 -1.442695, %v421_v33 }
 0x109   :  { %744 = vrcp.f32 %v451_v35 }
 0x10a   :  { %746 = vpow2.f32 %v568_v36  ;;  %v733_v37 = vpop.eup %732 }
 0x10b   :  { %v735_v39 = vpop.eup %734  ;;  %v452_v40 = vadd.f32 1.0, %v733_v37 }
 0x10c   :  { %v472_v43 = vmul.f32 %v735_v39, %v890_v46 }
 0x10d   :  { %748 = vrcp.f32 %v452_v40 }
 0x10e   :  { %v737_v41 = vpop.eup %736 }
 0x10f   :  { %v739_v42 = vpop.eup %738  ;;  %v473_v44 = vmul.f32 %v737_v41, %v894_v54 }
 0x110   :  { %v453_v45 = vadd.f32 1.0, %v739_v42 }
 0x111   :  { %v588_v38 = vpack.c.bf16 %v473_v44, %v472_v43 }
 0x112   :  { %750 = vrcp.f32 %v453_v45  ;;  %v741_v47 = vpop.eup %740 }
 0x113   :  { %589 = vst [vmem:[%s924_s3] sm:$0xff] %v588_v38   ;;  %v743_v48 = vpop.eup %742  ;;  %v454_v49 = vadd.f32 1.0, %v741_v47 }
 0x114   :  { %v474_v52 = vmul.f32 %v743_v48, %v898_v60 }
 0x115   :  { %752 = vrcp.f32 %v454_v49 }
 0x116   :  { %v745_v50 = vpop.eup %744 }
 0x117   :  { %v747_v51 = vpop.eup %746  ;;  %v475_v53 = vmul.f32 %v745_v50, %v405_v3 }
 0x118   :  { %v455_v46 = vadd.f32 1.0, %v747_v51 }
 0x119   :  { %v593_v55 = vpack.c.bf16 %v475_v53, %v474_v52 }
 0x11a   :  { %754 = vrcp.f32 %v455_v46  ;;  %v749_v54 = vpop.eup %748 }
 0x11b   :  { %605 = vst [vmem:[%s924_s3 + $0x8] sm:$0xff] %v593_v55   ;;  %v476_v57 = vmul.f32 %v749_v54, %v410_v11 }
 0x11f   :  { %v751_v56 = vpop.eup %750 }
 0x120   :  { %v477_v58 = vmul.f32 %v751_v56, %v413_v20 }
 0x122   :  { %v598_v59 = vpack.c.bf16 %v477_v58, %v476_v57  ;;  %v753_v61 = vpop.eup %752 }
 0x123   :  { %v478_v62 = vmul.f32 %v753_v61, %v418_v27 }
 0x124   :  { %606 = vst [vmem:[%s924_s3 + $0x10] sm:$0xff] %v598_v59  }
 0x127   :  { %v755_v60 = vpop.eup %754 }
 0x128   :  { %v479_v63 = vmul.f32 %v755_v60, %v421_v33 }
 0x12a   :  { %v603_v0 = vpack.c.bf16 %v479_v63, %v478_v62 }
 0x12c   :  { %607 = vst [vmem:[%s924_s3 + $0x18] sm:$0xff] %v603_v0  }

// kernel: _forward.39
= control target key start
LH: loop header
LB: loop body
LE: loop exit
PB: predicated region body
PF: predicated region fallthrough
CT: control target
= control target key end

     0   :  { %v208_v0 = vmov 0.0   ;;  %vm209_vm0 = vmmov 0   ;;  %s263_s1 = inlined_call_operand.vmem [shape: bf16[128,128], index: 1, kind: input, shape index: {}]   ;;  %s264_s0 = inlined_call_operand.vmem [shape: bf16[16,128], index: 0, kind: input, shape index: {}]   ;;  %s265_s2 = inlined_call_operand.vmem [shape: f32[1,128], index: 2, kind: input, shape index: {}]   ;;  %s266_s3 = inlined_call_operand.vmem [shape: bf16[16,128], index: 3, kind: output, shape index: {}]  }
   0x1   :  { %177 = vmatprep.subr.bf16.mxu0 %v208_v0  ;;  %v199_v1 = vld [vmem:[%s263_s1 + $0x38] sm:$0xff]   ;;  %193 = vmatprep.mubr.msk.bf16.mxu0 %vm209_vm0, %v208_v0  ;;  %v200_v2 = vld [vmem:[%s263_s1 + $0x30] sm:$0xff]   ;;  %v201_v3 = vld [vmem:[%s263_s1 + $0x28] sm:$0xff]  }
   0x2   :  { %178 = vmatpush3.bf16.msra.mxu0 %v199_v1  ;;  %v202_v4 = vld [vmem:[%s263_s1 + $0x20] sm:$0xff]   ;;  %v203_v5 = vld [vmem:[%s263_s1 + $0x18] sm:$0xff]   ;;  %v204_v6 = vld [vmem:[%s263_s1 + $0x10] sm:$0xff]  }
   0x3   :  { %179 = vmatprep.subr.bf16.mxu0 %v208_v0  ;;  %v205_v7 = vld [vmem:[%s263_s1 + $0x8] sm:$0xff]   ;;  %v206_v8 = vld [vmem:[%s263_s1] sm:$0xff]  }
   0x4   :  { %v207_v9 = vld [vmem:[%s264_s0] sm:$0xff]  }
   0x5   :  { %v149_v11 = vld [vmem:[%s265_s2] ss:$0 sm:$0xff] }
   0x6   :  { %180 = vmatpush3.bf16.msra.mxu0 %v200_v2 }
   0x7   :  { %181 = vmatprep.subr.bf16.mxu0 %v208_v0 }
   0xa   :  { %182 = vmatpush3.bf16.msra.mxu0 %v201_v3 }
   0xb   :  { %183 = vmatprep.subr.bf16.mxu0 %v208_v0 }
   0xe   :  { %184 = vmatpush3.bf16.msra.mxu0 %v202_v4 }
   0xf   :  { %185 = vmatprep.subr.bf16.mxu0 %v208_v0 }
  0x12   :  { %186 = vmatpush3.bf16.msra.mxu0 %v203_v5 }
  0x13   :  { %187 = vmatprep.subr.bf16.mxu0 %v208_v0 }
  0x16   :  { %188 = vmatpush3.bf16.msra.mxu0 %v204_v6 }
  0x17   :  { %189 = vmatprep.subr.bf16.mxu0 %v208_v0 }
  0x1a   :  { %190 = vmatpush3.bf16.msra.mxu0 %v205_v7 }
  0x1b   :  { %191 = vmatprep.subr.bf16.mxu0 %v208_v0 }
  0x1e   :  { %192 = vmatpush3.bf16.msra.mxu0 %v206_v8 }
  0x21   :  { %194 = vmatmul.mubr.bf16.vlgmr.msra.gmra.mxu0 %v207_v9 }
  0xe1   :  { %v128_v10 = vpop.f32.mrf.mxu0 }
  0xe2   :  { %v129_v14 = vadd.f32 %v149_v11, %v128_v10 }
  0xe3   :  { %v195_v12 = vpop.f32.mrf.mxu0 }
  0xe5   :  { %v131_v13 = vpop.f32.mrf.mxu0 }
  0xe6   :  { %v132_v15 = vadd.f32 %v149_v11, %v131_v13 }
  0xe7   :  { %v196_v16 = vpop.f32.mrf.mxu0 }
  0xe8   :  { %v166_v17 = vpack.c.bf16 %v132_v15, %v129_v14 }
  0xea   :  { %167 = vst [vmem:[%s266_s3] sm:$0xff] %v166_v17  }

// kernel: _forward.42
= control target key start
LH: loop header
LB: loop body
LE: loop exit
PB: predicated region body
PF: predicated region fallthrough
CT: control target
= control target key end

     0   :  { %v181_v0 = vmov 0.0   ;;  %vm182_vm0 = vmmov 0   ;;  %s236_s1 = inlined_call_operand.vmem [shape: bf16[128,128], index: 1, kind: input, shape index: {}]   ;;  %s237_s0 = inlined_call_operand.vmem [shape: bf16[8,128], index: 0, kind: input, shape index: {}]   ;;  %s238_s2 = inlined_call_operand.vmem [shape: f32[1,128], index: 2, kind: input, shape index: {}]   ;;  %s239_s3 = inlined_call_operand.vmem [shape: bf16[8,128], index: 3, kind: output, shape index: {}]  }
   0x1   :  { %151 = vmatprep.subr.bf16.mxu0 %v181_v0  ;;  %v173_v1 = vld [vmem:[%s236_s1 + $0x38] sm:$0xff]   ;;  %167 = vmatprep.mubr.msk.bf16.mxu0 %vm182_vm0, %v181_v0  ;;  %v174_v2 = vld [vmem:[%s236_s1 + $0x30] sm:$0xff]   ;;  %v175_v3 = vld [vmem:[%s236_s1 + $0x28] sm:$0xff]  }
   0x2   :  { %152 = vmatpush3.bf16.msra.mxu0 %v173_v1  ;;  %v176_v4 = vld [vmem:[%s236_s1 + $0x20] sm:$0xff]   ;;  %v177_v5 = vld [vmem:[%s236_s1 + $0x18] sm:$0xff]   ;;  %v178_v6 = vld [vmem:[%s236_s1 + $0x10] sm:$0xff]  }
   0x3   :  { %153 = vmatprep.subr.bf16.mxu0 %v181_v0  ;;  %v179_v7 = vld [vmem:[%s236_s1 + $0x8] sm:$0xff]   ;;  %v180_v8 = vld [vmem:[%s236_s1] sm:$0xff]  }
   0x4   :  { %v15_v9 = vld [vmem:[%s237_s0] sm:$0xf] }
   0x5   :  { %v133_v10 = vld [vmem:[%s238_s2] ss:$0 sm:$0xff] }
   0x6   :  { %154 = vmatpush3.bf16.msra.mxu0 %v174_v2 }
   0x7   :  { %155 = vmatprep.subr.bf16.mxu0 %v181_v0 }
   0xa   :  { %156 = vmatpush3.bf16.msra.mxu0 %v175_v3 }
   0xb   :  { %157 = vmatprep.subr.bf16.mxu0 %v181_v0 }
   0xe   :  { %158 = vmatpush3.bf16.msra.mxu0 %v176_v4 }
   0xf   :  { %159 = vmatprep.subr.bf16.mxu0 %v181_v0 }
  0x12   :  { %160 = vmatpush3.bf16.msra.mxu0 %v177_v5 }
  0x13   :  { %161 = vmatprep.subr.bf16.mxu0 %v181_v0 }
  0x16   :  { %162 = vmatpush3.bf16.msra.mxu0 %v178_v6 }
  0x17   :  { %163 = vmatprep.subr.bf16.mxu0 %v181_v0 }
  0x1a   :  { %164 = vmatpush3.bf16.msra.mxu0 %v179_v7 }
  0x1b   :  { %165 = vmatprep.subr.bf16.mxu0 %v181_v0 }
  0x1e   :  { %166 = vmatpush3.bf16.msra.mxu0 %v180_v8 }
  0x21   :  { %168 = vmatmul.mubr.bf16.vlgmr.msra.gmra.mxu0 %v15_v9 }
  0xe1   :  { %v121_v11 = vpop.f32.mrf.mxu0 }
  0xe2   :  { %v122_v12 = vadd.f32 %v133_v10, %v121_v11 }
  0xe3   :  { %v169_v13 = vpop.f32.mrf.mxu0 }
  0xe4   :  { %v127_v14 = vpack.c.bf16 %v122_v12, %v122_v12 }
  0xe5   :  { %v124_v15 = vpop.f32.mrf.mxu0 }
  0xe6   :  { %128 = vst [vmem:[%s239_s3] sm:$0xf] %v127_v14 }
  0xe7   :  { %v170_v16 = vpop.f32.mrf.mxu0 }

// kernel: _forward.41
= control target key start
LH: loop header
LB: loop body
LE: loop exit
PB: predicated region body
PF: predicated region fallthrough
CT: control target
= control target key end

     0   :  { %v433_v1 = vmov 0.0   ;;  %vm434_vm0 = vmmov 0   ;;  %s539_s1 = inlined_call_operand.vmem [shape: bf16[384,128], index: 1, kind: input, shape index: {}]   ;;  %s540_s0 = inlined_call_operand.vmem [shape: bf16[8,384], index: 0, kind: input, shape index: {}]   ;;  %s541_s2 = inlined_call_operand.vmem [shape: f32[1,128], index: 2, kind: input, shape index: {}]   ;;  %s542_s3 = inlined_call_operand.vmem [shape: bf16[8,128], index: 3, kind: output, shape index: {}]  }
   0x1   :  { %v402_v0 = vld [vmem:[%s539_s1 + $0x78] sm:$0xff]   ;;  %380 = vmatprep.subr.bf16.mxu1 %v433_v1  ;;  %396 = vmatprep.mubr.msk.bf16.mxu1 %vm434_vm0, %v433_v1  ;;  %v405_v4 = vld [vmem:[%s539_s1 + $0x70] sm:$0xff]   ;;  %v408_v7 = vld [vmem:[%s539_s1 + $0x68] sm:$0xff]  }
   0x2   :  { %v403_v2 = vld [vmem:[%s539_s1 + $0x38] sm:$0xff]   ;;  %349 = vmatprep.subr.bf16.mxu0 %v402_v0  ;;  %v406_v5 = vld [vmem:[%s539_s1 + $0x30] sm:$0xff]   ;;  %v409_v8 = vld [vmem:[%s539_s1 + $0x28] sm:$0xff]  }
   0x3   :  { %v404_v3 = vld [vmem:[%s539_s1 + $0xb8] sm:$0xff]   ;;  %350 = vmatpush3.bf16.msra.mxu0 %v403_v2  ;;  %v407_v6 = vld [vmem:[%s539_s1 + $0xb0] sm:$0xff]   ;;  %v410_v9 = vld [vmem:[%s539_s1 + $0xa8] sm:$0xff]  }
   0x4   :  { %381 = vmatpush3.bf16.msra.mxu1 %v404_v3  ;;  %351 = vmatprep.subr.bf16.mxu0 %v405_v4  ;;  %v411_v10 = vld [vmem:[%s539_s1 + $0x60] sm:$0xff]   ;;  %v414_v13 = vld [vmem:[%s539_s1 + $0x58] sm:$0xff]   ;;  %v417_v16 = vld [vmem:[%s539_s1 + $0x50] sm:$0xff]  }
   0x5   :  { %382 = vmatprep.subr.bf16.mxu1 %v433_v1  ;;  %v412_v11 = vld [vmem:[%s539_s1 + $0x20] sm:$0xff]   ;;  %v415_v14 = vld [vmem:[%s539_s1 + $0x18] sm:$0xff]   ;;  %v418_v17 = vld [vmem:[%s539_s1 + $0x10] sm:$0xff]  }
   0x6   :  { %v413_v12 = vld [vmem:[%s539_s1 + $0xa0] sm:$0xff]   ;;  %v416_v15 = vld [vmem:[%s539_s1 + $0x98] sm:$0xff]   ;;  %v419_v18 = vld [vmem:[%s539_s1 + $0x90] sm:$0xff]  }
   0x7   :  { %352 = vmatpush3.bf16.msra.mxu0 %v406_v5  ;;  %v420_v19 = vld [vmem:[%s539_s1 + $0x48] sm:$0xff]   ;;  %v423_v22 = vld [vmem:[%s539_s1 + $0x40] sm:$0xff]  }
   0x8   :  { %383 = vmatpush3.bf16.msra.mxu1 %v407_v6  ;;  %353 = vmatprep.subr.bf16.mxu0 %v408_v7  ;;  %v421_v20 = vld [vmem:[%s539_s1 + $0x8] sm:$0xff]   ;;  %v15_v23 = vld [vmem:[%s540_s0] sm:$0xff] }
   0x9   :  { %384 = vmatprep.subr.bf16.mxu1 %v433_v1  ;;  %v422_v21 = vld [vmem:[%s539_s1 + $0x88] sm:$0xff]   ;;  %v322_v24 = vcombine.high %v15_v23, %v15_v23  ;;  %v424_v25 = vld [vmem:[%s539_s1] sm:$0xff]   ;;  %v321_v27 = vcombine.low %v15_v23, %v15_v23 }
   0xa   :  { %v425_v26 = vld [vmem:[%s539_s1 + $0x80] sm:$0xff]   ;;  %v428_v28 = vld [vmem:[%s540_s0 + $0x8] ss:$0 sps:$4 sm:$0xff]  }
   0xb   :  { %354 = vmatpush3.bf16.msra.mxu0 %v409_v8  ;;  %259 = vmatprep.mubr.bf16.mxu0 %v322_v24  ;;  %v320_v31 = vld [vmem:[%s541_s2] ss:$0 sm:$0xff] }
   0xc   :  { %385 = vmatpush3.bf16.msra.mxu1 %v410_v9  ;;  %355 = vmatprep.subr.bf16.mxu0 %v411_v10 }
   0xd   :  { %386 = vmatprep.subr.bf16.mxu1 %v433_v1 }
   0xf   :  { %356 = vmatpush3.bf16.msra.mxu0 %v412_v11 }
  0x10   :  { %387 = vmatpush3.bf16.msra.mxu1 %v413_v12  ;;  %357 = vmatprep.subr.bf16.mxu0 %v414_v13 }
  0x11   :  { %388 = vmatprep.subr.bf16.mxu1 %v433_v1 }
  0x13   :  { %358 = vmatpush3.bf16.msra.mxu0 %v415_v14 }
  0x14   :  { %389 = vmatpush3.bf16.msra.mxu1 %v416_v15  ;;  %359 = vmatprep.subr.bf16.mxu0 %v417_v16 }
  0x15   :  { %390 = vmatprep.subr.bf16.mxu1 %v433_v1 }
  0x17   :  { %360 = vmatpush3.bf16.msra.mxu0 %v418_v17 }
  0x18   :  { %391 = vmatpush3.bf16.msra.mxu1 %v419_v18  ;;  %361 = vmatprep.subr.bf16.mxu0 %v420_v19 }
  0x19   :  { %392 = vmatprep.subr.bf16.mxu1 %v433_v1 }
  0x1b   :  { %362 = vmatpush3.bf16.msra.mxu0 %v421_v20 }
  0x1c   :  { %393 = vmatpush3.bf16.msra.mxu1 %v422_v21  ;;  %363 = vmatprep.subr.bf16.mxu0 %v423_v22 }
  0x1d   :  { %394 = vmatprep.subr.bf16.mxu1 %v433_v1 }
  0x1f   :  { %364 = vmatpush3.bf16.msra.mxu0 %v424_v25 }
  0x20   :  { %395 = vmatpush3.bf16.msra.mxu1 %v425_v26 }
  0x22   :  { %260 = vmatmul.mubr.bf16.vlgmr.msra.gmra.mxu0 %v321_v27 }
  0x23   :  { %397 = vmatmul.mubr.bf16.vlgmr.msra.gmra.mxu1 %v428_v28 }
  0xe2   :  { %v365_v29 = vpop.f32.mrf.mxu0 }
  0xe3   :  { %v301_v30 = vpop.f32.mrf.mxu1 }
  0xe4   :  { %v366_v32 = vpop.f32.mrf.mxu0 }
  0xe5   :  { %v367_v33 = vadd.f32 %v366_v32, %v365_v29  ;;  %v398_v34 = vpop.f32.mrf.mxu1 }
  0xe6   :  { %v368_v35 = vpop.f32.mrf.mxu0 }
  0xe7   :  { %v262_v36 = vadd.f32 %v367_v33, %v320_v31  ;;  %v304_v37 = vpop.f32.mrf.mxu1 }
  0xe8   :  { %v369_v38 = vpop.f32.mrf.mxu0 }
  0xe9   :  { %v302_v39 = vadd.f32 %v301_v30, %v262_v36  ;;  %v399_v40 = vpop.f32.mrf.mxu1 }
  0xeb   :  { %v348_v41 = vmul.f32 -1.442695, %v302_v39 }
  0xed   :  { %429 = vpow2.f32 %v348_v41 }
  0xfa   :  { %v430_v42 = vpop.eup %429 }
  0xfb   :  { %v310_v43 = vadd.f32 1.0, %v430_v42 }
  0xfd   :  { %431 = vrcp.f32 %v310_v43 }
 0x10a   :  { %v432_v44 = vpop.eup %431 }
 0x10b   :  { %v313_v45 = vmul.f32 %v432_v44, %v302_v39 }
 0x10d   :  { %v314_v46 = vpack.c.bf16 %v313_v45, %v313_v45 }
 0x10f   :  { %315 = vst [vmem:[%s542_s3] sm:$0xf] %v314_v46 }

// kernel: _forward.43
= control target key start
LH: loop header
LB: loop body
LE: loop exit
PB: predicated region body
PF: predicated region fallthrough
CT: control target
= control target key end

     0   :  { %s2570_s27 = smov 126   ;;  %vm1035_vm0 = vcmask 203816   ;;  %vm1356_vm1 = vcmask 162816   ;;  %s2573_s14 = smov 2   ;;  %vm1965_vm2 = vcmask 15360   ;;  %vm1998_vm3 = vcmask 31744   ;;  %s4244_s0 = inlined_call_operand.vmem [shape: bf16[256,25], index: 0, kind: input, shape index: {}]   ;;  %s4245_s1 = inlined_call_operand.vmem [shape: f32[256,8], index: 1, kind: input, shape index: {}]   ;;  %s4246_s2 = inlined_call_operand.vmem [shape: f32[256,128], index: 2, kind: output, shape index: {}]  }
   0x1   :  { %v2133_v0 = vld [vmem:[%s4244_s0] sm:$0xff]   ;;  %v2196_v3 = vld [vmem:[%s4244_s0 + $0x8] sm:$0xff]   ;;  %v2197_v7 = vld [vmem:[%s4244_s0 + $0x10] sm:$0xff]   ;;  %vm2031_vm4 = vcmask 195584  }
   0x2   :  { %v2593_v1 = vunpack.c.h.bf16 %v2133_v0  ;;  %v2595_v2 = vunpack.c.l.bf16 %v2133_v0  ;;  %v2600_v4 = vunpack.c.h.bf16 %v2196_v3  ;;  %v2607_v8 = vunpack.c.l.bf16 %v2196_v3  ;;  %v2198_v11 = vld [vmem:[%s4244_s0 + $0x18] sm:$0xff]   ;;  %v2199_v18 = vld [vmem:[%s4244_s0 + $0x20] sm:$0xff]   ;;  %v76_v21 = vld [vmem:[%s4245_s1 + $0x8] sm:$0xff] }
   0x3   :  { %v2610_v10 = vunpack.c.h.bf16 %v2197_v7  ;;  %v2616_v13 = vunpack.c.l.bf16 %v2197_v7  ;;  %v2619_v15 = vunpack.c.h.bf16 %v2198_v11  ;;  %v2622_v17 = vunpack.c.l.bf16 %v2198_v11  ;;  %v75_v24 = vld [vmem:[%s4245_s1] sm:$0xff]  ;;  %v78_v31 = vld [vmem:[%s4245_s1 + $0x18] sm:$0xff]  ;;  %v2200_v32 = vld [vmem:[%s4244_s0 + $0x28] sm:$0xff]  }
   0x4   :  { %v525_v5 = vmul.f32 1.442695, %v2593_v1  ;;  %v523_v6 = vmul.f32 1.442695, %v2595_v2  ;;  %v529_v9 = vmul.f32 1.442695, %v2600_v4  ;;  %v2628_v20 = vunpack.c.h.bf16 %v2199_v18 }
   0x5   :  { %v527_v12 = vmul.f32 1.442695, %v2607_v8  ;;  %v533_v14 = vmul.f32 1.442695, %v2610_v10  ;;  %v531_v16 = vmul.f32 1.442695, %v2616_v13  ;;  %v2638_v28 = vunpack.c.l.bf16 %v2199_v18 }
   0x6   :  { %2218 = vpow2.f32 %v525_v5  ;;  %v537_v19 = vmul.f32 1.442695, %v2619_v15  ;;  %v535_v22 = vmul.f32 1.442695, %v2622_v17  ;;  %v541_v26 = vmul.f32 1.442695, %v2628_v20 }
   0x7   :  { %2220 = vpow2.f32 %v523_v6  ;;  %v77_v35 = vld [vmem:[%s4245_s1 + $0x10] sm:$0xff]  ;;  %v539_v37 = vmul.f32 1.442695, %v2638_v28  ;;  %v2651_v38 = vunpack.c.h.bf16 %v2200_v32  ;;  %v80_v40 = vld [vmem:[%s4245_s1 + $0x28] sm:$0xff]  ;;  %v79_v44 = vld [vmem:[%s4245_s1 + $0x20] sm:$0xff]  ;;  %v2660_v45 = vunpack.c.l.bf16 %v2200_v32 }
   0x8   :  { %2222 = vpow2.f32 %v529_v9  ;;  %v2201_v49 = vld [vmem:[%s4244_s0 + $0x30] sm:$0xff]   ;;  %v82_v51 = vld [vmem:[%s4245_s1 + $0x38] sm:$0xff]  ;;  %v84_v3 = vld [vmem:[%s4245_s1 + $0x48] sm:$0xff] }
   0x9   :  { %2224 = vpow2.f32 %v527_v12  ;;  %v545_v48 = vmul.f32 1.442695, %v2651_v38  ;;  %v81_v55 = vld [vmem:[%s4245_s1 + $0x30] sm:$0xff]  ;;  %v2674_v56 = vunpack.c.h.bf16 %v2201_v49  ;;  %v543_v59 = vmul.f32 1.442695, %v2660_v45  ;;  %v2202_v62 = vld [vmem:[%s4244_s0 + $0x38] sm:$0xff]  }
   0xa   :  { %2226 = vpow2.f32 %v533_v14  ;;  %v2678_v61 = vunpack.c.l.bf16 %v2201_v49  ;;  %v2689_v9 = vunpack.c.h.bf16 %v2202_v62  ;;  %v2203_v14 = vld [vmem:[%s4244_s0 + $0x40] sm:$0xff]  }
   0xb   :  { %2228 = vpow2.f32 %v531_v16  ;;  %v549_v5 = vmul.f32 1.442695, %v2674_v56  ;;  %v83_v18 = vld [vmem:[%s4245_s1 + $0x40] sm:$0xff] }
   0xc   :  { %2230 = vpow2.f32 %v537_v19  ;;  %v547_v12 = vmul.f32 1.442695, %v2678_v61  ;;  %v2699_v19 = vunpack.c.l.bf16 %v2202_v62 }
   0xd   :  { %2232 = vpow2.f32 %v535_v22 }
   0xe   :  { %2234 = vpow2.f32 %v541_v26  ;;  %v551_v26 = vmul.f32 1.442695, %v2699_v19 }
   0xf   :  { %2236 = vpow2.f32 %v539_v37 }
  0x10   :  { %2238 = vpow2.f32 %v545_v48  ;;  %v87_v48 = vld [vmem:[%s4245_s1 + $0x60] sm:$0xff] }
  0x11   :  { %2240 = vpow2.f32 %v543_v59 }
  0x12   :  { %2242 = vpow2.f32 %v549_v5 }
  0x13   :  { %v2219_v23 = vpop.eup %2218  ;;  %2244 = vpow2.f32 %v547_v12 }
  0x14   :  { %v588_v25 = vmul.f32 %v2219_v23, %v76_v21  ;;  %v2221_v27 = vpop.eup %2220  ;;  %v553_v21 = vmul.f32 1.442695, %v2689_v9  ;;  %v2703_v23 = vunpack.c.h.bf16 %v2203_v14 }
  0x15   :  { %v587_v30 = vmul.f32 %v2221_v27, %v75_v24  ;;  %v2223_v33 = vpop.eup %2222 }
  0x16   :  { %v620_v29 = vmul.f32 0.5, %v588_v25  ;;  %v590_v36 = vmul.f32 %v2223_v33, %v78_v31  ;;  %v2225_v39 = vpop.eup %2224  ;;  %v86_v25 = vld [vmem:[%s4245_s1 + $0x58] sm:$0xff]  ;;  %2246 = vpow2.f32 %v553_v21  ;;  %v557_v32 = vmul.f32 1.442695, %v2703_v23  ;;  %v91_v21 = vld [vmem:[%s4245_s1 + $0x80] sm:$0xff] }
  0x17   :  { %v619_v34 = vmul.f32 0.5, %v587_v30  ;;  %v589_v42 = vmul.f32 %v2225_v39, %v77_v35  ;;  %v2227_v43 = vpop.eup %2226  ;;  %v2204_v30 = vld [vmem:[%s4244_s0 + $0x48] sm:$0xff]   ;;  %2248 = vpow2.f32 %v551_v26 }
  0x18   :  { %685 = vrot.lane.b32.xlu1 %v620_v29, %s2570_s27  ;;  %v622_v41 = vmul.f32 0.5, %v590_v36  ;;  %v592_v47 = vmul.f32 %v2227_v43, %v80_v40  ;;  %v2229_v50 = vpop.eup %2228  ;;  %v2709_v29 = vunpack.c.l.bf16 %v2203_v14  ;;  %v2719_v35 = vunpack.c.h.bf16 %v2204_v30 }
  0x19   :  { %683 = vrot.lane.b32.xlu0 %v619_v34, %s2570_s27  ;;  %v621_v46 = vmul.f32 0.5, %v589_v42  ;;  %v591_v53 = vmul.f32 %v2229_v50, %v79_v44  ;;  %v2231_v54 = vpop.eup %2230  ;;  %v85_v34 = vld [vmem:[%s4245_s1 + $0x50] sm:$0xff]  ;;  %2250 = vpow2.f32 %v557_v32  ;;  %v2726_v42 = vunpack.c.l.bf16 %v2204_v30 }
  0x1a   :  { %v624_v52 = vmul.f32 0.5, %v592_v47  ;;  %v594_v58 = vmul.f32 %v2231_v54, %v82_v51  ;;  %v2233_v60 = vpop.eup %2232  ;;  %v555_v37 = vmul.f32 1.442695, %v2709_v29  ;;  %v561_v43 = vmul.f32 1.442695, %v2719_v35  ;;  %v2205_v44 = vld [vmem:[%s4244_s0 + $0x50] sm:$0xff]  }
  0x1b   :  { %v623_v57 = vmul.f32 0.5, %v591_v53  ;;  %v593_v0 = vmul.f32 %v2233_v60, %v81_v55  ;;  %v2235_v6 = vpop.eup %2234  ;;  %v559_v51 = vmul.f32 1.442695, %v2726_v42  ;;  %v90_v55 = vld [vmem:[%s4245_s1 + $0x78] sm:$0xff]  ;;  %v2743_v59 = vunpack.c.l.bf16 %v2205_v44 }
  0x1c   :  { %689 = vrot.lane.b32.xlu1 %v622_v41, %s2570_s27  ;;  %v626_v63 = vmul.f32 0.5, %v594_v58  ;;  %v596_v11 = vmul.f32 %v2235_v6, %v84_v3  ;;  %v2237_v22 = vpop.eup %2236  ;;  %v88_v41 = vld [vmem:[%s4245_s1 + $0x68] sm:$0xff]  ;;  %2252 = vpow2.f32 %v555_v37  ;;  %v2206_v60 = vld [vmem:[%s4244_s0 + $0x58] sm:$0xff]  }
  0x1d   :  { %687 = vrot.lane.b32.xlu0 %v621_v46, %s2570_s27  ;;  %v625_v7 = vmul.f32 0.5, %v593_v0  ;;  %v595_v24 = vmul.f32 %v2237_v22, %v83_v18  ;;  %v2239_v31 = vpop.eup %2238  ;;  %2254 = vpow2.f32 %v561_v43  ;;  %v92_v6 = vld [vmem:[%s4245_s1 + $0x88] sm:$0xff]  ;;  %v563_v12 = vmul.f32 1.442695, %v2743_v59 }
  0x1e   :  { %v628_v16 = vmul.f32 0.5, %v596_v11  ;;  %v598_v33 = vmul.f32 %v2239_v31, %v86_v25  ;;  %v2241_v39 = vpop.eup %2240  ;;  %2256 = vpow2.f32 %v559_v51  ;;  %v2763_v22 = vunpack.c.l.bf16 %v2206_v60  ;;  %v94_v31 = vld [vmem:[%s4245_s1 + $0x98] sm:$0xff] }
  0x1f   :  { %v627_v27 = vmul.f32 0.5, %v595_v24  ;;  %v597_v40 = vmul.f32 %v2241_v39, %v85_v34  ;;  %v2243_v46 = vpop.eup %2242  ;;  %v2207_v24 = vld [vmem:[%s4244_s0 + $0x60] sm:$0xff]   ;;  %v93_v39 = vld [vmem:[%s4245_s1 + $0x90] sm:$0xff] }
  0x20   :  { %693 = vrot.lane.b32.xlu1 %v624_v52, %s2570_s27  ;;  %v630_v36 = vmul.f32 0.5, %v598_v33  ;;  %v600_v49 = vmul.f32 %v2243_v46, %v88_v41  ;;  %v2245_v50 = vpop.eup %2244  ;;  %v2737_v52 = vunpack.c.h.bf16 %v2205_v44  ;;  %v2773_v32 = vunpack.c.h.bf16 %v2207_v24  ;;  %v2208_v41 = vld [vmem:[%s4244_s0 + $0x68] sm:$0xff]  }
  0x21   :  { %691 = vrot.lane.b32.xlu0 %v623_v57, %s2570_s27  ;;  %v629_v47 = vmul.f32 0.5, %v597_v40  ;;  %v599_v54 = vmul.f32 %v2245_v50, %v87_v48  ;;  %v567_v33 = vmul.f32 1.442695, %v2763_v22  ;;  %v2780_v40 = vunpack.c.l.bf16 %v2207_v24  ;;  %v97_v24 = vld [vmem:[%s4245_s1 + $0xb0] sm:$0xff] }
  0x22   :  { %v632_v53 = vmul.f32 0.5, %v600_v49  ;;  %v565_v0 = vmul.f32 1.442695, %v2737_v52  ;;  %v573_v43 = vmul.f32 1.442695, %v2773_v32  ;;  %v2787_v48 = vunpack.c.h.bf16 %v2208_v41  ;;  %v2793_v49 = vld [vmem:[%s4245_s1 + $0xa8] sm:$0xff] }
  0x23   :  { %v2247_v57 = vpop.eup %2246  ;;  %v631_v58 = vmul.f32 0.5, %v599_v54  ;;  %v571_v50 = vmul.f32 1.442695, %v2780_v40 }
  0x24   :  { %697 = vrot.lane.b32.xlu1 %v626_v63, %s2570_s27  ;;  %v602_v62 = vmul.f32 %v2247_v57, %v90_v55  ;;  %v89_v63 = vld [vmem:[%s4245_s1 + $0x70] sm:$0xff]  ;;  %v2249_v3 = vpop.eup %2248  ;;  %2258 = vpow2.f32 %v565_v0  ;;  %v2799_v55 = vunpack.c.l.bf16 %v2208_v41  ;;  %v2842_v41 = vld [vmem:[%s4245_s1 + $0xc0] sm:$0xff] }
  0x25   :  { %695 = vrot.lane.b32.xlu0 %v625_v7, %s2570_s27  ;;  %v2756_v7 = vunpack.c.h.bf16 %v2206_v60  ;;  %v601_v11 = vmul.f32 %v2249_v3, %v89_v63  ;;  %2260 = vpow2.f32 %v563_v12  ;;  %v577_v60 = vmul.f32 1.442695, %v2787_v48 }
  0x26   :  { %v634_v5 = vmul.f32 0.5, %v602_v62  ;;  %v2251_v14 = vpop.eup %2250 }
  0x27   :  { %v604_v18 = vmul.f32 %v2251_v14, %v92_v6  ;;  %v569_v25 = vmul.f32 1.442695, %v2756_v7  ;;  %v575_v6 = vmul.f32 1.442695, %v2799_v55 }
  0x28   :  { %701 = vrot.lane.b32.xlu1 %v628_v16, %s2570_s27  ;;  %v633_v16 = vmul.f32 0.5, %v601_v11 }
  0x29   :  { %699 = vrot.lane.b32.xlu0 %v627_v27, %s2570_s27  ;;  %v2253_v26 = vpop.eup %2252  ;;  %v636_v27 = vmul.f32 0.5, %v604_v18  ;;  %2262 = vpow2.f32 %v569_v25  ;;  %v2210_v18 = vld [vmem:[%s4244_s0 + $0x78] sm:$0xff]  }
  0x2a   :  { %v603_v30 = vmul.f32 %v2253_v26, %v91_v21  ;;  %v2255_v34 = vpop.eup %2254  ;;  %2264 = vpow2.f32 %v567_v33 }
  0x2b   :  { %v606_v37 = vmul.f32 %v2255_v34, %v94_v31  ;;  %v2257_v44 = vpop.eup %2256  ;;  %2266 = vpow2.f32 %v573_v43  ;;  %v2832_v31 = vld [vmem:[%s4245_s1 + $0xc8] sm:$0xff] }
  0x2c   :  { %705 = vrot.lane.b32.xlu1 %v630_v36, %s2570_s27  ;;  %v635_v36 = vmul.f32 0.5, %v603_v30  ;;  %2268 = vpow2.f32 %v571_v50  ;;  %v2850_v50 = vld [vmem:[%s4245_s1 + $0xd8] sm:$0xff] }
  0x2d   :  { %703 = vrot.lane.b32.xlu0 %v629_v47, %s2570_s27  ;;  %v638_v46 = vmul.f32 0.5, %v606_v37  ;;  %v605_v47 = vmul.f32 %v2257_v44, %v93_v39  ;;  %2270 = vpow2.f32 %v577_v60  ;;  %v2836_v37 = vunpack.c.l.bf16 %v2210_v18 }
  0x2e   :  { %2272 = vpow2.f32 %v575_v6 }
  0x2f   :  { %v637_v51 = vmul.f32 0.5, %v605_v47 }
  0x30   :  { %709 = vrot.lane.b32.xlu1 %v632_v53, %s2570_s27  ;;  %v2209_v53 = vld [vmem:[%s4244_s0 + $0x70] sm:$0xff]  }
  0x31   :  { %707 = vrot.lane.b32.xlu0 %v631_v58, %s2570_s27  ;;  %v2259_v54 = vpop.eup %2258  ;;  %v95_v58 = vld [vmem:[%s4245_s1 + $0xa0] sm:$0xff]  ;;  %v2807_v62 = vunpack.c.h.bf16 %v2209_v53 }
  0x32   :  { %v608_v57 = vmul.f32 %v2259_v54, %v2793_v49  ;;  %v2261_v63 = vpop.eup %2260 }
  0x33   :  { %v607_v3 = vmul.f32 %v2261_v63, %v95_v58  ;;  %v581_v14 = vmul.f32 1.442695, %v2807_v62  ;;  %v2858_v58 = vld [vmem:[%s4245_s1 + $0xd0] sm:$0xff] }
  0x34   :  { %713 = vrot.lane.b32.xlu1 %v634_v5, %s2570_s27  ;;  %v640_v0 = vmul.f32 0.5, %v608_v57  ;;  %v2812_v5 = vld [vmem:[%s4245_s1 + $0xb8] sm:$0xff] }
  0x35   :  { %711 = vrot.lane.b32.xlu0 %v633_v16, %s2570_s27  ;;  %v639_v12 = vmul.f32 0.5, %v607_v3  ;;  %v2817_v16 = vunpack.c.l.bf16 %v2209_v53  ;;  %2274 = vpow2.f32 %v581_v14  ;;  %v103_v14 = vld [vmem:[%s4245_s1 + $0xe0] sm:$0xff] }
  0x36   :  { %v2263_v11 = vpop.eup %2262 }
  0x37   :  { %v610_v21 = vmul.f32 %v2263_v11, %v2812_v5  ;;  %v2265_v25 = vpop.eup %2264  ;;  %v579_v33 = vmul.f32 1.442695, %v2817_v16 }
  0x38   :  { %717 = vrot.lane.b32.xlu1 %v636_v27, %s2570_s27  ;;  %v2827_v27 = vunpack.c.h.bf16 %v2210_v18  ;;  %v609_v30 = vmul.f32 %v2265_v25, %v97_v24  ;;  %v2267_v34 = vpop.eup %2266  ;;  %v2877_v25 = vld [vmem:[%s4245_s1 + $0xf8] sm:$0xff] }
  0x39   :  { %715 = vrot.lane.b32.xlu0 %v635_v36, %s2570_s27  ;;  %v642_v26 = vmul.f32 0.5, %v610_v21  ;;  %v612_v39 = vmul.f32 %v2267_v34, %v2832_v31  ;;  %2276 = vpow2.f32 %v579_v33  ;;  %v2269_v44 = vpop.eup %2268  ;;  %v105_v34 = vld [vmem:[%s4245_s1 + $0xf0] sm:$0xff] }
  0x3a   :  { %v641_v36 = vmul.f32 0.5, %v609_v30  ;;  %v585_v43 = vmul.f32 1.442695, %v2827_v27  ;;  %v611_v47 = vmul.f32 %v2269_v44, %v2842_v41  ;;  %v2271_v53 = vpop.eup %2270 }
  0x3b   :  { %v614_v57 = vmul.f32 %v2271_v53, %v2850_v50  ;;  %v2273_v60 = vpop.eup %2272  ;;  %v1048_v53 = vsel %vm1035_vm0, %v2616_v13, -inf }
  0x3c   :  { %721 = vrot.lane.b32.xlu1 %v638_v46, %s2570_s27  ;;  %v644_v46 = vmul.f32 0.5, %v612_v39  ;;  %2278 = vpow2.f32 %v585_v43  ;;  %v643_v54 = vmul.f32 0.5, %v611_v47  ;;  %v613_v3 = vmul.f32 %v2273_v60, %v2858_v58 }
  0x3d   :  { %719 = vrot.lane.b32.xlu0 %v637_v51, %s2570_s27  ;;  %v583_v51 = vmul.f32 1.442695, %v2836_v37  ;;  %v646_v63 = vmul.f32 0.5, %v614_v57  ;;  %v1039_v47 = vsel %vm1035_vm0, %v2593_v1, -inf  ;;  %v1054_v57 = vsel %vm1035_vm0, %v2622_v17, -inf }
  0x3e   :  { %v645_v11 = vmul.f32 0.5, %v613_v3  ;;  %v1051_v60 = vsel %vm1035_vm0, %v2610_v10, -inf  ;;  %v1057_v3 = vsel %vm1035_vm0, %v2619_v15, -inf }
  0x3f   :  { %2280 = vpow2.f32 %v583_v51  ;;  %v1042_v51 = vsel %vm1035_vm0, %v2607_v8, -inf }
  0x40   :  { %725 = vrot.lane.b32.xlu1 %v640_v0, %s2570_s27  ;;  %v2864_v0 = vld [vmem:[%s4245_s1 + $0xe8] sm:$0xff] }
  0x41   :  { %723 = vrot.lane.b32.xlu0 %v639_v12, %s2570_s27 }
  0x42   :  { %v2275_v6 = vpop.eup %2274 }
  0x43   :  { %v616_v12 = vmul.f32 %v2275_v6, %v2864_v0  ;;  %v1066_v6 = vsel %vm1035_vm0, %v2660_v45, -inf }
  0x44   :  { %729 = vrot.lane.b32.xlu1 %v642_v26, %s2570_s27 }
  0x45   :  { %727 = vrot.lane.b32.xlu0 %v641_v36, %s2570_s27  ;;  %v648_v18 = vmul.f32 0.5, %v616_v12  ;;  %v1072_v12 = vsel %vm1035_vm0, %v2678_v61, -inf }
  0x46   :  { %v2277_v21 = vpop.eup %2276 }
  0x47   :  { %v615_v24 = vmul.f32 %v2277_v21, %v103_v14  ;;  %v1069_v14 = vsel %vm1035_vm0, %v2651_v38, -inf  ;;  %v1075_v21 = vsel %vm1035_vm0, %v2674_v56, -inf }
  0x48   :  { %733 = vrot.lane.b32.xlu1 %v644_v46, %s2570_s27  ;;  %v1036_v46 = vsel %vm1035_vm0, %v2595_v2, -inf }
  0x49   :  { %731 = vrot.lane.b32.xlu0 %v643_v54, %s2570_s27  ;;  %v2279_v26 = vpop.eup %2278  ;;  %v647_v30 = vmul.f32 0.5, %v615_v24  ;;  %v1045_v54 = vsel %vm1035_vm0, %v2600_v4, -inf  ;;  %v1084_v24 = vsel %vm1035_vm0, %v2709_v29, -inf }
  0x4a   :  { %v618_v33 = vmul.f32 %v2279_v26, %v2877_v25  ;;  %v1081_v26 = vsel %vm1035_vm0, %v2689_v9, -inf }
  0x4c   :  { %737 = vrot.lane.b32.xlu1 %v646_v63, %s2570_s27  ;;  %v2281_v36 = vpop.eup %2280  ;;  %v650_v39 = vmul.f32 0.5, %v618_v33  ;;  %v1060_v63 = vsel %vm1035_vm0, %v2638_v28, -inf  ;;  %v1087_v33 = vsel %vm1035_vm0, %v2703_v23, -inf }
  0x4d   :  { %735 = vrot.lane.b32.xlu0 %v645_v11, %s2570_s27  ;;  %v617_v43 = vmul.f32 %v2281_v36, %v105_v34  ;;  %v1063_v11 = vsel %vm1035_vm0, %v2628_v20, -inf  ;;  %v1096_v34 = vsel %vm1035_vm0, %v2743_v59, -inf  ;;  %v1093_v36 = vsel %vm1035_vm0, %v2719_v35, -inf }
  0x4f   :  { %v649_v44 = vmul.f32 0.5, %v617_v43  ;;  %v1099_v43 = vsel %vm1035_vm0, %v2737_v52, -inf }
  0x50   :  { %741 = vrot.lane.b32.xlu1 %v648_v18, %s2570_s27  ;;  %v1078_v18 = vsel %vm1035_vm0, %v2699_v19, -inf }
  0x51   :  { %739 = vrot.lane.b32.xlu0 %v647_v30, %s2570_s27  ;;  %v1090_v30 = vsel %vm1035_vm0, %v2726_v42, -inf }
  0x54   :  { %745 = vrot.lane.b32.xlu1 %v650_v39, %s2570_s27  ;;  %v1102_v39 = vsel %vm1035_vm0, %v2763_v22, -inf }
  0x55   :  { %743 = vrot.lane.b32.xlu0 %v649_v44, %s2570_s27  ;;  %s2571_s27 = smov 123  }
  0x74   :  { %1037 = vmax.xlane.f32.xlu0 %v1036_v46  ;;  %v1108_v46 = vsel %vm1035_vm0, %v2780_v40, -inf }
  0x78   :  { %1040 = vmax.xlane.f32.xlu1 %v1039_v47  ;;  %1043 = vmax.xlane.f32.xlu0 %v1042_v51  ;;  %v1105_v51 = vsel %vm1035_vm0, %v2756_v7, -inf }
  0x7c   :  { %1049 = vmax.xlane.f32.xlu1 %v1048_v53  ;;  %1046 = vmax.xlane.f32.xlu0 %v1045_v54  ;;  %v1114_v53 = vsel %vm1035_vm0, %v2799_v55, -inf }
  0x80   :  { %1055 = vmax.xlane.f32.xlu1 %v1054_v57  ;;  %1052 = vmax.xlane.f32.xlu0 %v1051_v60  ;;  %v1111_v57 = vsel %vm1035_vm0, %v2773_v32, -inf }
  0x84   :  { %1061 = vmax.xlane.f32.xlu1 %v1060_v63  ;;  %1058 = vmax.xlane.f32.xlu0 %v1057_v3  ;;  %v1120_v63 = vsel %vm1035_vm0, %v2817_v16, -inf  ;;  %v1117_v3 = vsel %vm1035_vm0, %v2787_v48, -inf }
  0x88   :  { %1067 = vmax.xlane.f32.xlu1 %v1066_v6  ;;  %1064 = vmax.xlane.f32.xlu0 %v1063_v11  ;;  %v1126_v11 = vsel %vm1035_vm0, %v2836_v37, -inf }
  0x8a   :  { %v2936_v47 = vpop.permute.xlu1 %685 }
  0x8b   :  { %v2932_v44 = vpop.permute.xlu0 %683 }
  0x8c   :  { %1073 = vmax.xlane.f32.xlu1 %v1072_v12  ;;  %1070 = vmax.xlane.f32.xlu0 %v1069_v14  ;;  %v1123_v14 = vsel %vm1035_vm0, %v2807_v62, -inf }
  0x8e   :  { %v2946_v60 = vpop.permute.xlu1 %689 }
  0x8f   :  { %v2942_v54 = vpop.permute.xlu0 %687 }
  0x90   :  { %1079 = vmax.xlane.f32.xlu1 %v1078_v18  ;;  %1076 = vmax.xlane.f32.xlu0 %v1075_v21  ;;  %4329 = vst [vmem:[#allocation2_spill] sm:$0xff] %v2942_v54  ;;  %v1129_v21 = vsel %vm1035_vm0, %v2827_v27, -inf }
  0x92   :  { %v2956_v12 = vpop.permute.xlu1 %693 }
  0x93   :  { %v2952_v6 = vpop.permute.xlu0 %691 }
  0x94   :  { %1085 = vmax.xlane.f32.xlu1 %v1084_v24  ;;  %1082 = vmax.xlane.f32.xlu0 %v1081_v26 }
  0x96   :  { %v2964_v24 = vpop.permute.xlu1 %697 }
  0x97   :  { %v2960_v18 = vpop.permute.xlu0 %695 }
  0x98   :  { %1091 = vmax.xlane.f32.xlu1 %v1090_v30  ;;  %1088 = vmax.xlane.f32.xlu0 %v1087_v33 }
  0x9a   :  { %v2968_v30 = vpop.permute.xlu1 %701 }
  0x9b   :  { %v2966_v26 = vpop.permute.xlu0 %699  ;;  %4331 = vst [vmem:[#allocation4_spill] sm:$0xff] %v2968_v30  ;;  %v2101_v30 = vmul.f32 -1.442695, %v2593_v1 }
  0x9c   :  { %1097 = vmax.xlane.f32.xlu1 %v1096_v34  ;;  %1094 = vmax.xlane.f32.xlu0 %v1093_v36  ;;  %4330 = vst [vmem:[#allocation3_spill] sm:$0xff] %v2966_v26 }
  0x9e   :  { %v2972_v34 = vpop.permute.xlu1 %705 }
  0x9f   :  { %v2970_v33 = vpop.permute.xlu0 %703  ;;  %4333 = vst [vmem:[#allocation6_spill] sm:$0xff] %v2972_v34 }
  0xa0   :  { %1103 = vmax.xlane.f32.xlu1 %v1102_v39  ;;  %1100 = vmax.xlane.f32.xlu0 %v1099_v43  ;;  %4332 = vst [vmem:[#allocation5_spill] sm:$0xff] %v2970_v33 }
  0xa2   :  { %v2976_v39 = vpop.permute.xlu1 %709 }
  0xa3   :  { %v2974_v36 = vpop.permute.xlu0 %707  ;;  %4335 = vst [vmem:[#allocation8_spill] sm:$0xff] %v2976_v39 }
  0xa4   :  { %1109 = vmax.xlane.f32.xlu1 %v1108_v46  ;;  %1106 = vmax.xlane.f32.xlu0 %v1105_v51  ;;  %4334 = vst [vmem:[#allocation7_spill] sm:$0xff] %v2974_v36 }
  0xa6   :  { %v2980_v46 = vpop.permute.xlu1 %713 }
  0xa7   :  { %v2978_v43 = vpop.permute.xlu0 %711  ;;  %4337 = vst [vmem:[#allocation10_spill] sm:$0xff] %v2980_v46 }
  0xa8   :  { %1115 = vmax.xlane.f32.xlu1 %v1114_v53  ;;  %1112 = vmax.xlane.f32.xlu0 %v1111_v57  ;;  %4336 = vst [vmem:[#allocation9_spill] sm:$0xff] %v2978_v43 }
  0xaa   :  { %v2984_v53 = vpop.permute.xlu1 %717 }
  0xab   :  { %v2982_v51 = vpop.permute.xlu0 %715  ;;  %4339 = vst [vmem:[#allocation12_spill] sm:$0xff] %v2984_v53 }
  0xac   :  { %1121 = vmax.xlane.f32.xlu1 %v1120_v63  ;;  %1118 = vmax.xlane.f32.xlu0 %v1117_v3  ;;  %4338 = vst [vmem:[#allocation11_spill] sm:$0xff] %v2982_v51 }
  0xae   :  { %v2988_v63 = vpop.permute.xlu1 %721 }
  0xaf   :  { %v2986_v57 = vpop.permute.xlu0 %719  ;;  %4341 = vst [vmem:[#allocation14_spill] sm:$0xff] %v2988_v63 }
  0xb0   :  { %1127 = vmax.xlane.f32.xlu1 %v1126_v11  ;;  %1124 = vmax.xlane.f32.xlu0 %v1123_v14  ;;  %4340 = vst [vmem:[#allocation13_spill] sm:$0xff] %v2986_v57 }
  0xb2   :  { %v2992_v11 = vpop.permute.xlu1 %725 }
  0xb3   :  { %v2990_v3 = vpop.permute.xlu0 %723  ;;  %4343 = vst [vmem:[#allocation16_spill] sm:$0xff] %v2992_v11 }
  0xb4   :  { %1130 = vmax.xlane.f32.xlu0 %v1129_v21  ;;  %4342 = vst [vmem:[#allocation15_spill] sm:$0xff] %v2990_v3 }
  0xb6   :  { %v2996_v21 = vpop.permute.xlu1 %729 }
  0xb7   :  { %v2994_v14 = vpop.permute.xlu0 %727  ;;  %4345 = vst [vmem:[#allocation18_spill] sm:$0xff] %v2996_v21 }
  0xb8   :  { %4344 = vst [vmem:[#allocation17_spill] sm:$0xff] %v2994_v14 }
  0xba   :  { %v3000_v43 = vpop.permute.xlu1 %733 }
  0xbb   :  { %v2998_v36 = vpop.permute.xlu0 %731  ;;  %4347 = vst [vmem:[#allocation20_spill] sm:$0xff] %v3000_v43 }
  0xbc   :  { %4346 = vst [vmem:[#allocation19_spill] sm:$0xff] %v2998_v36 }
  0xbe   :  { %v3004_v51 = vpop.permute.xlu1 %737 }
  0xbf   :  { %v3002_v46 = vpop.permute.xlu0 %735  ;;  %4349 = vst [vmem:[#allocation22_spill] sm:$0xff] %v3004_v51 }
  0xc0   :  { %4348 = vst [vmem:[#allocation21_spill] sm:$0xff] %v3002_v46 }
  0xc2   :  { %v3008_v57 = vpop.permute.xlu1 %741 }
  0xc3   :  { %v3006_v53 = vpop.permute.xlu0 %739  ;;  %4351 = vst [vmem:[#allocation24_spill] sm:$0xff] %v3008_v57 }
  0xc4   :  { %4350 = vst [vmem:[#allocation23_spill] sm:$0xff] %v3006_v53 }
  0xc6   :  { %v3012_v3 = vpop.permute.xlu1 %745 }
  0xc7   :  { %v3010_v63 = vpop.permute.xlu0 %743  ;;  %4353 = vst [vmem:[#allocation26_spill] sm:$0xff] %v3012_v3 }
  0xc8   :  { %4352 = vst [vmem:[#allocation25_spill] sm:$0xff] %v3010_v63 }
  0xfd   :  { %v1038_v11 = vpop.xlane.xlu0 %1037 }
  0xfe   :  { %v1132_v14 = vsub.f32 %v2595_v2, %v1038_v11 }
 0x100   :  { %v1164_v39 = vmul.f32 1.442695, %v1132_v14 }
 0x101   :  { %v1041_v21 = vpop.xlane.xlu1 %1040  ;;  %v1044_v43 = vpop.xlane.xlu0 %1043 }
 0x102   :  { %v1133_v36 = vsub.f32 %v2593_v1, %v1041_v21  ;;  %2282 = vpow2.f32 %v1164_v39  ;;  %v1134_v46 = vsub.f32 %v2607_v8, %v1044_v43  ;;  %v2104_v1 = vmul.f32 -1.442695, %v2616_v13 }
 0x104   :  { %v1166_v51 = vmul.f32 1.442695, %v1133_v36  ;;  %v1168_v53 = vmul.f32 1.442695, %v1134_v46 }
 0x105   :  { %v1050_v33 = vpop.xlane.xlu1 %1049  ;;  %v1047_v63 = vpop.xlane.xlu0 %1046 }
 0x106   :  { %2284 = vpow2.f32 %v1166_v51  ;;  %v1136_v57 = vsub.f32 %v2616_v13, %v1050_v33  ;;  %v1135_v3 = vsub.f32 %v2600_v4, %v1047_v63  ;;  %v3327_v13 = vld [vmem:[%s4245_s1 + $0x80] sm:$0xff] }
 0x107   :  { %2286 = vpow2.f32 %v1168_v53 }
 0x108   :  { %v1172_v26 = vmul.f32 1.442695, %v1136_v57  ;;  %v1170_v34 = vmul.f32 1.442695, %v1135_v3 }
 0x109   :  { %v1056_v11 = vpop.xlane.xlu1 %1055  ;;  %v1053_v21 = vpop.xlane.xlu0 %1052 }
 0x10a   :  { %2288 = vpow2.f32 %v1172_v26  ;;  %v1138_v14 = vsub.f32 %v2622_v17, %v1056_v11  ;;  %v1137_v39 = vsub.f32 %v2610_v10, %v1053_v21 }
 0x10b   :  { %2290 = vpow2.f32 %v1170_v34 }
 0x10c   :  { %v1176_v36 = vmul.f32 1.442695, %v1138_v14  ;;  %v1174_v46 = vmul.f32 1.442695, %v1137_v39 }
 0x10d   :  { %v1062_v43 = vpop.xlane.xlu1 %1061  ;;  %v1059_v51 = vpop.xlane.xlu0 %1058 }
 0x10e   :  { %2292 = vpow2.f32 %v1176_v36  ;;  %v1140_v33 = vsub.f32 %v2638_v28, %v1062_v43  ;;  %v1139_v53 = vsub.f32 %v2619_v15, %v1059_v51 }
 0x10f   :  { %2294 = vpow2.f32 %v1174_v46  ;;  %v3023_v63 = vpop.eup %2282 }
 0x110   :  { %v1180_v57 = vmul.f32 1.442695, %v1140_v33  ;;  %4354 = vst [vmem:[#allocation27_spill] sm:$0xff] %v3023_v63  ;;  %v1178_v3 = vmul.f32 1.442695, %v1139_v53  ;;  %1260 = vrot.lane.b32.xlu1 %v3023_v63, %s2571_s27  ;;  %v3277_v63 = vld [vmem:[%s4245_s1 + $0x40] sm:$0xff] }
 0x111   :  { %v1068_v26 = vpop.xlane.xlu1 %1067  ;;  %v1065_v14 = vpop.xlane.xlu0 %1064 }
 0x112   :  { %2296 = vpow2.f32 %v1180_v57  ;;  %v1142_v34 = vsub.f32 %v2660_v45, %v1068_v26  ;;  %v1141_v21 = vsub.f32 %v2628_v20, %v1065_v14 }
 0x113   :  { %v3028_v11 = vpop.eup %2284  ;;  %2298 = vpow2.f32 %v1178_v3 }
 0x114   :  { %4355 = vst [vmem:[#allocation28_spill] sm:$0xff] %v3028_v11  ;;  %v1184_v39 = vmul.f32 1.442695, %v1142_v34  ;;  %1262 = vrot.lane.b32.xlu0 %v3028_v11, %s2571_s27  ;;  %v3033_v36 = vpop.eup %2286  ;;  %v1182_v46 = vmul.f32 1.442695, %v1141_v21 }
 0x115   :  { %4356 = vst [vmem:[#allocation29_spill] sm:$0xff] %v3033_v36  ;;  %v1074_v43 = vpop.xlane.xlu1 %1073  ;;  %1264 = vrot.lane.b32.xlu1 %v3033_v36, %s2571_s27  ;;  %v1071_v53 = vpop.xlane.xlu0 %1070  ;;  %v2103_v11 = vmul.f32 -1.442695, %v2600_v4  ;;  %v3310_v4 = vld [vmem:[%s4245_s1 + $0x98] sm:$0xff] }
 0x116   :  { %2300 = vpow2.f32 %v1184_v39  ;;  %v1144_v33 = vsub.f32 %v2678_v61, %v1074_v43  ;;  %v1143_v57 = vsub.f32 %v2651_v38, %v1071_v53  ;;  %4389 = vst [vmem:[#allocation62_spill] sm:$0xff] %v3310_v4 }
 0x117   :  { %v3038_v51 = vpop.eup %2288  ;;  %2302 = vpow2.f32 %v1182_v46 }
 0x118   :  { %4357 = vst [vmem:[#allocation30_spill] sm:$0xff] %v3038_v51  ;;  %v1188_v26 = vmul.f32 1.442695, %v1144_v33  ;;  %1268 = vrot.lane.b32.xlu0 %v3038_v51, %s2571_s27  ;;  %v3043_v3 = vpop.eup %2290  ;;  %v1186_v14 = vmul.f32 1.442695, %v1143_v57 }
 0x119   :  { %4358 = vst [vmem:[#allocation31_spill] sm:$0xff] %v3043_v3  ;;  %v1080_v34 = vpop.xlane.xlu1 %1079  ;;  %1266 = vrot.lane.b32.xlu1 %v3043_v3, %s2571_s27  ;;  %v1077_v43 = vpop.xlane.xlu0 %1076  ;;  %v2102_v3 = vmul.f32 -1.442695, %v2607_v8  ;;  %v3289_v8 = vld [vmem:[%s4245_s1 + $0x50] sm:$0xff] }
 0x11a   :  { %2304 = vpow2.f32 %v1188_v26  ;;  %v1146_v21 = vsub.f32 %v2699_v19, %v1080_v34  ;;  %v1145_v46 = vsub.f32 %v2674_v56, %v1077_v43 }
 0x11b   :  { %v3048_v39 = vpop.eup %2292  ;;  %2306 = vpow2.f32 %v1186_v14 }
 0x11c   :  { %4359 = vst [vmem:[#allocation32_spill] sm:$0xff] %v3048_v39  ;;  %v1192_v33 = vmul.f32 1.442695, %v1146_v21  ;;  %1272 = vrot.lane.b32.xlu0 %v3048_v39, %s2571_s27  ;;  %v3053_v53 = vpop.eup %2294  ;;  %v1190_v57 = vmul.f32 1.442695, %v1145_v46 }
 0x11d   :  { %4360 = vst [vmem:[#allocation33_spill] sm:$0xff] %v3053_v53  ;;  %v1086_v51 = vpop.xlane.xlu1 %1085  ;;  %1270 = vrot.lane.b32.xlu1 %v3053_v53, %s2571_s27  ;;  %v1083_v36 = vpop.xlane.xlu0 %1082 }
 0x11e   :  { %2308 = vpow2.f32 %v1192_v33  ;;  %v1148_v26 = vsub.f32 %v2709_v29, %v1086_v51  ;;  %v1147_v14 = vsub.f32 %v2689_v9, %v1083_v36 }
 0x11f   :  { %v3058_v34 = vpop.eup %2296  ;;  %2310 = vpow2.f32 %v1190_v57 }
 0x120   :  { %4361 = vst [vmem:[#allocation34_spill] sm:$0xff] %v3058_v34  ;;  %v1196_v21 = vmul.f32 1.442695, %v1148_v26  ;;  %1276 = vrot.lane.b32.xlu0 %v3058_v34, %s2571_s27  ;;  %v3063_v43 = vpop.eup %2298  ;;  %v1194_v46 = vmul.f32 1.442695, %v1147_v14 }
 0x121   :  { %4362 = vst [vmem:[#allocation35_spill] sm:$0xff] %v3063_v43  ;;  %v1092_v39 = vpop.xlane.xlu1 %1091  ;;  %1274 = vrot.lane.b32.xlu1 %v3063_v43, %s2571_s27  ;;  %v1089_v53 = vpop.xlane.xlu0 %1088 }
 0x122   :  { %2312 = vpow2.f32 %v1196_v21  ;;  %v1150_v51 = vsub.f32 %v2726_v42, %v1092_v39  ;;  %v1149_v36 = vsub.f32 %v2703_v23, %v1089_v53 }
 0x123   :  { %v3068_v33 = vpop.eup %2300  ;;  %2314 = vpow2.f32 %v1194_v46 }
 0x124   :  { %4363 = vst [vmem:[#allocation36_spill] sm:$0xff] %v3068_v33  ;;  %v1200_v57 = vmul.f32 1.442695, %v1150_v51  ;;  %1280 = vrot.lane.b32.xlu0 %v3068_v33, %s2571_s27  ;;  %v3073_v26 = vpop.eup %2302  ;;  %v1198_v14 = vmul.f32 1.442695, %v1149_v36 }
 0x125   :  { %4364 = vst [vmem:[#allocation37_spill] sm:$0xff] %v3073_v26  ;;  %v1098_v34 = vpop.xlane.xlu1 %1097  ;;  %1278 = vrot.lane.b32.xlu1 %v3073_v26, %s2571_s27  ;;  %v1095_v43 = vpop.xlane.xlu0 %1094 }
 0x126   :  { %2316 = vpow2.f32 %v1200_v57  ;;  %v1152_v39 = vsub.f32 %v2743_v59, %v1098_v34  ;;  %v1151_v53 = vsub.f32 %v2719_v35, %v1095_v43 }
 0x127   :  { %v3078_v21 = vpop.eup %2304  ;;  %2318 = vpow2.f32 %v1198_v14 }
 0x128   :  { %4365 = vst [vmem:[#allocation38_spill] sm:$0xff] %v3078_v21  ;;  %v1204_v46 = vmul.f32 1.442695, %v1152_v39  ;;  %1284 = vrot.lane.b32.xlu0 %v3078_v21, %s2571_s27  ;;  %v3083_v51 = vpop.eup %2306  ;;  %v1202_v36 = vmul.f32 1.442695, %v1151_v53 }
 0x129   :  { %4366 = vst [vmem:[#allocation39_spill] sm:$0xff] %v3083_v51  ;;  %v1104_v33 = vpop.xlane.xlu1 %1103  ;;  %1282 = vrot.lane.b32.xlu1 %v3083_v51, %s2571_s27  ;;  %v1101_v26 = vpop.xlane.xlu0 %1100 }
 0x12a   :  { %2320 = vpow2.f32 %v1204_v46  ;;  %v1154_v34 = vsub.f32 %v2763_v22, %v1104_v33  ;;  %v1153_v43 = vsub.f32 %v2737_v52, %v1101_v26 }
 0x12b   :  { %v3088_v57 = vpop.eup %2308  ;;  %2322 = vpow2.f32 %v1202_v36 }
 0x12c   :  { %4367 = vst [vmem:[#allocation40_spill] sm:$0xff] %v3088_v57  ;;  %v1208_v14 = vmul.f32 1.442695, %v1154_v34  ;;  %1288 = vrot.lane.b32.xlu0 %v3088_v57, %s2571_s27  ;;  %v3093_v39 = vpop.eup %2310  ;;  %v1206_v53 = vmul.f32 1.442695, %v1153_v43 }
 0x12d   :  { %4368 = vst [vmem:[#allocation41_spill] sm:$0xff] %v3093_v39  ;;  %v1110_v21 = vpop.xlane.xlu1 %1109  ;;  %1286 = vrot.lane.b32.xlu1 %v3093_v39, %s2571_s27  ;;  %v1107_v51 = vpop.xlane.xlu0 %1106 }
 0x12e   :  { %2324 = vpow2.f32 %v1208_v14  ;;  %v1156_v33 = vsub.f32 %v2780_v40, %v1110_v21  ;;  %v1155_v26 = vsub.f32 %v2756_v7, %v1107_v51 }
 0x12f   :  { %v3098_v46 = vpop.eup %2312  ;;  %2326 = vpow2.f32 %v1206_v53 }
 0x130   :  { %4369 = vst [vmem:[#allocation42_spill] sm:$0xff] %v3098_v46  ;;  %v1212_v36 = vmul.f32 1.442695, %v1156_v33  ;;  %1292 = vrot.lane.b32.xlu0 %v3098_v46, %s2571_s27  ;;  %v3103_v34 = vpop.eup %2314  ;;  %v1210_v43 = vmul.f32 1.442695, %v1155_v26 }
 0x131   :  { %4370 = vst [vmem:[#allocation43_spill] sm:$0xff] %v3103_v34  ;;  %v1116_v57 = vpop.xlane.xlu1 %1115  ;;  %1290 = vrot.lane.b32.xlu1 %v3103_v34, %s2571_s27  ;;  %v1113_v39 = vpop.xlane.xlu0 %1112 }
 0x132   :  { %2328 = vpow2.f32 %v1212_v36  ;;  %v1158_v21 = vsub.f32 %v2799_v55, %v1116_v57  ;;  %v1157_v51 = vsub.f32 %v2773_v32, %v1113_v39 }
 0x133   :  { %v3108_v14 = vpop.eup %2316  ;;  %2330 = vpow2.f32 %v1210_v43 }
 0x134   :  { %4371 = vst [vmem:[#allocation44_spill] sm:$0xff] %v3108_v14  ;;  %v1216_v53 = vmul.f32 1.442695, %v1158_v21  ;;  %1296 = vrot.lane.b32.xlu0 %v3108_v14, %s2571_s27  ;;  %v3113_v33 = vpop.eup %2318  ;;  %v1214_v26 = vmul.f32 1.442695, %v1157_v51 }
 0x135   :  { %4372 = vst [vmem:[#allocation45_spill] sm:$0xff] %v3113_v33  ;;  %v1122_v46 = vpop.xlane.xlu1 %1121  ;;  %1294 = vrot.lane.b32.xlu1 %v3113_v33, %s2571_s27  ;;  %v1119_v34 = vpop.xlane.xlu0 %1118 }
 0x136   :  { %2332 = vpow2.f32 %v1216_v53  ;;  %v1160_v57 = vsub.f32 %v2817_v16, %v1122_v46  ;;  %v1159_v39 = vsub.f32 %v2787_v48, %v1119_v34 }
 0x137   :  { %v3118_v36 = vpop.eup %2320  ;;  %2334 = vpow2.f32 %v1214_v26 }
 0x138   :  { %4373 = vst [vmem:[#allocation46_spill] sm:$0xff] %v3118_v36  ;;  %v1220_v43 = vmul.f32 1.442695, %v1160_v57  ;;  %1300 = vrot.lane.b32.xlu0 %v3118_v36, %s2571_s27  ;;  %v3123_v21 = vpop.eup %2322  ;;  %v1218_v51 = vmul.f32 1.442695, %v1159_v39 }
 0x139   :  { %4374 = vst [vmem:[#allocation47_spill] sm:$0xff] %v3123_v21  ;;  %v1128_v14 = vpop.xlane.xlu1 %1127  ;;  %1298 = vrot.lane.b32.xlu1 %v3123_v21, %s2571_s27  ;;  %v1125_v33 = vpop.xlane.xlu0 %1124  ;;  %v3270_v21 = vld [vmem:[%s4245_s1 + $0x68] sm:$0xff] }
 0x13a   :  { %2336 = vpow2.f32 %v1220_v43  ;;  %v1162_v46 = vsub.f32 %v2836_v37, %v1128_v14  ;;  %v1161_v34 = vsub.f32 %v2807_v62, %v1125_v33 }
 0x13b   :  { %v3128_v53 = vpop.eup %2324  ;;  %2338 = vpow2.f32 %v1218_v51 }
 0x13c   :  { %4375 = vst [vmem:[#allocation48_spill] sm:$0xff] %v3128_v53  ;;  %v1224_v26 = vmul.f32 1.442695, %v1162_v46  ;;  %1304 = vrot.lane.b32.xlu0 %v3128_v53, %s2571_s27  ;;  %v3133_v57 = vpop.eup %2326  ;;  %v1222_v36 = vmul.f32 1.442695, %v1161_v34 }
 0x13d   :  { %4376 = vst [vmem:[#allocation49_spill] sm:$0xff] %v3133_v57  ;;  %1302 = vrot.lane.b32.xlu1 %v3133_v57, %s2571_s27  ;;  %v1131_v14 = vpop.xlane.xlu0 %1130 }
 0x13e   :  { %2340 = vpow2.f32 %v1224_v26  ;;  %v1163_v43 = vsub.f32 %v2827_v27, %v1131_v14  ;;  %v2572_v26 = vmov 4  }
 0x13f   :  { %v3137_v39 = vpop.eup %2328  ;;  %2342 = vpow2.f32 %v1222_v36  ;;  %2216 = vset.pattern.permute.xlu1 %v2572_v26  ;;  %2217 = vset.pattern.permute.xlu0 %v2572_v26 }
 0x140   :  { %4377 = vst [vmem:[#allocation50_spill] sm:$0xff] %v3137_v39  ;;  %1308 = vrot.lane.b32.xlu0 %v3137_v39, %s2571_s27  ;;  %v3142_v33 = vpop.eup %2330  ;;  %v1226_v51 = vmul.f32 1.442695, %v1163_v43 }
 0x141   :  { %4378 = vst [vmem:[#allocation51_spill] sm:$0xff] %v3142_v33  ;;  %1306 = vrot.lane.b32.xlu1 %v3142_v33, %s2571_s27 }
 0x142   :  { %2344 = vpow2.f32 %v1226_v51 }
 0x143   :  { %v3146_v46 = vpop.eup %2332 }
 0x144   :  { %4379 = vst [vmem:[#allocation52_spill] sm:$0xff] %v3146_v46  ;;  %1312 = vrot.lane.b32.xlu0 %v3146_v46, %s2571_s27  ;;  %v3150_v34 = vpop.eup %2334 }
 0x145   :  { %4380 = vst [vmem:[#allocation53_spill] sm:$0xff] %v3150_v34  ;;  %1310 = vrot.lane.b32.xlu1 %v3150_v34, %s2571_s27 }
 0x147   :  { %v3154_v36 = vpop.eup %2336 }
 0x148   :  { %4381 = vst [vmem:[#allocation54_spill] sm:$0xff] %v3154_v36  ;;  %1316 = vrot.lane.b32.xlu0 %v3154_v36, %s2571_s27  ;;  %v3158_v14 = vpop.eup %2338 }
 0x149   :  { %4382 = vst [vmem:[#allocation55_spill] sm:$0xff] %v3158_v14  ;;  %1314 = vrot.lane.b32.xlu1 %v3158_v14, %s2571_s27 }
 0x14b   :  { %v3162_v43 = vpop.eup %2340 }
 0x14c   :  { %4383 = vst [vmem:[#allocation56_spill] sm:$0xff] %v3162_v43  ;;  %1320 = vrot.lane.b32.xlu0 %v3162_v43, %s2571_s27  ;;  %v3166_v51 = vpop.eup %2342 }
 0x14d   :  { %4384 = vst [vmem:[#allocation57_spill] sm:$0xff] %v3166_v51  ;;  %1318 = vrot.lane.b32.xlu1 %v3166_v51, %s2571_s27 }
 0x14f   :  { %v3170_v46 = vpop.eup %2344 }
 0x150   :  { %4385 = vst [vmem:[#allocation58_spill] sm:$0xff] %v3170_v46 }
 0x151   :  { %1322 = vrot.lane.b32.xlu1 %v3170_v46, %s2571_s27 }
 0x182   :  { %v1261_v26 = vpop.permute.xlu1 %1260 }
 0x183   :  { %v1357_v36 = vsel %vm1356_vm1, %v1261_v26, 0.0 }
 0x184   :  { %1358 = vadd.xlane.f32.xlu0 %v1357_v36 }
 0x186   :  { %v1263_v14 = vpop.permute.xlu0 %1262 }
 0x187   :  { %v1360_v39 = vsel %vm1356_vm1, %v1263_v14, 0.0  ;;  %v1265_v34 = vpop.permute.xlu1 %1264 }
 0x188   :  { %1361 = vadd.xlane.f32.xlu1 %v1360_v39  ;;  %v1363_v43 = vsel %vm1356_vm1, %v1265_v34, 0.0 }
 0x189   :  { %1364 = vadd.xlane.f32.xlu0 %v1363_v43 }
 0x18a   :  { %v1269_v53 = vpop.permute.xlu0 %1268 }
 0x18b   :  { %v1369_v51 = vsel %vm1356_vm1, %v1269_v53, 0.0  ;;  %v1267_v33 = vpop.permute.xlu1 %1266 }
 0x18c   :  { %1370 = vadd.xlane.f32.xlu1 %v1369_v51  ;;  %v1366_v46 = vsel %vm1356_vm1, %v1267_v33, 0.0 }
 0x18d   :  { %1367 = vadd.xlane.f32.xlu0 %v1366_v46 }
 0x18e   :  { %v1273_v57 = vpop.permute.xlu0 %1272 }
 0x18f   :  { %v1375_v26 = vsel %vm1356_vm1, %v1273_v57, 0.0  ;;  %v1271_v36 = vpop.permute.xlu1 %1270 }
 0x190   :  { %1376 = vadd.xlane.f32.xlu1 %v1375_v26  ;;  %v1372_v14 = vsel %vm1356_vm1, %v1271_v36, 0.0 }
 0x191   :  { %1373 = vadd.xlane.f32.xlu0 %v1372_v14 }
 0x192   :  { %v1277_v39 = vpop.permute.xlu0 %1276 }
 0x193   :  { %v1381_v34 = vsel %vm1356_vm1, %v1277_v39, 0.0  ;;  %v1275_v43 = vpop.permute.xlu1 %1274 }
 0x194   :  { %1382 = vadd.xlane.f32.xlu1 %v1381_v34  ;;  %v1378_v53 = vsel %vm1356_vm1, %v1275_v43, 0.0 }
 0x195   :  { %1379 = vadd.xlane.f32.xlu0 %v1378_v53 }
 0x196   :  { %v1281_v51 = vpop.permute.xlu0 %1280 }
 0x197   :  { %v1387_v33 = vsel %vm1356_vm1, %v1281_v51, 0.0  ;;  %v1279_v46 = vpop.permute.xlu1 %1278 }
 0x198   :  { %1388 = vadd.xlane.f32.xlu1 %v1387_v33  ;;  %v1384_v57 = vsel %vm1356_vm1, %v1279_v46, 0.0 }
 0x199   :  { %1385 = vadd.xlane.f32.xlu0 %v1384_v57 }
 0x19a   :  { %v1285_v26 = vpop.permute.xlu0 %1284 }
 0x19b   :  { %v1393_v36 = vsel %vm1356_vm1, %v1285_v26, 0.0  ;;  %v1283_v14 = vpop.permute.xlu1 %1282 }
 0x19c   :  { %1394 = vadd.xlane.f32.xlu1 %v1393_v36  ;;  %v1390_v39 = vsel %vm1356_vm1, %v1283_v14, 0.0 }
 0x19d   :  { %1391 = vadd.xlane.f32.xlu0 %v1390_v39 }
 0x19e   :  { %v1289_v34 = vpop.permute.xlu0 %1288 }
 0x19f   :  { %v1399_v43 = vsel %vm1356_vm1, %v1289_v34, 0.0  ;;  %v1287_v53 = vpop.permute.xlu1 %1286 }
 0x1a0   :  { %1400 = vadd.xlane.f32.xlu1 %v1399_v43  ;;  %v1396_v51 = vsel %vm1356_vm1, %v1287_v53, 0.0 }
 0x1a1   :  { %1397 = vadd.xlane.f32.xlu0 %v1396_v51 }
 0x1a2   :  { %v1293_v33 = vpop.permute.xlu0 %1292 }
 0x1a3   :  { %v1405_v46 = vsel %vm1356_vm1, %v1293_v33, 0.0  ;;  %v1291_v57 = vpop.permute.xlu1 %1290 }
 0x1a4   :  { %1406 = vadd.xlane.f32.xlu1 %v1405_v46  ;;  %v1402_v26 = vsel %vm1356_vm1, %v1291_v57, 0.0 }
 0x1a5   :  { %1403 = vadd.xlane.f32.xlu0 %v1402_v26 }
 0x1a6   :  { %v1297_v36 = vpop.permute.xlu0 %1296 }
 0x1a7   :  { %v1411_v14 = vsel %vm1356_vm1, %v1297_v36, 0.0  ;;  %v1295_v39 = vpop.permute.xlu1 %1294 }
 0x1a8   :  { %1412 = vadd.xlane.f32.xlu1 %v1411_v14  ;;  %v1408_v34 = vsel %vm1356_vm1, %v1295_v39, 0.0 }
 0x1a9   :  { %1409 = vadd.xlane.f32.xlu0 %v1408_v34 }
 0x1aa   :  { %v1301_v43 = vpop.permute.xlu0 %1300 }
 0x1ab   :  { %v1417_v53 = vsel %vm1356_vm1, %v1301_v43, 0.0  ;;  %v1299_v51 = vpop.permute.xlu1 %1298 }
 0x1ac   :  { %1418 = vadd.xlane.f32.xlu1 %v1417_v53  ;;  %v1414_v33 = vsel %vm1356_vm1, %v1299_v51, 0.0 }
 0x1ad   :  { %1415 = vadd.xlane.f32.xlu0 %v1414_v33 }
 0x1ae   :  { %v1305_v46 = vpop.permute.xlu0 %1304 }
 0x1af   :  { %v1423_v57 = vsel %vm1356_vm1, %v1305_v46, 0.0  ;;  %v1303_v26 = vpop.permute.xlu1 %1302 }
 0x1b0   :  { %1424 = vadd.xlane.f32.xlu1 %v1423_v57  ;;  %v1420_v36 = vsel %vm1356_vm1, %v1303_v26, 0.0 }
 0x1b1   :  { %1421 = vadd.xlane.f32.xlu0 %v1420_v36 }
 0x1b2   :  { %v1309_v14 = vpop.permute.xlu0 %1308 }
 0x1b3   :  { %v1429_v39 = vsel %vm1356_vm1, %v1309_v14, 0.0  ;;  %v1307_v34 = vpop.permute.xlu1 %1306 }
 0x1b4   :  { %1430 = vadd.xlane.f32.xlu1 %v1429_v39  ;;  %v1426_v43 = vsel %vm1356_vm1, %v1307_v34, 0.0 }
 0x1b5   :  { %1427 = vadd.xlane.f32.xlu0 %v1426_v43 }
 0x1b6   :  { %v1313_v53 = vpop.permute.xlu0 %1312 }
 0x1b7   :  { %v1435_v51 = vsel %vm1356_vm1, %v1313_v53, 0.0  ;;  %v1311_v33 = vpop.permute.xlu1 %1310 }
 0x1b8   :  { %1436 = vadd.xlane.f32.xlu1 %v1435_v51  ;;  %v1432_v46 = vsel %vm1356_vm1, %v1311_v33, 0.0 }
 0x1b9   :  { %1433 = vadd.xlane.f32.xlu0 %v1432_v46  ;;  %v3209_v46 = vld [vmem:[%s4245_s1 + $0x10] sm:$0xff] }
 0x1ba   :  { %v1317_v57 = vpop.permute.xlu0 %1316 }
 0x1bb   :  { %v1441_v26 = vsel %vm1356_vm1, %v1317_v57, 0.0  ;;  %v1315_v36 = vpop.permute.xlu1 %1314  ;;  %v3215_v57 = vld [vmem:[%s4245_s1 + $0x18] sm:$0xff] }
 0x1bc   :  { %1442 = vadd.xlane.f32.xlu1 %v1441_v26  ;;  %v1438_v14 = vsel %vm1356_vm1, %v1315_v36, 0.0  ;;  %v3221_v26 = vld [vmem:[%s4245_s1 + $0x28] sm:$0xff]  ;;  %v3227_v36 = vld [vmem:[%s4245_s1] sm:$0xff] }
 0x1bd   :  { %1439 = vadd.xlane.f32.xlu0 %v1438_v14  ;;  %v3233_v14 = vld [vmem:[%s4245_s1 + $0x38] sm:$0xff] }
 0x1be   :  { %v1321_v39 = vpop.permute.xlu0 %1320 }
 0x1bf   :  { %v1447_v34 = vsel %vm1356_vm1, %v1321_v39, 0.0  ;;  %v1319_v43 = vpop.permute.xlu1 %1318  ;;  %v3239_v39 = vld [vmem:[%s4245_s1 + $0x8] sm:$0xff] }
 0x1c0   :  { %1448 = vadd.xlane.f32.xlu1 %v1447_v34  ;;  %v1444_v53 = vsel %vm1356_vm1, %v1319_v43, 0.0  ;;  %v3245_v34 = vld [vmem:[%s4245_s1 + $0x48] sm:$0xff]  ;;  %v3251_v43 = vld [vmem:[%s4245_s1 + $0x20] sm:$0xff] }
 0x1c1   :  { %1445 = vadd.xlane.f32.xlu0 %v1444_v53  ;;  %v3257_v53 = vld [vmem:[%s4245_s1 + $0x58] sm:$0xff] }
 0x1c3   :  { %v1323_v51 = vpop.permute.xlu1 %1322 }
 0x1c4   :  { %v1450_v33 = vsel %vm1356_vm1, %v1323_v51, 0.0  ;;  %v3263_v51 = vld [vmem:[%s4245_s1 + $0x30] sm:$0xff] }
 0x1c5   :  { %1451 = vadd.xlane.f32.xlu0 %v1450_v33  ;;  %v2100_v33 = vmul.f32 -1.442695, %v2595_v2  ;;  %v3283_v2 = vld [vmem:[%s4245_s1 + $0x78] sm:$0xff] }
 0x1c6   :  { %4386 = vst [vmem:[#allocation59_spill] sm:$0xff] %v3283_v2 }
 0x1c7   :  { %2346 = vpow2.f32 %v2100_v33  ;;  %v3296_v33 = vld [vmem:[%s4245_s1 + $0x88] sm:$0xff] }
 0x1c8   :  { %2348 = vpow2.f32 %v2102_v3  ;;  %4387 = vst [vmem:[#allocation60_spill] sm:$0xff] %v3296_v33  ;;  %v3303_v3 = vld [vmem:[%s4245_s1 + $0x60] sm:$0xff] }
 0x1c9   :  { %4388 = vst [vmem:[#allocation61_spill] sm:$0xff] %v3303_v3  ;;  %2350 = vpow2.f32 %v2103_v11 }
 0x1ca   :  { %2352 = vpow2.f32 %v2101_v30  ;;  %v2109_v30 = vmul.f32 -1.442695, %v2628_v20  ;;  %v2111_v20 = vmul.f32 -1.442695, %v2651_v38 }
 0x1d1   :  { %343 = vperm.xlu1 %2216, %v3209_v46  }
 0x1d4   :  { %v2347_v11 = vpop.eup %2346 }
 0x1d5   :  { %348 = vperm.xlu1 %2216, %v3215_v57  }
 0x1d9   :  { %358 = vperm.xlu1 %2216, %v3221_v26  }
 0x1db   :  { %333 = vperm.xlu0 %2217, %v3227_v36  }
 0x1dd   :  { %368 = vperm.xlu1 %2216, %v3233_v14  }
 0x1df   :  { %338 = vperm.xlu0 %2217, %v3239_v39  }
 0x1e1   :  { %378 = vperm.xlu1 %2216, %v3245_v34  }
 0x1e3   :  { %353 = vperm.xlu0 %2217, %v3251_v43  }
 0x1e5   :  { %388 = vperm.xlu1 %2216, %v3257_v53  }
 0x1e7   :  { %363 = vperm.xlu0 %2217, %v3263_v51  }
 0x1e9   :  { %398 = vperm.xlu1 %2216, %v3270_v21  }
 0x1eb   :  { %373 = vperm.xlu0 %2217, %v3277_v63  }
 0x1ed   :  { %408 = vperm.xlu1 %2216, %v3283_v2   ;;  %v2105_v2 = vmul.f32 -1.442695, %v2610_v10  ;;  %v2107_v10 = vmul.f32 -1.442695, %v2619_v15  ;;  %v2108_v15 = vmul.f32 -1.442695, %v2638_v28 }
 0x1ee   :  { %v2113_v28 = vmul.f32 -1.442695, %v2674_v56  ;;  %v3354_v56 = vld [vmem:[%s4245_s1 + $0xb0] sm:$0xff] }
 0x1ef   :  { %383 = vperm.xlu0 %2217, %v3289_v8   ;;  %2354 = vpow2.f32 %v2105_v2 }
 0x1f0   :  { %2356 = vpow2.f32 %v2104_v1 }
 0x1f1   :  { %418 = vperm.xlu1 %2216, %v3296_v33   ;;  %v3317_v33 = vld [vmem:[%s4245_s1 + $0x70] sm:$0xff]  ;;  %2358 = vpow2.f32 %v2107_v10 }
 0x1f2   :  { %4390 = vst [vmem:[#allocation63_spill] sm:$0xff] %v3317_v33 }
 0x1f3   :  { %393 = vperm.xlu0 %2217, %v3303_v3   ;;  %v2106_v3 = vmul.f32 -1.442695, %v2622_v17  ;;  %v3335_v17 = vld [vmem:[%s4245_s1 + $0x90] sm:$0xff] }
 0x1f5   :  { %428 = vperm.xlu1 %2216, %v3310_v4   ;;  %v2349_v4 = vpop.eup %2348  ;;  %2360 = vpow2.f32 %v2106_v3  ;;  %v3345_v3 = vld [vmem:[%s4245_s1 + $0xa0] sm:$0xff] }
 0x1f6   :  { %2362 = vpow2.f32 %v2109_v30  ;;  %v2351_v2 = vpop.eup %2350 }
 0x1f7   :  { %403 = vperm.xlu0 %2217, %v3317_v33   ;;  %v203_v33 = vadd.f32 1.0, %v2347_v11 }
 0x1f9   :  { %438 = vperm.xlu1 %2216, %v2793_v49   ;;  %v205_v49 = vadd.f32 1.0, %v2349_v4  ;;  %2364 = vrcp.f32 %v203_v33  ;;  %v2353_v4 = vpop.eup %2352  ;;  %v206_v33 = vadd.f32 1.0, %v2351_v2 }
 0x1fa   :  { %2366 = vpow2.f32 %v2108_v15  ;;  %v204_v1 = vadd.f32 1.0, %v2353_v4 }
 0x1fb   :  { %413 = vperm.xlu0 %2217, %v3327_v13   ;;  %2368 = vrcp.f32 %v205_v49 }
 0x1fc   :  { %2370 = vpow2.f32 %v2111_v20  ;;  %v2355_v38 = vpop.eup %2354 }
 0x1fd   :  { %448 = vperm.xlu1 %2216, %v2812_v5   ;;  %v2110_v5 = vmul.f32 -1.442695, %v2660_v45  ;;  %v2112_v45 = vmul.f32 -1.442695, %v2678_v61  ;;  %v2357_v10 = vpop.eup %2356  ;;  %v208_v11 = vadd.f32 1.0, %v2355_v38 }
 0x1fe   :  { %v2114_v61 = vmul.f32 -1.442695, %v2699_v19  ;;  %v207_v15 = vadd.f32 1.0, %v2357_v10  ;;  %v2119_v19 = vmul.f32 -1.442695, %v2719_v35 }
 0x1ff   :  { %423 = vperm.xlu0 %2217, %v3335_v17   ;;  %2372 = vpow2.f32 %v2110_v5  ;;  %v2121_v38 = vmul.f32 -1.442695, %v2737_v52 }
 0x200   :  { %2374 = vpow2.f32 %v2113_v28 }
 0x201   :  { %458 = vperm.xlu1 %2216, %v2832_v31   ;;  %v2115_v31 = vmul.f32 -1.442695, %v2689_v9  ;;  %2376 = vrcp.f32 %v206_v33  ;;  %v2117_v9 = vmul.f32 -1.442695, %v2703_v23 }
 0x202   :  { %2378 = vpow2.f32 %v2112_v45 }
 0x203   :  { %433 = vperm.xlu0 %2217, %v3345_v3   ;;  %2380 = vpow2.f32 %v2115_v31  ;;  %v3381_v31 = vld [vmem:[%s4245_s1 + $0xe0] sm:$0xff] }
 0x204   :  { %2382 = vrcp.f32 %v204_v1  ;;  %4394 = vst [vmem:[#allocation67_spill] sm:$0xff] %v3381_v31 }
 0x205   :  { %468 = vperm.xlu1 %2216, %v2850_v50   ;;  %v2359_v50 = vpop.eup %2358  ;;  %2384 = vrcp.f32 %v208_v11 }
 0x206   :  { %v2361_v30 = vpop.eup %2360  ;;  %v210_v20 = vadd.f32 1.0, %v2359_v50  ;;  %2386 = vpow2.f32 %v2114_v61  ;;  %v2120_v61 = vmul.f32 -1.442695, %v2743_v59 }
 0x207   :  { %443 = vperm.xlu0 %2217, %v3354_v56   ;;  %v2363_v49 = vpop.eup %2362  ;;  %2388 = vpow2.f32 %v2117_v9  ;;  %v209_v28 = vadd.f32 1.0, %v2361_v30 }
 0x208   :  { %v3362_v2 = vpop.eup %2364  ;;  %2390 = vrcp.f32 %v207_v15  ;;  %v212_v4 = vadd.f32 1.0, %v2363_v49  ;;  %v3395_v49 = vld [vmem:[%s4245_s1 + $0xf0] sm:$0xff] }
 0x209   :  { %478 = vperm.xlu1 %2216, %v2864_v0   ;;  %v2116_v0 = vmul.f32 -1.442695, %v2709_v29  ;;  %v2367_v23 = vpop.eup %2366  ;;  %2392 = vrcp.f32 %v210_v20  ;;  %v2118_v29 = vmul.f32 -1.442695, %v2726_v42  ;;  %4397 = vst [vmem:[#allocation70_spill] sm:$0xff] %v3395_v49 }
 0x20b   :  { %453 = vperm.xlu0 %2217, %v2842_v41   ;;  %v3369_v41 = vpop.eup %2368  ;;  %2394 = vpow2.f32 %v2116_v0  ;;  %v2123_v0 = vmul.f32 -1.442695, %v2756_v7 }
 0x20c   :  { %v2371_v33 = vpop.eup %2370  ;;  %2396 = vpow2.f32 %v2119_v19 }
 0x20d   :  { %488 = vperm.xlu1 %2216, %v2877_v25   ;;  %v3366_v5 = vpop.xlane.xlu0 %1358  ;;  %v2373_v35 = vpop.eup %2372  ;;  %2398 = vrcp.f32 %v209_v28  ;;  %v214_v10 = vadd.f32 1.0, %v2371_v33 }
 0x20e   :  { %4391 = vst [vmem:[#allocation64_spill] sm:$0xff] %v3366_v5  ;;  %v2375_v1 = vpop.eup %2374  ;;  %2400 = vrcp.f32 %v212_v4  ;;  %v213_v52 = vadd.f32 1.0, %v2373_v35  ;;  %v2122_v35 = vmul.f32 -1.442695, %v2763_v22 }
 0x20f   :  { %463 = vperm.xlu0 %2217, %v2858_v58   ;;  %v211_v58 = vadd.f32 1.0, %v2367_v23  ;;  %v3387_v42 = vpop.eup %2376  ;;  %2402 = vpow2.f32 %v2118_v29  ;;  %v216_v15 = vadd.f32 1.0, %v2375_v1 }
 0x210   :  { %v2379_v50 = vpop.eup %2378  ;;  %2404 = vpow2.f32 %v2121_v38  ;;  %v2125_v38 = vmul.f32 -1.442695, %v2773_v32 }
 0x211   :  { %v3371_v25 = vpop.xlane.xlu1 %1361  ;;  %1519 = vperm.xlu1 %2216, %v3362_v2   ;;  %v2381_v30 = vpop.eup %2380  ;;  %2406 = vrcp.f32 %v211_v58  ;;  %v215_v23 = vadd.f32 1.0, %v2379_v50 }
 0x212   :  { %4392 = vst [vmem:[#allocation65_spill] sm:$0xff] %v3371_v25  ;;  %v3376_v45 = vpop.xlane.xlu0 %1364  ;;  %v3398_v20 = vpop.eup %2382  ;;  %2408 = vrcp.f32 %v214_v10  ;;  %v218_v4 = vadd.f32 1.0, %v2381_v30  ;;  %v2124_v30 = vmul.f32 -1.442695, %v2780_v40 }
 0x213   :  { %4393 = vst [vmem:[#allocation66_spill] sm:$0xff] %v3376_v45  ;;  %473 = vperm.xlu0 %2217, %v3381_v31   ;;  %v3404_v59 = vpop.eup %2384  ;;  %2410 = vrcp.f32 %v213_v52  ;;  %v299_v31 = vadd.f32 %v3227_v36, %v3362_v2 }
 0x214   :  { %v2387_v28 = vpop.eup %2386  ;;  %2412 = vpow2.f32 %v2120_v61 }
 0x215   :  { %v3384_v11 = vpop.xlane.xlu1 %1370  ;;  %1529 = vperm.xlu1 %2216, %v3369_v41   ;;  %v2389_v29 = vpop.eup %2388  ;;  %2414 = vrcp.f32 %v216_v15  ;;  %v217_v10 = vadd.f32 1.0, %v2387_v28  ;;  %v2127_v15 = vmul.f32 -1.442695, %v2787_v48 }
 0x216   :  { %4395 = vst [vmem:[#allocation68_spill] sm:$0xff] %v3384_v11  ;;  %v3390_v9 = vpop.xlane.xlu0 %1367  ;;  %v3410_v7 = vpop.eup %2390  ;;  %2416 = vpow2.f32 %v2123_v0  ;;  %v220_v50 = vadd.f32 1.0, %v2389_v29 }
 0x217   :  { %4396 = vst [vmem:[#allocation69_spill] sm:$0xff] %v3390_v9  ;;  %483 = vperm.xlu0 %2217, %v3395_v49   ;;  %v3416_v1 = vpop.eup %2392  ;;  %2418 = vrcp.f32 %v215_v23  ;;  %v301_v49 = vadd.f32 %v3209_v46, %v3369_v41 }
 0x218   :  { %v2395_v52 = vpop.eup %2394  ;;  %2420 = vrcp.f32 %v218_v4 }
 0x219   :  { %v3401_v19 = vpop.xlane.xlu1 %1376  ;;  %1534 = vperm.xlu1 %2216, %v3387_v42   ;;  %v2397_v22 = vpop.eup %2396  ;;  %2422 = vpow2.f32 %v2122_v35  ;;  %v219_v28 = vadd.f32 1.0, %v2395_v52 }
 0x21a   :  { %4398 = vst [vmem:[#allocation71_spill] sm:$0xff] %v3401_v19  ;;  %v3406_v33 = vpop.xlane.xlu0 %1373  ;;  %v3422_v32 = vpop.eup %2398  ;;  %2424 = vpow2.f32 %v2125_v38  ;;  %v222_v29 = vadd.f32 1.0, %v2397_v22  ;;  %v2129_v38 = vmul.f32 -1.442695, %v2807_v62 }
 0x21b   :  { %4399 = vst [vmem:[#allocation72_spill] sm:$0xff] %v3406_v33  ;;  %1524 = vperm.xlu0 %2217, %v3398_v20   ;;  %v3428_v23 = vpop.eup %2400  ;;  %2426 = vrcp.f32 %v217_v10 }
 0x21c   :  { %v2403_v4 = vpop.eup %2402  ;;  %2428 = vrcp.f32 %v220_v50 }
 0x21d   :  { %v3413_v58 = vpop.xlane.xlu1 %1382  ;;  %1544 = vperm.xlu1 %2216, %v3404_v59   ;;  %v2405_v40 = vpop.eup %2404  ;;  %2430 = vpow2.f32 %v2124_v30  ;;  %v221_v52 = vadd.f32 1.0, %v2403_v4 }
 0x21e   :  { %4400 = vst [vmem:[#allocation73_spill] sm:$0xff] %v3413_v58  ;;  %v3418_v61 = vpop.xlane.xlu0 %1379  ;;  %v2126_v58 = vmul.f32 -1.442695, %v2799_v55  ;;  %v3434_v48 = vpop.eup %2406  ;;  %2432 = vpow2.f32 %v2127_v15  ;;  %v224_v22 = vadd.f32 1.0, %v2405_v40  ;;  %v2128_v15 = vmul.f32 -1.442695, %v2817_v16 }
 0x21f   :  { %4401 = vst [vmem:[#allocation74_spill] sm:$0xff] %v3418_v61  ;;  %1539 = vperm.xlu0 %2217, %v3410_v7   ;;  %v3440_v10 = vpop.eup %2408  ;;  %2434 = vrcp.f32 %v219_v28  ;;  %v2130_v40 = vmul.f32 -1.442695, %v2836_v37 }
 0x220   :  { %v3442_v50 = vpop.eup %2410  ;;  %2436 = vrcp.f32 %v222_v29 }
 0x221   :  { %v3425_v0 = vpop.xlane.xlu1 %1388  ;;  %1554 = vperm.xlu1 %2216, %v3416_v1   ;;  %v2413_v30 = vpop.eup %2412  ;;  %2438 = vpow2.f32 %v2126_v58 }
 0x222   :  { %4402 = vst [vmem:[#allocation75_spill] sm:$0xff] %v3425_v0  ;;  %v3430_v35 = vpop.xlane.xlu0 %1385  ;;  %v3448_v62 = vpop.eup %2414  ;;  %2440 = vpow2.f32 %v2129_v38  ;;  %v223_v29 = vadd.f32 1.0, %v2413_v30 }
 0x223   :  { %4403 = vst [vmem:[#allocation76_spill] sm:$0xff] %v3430_v35  ;;  %1549 = vperm.xlu0 %2217, %v3422_v32   ;;  %v2417_v28 = vpop.eup %2416  ;;  %2442 = vrcp.f32 %v221_v52 }
 0x224   :  { %v3454_v4 = vpop.eup %2418  ;;  %2444 = vrcp.f32 %v224_v22  ;;  %v226_v38 = vadd.f32 1.0, %v2417_v28 }
 0x225   :  { %v3437_v0 = vpop.xlane.xlu1 %1394  ;;  %1564 = vperm.xlu1 %2216, %v3428_v23   ;;  %v3458_v16 = vpop.eup %2420  ;;  %2446 = vpow2.f32 %v2128_v15 }
 0x226   :  { %4404 = vst [vmem:[#allocation77_spill] sm:$0xff] %v3437_v0  ;;  %v3444_v55 = vpop.xlane.xlu0 %1391  ;;  %v2131_v0 = vmul.f32 -1.442695, %v2827_v27  ;;  %v2423_v27 = vpop.eup %2422 }
 0x227   :  { %4405 = vst [vmem:[#allocation78_spill] sm:$0xff] %v3444_v55  ;;  %1559 = vperm.xlu0 %2217, %v3434_v48   ;;  %v2425_v52 = vpop.eup %2424  ;;  %v225_v15 = vadd.f32 1.0, %v2423_v27 }
 0x228   :  { %2448 = vpow2.f32 %v2131_v0  ;;  %v3465_v55 = vpop.eup %2426  ;;  %v228_v28 = vadd.f32 1.0, %v2425_v52 }
 0x229   :  { %v3451_v35 = vpop.xlane.xlu1 %1400  ;;  %1574 = vperm.xlu1 %2216, %v3440_v10   ;;  %2450 = vrcp.f32 %v223_v29  ;;  %v3469_v30 = vpop.eup %2428 }
 0x22a   :  { %4406 = vst [vmem:[#allocation79_spill] sm:$0xff] %v3451_v35  ;;  %v3456_v58 = vpop.xlane.xlu0 %1397  ;;  %2452 = vpow2.f32 %v2130_v40  ;;  %v2431_v37 = vpop.eup %2430 }
 0x22b   :  { %4407 = vst [vmem:[#allocation80_spill] sm:$0xff] %v3456_v58  ;;  %1569 = vperm.xlu0 %2217, %v3442_v50   ;;  %2454 = vrcp.f32 %v226_v38 }
 0x22c   :  { %2456 = vrcp.f32 %v225_v15 }
 0x22d   :  { %v3462_v35 = vpop.xlane.xlu1 %1406  ;;  %1584 = vperm.xlu1 %2216, %v3448_v62   ;;  %2458 = vrcp.f32 %v228_v28 }
 0x22e   :  { %4408 = vst [vmem:[#allocation81_spill] sm:$0xff] %v3462_v35  ;;  %v3467_v22 = vpop.xlane.xlu0 %1403  ;;  %v2433_v35 = vpop.eup %2432 }
 0x22f   :  { %4409 = vst [vmem:[#allocation82_spill] sm:$0xff] %v3467_v22  ;;  %1579 = vperm.xlu0 %2217, %v3454_v4   ;;  %v3475_v58 = vpop.eup %2434  ;;  %v227_v22 = vadd.f32 1.0, %v2431_v37  ;;  %v230_v27 = vadd.f32 1.0, %v2433_v35 }
 0x230   :  { %v3479_v29 = vpop.eup %2436 }
 0x231   :  { %v3472_v0 = vpop.xlane.xlu1 %1412  ;;  %1594 = vperm.xlu1 %2216, %v3458_v16   ;;  %v2439_v40 = vpop.eup %2438  ;;  %2460 = vrcp.f32 %v227_v22 }
 0x232   :  { %4410 = vst [vmem:[#allocation83_spill] sm:$0xff] %v3472_v0  ;;  %v3477_v19 = vpop.xlane.xlu0 %1409  ;;  %v2441_v52 = vpop.eup %2440  ;;  %2462 = vrcp.f32 %v230_v27 }
 0x233   :  { %4411 = vst [vmem:[#allocation84_spill] sm:$0xff] %v3477_v19  ;;  %1589 = vperm.xlu0 %2217, %v3465_v55   ;;  %v3485_v0 = vpop.eup %2442  ;;  %v229_v19 = vadd.f32 1.0, %v2439_v40  ;;  %v232_v37 = vadd.f32 1.0, %v2441_v52 }
 0x234   :  { %v3489_v11 = vpop.eup %2444 }
 0x235   :  { %v3482_v38 = vpop.xlane.xlu1 %1418  ;;  %1604 = vperm.xlu1 %2216, %v3469_v30   ;;  %v2447_v15 = vpop.eup %2446  ;;  %2464 = vrcp.f32 %v229_v19 }
 0x236   :  { %4412 = vst [vmem:[#allocation85_spill] sm:$0xff] %v3482_v38  ;;  %v3487_v61 = vpop.xlane.xlu0 %1415  ;;  %v2449_v35 = vpop.eup %2448  ;;  %2466 = vrcp.f32 %v232_v37 }
 0x237   :  { %4413 = vst [vmem:[#allocation86_spill] sm:$0xff] %v3487_v61  ;;  %1599 = vperm.xlu0 %2217, %v3475_v58   ;;  %v3497_v33 = vpop.eup %2450  ;;  %v231_v61 = vadd.f32 1.0, %v2447_v15  ;;  %v234_v40 = vadd.f32 1.0, %v2449_v35 }
 0x238   :  { %v2453_v22 = vpop.eup %2452 }
 0x239   :  { %v3492_v28 = vpop.xlane.xlu1 %1424  ;;  %1614 = vperm.xlu1 %2216, %v3479_v29   ;;  %v3503_v27 = vpop.eup %2454  ;;  %2468 = vrcp.f32 %v231_v61 }
 0x23a   :  { %4414 = vst [vmem:[#allocation87_spill] sm:$0xff] %v3492_v28  ;;  %v3495_v38 = vpop.xlane.xlu0 %1421  ;;  %v233_v28 = vadd.f32 1.0, %v2453_v22  ;;  %2470 = vrcp.f32 %v234_v40 }
 0x23b   :  { %4415 = vst [vmem:[#allocation88_spill] sm:$0xff] %v3495_v38  ;;  %1609 = vperm.xlu0 %2217, %v3485_v0   ;;  %v3508_v38 = vpop.eup %2456 }
 0x23c   :  { %v3513_v15 = vpop.eup %2458  ;;  %2472 = vrcp.f32 %v233_v28 }
 0x23d   :  { %v3500_v45 = vpop.xlane.xlu1 %1430  ;;  %1624 = vperm.xlu1 %2216, %v3489_v11  }
 0x23e   :  { %4416 = vst [vmem:[#allocation89_spill] sm:$0xff] %v3500_v45  ;;  %v3505_v52 = vpop.xlane.xlu0 %1427  ;;  %v3518_v35 = vpop.eup %2460 }
 0x23f   :  { %4417 = vst [vmem:[#allocation90_spill] sm:$0xff] %v3505_v52  ;;  %1619 = vperm.xlu0 %2217, %v3497_v33   ;;  %v3523_v22 = vpop.eup %2462 }
 0x241   :  { %v3510_v19 = vpop.xlane.xlu1 %1436  ;;  %1634 = vperm.xlu1 %2216, %v3503_v27  }
 0x242   :  { %4418 = vst [vmem:[#allocation91_spill] sm:$0xff] %v3510_v19  ;;  %v3515_v37 = vpop.xlane.xlu0 %1433  ;;  %v3528_v19 = vpop.eup %2464 }
 0x243   :  { %4419 = vst [vmem:[#allocation92_spill] sm:$0xff] %v3515_v37  ;;  %1629 = vperm.xlu0 %2217, %v3508_v38   ;;  %4422 = vst [vmem:[#allocation95_spill] sm:$0xff] %v3528_v19  ;;  %v3533_v28 = vpop.eup %2466 }
 0x245   :  { %v3520_v61 = vpop.xlane.xlu1 %1442  ;;  %1644 = vperm.xlu1 %2216, %v3513_v15  }
 0x246   :  { %4420 = vst [vmem:[#allocation93_spill] sm:$0xff] %v3520_v61  ;;  %v3525_v40 = vpop.xlane.xlu0 %1439  ;;  %v3536_v37 = vpop.eup %2468 }
 0x247   :  { %4421 = vst [vmem:[#allocation94_spill] sm:$0xff] %v3525_v40  ;;  %1639 = vperm.xlu0 %2217, %v3518_v35   ;;  %4424 = vst [vmem:[#allocation97_spill] sm:$0xff] %v3536_v37  ;;  %v3541_v40 = vpop.eup %2470 }
 0x248   :  { %4426 = vst [vmem:[#allocation99_spill] sm:$0xff] %v3541_v40 }
 0x249   :  { %v3530_v45 = vpop.xlane.xlu1 %1448  ;;  %1654 = vperm.xlu1 %2216, %v3523_v22  }
 0x24a   :  { %4423 = vst [vmem:[#allocation96_spill] sm:$0xff] %v3530_v45  ;;  %v3538_v61 = vpop.xlane.xlu0 %1445  ;;  %v3546_v45 = vpop.eup %2472 }
 0x24b   :  { %1649 = vperm.xlu0 %2217, %v3528_v19   ;;  %4425 = vst [vmem:[#allocation98_spill] sm:$0xff] %v3538_v61  ;;  %v302_v61 = vadd.f32 %v3215_v57, %v3387_v42 }
 0x24d   :  { %v344_v52 = vpop.permute.xlu1 %343  ;;  %1664 = vperm.xlu1 %2216, %v3533_v28  }
 0x24e   :  { %v3549_v5 = vpop.xlane.xlu0 %1451  ;;  %v3551_v25 = vmul.f32 %v344_v52, %v301_v49  ;;  %v300_v52 = vadd.f32 %v3239_v39, %v3398_v20  ;;  %v303_v39 = vadd.f32 %v3251_v43, %v3410_v7 }
 0x24f   :  { %1659 = vperm.xlu0 %2217, %v3536_v37   ;;  %4427 = vst [vmem:[#allocation100_spill] sm:$0xff] %v3549_v5 }
 0x250   :  { %4428 = vst [vmem:[#allocation101_spill] sm:$0xff] %v3551_v25  ;;  %v909_v41 = vadd.f32 %v2942_v54, %v3551_v25 }
 0x251   :  { %v349_v9 = vpop.permute.xlu1 %348  ;;  %1674 = vperm.xlu1 %2216, %v3541_v40   ;;  %v304_v40 = vadd.f32 %v3221_v26, %v3404_v59 }
 0x252   :  { %v3562_v19 = vmul.f32 %v349_v9, %v302_v61  ;;  %v941_v36 = vmul.f32 0.015625, %v909_v41 }
 0x253   :  { %1669 = vperm.xlu0 %2217, %v3546_v45  }
 0x254   :  { %v910_v25 = vadd.f32 %v2946_v60, %v3562_v19 }
 0x255   :  { %v359_v46 = vpop.permute.xlu1 %358 }
 0x256   :  { %v334_v37 = vpop.permute.xlu0 %333  ;;  %v3570_v2 = vmul.f32 %v359_v46, %v304_v40  ;;  %v308_v46 = vadd.f32 %v3245_v34, %v3428_v23  ;;  %v942_v41 = vmul.f32 0.015625, %v910_v25 }
 0x257   :  { %v3564_v49 = vmul.f32 %v334_v37, %v299_v31  ;;  %v306_v31 = vadd.f32 %v3233_v14, %v3416_v1  ;;  %v973_v37 = vmax.f32 %v941_v36, 0.0 }
 0x258   :  { %v912_v61 = vadd.f32 %v2956_v12, %v3570_v2  ;;  %v974_v23 = vmax.f32 %v942_v41, 0.0 }
 0x259   :  { %v369_v5 = vpop.permute.xlu1 %368  ;;  %v907_v57 = vadd.f32 %v2932_v44, %v3564_v49  ;;  %v1005_v36 = vmin.f32 %v973_v37, 1.0  ;;  %v307_v37 = vadd.f32 %v3277_v63, %v3434_v48 }
 0x25a   :  { %v339_v42 = vpop.permute.xlu0 %338  ;;  %v3586_v14 = vmul.f32 %v369_v5, %v306_v31  ;;  %v310_v5 = vadd.f32 %v3257_v53, %v3440_v10  ;;  %v312_v53 = vadd.f32 %v3270_v21, %v3448_v62  ;;  %v1006_v41 = vmin.f32 %v974_v23, 1.0  ;;  %v4430_v21 = vld [vmem:[#allocation59_spill] sm:$0xff] }
 0x25b   :  { %v939_v54 = vmul.f32 0.015625, %v907_v57  ;;  %v3574_v26 = vmul.f32 %v339_v42, %v300_v52  ;;  %v944_v42 = vmul.f32 0.015625, %v912_v61  ;;  %v314_v62 = vadd.f32 %v4430_v21, %v3458_v16 }
 0x25d   :  { %v379_v9 = vpop.permute.xlu1 %378  ;;  %v971_v20 = vmax.f32 %v939_v54, 0.0  ;;  %v908_v59 = vadd.f32 %v2936_v47, %v3574_v26  ;;  %v305_v54 = vadd.f32 %v3263_v51, %v3422_v32  ;;  %v976_v10 = vmax.f32 %v944_v42, 0.0 }
 0x25e   :  { %v354_v40 = vpop.permute.xlu0 %353  ;;  %v3599_v51 = vmul.f32 %v379_v9, %v308_v46  ;;  %v309_v46 = vadd.f32 %v3289_v8, %v3442_v50 }
 0x25f   :  { %v1003_v52 = vmin.f32 %v971_v20, 1.0  ;;  %v940_v57 = vmul.f32 0.015625, %v908_v59  ;;  %v3588_v1 = vmul.f32 %v354_v40, %v303_v39  ;;  %v914_v39 = vadd.f32 %v2964_v24, %v3586_v14 }
 0x260   :  { %v1008_v42 = vmin.f32 %v976_v10, 1.0 }
 0x261   :  { %v389_v43 = vpop.permute.xlu1 %388  ;;  %v972_v7 = vmax.f32 %v940_v57, 0.0  ;;  %1741 = vrot.lane.b32.xlu0 %v1003_v52, %s2573_s14  ;;  %v911_v34 = vadd.f32 %v2952_v6, %v3588_v1  ;;  %v946_v52 = vmul.f32 0.015625, %v914_v39  ;;  %v4429_v57 = vld [vmem:[#allocation4_spill] sm:$0xff] }
 0x262   :  { %v364_v25 = vpop.permute.xlu0 %363 }
 0x263   :  { %v1004_v31 = vmin.f32 %v972_v7, 1.0  ;;  %v943_v32 = vmul.f32 0.015625, %v911_v34  ;;  %v3601_v20 = vmul.f32 %v364_v25, %v305_v54  ;;  %v916_v54 = vadd.f32 %v4429_v57, %v3599_v51 }
 0x264   :  { %v3615_v7 = vmul.f32 %v389_v43, %v310_v5  ;;  %v978_v23 = vmax.f32 %v946_v52, 0.0  ;;  %v4432_v5 = vld [vmem:[#allocation6_spill] sm:$0xff] }
 0x265   :  { %v399_v59 = vpop.permute.xlu1 %398  ;;  %1743 = vrot.lane.b32.xlu1 %v1004_v31, %s2573_s14  ;;  %1745 = vrot.lane.b32.xlu0 %v1005_v36, %s2573_s14  ;;  %v975_v61 = vmax.f32 %v943_v32, 0.0  ;;  %v913_v9 = vadd.f32 %v2960_v18, %v3601_v20  ;;  %v948_v43 = vmul.f32 0.015625, %v916_v54 }
 0x266   :  { %v374_v40 = vpop.permute.xlu0 %373  ;;  %v3622_v8 = vmul.f32 %v399_v59, %v312_v53  ;;  %v918_v31 = vadd.f32 %v4432_v5, %v3615_v7  ;;  %v4436_v59 = vld [vmem:[#allocation61_spill] sm:$0xff]  ;;  %v1010_v21 = vmin.f32 %v978_v23, 1.0 }
 0x267   :  { %v1007_v63 = vmin.f32 %v975_v61, 1.0  ;;  %v945_v48 = vmul.f32 0.015625, %v913_v9  ;;  %v3620_v25 = vmul.f32 %v374_v40, %v307_v37  ;;  %v4434_v61 = vld [vmem:[#allocation3_spill] sm:$0xff]  ;;  %v4435_v37 = vld [vmem:[#allocation5_spill] sm:$0xff]  ;;  %v311_v53 = vadd.f32 %v4436_v59, %v3454_v4 }
 0x268   :  { %4431 = vst [vmem:[#allocation4_spill] sm:$0xff] %v3622_v8 }
 0x269   :  { %v409_v36 = vpop.permute.xlu1 %408  ;;  %1747 = vrot.lane.b32.xlu1 %v1006_v41, %s2573_s14  ;;  %v977_v34 = vmax.f32 %v945_v48, 0.0  ;;  %1749 = vrot.lane.b32.xlu0 %v1007_v63, %s2573_s14  ;;  %v915_v16 = vadd.f32 %v4434_v61, %v3620_v25  ;;  %v4437_v41 = vld [vmem:[#allocation8_spill] sm:$0xff] }
 0x26a   :  { %v384_v50 = vpop.permute.xlu0 %383  ;;  %v920_v52 = vadd.f32 %v4437_v41, %v3622_v8  ;;  %v3638_v54 = vmul.f32 %v409_v36, %v314_v62  ;;  %v4438_v63 = vld [vmem:[#allocation60_spill] sm:$0xff] }
 0x26b   :  { %v3627_v39 = vmul.f32 %v384_v50, %v309_v46  ;;  %v1009_v32 = vmin.f32 %v977_v34, 1.0  ;;  %v947_v40 = vmul.f32 0.015625, %v915_v16  ;;  %v316_v48 = vadd.f32 %v4438_v63, %v3469_v30 }
 0x26c   :  { %v980_v34 = vmax.f32 %v948_v43, 0.0  ;;  %v950_v50 = vmul.f32 0.015625, %v918_v31  ;;  %v952_v62 = vmul.f32 0.015625, %v920_v52  ;;  %v4443_v52 = vld [vmem:[#allocation7_spill] sm:$0xff] }
 0x26d   :  { %4433 = vst [vmem:[#allocation59_spill] sm:$0xff] %v3627_v39  ;;  %v419_v10 = vpop.permute.xlu1 %418  ;;  %v917_v9 = vadd.f32 %v4435_v37, %v3627_v39  ;;  %1751 = vrot.lane.b32.xlu1 %v1008_v42, %s2573_s14  ;;  %1753 = vrot.lane.b32.xlu0 %v1009_v32, %s2573_s14  ;;  %v979_v42 = vmax.f32 %v947_v40, 0.0  ;;  %v4439_v37 = vld [vmem:[#allocation63_spill] sm:$0xff]  ;;  %v4440_v32 = vld [vmem:[#allocation10_spill] sm:$0xff] }
 0x26e   :  { %v394_v46 = vpop.permute.xlu0 %393  ;;  %v313_v4 = vadd.f32 %v4439_v37, %v3465_v55  ;;  %v922_v8 = vadd.f32 %v4440_v32, %v3638_v54  ;;  %v3648_v41 = vmul.f32 %v419_v10, %v316_v48  ;;  %v1012_v23 = vmin.f32 %v980_v34, 1.0 }
 0x26f   :  { %v949_v39 = vmul.f32 0.015625, %v917_v9  ;;  %v1011_v36 = vmin.f32 %v979_v42, 1.0  ;;  %v982_v43 = vmax.f32 %v950_v50, 0.0  ;;  %v3650_v31 = vmul.f32 %v394_v46, %v311_v53  ;;  %v4441_v9 = vld [vmem:[#allocation62_spill] sm:$0xff]  ;;  %v4445_v42 = vld [vmem:[#allocation9_spill] sm:$0xff] }
 0x270   :  { %v318_v40 = vadd.f32 %v4441_v9, %v3479_v29  ;;  %v984_v10 = vmax.f32 %v952_v62, 0.0  ;;  %v954_v48 = vmul.f32 0.015625, %v922_v8  ;;  %v315_v46 = vadd.f32 %v3327_v13, %v3475_v58  ;;  %v2562_v8 = vld [vmem:[%s4245_s1 + $0xa8] sm:$0xff] }
 0x271   :  { %v429_v16 = vpop.permute.xlu1 %428  ;;  %v981_v59 = vmax.f32 %v949_v39, 0.0  ;;  %1755 = vrot.lane.b32.xlu1 %v1010_v21, %s2573_s14  ;;  %1757 = vrot.lane.b32.xlu0 %v1011_v36, %s2573_s14  ;;  %v919_v63 = vadd.f32 %v4443_v52, %v3650_v31  ;;  %v4444_v21 = vld [vmem:[#allocation12_spill] sm:$0xff]  ;;  %v1014_v34 = vmin.f32 %v982_v43, 1.0  ;;  %v320_v36 = vadd.f32 %v2562_v8, %v3489_v11 }
 0x272   :  { %v404_v30 = vpop.permute.xlu0 %403  ;;  %v924_v53 = vadd.f32 %v4444_v21, %v3648_v41  ;;  %v317_v13 = vadd.f32 %v3335_v17, %v3485_v0  ;;  %v1016_v58 = vmin.f32 %v984_v10, 1.0  ;;  %v986_v43 = vmax.f32 %v954_v48, 0.0  ;;  %v4448_v10 = vld [vmem:[#allocation11_spill] sm:$0xff] }
 0x273   :  { %v1013_v55 = vmin.f32 %v981_v59, 1.0  ;;  %v3655_v39 = vmul.f32 %v404_v30, %v313_v4  ;;  %v951_v50 = vmul.f32 0.015625, %v919_v63  ;;  %v3666_v59 = vmul.f32 %v429_v16, %v318_v40  ;;  %v4446_v63 = vld [vmem:[#allocation14_spill] sm:$0xff] }
 0x274   :  { %v956_v16 = vmul.f32 0.015625, %v924_v53 }
 0x275   :  { %4442 = vst [vmem:[#allocation6_spill] sm:$0xff] %v3655_v39  ;;  %v439_v37 = vpop.permute.xlu1 %438  ;;  %1759 = vrot.lane.b32.xlu1 %v1012_v23, %s2573_s14  ;;  %v921_v4 = vadd.f32 %v4445_v42, %v3655_v39  ;;  %1761 = vrot.lane.b32.xlu0 %v1013_v55, %s2573_s14  ;;  %v983_v30 = vmax.f32 %v951_v50, 0.0  ;;  %v926_v39 = vadd.f32 %v4446_v63, %v3666_v59 }
 0x276   :  { %v414_v29 = vpop.permute.xlu0 %413  ;;  %v3680_v11 = vmul.f32 %v439_v37, %v320_v36  ;;  %v319_v37 = vadd.f32 %v3345_v3, %v3497_v33  ;;  %v2564_v3 = vld [vmem:[%s4245_s1 + $0xc8] sm:$0xff] }
 0x277   :  { %v953_v23 = vmul.f32 0.015625, %v921_v4  ;;  %v1015_v40 = vmin.f32 %v983_v30, 1.0  ;;  %v3678_v42 = vmul.f32 %v414_v29, %v315_v46  ;;  %v1018_v46 = vmin.f32 %v986_v43, 1.0  ;;  %v4449_v29 = vld [vmem:[#allocation16_spill] sm:$0xff]  ;;  %v4453_v43 = vld [vmem:[#allocation18_spill] sm:$0xff] }
 0x278   :  { %4447 = vst [vmem:[#allocation3_spill] sm:$0xff] %v3680_v11  ;;  %v928_v4 = vadd.f32 %v4449_v29, %v3680_v11  ;;  %v958_v36 = vmul.f32 0.015625, %v926_v39  ;;  %v324_v33 = vadd.f32 %v2564_v3, %v3513_v15 }
 0x279   :  { %v449_v62 = vpop.permute.xlu1 %448  ;;  %1763 = vrot.lane.b32.xlu1 %v1014_v34, %s2573_s14  ;;  %v985_v55 = vmax.f32 %v953_v23, 0.0  ;;  %v2563_v34 = vld [vmem:[%s4245_s1 + $0xb8] sm:$0xff]  ;;  %v923_v48 = vadd.f32 %v4448_v10, %v3678_v42  ;;  %1765 = vrot.lane.b32.xlu0 %v1015_v40, %s2573_s14 }
 0x27a   :  { %v424_v9 = vpop.permute.xlu0 %423  ;;  %v322_v50 = vadd.f32 %v2563_v34, %v3503_v27  ;;  %v988_v27 = vmax.f32 %v956_v16, 0.0  ;;  %v4450_v23 = vld [vmem:[#allocation13_spill] sm:$0xff]  ;;  %v960_v39 = vmul.f32 0.015625, %v928_v4  ;;  %v321_v16 = vadd.f32 %v3354_v56, %v3508_v38  ;;  %v4454_v4 = vld [vmem:[#allocation15_spill] sm:$0xff]  ;;  %v2566_v56 = vld [vmem:[%s4245_s1 + $0xc0] sm:$0xff] }
 0x27b   :  { %v1017_v0 = vmin.f32 %v985_v55, 1.0  ;;  %v3689_v53 = vmul.f32 %v424_v9, %v317_v13  ;;  %v955_v30 = vmul.f32 0.015625, %v923_v48  ;;  %v323_v38 = vadd.f32 %v2566_v56, %v3518_v35  ;;  %v4461_v56 = vld [vmem:[#allocation95_spill] sm:$0xff] }
 0x27c   :  { %v3698_v34 = vmul.f32 %v449_v62, %v322_v50 }
 0x27d   :  { %v459_v17 = vpop.permute.xlu1 %458  ;;  %1767 = vrot.lane.b32.xlu1 %v1016_v58, %s2573_s14  ;;  %v925_v55 = vadd.f32 %v4450_v23, %v3689_v53  ;;  %v987_v9 = vmax.f32 %v955_v30, 0.0  ;;  %1769 = vrot.lane.b32.xlu0 %v1017_v0, %s2573_s14  ;;  %v2565_v0 = vld [vmem:[%s4245_s1 + $0xd8] sm:$0xff] }
 0x27e   :  { %v434_v8 = vpop.permute.xlu0 %433  ;;  %4451 = vst [vmem:[#allocation61_spill] sm:$0xff] %v3698_v34  ;;  %v930_v62 = vadd.f32 %v4453_v43, %v3698_v34  ;;  %v326_v48 = vadd.f32 %v2565_v0, %v3523_v22  ;;  %v992_v22 = vmax.f32 %v960_v39, 0.0 }
 0x27f   :  { %v957_v40 = vmul.f32 0.015625, %v925_v55  ;;  %v3701_v58 = vmul.f32 %v434_v8, %v319_v37  ;;  %v1020_v37 = vmin.f32 %v988_v27, 1.0  ;;  %v990_v8 = vmax.f32 %v958_v36, 0.0 }
 0x280   :  { %v1019_v30 = vmin.f32 %v987_v9, 1.0  ;;  %v962_v27 = vmul.f32 0.015625, %v930_v62  ;;  %v3724_v36 = vmul.f32 %v459_v17, %v324_v33  ;;  %v1024_v17 = vmin.f32 %v992_v22, 1.0 }
 0x281   :  { %v469_v13 = vpop.permute.xlu1 %468  ;;  %4452 = vst [vmem:[#allocation60_spill] sm:$0xff] %v3701_v58  ;;  %1771 = vrot.lane.b32.xlu1 %v1018_v46, %s2573_s14  ;;  %v989_v15 = vmax.f32 %v957_v40, 0.0  ;;  %v927_v3 = vadd.f32 %v4454_v4, %v3701_v58  ;;  %v1022_v0 = vmin.f32 %v990_v8, 1.0  ;;  %v4458_v4 = vld [vmem:[#allocation17_spill] sm:$0xff]  ;;  %v2567_v8 = vld [vmem:[%s4245_s1 + $0xe8] sm:$0xff] }
 0x282   :  { %v444_v50 = vpop.permute.xlu0 %443  ;;  %1773 = vrot.lane.b32.xlu0 %v1019_v30, %s2573_s14  ;;  %v3728_v34 = vmul.f32 %v469_v13, %v326_v48  ;;  %v4457_v30 = vld [vmem:[#allocation20_spill] sm:$0xff]  ;;  %v994_v33 = vmax.f32 %v962_v27, 0.0 }
 0x283   :  { %v1021_v46 = vmin.f32 %v989_v15, 1.0  ;;  %v3726_v9 = vmul.f32 %v444_v50, %v321_v16  ;;  %v959_v15 = vmul.f32 0.015625, %v927_v3  ;;  %v4460_v50 = vld [vmem:[#allocation22_spill] sm:$0xff]  ;;  %v328_v3 = vadd.f32 %v2567_v8, %v3533_v28 }
 0x284   :  { %4456 = vst [vmem:[#allocation10_spill] sm:$0xff] %v3728_v34  ;;  %v934_v48 = vadd.f32 %v4460_v50, %v3728_v34 }
 0x285   :  { %v479_v55 = vpop.permute.xlu1 %478  ;;  %1775 = vrot.lane.b32.xlu1 %v1020_v37, %s2573_s14  ;;  %4455 = vst [vmem:[#allocation63_spill] sm:$0xff] %v3726_v9  ;;  %v932_v37 = vadd.f32 %v4457_v30, %v3724_v36  ;;  %v991_v58 = vmax.f32 %v959_v15, 0.0  ;;  %v929_v11 = vadd.f32 %v4458_v4, %v3726_v9  ;;  %v4464_v15 = vld [vmem:[#allocation97_spill] sm:$0xff] }
 0x286   :  { %v454_v40 = vpop.permute.xlu0 %453  ;;  %1777 = vrot.lane.b32.xlu0 %v1021_v46, %s2573_s14  ;;  %v2568_v46 = vld [vmem:[%s4245_s1 + $0xd0] sm:$0xff]  ;;  %v966_v50 = vmul.f32 0.015625, %v934_v48  ;;  %v4468_v4 = vld [vmem:[#allocation65_spill] sm:$0xff] }
 0x287   :  { %v3735_v35 = vmul.f32 %v454_v40, %v323_v38  ;;  %v1023_v62 = vmin.f32 %v991_v58, 1.0  ;;  %v964_v13 = vmul.f32 0.015625, %v932_v37  ;;  %v961_v16 = vmul.f32 0.015625, %v929_v11  ;;  %v4462_v11 = vld [vmem:[#allocation19_spill] sm:$0xff]  ;;  %v2569_v40 = vld [vmem:[%s4245_s1 + $0xf8] sm:$0xff]  ;;  %s2574_s1 = smov 127  }
 0x288   :  { %v325_v38 = vadd.f32 %v2568_v46, %v4461_v56  ;;  %v4465_v37 = vld [vmem:[#allocation67_spill] sm:$0xff]  ;;  %v1026_v46 = vmin.f32 %v994_v33, 1.0  ;;  %2474 = vrcp.f32 %v4468_v4  ;;  %v4471_v33 = vld [vmem:[#allocation24_spill] sm:$0xff]  ;;  %v4473_v4 = vld [vmem:[#allocation26_spill] sm:$0xff] }
 0x289   :  { %v489_v43 = vpop.permute.xlu1 %488  ;;  %4459 = vst [vmem:[#allocation62_spill] sm:$0xff] %v3735_v35  ;;  %1779 = vrot.lane.b32.xlu1 %v1022_v0, %s2573_s14  ;;  %v993_v58 = vmax.f32 %v961_v16, 0.0  ;;  %v931_v27 = vadd.f32 %v4462_v11, %v3735_v35  ;;  %v4463_v0 = vld [vmem:[#allocation99_spill] sm:$0xff]  ;;  %v327_v8 = vadd.f32 %v4465_v37, %v4464_v15  ;;  %v996_v34 = vmax.f32 %v964_v13, 0.0  ;;  %v4475_v37 = vld [vmem:[#allocation69_spill] sm:$0xff] }
 0x28a   :  { %v464_v39 = vpop.permute.xlu0 %463  ;;  %1781 = vrot.lane.b32.xlu0 %v1023_v62, %s2573_s14  ;;  %v330_v28 = vadd.f32 %v2569_v40, %v4463_v0  ;;  %v3760_v35 = vmul.f32 %v479_v55, %v328_v3  ;;  %v4472_v55 = vld [vmem:[#allocation21_spill] sm:$0xff] }
 0x28b   :  { %v1025_v16 = vmin.f32 %v993_v58, 1.0  ;;  %v963_v9 = vmul.f32 0.015625, %v931_v27  ;;  %v3762_v62 = vmul.f32 %v464_v39, %v325_v38  ;;  %v1028_v3 = vmin.f32 %v996_v34, 1.0 }
 0x28c   :  { %4466 = vst [vmem:[#allocation7_spill] sm:$0xff] %v3760_v35  ;;  %v3767_v0 = vmul.f32 %v489_v43, %v330_v28  ;;  %v936_v13 = vadd.f32 %v4471_v33, %v3760_v35  ;;  %v998_v38 = vmax.f32 %v966_v50, 0.0  ;;  %v4477_v50 = vld [vmem:[#allocation70_spill] sm:$0xff]  ;;  %v4479_v35 = vld [vmem:[#allocation72_spill] sm:$0xff]  ;;  %v4490_v33 = vld [vmem:[#allocation31_spill] sm:$0xff] }
 0x28d   :  { %v3748_v22 = vpop.permute.xlu1 %1519  ;;  %1783 = vrot.lane.b32.xlu1 %v1024_v17, %s2573_s14  ;;  %4467 = vst [vmem:[#allocation12_spill] sm:$0xff] %v3762_v62  ;;  %v995_v40 = vmax.f32 %v963_v9, 0.0  ;;  %v933_v39 = vadd.f32 %v4472_v55, %v3762_v62  ;;  %v4474_v9 = vld [vmem:[#allocation64_spill] sm:$0xff] }
 0x28e   :  { %v474_v56 = vpop.permute.xlu0 %473  ;;  %4469 = vst [vmem:[#allocation14_spill] sm:$0xff] %v3767_v0  ;;  %1785 = vrot.lane.b32.xlu0 %v1025_v16, %s2573_s14  ;;  %v938_v43 = vadd.f32 %v4473_v4, %v3767_v0  ;;  %2476 = vrcp.f32 %v4474_v9  ;;  %v968_v27 = vmul.f32 0.015625, %v936_v13 }
 0x28f   :  { %v3770_v17 = vmul.f32 %v474_v56, %v327_v8  ;;  %v1027_v58 = vmin.f32 %v995_v40, 1.0  ;;  %v965_v28 = vmul.f32 0.015625, %v933_v39  ;;  %2478 = vrcp.f32 %v4475_v37  ;;  %v4476_v8 = vld [vmem:[#allocation23_spill] sm:$0xff]  ;;  %v4478_v39 = vld [vmem:[#allocation66_spill] sm:$0xff] }
 0x290   :  { %v329_v56 = vadd.f32 %v4477_v50, %v3546_v45  ;;  %v1030_v40 = vmin.f32 %v998_v38, 1.0  ;;  %v1000_v0 = vmax.f32 %v968_v27, 0.0  ;;  %v970_v9 = vmul.f32 0.015625, %v938_v43  ;;  %v4481_v27 = vld [vmem:[#allocation68_spill] sm:$0xff]  ;;  %v4482_v43 = vld [vmem:[#allocation25_spill] sm:$0xff]  ;;  %v4483_v50 = vld [vmem:[#allocation74_spill] sm:$0xff] }
 0x291   :  { %v3764_v11 = vpop.permute.xlu1 %1529  ;;  %4470 = vst [vmem:[#allocation11_spill] sm:$0xff] %v3770_v17  ;;  %1787 = vrot.lane.b32.xlu1 %v1026_v46, %s2573_s14  ;;  %v935_v46 = vadd.f32 %v4476_v8, %v3770_v17  ;;  %v997_v34 = vmax.f32 %v965_v28, 0.0  ;;  %2480 = vrcp.f32 %v4478_v39  ;;  %v4486_v39 = vld [vmem:[#allocation28_spill] sm:$0xff] }
 0x292   :  { %v484_v48 = vpop.permute.xlu0 %483  ;;  %1789 = vrot.lane.b32.xlu0 %v1027_v58, %s2573_s14  ;;  %2482 = vrcp.f32 %v4479_v35  ;;  %v1032_v45 = vmin.f32 %v1000_v0, 1.0  ;;  %v1002_v28 = vmax.f32 %v970_v9, 0.0 }
 0x293   :  { %v967_v13 = vmul.f32 0.015625, %v935_v46  ;;  %v1029_v4 = vmin.f32 %v997_v34, 1.0  ;;  %v3790_v58 = vmul.f32 %v484_v48, %v329_v56  ;;  %2484 = vrcp.f32 %v4481_v27  ;;  %v4484_v56 = vld [vmem:[#allocation71_spill] sm:$0xff] }
 0x294   :  { %2486 = vrcp.f32 %v4483_v50 }
 0x295   :  { %v1535_v15 = vpop.permute.xlu1 %1534  ;;  %1791 = vrot.lane.b32.xlu1 %v1028_v3, %s2573_s14  ;;  %v999_v17 = vmax.f32 %v967_v13, 0.0  ;;  %4480 = vst [vmem:[#allocation16_spill] sm:$0xff] %v3790_v58  ;;  %v937_v46 = vadd.f32 %v4482_v43, %v3790_v58  ;;  %v2475_v35 = vpop.eup %2474  ;;  %2488 = vrcp.f32 %v4484_v56  ;;  %v4485_v13 = vld [vmem:[#allocation76_spill] sm:$0xff]  ;;  %v4489_v56 = vld [vmem:[#allocation78_spill] sm:$0xff] }
 0x296   :  { %v1525_v16 = vpop.permute.xlu0 %1524  ;;  %1793 = vrot.lane.b32.xlu0 %v1029_v4, %s2573_s14  ;;  %v1034_v4 = vmin.f32 %v1002_v28, 1.0  ;;  %2490 = vrcp.f32 %v4485_v13  ;;  %v1456_v27 = vmul.f32 %v2475_v35, %v4486_v39  ;;  %v4491_v39 = vld [vmem:[#allocation75_spill] sm:$0xff] }
 0x297   :  { %v1031_v38 = vmin.f32 %v999_v17, 1.0 }
 0x298   :  { %v1678_v43 = vmul.f32 %v1525_v16, %v1456_v27  ;;  %v4492_v27 = vld [vmem:[#allocation29_spill] sm:$0xff] }
 0x299   :  { %v1545_v37 = vpop.permute.xlu1 %1544  ;;  %1795 = vrot.lane.b32.xlu1 %v1030_v40, %s2573_s14  ;;  %v969_v40 = vmul.f32 0.015625, %v937_v46  ;;  %v4487_v46 = vld [vmem:[#allocation73_spill] sm:$0xff] }
 0x29a   :  { %v1540_v3 = vpop.permute.xlu0 %1539  ;;  %1797 = vrot.lane.b32.xlu0 %v1031_v38, %s2573_s14  ;;  %2492 = vrcp.f32 %v4487_v46  ;;  %v4488_v38 = vld [vmem:[#allocation27_spill] sm:$0xff] }
 0x29b   :  { %v1001_v0 = vmax.f32 %v969_v40, 0.0  ;;  %v2477_v9 = vpop.eup %2476  ;;  %2494 = vrcp.f32 %v4489_v56  ;;  %v4494_v56 = vld [vmem:[#allocation33_spill] sm:$0xff] }
 0x29c   :  { %v2479_v50 = vpop.eup %2478  ;;  %v1454_v8 = vmul.f32 %v2477_v9, %v4488_v38  ;;  %2496 = vrcp.f32 %v4491_v39  ;;  %v4493_v38 = vld [vmem:[#allocation80_spill] sm:$0xff] }
 0x29d   :  { %v1555_v34 = vpop.permute.xlu1 %1554  ;;  %1799 = vrot.lane.b32.xlu1 %v1032_v45, %s2573_s14  ;;  %v1033_v58 = vmin.f32 %v1001_v0, 1.0  ;;  %v1460_v13 = vmul.f32 %v2479_v50, %v4490_v33  ;;  %2498 = vrcp.f32 %v4493_v38  ;;  %v4498_v38 = vld [vmem:[#allocation35_spill] sm:$0xff] }
 0x29e   :  { %v1550_v48 = vpop.permute.xlu0 %1549  ;;  %v2481_v40 = vpop.eup %2480 }
 0x29f   :  { %1801 = vrot.lane.b32.xlu0 %v1033_v58, %s2573_s14  ;;  %v2483_v35 = vpop.eup %2482  ;;  %v1680_v16 = vmul.f32 %v1535_v15, %v1460_v13  ;;  %v1458_v9 = vmul.f32 %v2481_v40, %v4492_v27  ;;  %v4495_v15 = vld [vmem:[#allocation77_spill] sm:$0xff]  ;;  %v4496_v13 = vld [vmem:[#allocation30_spill] sm:$0xff] }
 0x2a0   :  { %v2485_v46 = vpop.eup %2484  ;;  %v1464_v33 = vmul.f32 %v2483_v35, %v4494_v56  ;;  %2500 = vrcp.f32 %v4495_v15  ;;  %v4497_v27 = vld [vmem:[#allocation82_spill] sm:$0xff]  ;;  %v4501_v15 = vld [vmem:[#allocation84_spill] sm:$0xff] }
 0x2a1   :  { %v1565_v17 = vpop.permute.xlu1 %1564  ;;  %1803 = vrot.lane.b32.xlu1 %v1034_v4, %s2573_s14  ;;  %v1677_v4 = vmul.f32 %v3748_v22, %v1454_v8  ;;  %v1679_v50 = vmul.f32 %v3764_v11, %v1458_v9  ;;  %v1462_v39 = vmul.f32 %v2485_v46, %v4496_v13  ;;  %2502 = vrcp.f32 %v4497_v27  ;;  %v4499_v9 = vld [vmem:[#allocation79_spill] sm:$0xff]  ;;  %v4502_v13 = vld [vmem:[#allocation37_spill] sm:$0xff] }
 0x2a2   :  { %v1560_v45 = vpop.permute.xlu0 %1559  ;;  %v1682_v8 = vmul.f32 %v1545_v37, %v1464_v33  ;;  %2504 = vrcp.f32 %v4499_v9  ;;  %v4500_v37 = vld [vmem:[#allocation32_spill] sm:$0xff]  ;;  %v4505_v9 = vld [vmem:[#allocation86_spill] sm:$0xff] }
 0x2a3   :  { %1869 = vrot.lane.b32.xlu0 %v1677_v4, %s2574_s1  ;;  %2506 = vrcp.f32 %v4501_v15 }
 0x2a5   :  { %v1575_v28 = vpop.permute.xlu1 %1574  ;;  %1871 = vrot.lane.b32.xlu1 %v1678_v43, %s2574_s1  ;;  %v2487_v43 = vpop.eup %2486 }
 0x2a6   :  { %v1570_v0 = vpop.permute.xlu0 %1569  ;;  %v2489_v4 = vpop.eup %2488  ;;  %v1468_v62 = vmul.f32 %v2487_v43, %v4498_v38 }
 0x2a7   :  { %1873 = vrot.lane.b32.xlu0 %v1679_v50, %s2574_s1  ;;  %v2491_v35 = vpop.eup %2490  ;;  %v1466_v33 = vmul.f32 %v2489_v4, %v4500_v37  ;;  %v4506_v37 = vld [vmem:[#allocation39_spill] sm:$0xff] }
 0x2a8   :  { %v1684_v11 = vmul.f32 %v1555_v34, %v1468_v62  ;;  %v2493_v50 = vpop.eup %2492  ;;  %v1472_v27 = vmul.f32 %v2491_v35, %v4502_v13  ;;  %v4504_v62 = vld [vmem:[#allocation34_spill] sm:$0xff] }
 0x2a9   :  { %v1585_v58 = vpop.permute.xlu1 %1584  ;;  %1875 = vrot.lane.b32.xlu1 %v1680_v16, %s2574_s1  ;;  %v1681_v16 = vmul.f32 %v1540_v3, %v1462_v39  ;;  %v2495_v43 = vpop.eup %2494  ;;  %v4503_v39 = vld [vmem:[#allocation81_spill] sm:$0xff]  ;;  %v1470_v34 = vmul.f32 %v2493_v50, %v4504_v62 }
 0x2aa   :  { %v1580_v22 = vpop.permute.xlu0 %1579  ;;  %v1686_v3 = vmul.f32 %v1565_v17, %v1472_v27  ;;  %2508 = vrcp.f32 %v4503_v39  ;;  %v1476_v15 = vmul.f32 %v2495_v43, %v4506_v37  ;;  %v4508_v17 = vld [vmem:[#allocation36_spill] sm:$0xff]  ;;  %v4510_v62 = vld [vmem:[#allocation41_spill] sm:$0xff] }
 0x2ab   :  { %1877 = vrot.lane.b32.xlu0 %v1681_v16, %s2574_s1  ;;  %v2497_v16 = vpop.eup %2496  ;;  %2510 = vrcp.f32 %v4505_v9  ;;  %v4509_v39 = vld [vmem:[#allocation88_spill] sm:$0xff] }
 0x2ac   :  { %v2499_v35 = vpop.eup %2498  ;;  %v1474_v27 = vmul.f32 %v2497_v16, %v4508_v17  ;;  %v4514_v17 = vld [vmem:[#allocation43_spill] sm:$0xff] }
 0x2ad   :  { %v1595_v40 = vpop.permute.xlu1 %1594  ;;  %1879 = vrot.lane.b32.xlu1 %v1682_v8, %s2574_s1  ;;  %v1683_v8 = vmul.f32 %v1550_v48, %v1466_v33  ;;  %v1688_v48 = vmul.f32 %v1575_v28, %v1476_v15  ;;  %v4507_v33 = vld [vmem:[#allocation83_spill] sm:$0xff]  ;;  %v1480_v9 = vmul.f32 %v2499_v35, %v4510_v62  ;;  %v4512_v28 = vld [vmem:[#allocation38_spill] sm:$0xff] }
 0x2ae   :  { %v1590_v56 = vpop.permute.xlu0 %1589  ;;  %2512 = vrcp.f32 %v4507_v33  ;;  %v4513_v33 = vld [vmem:[#allocation90_spill] sm:$0xff] }
 0x2af   :  { %1881 = vrot.lane.b32.xlu0 %v1683_v8, %s2574_s1  ;;  %v2501_v8 = vpop.eup %2500  ;;  %2514 = vrcp.f32 %v4509_v39 }
 0x2b0   :  { %v2503_v43 = vpop.eup %2502  ;;  %v1478_v15 = vmul.f32 %v2501_v8, %v4512_v28 }
 0x2b1   :  { %v1605_v46 = vpop.permute.xlu1 %1604  ;;  %1883 = vrot.lane.b32.xlu1 %v1684_v11, %s2574_s1  ;;  %v1685_v11 = vmul.f32 %v1560_v45, %v1470_v34  ;;  %v1690_v45 = vmul.f32 %v1585_v58, %v1480_v9  ;;  %v4511_v34 = vld [vmem:[#allocation85_spill] sm:$0xff]  ;;  %v1484_v39 = vmul.f32 %v2503_v43, %v4514_v17  ;;  %v4516_v58 = vld [vmem:[#allocation40_spill] sm:$0xff] }
 0x2b2   :  { %v1600_v38 = vpop.permute.xlu0 %1599  ;;  %2516 = vrcp.f32 %v4511_v34  ;;  %v4518_v34 = vld [vmem:[#allocation45_spill] sm:$0xff] }
 0x2b3   :  { %1885 = vrot.lane.b32.xlu0 %v1685_v11, %s2574_s1  ;;  %v2505_v11 = vpop.eup %2504  ;;  %2518 = vrcp.f32 %v4513_v33 }
 0x2b4   :  { %v2507_v35 = vpop.eup %2506  ;;  %v1482_v9 = vmul.f32 %v2505_v11, %v4516_v58 }
 0x2b5   :  { %v1615_v4 = vpop.permute.xlu1 %1614  ;;  %1887 = vrot.lane.b32.xlu1 %v1686_v3, %s2574_s1  ;;  %v1687_v3 = vmul.f32 %v1570_v0, %v1474_v27  ;;  %v1692_v0 = vmul.f32 %v1595_v40, %v1484_v39  ;;  %v4515_v27 = vld [vmem:[#allocation87_spill] sm:$0xff]  ;;  %v1488_v28 = vmul.f32 %v2507_v35, %v4518_v34  ;;  %v4520_v40 = vld [vmem:[#allocation42_spill] sm:$0xff] }
 0x2b6   :  { %v1610_v13 = vpop.permute.xlu0 %1609  ;;  %2520 = vrcp.f32 %v4515_v27  ;;  %v4522_v27 = vld [vmem:[#allocation47_spill] sm:$0xff] }
 0x2b7   :  { %1889 = vrot.lane.b32.xlu0 %v1687_v3, %s2574_s1  ;;  %v2509_v8 = vpop.eup %2508  ;;  %v4517_v3 = vld [vmem:[#allocation92_spill] sm:$0xff] }
 0x2b8   :  { %2522 = vrcp.f32 %v4517_v3  ;;  %v2511_v33 = vpop.eup %2510  ;;  %v1486_v39 = vmul.f32 %v2509_v8, %v4520_v40 }
 0x2b9   :  { %v1625_v50 = vpop.permute.xlu1 %1624  ;;  %1891 = vrot.lane.b32.xlu1 %v1688_v48, %s2574_s1  ;;  %v1689_v48 = vmul.f32 %v1580_v22, %v1478_v15  ;;  %v1694_v22 = vmul.f32 %v1605_v46, %v1488_v28  ;;  %v4519_v15 = vld [vmem:[#allocation89_spill] sm:$0xff]  ;;  %v1492_v58 = vmul.f32 %v2511_v33, %v4522_v27  ;;  %v4524_v46 = vld [vmem:[#allocation44_spill] sm:$0xff] }
 0x2ba   :  { %v1620_v37 = vpop.permute.xlu0 %1619  ;;  %2524 = vrcp.f32 %v4519_v15  ;;  %v4526_v15 = vld [vmem:[#allocation49_spill] sm:$0xff] }
 0x2bb   :  { %1893 = vrot.lane.b32.xlu0 %v1689_v48, %s2574_s1  ;;  %v2513_v11 = vpop.eup %2512  ;;  %v4521_v48 = vld [vmem:[#allocation94_spill] sm:$0xff]  ;;  %v1696_v34 = vmul.f32 %v1615_v4, %v1492_v58  ;;  %v4529_v58 = vld [vmem:[#allocation100_spill] sm:$0xff] }
 0x2bc   :  { %2526 = vrcp.f32 %v4521_v48  ;;  %v2515_v35 = vpop.eup %2514  ;;  %v1490_v28 = vmul.f32 %v2513_v11, %v4524_v46  ;;  %v4528_v4 = vld [vmem:[#allocation46_spill] sm:$0xff] }
 0x2bd   :  { %v1635_v16 = vpop.permute.xlu1 %1634  ;;  %1895 = vrot.lane.b32.xlu1 %v1690_v45, %s2574_s1  ;;  %v1691_v45 = vmul.f32 %v1590_v56, %v1482_v9  ;;  %v4523_v9 = vld [vmem:[#allocation91_spill] sm:$0xff]  ;;  %v1496_v40 = vmul.f32 %v2515_v35, %v4526_v15 }
 0x2be   :  { %v1630_v62 = vpop.permute.xlu0 %1629  ;;  %2528 = vrcp.f32 %v4523_v9 }
 0x2bf   :  { %1897 = vrot.lane.b32.xlu0 %v1691_v45, %s2574_s1  ;;  %v2517_v8 = vpop.eup %2516  ;;  %v4525_v45 = vld [vmem:[#allocation98_spill] sm:$0xff] }
 0x2c0   :  { %2530 = vrcp.f32 %v4525_v45  ;;  %v2519_v33 = vpop.eup %2518  ;;  %v1494_v27 = vmul.f32 %v2517_v8, %v4528_v4 }
 0x2c1   :  { %1899 = vrot.lane.b32.xlu1 %v1692_v0, %s2574_s1  ;;  %v1645_v43 = vpop.permute.xlu1 %1644  ;;  %v1693_v0 = vmul.f32 %v1600_v38, %v1486_v39  ;;  %v1698_v38 = vmul.f32 %v1625_v50, %v1496_v40  ;;  %v4527_v39 = vld [vmem:[#allocation93_spill] sm:$0xff]  ;;  %v4532_v50 = vld [vmem:[#allocation48_spill] sm:$0xff] }
 0x2c2   :  { %v1640_v17 = vpop.permute.xlu0 %1639  ;;  %2532 = vrcp.f32 %v4527_v39  ;;  %v4533_v40 = vld [vmem:[#allocation53_spill] sm:$0xff] }
 0x2c3   :  { %1901 = vrot.lane.b32.xlu0 %v1693_v0, %s2574_s1  ;;  %v2521_v11 = vpop.eup %2520  ;;  %2534 = vrcp.f32 %v4529_v58  ;;  %v4530_v0 = vld [vmem:[#allocation51_spill] sm:$0xff] }
 0x2c4   :  { %v1500_v9 = vmul.f32 %v2519_v33, %v4530_v0  ;;  %v1498_v15 = vmul.f32 %v2521_v11, %v4532_v50  ;;  %v4535_v0 = vld [vmem:[#allocation55_spill] sm:$0xff] }
 0x2c5   :  { %1903 = vrot.lane.b32.xlu1 %v1694_v22, %s2574_s1  ;;  %v1655_v56 = vpop.permute.xlu1 %1654  ;;  %v1695_v22 = vmul.f32 %v1610_v13, %v1490_v28  ;;  %v2523_v35 = vpop.eup %2522  ;;  %v4531_v28 = vld [vmem:[#allocation96_spill] sm:$0xff] }
 0x2c6   :  { %v1650_v3 = vpop.permute.xlu0 %1649  ;;  %v1700_v13 = vmul.f32 %v1635_v16, %v1500_v9  ;;  %2536 = vrcp.f32 %v4531_v28  ;;  %v1699_v33 = vmul.f32 %v1630_v62, %v1498_v15  ;;  %v4536_v62 = vld [vmem:[#allocation52_spill] sm:$0xff]  ;;  %v4537_v15 = vld [vmem:[#allocation57_spill] sm:$0xff] }
 0x2c7   :  { %1905 = vrot.lane.b32.xlu0 %v1695_v22, %s2574_s1  ;;  %v2525_v8 = vpop.eup %2524  ;;  %v1504_v22 = vmul.f32 %v2523_v35, %v4533_v40 }
 0x2c9   :  { %1907 = vrot.lane.b32.xlu1 %v1696_v34, %s2574_s1  ;;  %v1665_v46 = vpop.permute.xlu1 %1664  ;;  %v1697_v34 = vmul.f32 %v1620_v37, %v1494_v27  ;;  %v2527_v39 = vpop.eup %2526  ;;  %v1702_v4 = vmul.f32 %v1645_v43, %v1504_v22  ;;  %v4534_v37 = vld [vmem:[#allocation50_spill] sm:$0xff] }
 0x2ca   :  { %v1660_v48 = vpop.permute.xlu0 %1659  ;;  %v1502_v27 = vmul.f32 %v2525_v8, %v4534_v37  ;;  %v1508_v11 = vmul.f32 %v2527_v39, %v4535_v0 }
 0x2cb   :  { %1909 = vrot.lane.b32.xlu0 %v1697_v34, %s2574_s1  ;;  %v2529_v16 = vpop.eup %2528 }
 0x2cc   :  { %v1701_v34 = vmul.f32 %v1640_v17, %v1502_v27  ;;  %v1704_v35 = vmul.f32 %v1655_v56, %v1508_v11  ;;  %v1506_v43 = vmul.f32 %v2529_v16, %v4536_v62  ;;  %v4538_v17 = vld [vmem:[#allocation54_spill] sm:$0xff] }
 0x2cd   :  { %1911 = vrot.lane.b32.xlu1 %v1698_v38, %s2574_s1  ;;  %v1675_v58 = vpop.permute.xlu1 %1674  ;;  %v2531_v9 = vpop.eup %2530  ;;  %v4539_v27 = vld [vmem:[#allocation58_spill] sm:$0xff] }
 0x2ce   :  { %v1670_v45 = vpop.permute.xlu0 %1669  ;;  %v1512_v8 = vmul.f32 %v2531_v9, %v4537_v15  ;;  %v1703_v22 = vmul.f32 %v1650_v3, %v1506_v43 }
 0x2cf   :  { %1913 = vrot.lane.b32.xlu0 %v1699_v33, %s2574_s1  ;;  %v2533_v50 = vpop.eup %2532 }
 0x2d0   :  { %v2535_v40 = vpop.eup %2534  ;;  %v1706_v39 = vmul.f32 %v1665_v46, %v1512_v8  ;;  %v1510_v56 = vmul.f32 %v2533_v50, %v4538_v17 }
 0x2d1   :  { %1915 = vrot.lane.b32.xlu1 %v1700_v13, %s2574_s1  ;;  %v1516_v16 = vmul.f32 %v2535_v40, %v4539_v27 }
 0x2d2   :  { %v1705_v0 = vmul.f32 %v1660_v48, %v1510_v56 }
 0x2d3   :  { %v3876_v38 = vpop.permute.xlu0 %1741  ;;  %1917 = vrot.lane.b32.xlu0 %v1701_v34, %s2574_s1  ;;  %v2537_v37 = vpop.eup %2536  ;;  %v1708_v11 = vmul.f32 %v1675_v58, %v1516_v16  ;;  %v4540_v34 = vld [vmem:[#allocation56_spill] sm:$0xff] }
 0x2d4   :  { %v1514_v3 = vmul.f32 %v2537_v37, %v4540_v34 }
 0x2d5   :  { %1919 = vrot.lane.b32.xlu1 %v1702_v4, %s2574_s1 }
 0x2d7   :  { %v3882_v28 = vpop.permute.xlu1 %1743  ;;  %v3884_v13 = vpop.permute.xlu0 %1745  ;;  %1921 = vrot.lane.b32.xlu0 %v1703_v22, %s2574_s1 }
 0x2d9   :  { %1923 = vrot.lane.b32.xlu1 %v1704_v35, %s2574_s1  ;;  %v1707_v35 = vmul.f32 %v1670_v45, %v1514_v3  ;;  %v780_v3 = vsub.f32 %v3574_v26, %v2936_v47 }
 0x2db   :  { %v3890_v33 = vpop.permute.xlu1 %1747  ;;  %v3894_v4 = vpop.permute.xlu0 %1749  ;;  %1925 = vrot.lane.b32.xlu0 %v1705_v0, %s2574_s1 }
 0x2dd   :  { %1927 = vrot.lane.b32.xlu1 %v1706_v39, %s2574_s1 }
 0x2df   :  { %v3898_v9 = vpop.permute.xlu1 %1751  ;;  %v3902_v46 = vpop.permute.xlu0 %1753  ;;  %1929 = vrot.lane.b32.xlu0 %v1707_v35, %s2574_s1  ;;  %v779_v35 = vsub.f32 %v3564_v49, %v2932_v44  ;;  %v784_v44 = vsub.f32 %v3570_v2, %v2956_v12 }
 0x2e1   :  { %1931 = vrot.lane.b32.xlu1 %v1708_v11, %s2574_s1 }
 0x2e3   :  { %v3905_v62 = vpop.permute.xlu1 %1755  ;;  %v3908_v43 = vpop.permute.xlu0 %1757 }
 0x2e7   :  { %v3910_v50 = vpop.permute.xlu1 %1759  ;;  %v3912_v48 = vpop.permute.xlu0 %1761 }
 0x2eb   :  { %v3914_v58 = vpop.permute.xlu1 %1763  ;;  %v3916_v15 = vpop.permute.xlu0 %1765 }
 0x2ef   :  { %v3918_v8 = vpop.permute.xlu1 %1767  ;;  %v3920_v40 = vpop.permute.xlu0 %1769 }
 0x2f3   :  { %v3922_v22 = vpop.permute.xlu1 %1771 }
 0x2f4   :  { %v3924_v45 = vpop.permute.xlu0 %1773 }
 0x2f5   :  { %4541 = vst [vmem:[#allocation13_spill] sm:$0xff] %v3924_v45 }
 0x2f7   :  { %v3926_v39 = vpop.permute.xlu1 %1775 }
 0x2f8   :  { %v3928_v17 = vpop.permute.xlu0 %1777 }
 0x2f9   :  { %4542 = vst [vmem:[#allocation20_spill] sm:$0xff] %v3928_v17 }
 0x2fb   :  { %v3930_v56 = vpop.permute.xlu1 %1779 }
 0x2fc   :  { %4543 = vst [vmem:[#allocation95_spill] sm:$0xff] %v3930_v56  ;;  %v3932_v37 = vpop.permute.xlu0 %1781 }
 0x2fd   :  { %4544 = vst [vmem:[#allocation99_spill] sm:$0xff] %v3932_v37  ;;  %v782_v37 = vsub.f32 %v3562_v19, %v2946_v60  ;;  %v783_v60 = vsub.f32 %v3588_v1, %v2952_v6  ;;  %v785_v1 = vsub.f32 %v3601_v20, %v2960_v18  ;;  %v787_v18 = vsub.f32 %v3620_v25, %v4434_v61 }
 0x2ff   :  { %v3934_v27 = vpop.permute.xlu1 %1783  ;;  %v814_v47 = vmul.f32 0.015625, %v782_v37  ;;  %v788_v37 = vsub.f32 %v3599_v51, %v4429_v57  ;;  %v815_v6 = vmul.f32 0.015625, %v783_v60 }
 0x300   :  { %4545 = vst [vmem:[#allocation97_spill] sm:$0xff] %v3934_v27  ;;  %v3936_v16 = vpop.permute.xlu0 %1785  ;;  %v4552_v27 = vld [vmem:[#allocation2_spill] sm:$0xff] }
 0x301   :  { %4546 = vst [vmem:[#allocation67_spill] sm:$0xff] %v3936_v16  ;;  %v812_v16 = vmul.f32 0.015625, %v780_v3  ;;  %v846_v19 = vmax.f32 %v814_v47, 0.0  ;;  %v816_v3 = vmul.f32 0.015625, %v784_v44  ;;  %v820_v47 = vmul.f32 0.015625, %v788_v37 }
 0x302   :  { %v847_v60 = vmax.f32 %v815_v6, 0.0  ;;  %v790_v37 = vsub.f32 %v3615_v7, %v4432_v5 }
 0x303   :  { %v3938_v0 = vpop.permute.xlu1 %1787  ;;  %v844_v49 = vmax.f32 %v812_v16, 0.0  ;;  %v852_v61 = vmax.f32 %v820_v47, 0.0  ;;  %v4556_v47 = vld [vmem:[#allocation8_spill] sm:$0xff] }
 0x304   :  { %4547 = vst [vmem:[#allocation65_spill] sm:$0xff] %v3938_v0  ;;  %v3940_v11 = vpop.permute.xlu0 %1789  ;;  %v4553_v0 = vld [vmem:[#allocation101_spill] sm:$0xff] }
 0x305   :  { %4548 = vst [vmem:[#allocation64_spill] sm:$0xff] %v3940_v11  ;;  %v781_v56 = vsub.f32 %v4553_v0, %v4552_v27  ;;  %v811_v11 = vmul.f32 0.015625, %v779_v35  ;;  %v876_v27 = vmin.f32 %v844_v49, 1.0  ;;  %v786_v0 = vsub.f32 %v3586_v14, %v2964_v24 }
 0x306   :  { %v878_v14 = vmin.f32 %v846_v19, 1.0  ;;  %v817_v19 = vmul.f32 0.015625, %v785_v1 }
 0x307   :  { %v3942_v34 = vpop.permute.xlu1 %1791  ;;  %v813_v26 = vmul.f32 0.015625, %v781_v56  ;;  %v1967_v56 = vsel %vm1965_vm2, %v876_v27, %v3882_v28  ;;  %v818_v51 = vmul.f32 0.015625, %v786_v0 }
 0x308   :  { %4549 = vst [vmem:[#allocation69_spill] sm:$0xff] %v3942_v34  ;;  %v3950_v17 = vpop.permute.xlu0 %1793  ;;  %v1969_v20 = vsel %vm1965_vm2, %v878_v14, %v3890_v33  ;;  %v849_v14 = vmax.f32 %v817_v19, 0.0 }
 0x309   :  { %4551 = vst [vmem:[#allocation66_spill] sm:$0xff] %v3950_v17  ;;  %v845_v12 = vmax.f32 %v813_v26, 0.0  ;;  %v850_v0 = vmax.f32 %v818_v51, 0.0 }
 0x30b   :  { %v3948_v55 = vpop.permute.xlu1 %1795  ;;  %v877_v28 = vmin.f32 %v845_v12, 1.0  ;;  %v882_v51 = vmin.f32 %v850_v0, 1.0 }
 0x30c   :  { %4550 = vst [vmem:[#allocation70_spill] sm:$0xff] %v3948_v55  ;;  %v3958_v34 = vpop.permute.xlu0 %1797  ;;  %v843_v55 = vmax.f32 %v811_v11, 0.0  ;;  %v848_v11 = vmax.f32 %v816_v3, 0.0 }
 0x30d   :  { %v1968_v33 = vsel %vm1965_vm2, %v877_v28, %v3884_v13  ;;  %v884_v28 = vmin.f32 %v852_v61, 1.0  ;;  %v794_v61 = vsub.f32 %v3638_v54, %v4440_v32 }
 0x30e   :  { %v875_v2 = vmin.f32 %v843_v55, 1.0  ;;  %v880_v27 = vmin.f32 %v848_v11, 1.0 }
 0x30f   :  { %v3956_v45 = vpop.permute.xlu1 %1799  ;;  %v1975_v54 = vsel %vm1965_vm2, %v884_v28, %v3910_v50 }
 0x310   :  { %v1966_v55 = vsel %vm1965_vm2, %v875_v2, %v3876_v38  ;;  %v819_v2 = vmul.f32 0.015625, %v787_v18  ;;  %v1971_v7 = vsel %vm1965_vm2, %v880_v27, %v3898_v9  ;;  %v791_v27 = vsub.f32 %v3650_v31, %v4443_v52 }
 0x311   :  { %v3970_v35 = vpop.permute.xlu0 %1801 }
 0x313   :  { %v3962_v17 = vpop.permute.xlu1 %1803 }
 0x315   :  { %v1870_v44 = vpop.permute.xlu0 %1869 }
 0x316   :  { %v1999_v49 = vsel %vm1998_vm3, %v1966_v55, %v1870_v44  ;;  %v4557_v55 = vld [vmem:[#allocation4_spill] sm:$0xff] }
 0x317   :  { %v1872_v16 = vpop.permute.xlu1 %1871  ;;  %v2032_v3 = vsel %vm2031_vm4, %v1999_v49, 0.0  ;;  %v792_v44 = vsub.f32 %v4557_v55, %v4556_v47  ;;  %v851_v49 = vmax.f32 %v819_v2, 0.0 }
 0x318   :  { %v2000_v24 = vsel %vm1998_vm3, %v1967_v56, %v1872_v16  ;;  %2064 = vst [vmem:[%s4246_s2] sm:$0xff] %v2032_v3  ;;  %v4554_v56 = vld [vmem:[#allocation5_spill] sm:$0xff]  ;;  %v4555_v16 = vld [vmem:[#allocation59_spill] sm:$0xff] }
 0x319   :  { %v2033_v57 = vsel %vm2031_vm4, %v2000_v24, 0.0  ;;  %v1874_v12 = vpop.permute.xlu0 %1873  ;;  %v789_v6 = vsub.f32 %v4555_v16, %v4554_v56  ;;  %v879_v24 = vmin.f32 %v847_v60, 1.0  ;;  %v1973_v60 = vsel %vm1965_vm2, %v882_v51, %v3905_v62 }
 0x31a   :  { %2065 = vst [vmem:[%s4246_s2 + $0x8] sm:$0xff] %v2033_v57  ;;  %v2001_v5 = vsel %vm1998_vm3, %v1968_v33, %v1874_v12  ;;  %v822_v57 = vmul.f32 0.015625, %v790_v37  ;;  %v796_v33 = vsub.f32 %v3648_v41, %v4444_v21  ;;  %v883_v12 = vmin.f32 %v851_v49, 1.0 }
 0x31b   :  { %v1876_v26 = vpop.permute.xlu1 %1875  ;;  %v2034_v11 = vsel %vm2031_vm4, %v2001_v5, 0.0  ;;  %v1970_v18 = vsel %vm1965_vm2, %v879_v24, %v3894_v4  ;;  %v823_v16 = vmul.f32 0.015625, %v791_v27  ;;  %v826_v24 = vmul.f32 0.015625, %v794_v61  ;;  %v4560_v61 = vld [vmem:[#allocation3_spill] sm:$0xff] }
 0x31c   :  { %v2002_v38 = vsel %vm1998_vm3, %v1969_v20, %v1876_v26  ;;  %2066 = vst [vmem:[%s4246_s2 + $0x10] sm:$0xff] %v2034_v11  ;;  %v821_v26 = vmul.f32 0.015625, %v789_v6  ;;  %v854_v37 = vmax.f32 %v822_v57, 0.0  ;;  %v4558_v6 = vld [vmem:[#allocation9_spill] sm:$0xff]  ;;  %v1974_v11 = vsel %vm1965_vm2, %v883_v12, %v3908_v43 }
 0x31d   :  { %v2035_v25 = vsel %vm2031_vm4, %v2002_v38, 0.0  ;;  %v1878_v20 = vpop.permute.xlu0 %1877  ;;  %v881_v38 = vmin.f32 %v849_v14, 1.0  ;;  %v828_v14 = vmul.f32 0.015625, %v796_v33  ;;  %v795_v57 = vsub.f32 %v3678_v42, %v4448_v10 }
 0x31e   :  { %2067 = vst [vmem:[%s4246_s2 + $0x18] sm:$0xff] %v2035_v25  ;;  %v2003_v19 = vsel %vm1998_vm3, %v1970_v18, %v1878_v20  ;;  %v824_v25 = vmul.f32 0.015625, %v792_v44  ;;  %v853_v2 = vmax.f32 %v821_v26, 0.0  ;;  %v886_v5 = vmin.f32 %v854_v37, 1.0 }
 0x31f   :  { %v1880_v1 = vpop.permute.xlu1 %1879  ;;  %v2036_v0 = vsel %vm2031_vm4, %v2003_v19, 0.0  ;;  %v1972_v31 = vsel %vm1965_vm2, %v881_v38, %v3902_v46  ;;  %v858_v49 = vmax.f32 %v826_v24, 0.0  ;;  %v798_v26 = vsub.f32 %v3666_v59, %v4446_v63 }
 0x320   :  { %v2004_v13 = vsel %vm1998_vm3, %v1971_v7, %v1880_v1  ;;  %2068 = vst [vmem:[%s4246_s2 + $0x20] sm:$0xff] %v2036_v0  ;;  %v4559_v7 = vld [vmem:[#allocation6_spill] sm:$0xff]  ;;  %v856_v1 = vmax.f32 %v824_v25, 0.0  ;;  %v885_v51 = vmin.f32 %v853_v2, 1.0  ;;  %v1977_v47 = vsel %vm1965_vm2, %v886_v5, %v3914_v58 }
 0x321   :  { %v2037_v9 = vsel %vm2031_vm4, %v2004_v13, 0.0  ;;  %v1882_v52 = vpop.permute.xlu0 %1881  ;;  %v793_v41 = vsub.f32 %v4559_v7, %v4558_v6  ;;  %v860_v10 = vmax.f32 %v828_v14, 0.0  ;;  %v827_v19 = vmul.f32 0.015625, %v795_v57 }
 0x322   :  { %2069 = vst [vmem:[%s4246_s2 + $0x28] sm:$0xff] %v2037_v9  ;;  %v2005_v32 = vsel %vm1998_vm3, %v1972_v31, %v1882_v52  ;;  %v855_v9 = vmax.f32 %v823_v16, 0.0  ;;  %v888_v20 = vmin.f32 %v856_v1, 1.0  ;;  %v1976_v58 = vsel %vm1965_vm2, %v885_v51, %v3912_v48 }
 0x323   :  { %v1884_v3 = vpop.permute.xlu1 %1883  ;;  %v2038_v21 = vsel %vm2031_vm4, %v2005_v32, 0.0  ;;  %v825_v28 = vmul.f32 0.015625, %v793_v41  ;;  %v890_v37 = vmin.f32 %v858_v49, 1.0  ;;  %v830_v25 = vmul.f32 0.015625, %v798_v26  ;;  %v4561_v32 = vld [vmem:[#allocation15_spill] sm:$0xff] }
 0x324   :  { %v2006_v4 = vsel %vm1998_vm3, %v1973_v60, %v1884_v3  ;;  %2070 = vst [vmem:[%s4246_s2 + $0x30] sm:$0xff] %v2038_v21  ;;  %v797_v3 = vsub.f32 %v3689_v53, %v4450_v23  ;;  %v1979_v59 = vsel %vm1965_vm2, %v888_v20, %v3918_v8  ;;  %v887_v27 = vmin.f32 %v855_v9, 1.0  ;;  %v4563_v21 = vld [vmem:[#allocation18_spill] sm:$0xff]  ;;  %v4567_v20 = vld [vmem:[#allocation13_spill] sm:$0xff] }
 0x325   :  { %v2039_v62 = vsel %vm2031_vm4, %v2006_v4, 0.0  ;;  %v1886_v13 = vpop.permute.xlu0 %1885  ;;  %v857_v0 = vmax.f32 %v825_v28, 0.0  ;;  %v892_v23 = vmin.f32 %v860_v10, 1.0  ;;  %v859_v31 = vmax.f32 %v827_v19, 0.0  ;;  %v4568_v10 = vld [vmem:[#allocation19_spill] sm:$0xff] }
 0x326   :  { %2071 = vst [vmem:[%s4246_s2 + $0x38] sm:$0xff] %v2039_v62  ;;  %v2007_v55 = vsel %vm1998_vm3, %v1974_v11, %v1886_v13  ;;  %v800_v62 = vsub.f32 %v4560_v61, %v4449_v29  ;;  %v1978_v8 = vsel %vm1965_vm2, %v887_v27, %v3916_v15  ;;  %v829_v52 = vmul.f32 0.015625, %v797_v3  ;;  %v4570_v19 = vld [vmem:[#allocation95_spill] sm:$0xff]  ;;  %v4572_v61 = vld [vmem:[#allocation10_spill] sm:$0xff] }
 0x327   :  { %v1888_v56 = vpop.permute.xlu1 %1887  ;;  %v2040_v18 = vsel %vm2031_vm4, %v2007_v55, 0.0  ;;  %v1981_v29 = vsel %vm1965_vm2, %v890_v37, %v3922_v22  ;;  %v862_v7 = vmax.f32 %v830_v25, 0.0  ;;  %v804_v1 = vsub.f32 %v3724_v36, %v4457_v30  ;;  %v4565_v55 = vld [vmem:[#allocation17_spill] sm:$0xff]  ;;  %v4571_v25 = vld [vmem:[#allocation22_spill] sm:$0xff] }
 0x328   :  { %v2008_v46 = vsel %vm1998_vm3, %v1975_v54, %v1888_v56  ;;  %2072 = vst [vmem:[%s4246_s2 + $0x40] sm:$0xff] %v2040_v18  ;;  %v889_v54 = vmin.f32 %v857_v0, 1.0  ;;  %v4562_v56 = vld [vmem:[#allocation60_spill] sm:$0xff]  ;;  %v832_v41 = vmul.f32 0.015625, %v800_v62  ;;  %v891_v14 = vmin.f32 %v859_v31, 1.0 }
 0x329   :  { %v2041_v50 = vsel %vm2031_vm4, %v2008_v46, 0.0  ;;  %v1890_v60 = vpop.permute.xlu0 %1889  ;;  %v799_v16 = vsub.f32 %v4562_v56, %v4561_v32  ;;  %v4564_v46 = vld [vmem:[#allocation61_spill] sm:$0xff]  ;;  %v861_v11 = vmax.f32 %v829_v52, 0.0  ;;  %v1983_v13 = vsel %vm1965_vm2, %v892_v23, %v3926_v39 }
 0x32a   :  { %2073 = vst [vmem:[%s4246_s2 + $0x48] sm:$0xff] %v2041_v50  ;;  %v2009_v63 = vsel %vm1998_vm3, %v1976_v58, %v1890_v60  ;;  %v802_v5 = vsub.f32 %v4564_v46, %v4563_v21  ;;  %v1980_v24 = vsel %vm1965_vm2, %v889_v54, %v3920_v40  ;;  %v894_v9 = vmin.f32 %v862_v7, 1.0  ;;  %v4569_v58 = vld [vmem:[#allocation62_spill] sm:$0xff]  ;;  %v4576_v54 = vld [vmem:[#allocation97_spill] sm:$0xff] }
 0x32b   :  { %v1892_v44 = vpop.permute.xlu1 %1891  ;;  %v2042_v4 = vsel %vm2031_vm4, %v2009_v63, 0.0  ;;  %v864_v28 = vmax.f32 %v832_v41, 0.0  ;;  %v1982_v49 = vsel %vm1965_vm2, %v891_v14, %v4567_v20  ;;  %v803_v60 = vsub.f32 %v4569_v58, %v4568_v10  ;;  %v4579_v14 = vld [vmem:[#allocation99_spill] sm:$0xff] }
 0x32c   :  { %v2010_v43 = vsel %vm1998_vm3, %v1977_v47, %v1892_v44  ;;  %2074 = vst [vmem:[%s4246_s2 + $0x50] sm:$0xff] %v2042_v4  ;;  %v831_v47 = vmul.f32 0.015625, %v799_v16  ;;  %v4566_v44 = vld [vmem:[#allocation63_spill] sm:$0xff]  ;;  %v834_v18 = vmul.f32 0.015625, %v802_v5  ;;  %v1985_v3 = vsel %vm1965_vm2, %v894_v9, %v4570_v19  ;;  %v4577_v5 = vld [vmem:[#allocation24_spill] sm:$0xff] }
 0x32d   :  { %v2043_v42 = vsel %vm2031_vm4, %v2010_v43, 0.0  ;;  %v1894_v33 = vpop.permute.xlu0 %1893  ;;  %v801_v36 = vsub.f32 %v4566_v44, %v4565_v55  ;;  %v836_v43 = vmul.f32 0.015625, %v804_v1  ;;  %v806_v62 = vsub.f32 %v4572_v61, %v4571_v25  ;;  %v4582_v9 = vld [vmem:[#allocation11_spill] sm:$0xff] }
 0x32e   :  { %2075 = vst [vmem:[%s4246_s2 + $0x58] sm:$0xff] %v2043_v42  ;;  %v2011_v12 = vsel %vm1998_vm3, %v1978_v8, %v1894_v33  ;;  %v893_v42 = vmin.f32 %v861_v11, 1.0  ;;  %v866_v37 = vmax.f32 %v834_v18, 0.0  ;;  %v4573_v8 = vld [vmem:[#allocation20_spill] sm:$0xff]  ;;  %v835_v52 = vmul.f32 0.015625, %v803_v60  ;;  %v4585_v58 = vld [vmem:[#allocation67_spill] sm:$0xff] }
 0x32f   :  { %v1896_v38 = vpop.permute.xlu1 %1895  ;;  %v2044_v6 = vsel %vm2031_vm4, %v2011_v12, 0.0  ;;  %v833_v27 = vmul.f32 0.015625, %v801_v36  ;;  %v868_v23 = vmax.f32 %v836_v43, 0.0  ;;  %v4575_v12 = vld [vmem:[#allocation12_spill] sm:$0xff]  ;;  %v838_v46 = vmul.f32 0.015625, %v806_v62 }
 0x330   :  { %v2012_v48 = vsel %vm1998_vm3, %v1979_v59, %v1896_v38  ;;  %2076 = vst [vmem:[%s4246_s2 + $0x60] sm:$0xff] %v2044_v6  ;;  %v863_v38 = vmax.f32 %v831_v47, 0.0  ;;  %v1984_v33 = vsel %vm1965_vm2, %v893_v42, %v4573_v8  ;;  %v898_v21 = vmin.f32 %v866_v37, 1.0  ;;  %v4580_v47 = vld [vmem:[#allocation65_spill] sm:$0xff]  ;;  %v4588_v37 = vld [vmem:[#allocation16_spill] sm:$0xff] }
 0x331   :  { %v2045_v53 = vsel %vm2031_vm4, %v2012_v48, 0.0  ;;  %v1898_v50 = vpop.permute.xlu0 %1897  ;;  %v896_v48 = vmin.f32 %v864_v28, 1.0  ;;  %v870_v43 = vmax.f32 %v838_v46, 0.0 }
 0x332   :  { %2077 = vst [vmem:[%s4246_s2 + $0x68] sm:$0xff] %v2045_v53  ;;  %v2013_v51 = vsel %vm1998_vm3, %v1980_v24, %v1898_v50  ;;  %v895_v6 = vmin.f32 %v863_v38, 1.0  ;;  %v900_v50 = vmin.f32 %v868_v23, 1.0  ;;  %v1989_v55 = vsel %vm1965_vm2, %v898_v21, %v4580_v47 }
 0x333   :  { %v1900_v2 = vpop.permute.xlu1 %1899  ;;  %v2046_v30 = vsel %vm2031_vm4, %v2013_v51, 0.0  ;;  %v1987_v32 = vsel %vm1965_vm2, %v896_v48, %v4576_v54  ;;  %v867_v51 = vmax.f32 %v835_v52, 0.0  ;;  %v4587_v48 = vld [vmem:[#allocation25_spill] sm:$0xff] }
 0x334   :  { %v2014_v15 = vsel %vm1998_vm3, %v1981_v29, %v1900_v2  ;;  %2078 = vst [vmem:[%s4246_s2 + $0x70] sm:$0xff] %v2046_v30  ;;  %v4574_v29 = vld [vmem:[#allocation21_spill] sm:$0xff]  ;;  %v1986_v11 = vsel %vm1965_vm2, %v895_v6, %v4579_v14  ;;  %v809_v25 = vsub.f32 %v4588_v37, %v4587_v48 }
 0x335   :  { %v2047_v22 = vsel %vm2031_vm4, %v2014_v15, 0.0  ;;  %v1902_v26 = vpop.permute.xlu0 %1901  ;;  %v805_v2 = vsub.f32 %v4575_v12, %v4574_v29  ;;  %v865_v15 = vmax.f32 %v833_v27, 0.0 }
 0x336   :  { %2079 = vst [vmem:[%s4246_s2 + $0x78] sm:$0xff] %v2047_v22  ;;  %v2015_v59 = vsel %vm1998_vm3, %v1982_v49, %v1902_v26  ;;  %v4578_v22 = vld [vmem:[#allocation7_spill] sm:$0xff]  ;;  %v4583_v49 = vld [vmem:[#allocation26_spill] sm:$0xff]  ;;  %v841_v6 = vmul.f32 0.015625, %v809_v25 }
 0x337   :  { %v1904_v57 = vpop.permute.xlu1 %1903  ;;  %v2048_v0 = vsel %vm2031_vm4, %v2015_v59, 0.0  ;;  %v808_v1 = vsub.f32 %v4578_v22, %v4577_v5  ;;  %v897_v30 = vmin.f32 %v865_v15, 1.0  ;;  %v4584_v26 = vld [vmem:[#allocation14_spill] sm:$0xff] }
 0x338   :  { %v2016_v40 = vsel %vm1998_vm3, %v1983_v13, %v1904_v57  ;;  %2080 = vst [vmem:[%s4246_s2 + $0x80] sm:$0xff] %v2048_v0  ;;  %v837_v57 = vmul.f32 0.015625, %v805_v2  ;;  %v810_v42 = vsub.f32 %v4584_v26, %v4583_v49  ;;  %v4590_v2 = vld [vmem:[#allocation70_spill] sm:$0xff] }
 0x339   :  { %v2049_v39 = vsel %vm2031_vm4, %v2016_v40, 0.0  ;;  %v1906_v31 = vpop.permute.xlu0 %1905  ;;  %v4581_v40 = vld [vmem:[#allocation23_spill] sm:$0xff]  ;;  %v840_v20 = vmul.f32 0.015625, %v808_v1  ;;  %v1988_v60 = vsel %vm1965_vm2, %v897_v30, %v4585_v58  ;;  %v4591_v5 = vld [vmem:[#allocation66_spill] sm:$0xff] }
 0x33a   :  { %2081 = vst [vmem:[%s4246_s2 + $0x88] sm:$0xff] %v2049_v39  ;;  %v2017_v56 = vsel %vm1998_vm3, %v1984_v33, %v1906_v31  ;;  %v807_v28 = vsub.f32 %v4582_v9, %v4581_v40  ;;  %v869_v59 = vmax.f32 %v837_v57, 0.0  ;;  %v842_v8 = vmul.f32 0.015625, %v810_v42  ;;  %v4589_v31 = vld [vmem:[#allocation64_spill] sm:$0xff] }
 0x33b   :  { %v1908_v63 = vpop.permute.xlu1 %1907  ;;  %v2050_v7 = vsel %vm2031_vm4, %v2017_v56, 0.0  ;;  %v872_v23 = vmax.f32 %v840_v20, 0.0 }
 0x33c   :  { %v2018_v4 = vsel %vm1998_vm3, %v1985_v3, %v1908_v63  ;;  %2082 = vst [vmem:[%s4246_s2 + $0x90] sm:$0xff] %v2050_v7  ;;  %v899_v3 = vmin.f32 %v867_v51, 1.0  ;;  %v4586_v63 = vld [vmem:[#allocation69_spill] sm:$0xff]  ;;  %v901_v12 = vmin.f32 %v869_v59, 1.0  ;;  %v874_v21 = vmax.f32 %v842_v8, 0.0 }
 0x33d   :  { %v2051_v53 = vsel %vm2031_vm4, %v2018_v4, 0.0  ;;  %v1910_v13 = vpop.permute.xlu0 %1909  ;;  %v1991_v38 = vsel %vm1965_vm2, %v900_v50, %v4586_v63  ;;  %v839_v4 = vmul.f32 0.015625, %v807_v28 }
 0x33e   :  { %2083 = vst [vmem:[%s4246_s2 + $0x98] sm:$0xff] %v2051_v53  ;;  %v2019_v44 = vsel %vm1998_vm3, %v1986_v11, %v1910_v13  ;;  %v902_v53 = vmin.f32 %v870_v43, 1.0  ;;  %v1990_v52 = vsel %vm1965_vm2, %v899_v3, %v4589_v31  ;;  %v1992_v22 = vsel %vm1965_vm2, %v901_v12, %v4591_v5 }
 0x33f   :  { %v1912_v16 = vpop.permute.xlu1 %1911  ;;  %v2052_v18 = vsel %vm2031_vm4, %v2019_v44, 0.0  ;;  %v873_v13 = vmax.f32 %v841_v6, 0.0  ;;  %v906_v47 = vmin.f32 %v874_v21, 1.0 }
 0x340   :  { %v2020_v41 = vsel %vm1998_vm3, %v1987_v32, %v1912_v16  ;;  %2084 = vst [vmem:[%s4246_s2 + $0xa0] sm:$0xff] %v2052_v18  ;;  %v1993_v54 = vsel %vm1965_vm2, %v902_v53, %v4590_v2  ;;  %v871_v16 = vmax.f32 %v839_v4, 0.0 }
 0x341   :  { %v2053_v24 = vsel %vm2031_vm4, %v2020_v41, 0.0  ;;  %v1914_v19 = vpop.permute.xlu0 %1913  ;;  %v904_v41 = vmin.f32 %v872_v23, 1.0  ;;  %v905_v9 = vmin.f32 %v873_v13, 1.0 }
 0x342   :  { %2085 = vst [vmem:[%s4246_s2 + $0xa8] sm:$0xff] %v2053_v24  ;;  %v2021_v27 = vsel %vm1998_vm3, %v1988_v60, %v1914_v19  ;;  %v903_v11 = vmin.f32 %v871_v16, 1.0 }
 0x343   :  { %v1916_v36 = vpop.permute.xlu1 %1915  ;;  %v2054_v61 = vsel %vm2031_vm4, %v2021_v27, 0.0  ;;  %v1995_v24 = vsel %vm1965_vm2, %v904_v41, %v3956_v45 }
 0x344   :  { %v2022_v39 = vsel %vm1998_vm3, %v1989_v55, %v1916_v36  ;;  %2086 = vst [vmem:[%s4246_s2 + $0xb0] sm:$0xff] %v2054_v61  ;;  %v1994_v44 = vsel %vm1965_vm2, %v903_v11, %v3958_v34  ;;  %v1997_v36 = vsel %vm1965_vm2, %v906_v47, %v3962_v17 }
 0x345   :  { %v2055_v10 = vsel %vm2031_vm4, %v2022_v39, 0.0  ;;  %v1918_v29 = vpop.permute.xlu0 %1917  ;;  %v1996_v39 = vsel %vm1965_vm2, %v905_v9, %v3970_v35 }
 0x346   :  { %2087 = vst [vmem:[%s4246_s2 + $0xb8] sm:$0xff] %v2055_v10  ;;  %v2023_v32 = vsel %vm1998_vm3, %v1990_v52, %v1918_v29 }
 0x347   :  { %v1920_v0 = vpop.permute.xlu1 %1919  ;;  %v2056_v15 = vsel %vm2031_vm4, %v2023_v32, 0.0 }
 0x348   :  { %v2024_v62 = vsel %vm1998_vm3, %v1991_v38, %v1920_v0  ;;  %2088 = vst [vmem:[%s4246_s2 + $0xc0] sm:$0xff] %v2056_v15 }
 0x349   :  { %v2057_v33 = vsel %vm2031_vm4, %v2024_v62, 0.0  ;;  %v1922_v1 = vpop.permute.xlu0 %1921 }
 0x34a   :  { %2089 = vst [vmem:[%s4246_s2 + $0xc8] sm:$0xff] %v2057_v33  ;;  %v2025_v50 = vsel %vm1998_vm3, %v1992_v22, %v1922_v1 }
 0x34b   :  { %v1924_v56 = vpop.permute.xlu1 %1923  ;;  %v2058_v51 = vsel %vm2031_vm4, %v2025_v50, 0.0 }
 0x34c   :  { %v2026_v7 = vsel %vm1998_vm3, %v1993_v54, %v1924_v56  ;;  %2090 = vst [vmem:[%s4246_s2 + $0xd0] sm:$0xff] %v2058_v51 }
 0x34d   :  { %v2059_v46 = vsel %vm2031_vm4, %v2026_v7, 0.0  ;;  %v1926_v45 = vpop.permute.xlu0 %1925 }
 0x34e   :  { %2091 = vst [vmem:[%s4246_s2 + $0xd8] sm:$0xff] %v2059_v46  ;;  %v2027_v30 = vsel %vm1998_vm3, %v1994_v44, %v1926_v45 }
 0x34f   :  { %v1928_v14 = vpop.permute.xlu1 %1927  ;;  %v2060_v28 = vsel %vm2031_vm4, %v2027_v30, 0.0 }
 0x350   :  { %v2028_v57 = vsel %vm1998_vm3, %v1995_v24, %v1928_v14  ;;  %2092 = vst [vmem:[%s4246_s2 + $0xe0] sm:$0xff] %v2060_v28 }
 0x351   :  { %v2061_v55 = vsel %vm2031_vm4, %v2028_v57, 0.0  ;;  %v1930_v43 = vpop.permute.xlu0 %1929 }
 0x352   :  { %2093 = vst [vmem:[%s4246_s2 + $0xe8] sm:$0xff] %v2061_v55  ;;  %v2029_v17 = vsel %vm1998_vm3, %v1996_v39, %v1930_v43 }
 0x353   :  { %v1932_v40 = vpop.permute.xlu1 %1931  ;;  %v2062_v20 = vsel %vm2031_vm4, %v2029_v17, 0.0 }
 0x354   :  { %v2030_v18 = vsel %vm1998_vm3, %v1997_v36, %v1932_v40  ;;  %2094 = vst [vmem:[%s4246_s2 + $0xf0] sm:$0xff] %v2062_v20 }
 0x355   :  { %v2063_v34 = vsel %vm2031_vm4, %v2030_v18, 0.0 }
 0x356   :  { %2095 = vst [vmem:[%s4246_s2 + $0xf8] sm:$0xff] %v2063_v34 }

</bundles_post_ra>
